<compile_context>
chip_gen: v5e
topology: v5e:2x2
jax: 0.10.0
libtpu: 0.0.40
codegen_flags: <defaults>
</compile_context>

<pallas_src>
import jax
import jax.numpy as jnp
import numpy as np
from jax.experimental import pallas as pl
from jax.experimental.pallas import tpu as pltpu

LEAKY_SLOPE = 0.01   # torch nn.LeakyReLU default
BN_EPS = 1e-5        # torch nn.BatchNorm2d default


# ---------------------------------------------------------------------------
# Small helpers
# ---------------------------------------------------------------------------
def _round_up(x, m):
    return ((x + m - 1) // m) * m


def _largest_tile(n, cap):
    """Largest divisor of n that is a multiple of 16 (preferred) or 8 and <= cap.
    Returns None if no such divisor exists."""
    for mult in (16, 8):
        best = None
        t = mult
        lim = min(n, cap)
        while t <= lim:
            if n % t == 0:
                best = t
            t += mult
        if best is not None:
            return best
    return None


# ---------------------------------------------------------------------------
# Pallas kernels
# ---------------------------------------------------------------------------
def _matmul_bias_kernel(x_ref, w_ref, b_ref, o_ref):
    y = jnp.dot(x_ref[...], w_ref[...], preferred_element_type=jnp.float32)
    y = y + b_ref[...]
    o_ref[...] = y.astype(o_ref.dtype)


def _matmul_bias_stats_kernel(x_ref, w_ref, b_ref, o_ref, stats_ref):
    """Matmul+bias, plus per-tile channel sum / sum-of-squares for BatchNorm."""
    y = jnp.dot(x_ref[...], w_ref[...], preferred_element_type=jnp.float32)
    y = y + b_ref[...]
    o_ref[...] = y.astype(o_ref.dtype)
    s = jnp.sum(y, axis=0, keepdims=True)          # (1, C)
    ss = jnp.sum(y * y, axis=0, keepdims=True)     # (1, C)
    c = y.shape[1]
    row = jax.lax.broadcasted_iota(jnp.int32, (8, c), 0)
    stats = jnp.where(row == 0, s, jnp.where(row == 1, ss, 0.0))   # (8, C) f32
    stats_ref[...] = stats[None, :, :]


def _scale_shift_leaky_kernel(x_ref, scale_ref, shift_ref, o_ref):
    """Fused (x*scale + shift) -> LeakyReLU; math in f32, bf16 load/store."""
    y = x_ref[...].astype(jnp.float32) * scale_ref[...] + shift_ref[...]
    y = jnp.where(y > 0, y, LEAKY_SLOPE * y)
    o_ref[...] = y.astype(o_ref.dtype)


def _classifier_kernel(x_ref, w1_ref, b1_ref, w2_ref, b2_ref, w3_ref, b3_ref,
                       w4_ref, b4_ref, w5t_ref, b5_ref, o_ref):
    """Whole classifier in one kernel: all weights VMEM-resident, intermediates
    never leave VMEM, single (Mp, 1) output store."""
    def fc_relu(h, w_ref, b_ref):
        y = jnp.dot(h, w_ref[...], preferred_element_type=jnp.float32) + b_ref[...]
        return jnp.maximum(y, 0.0).astype(jnp.bfloat16)

    h = x_ref[...]                       # (Mp, 1600) bf16
    h = fc_relu(h, w1_ref, b1_ref)       # (Mp, 512)
    h = fc_relu(h, w2_ref, b2_ref)       # (Mp, 256)
    h = fc_relu(h, w3_ref, b3_ref)       # (Mp, 64)
    h = fc_relu(h, w4_ref, b4_ref)       # (Mp, 16)
    # fc5 (16 -> 1) as an elementwise product + lane reduction; an N=1 matmul
    # would waste the MXU and give an awkward single-lane result layout.
    y = jnp.sum(h.astype(jnp.float32) * w5t_ref[...], axis=-1, keepdims=True)
    y = jax.nn.sigmoid(y + b5_ref[...])
    o_ref[...] = y


# ---------------------------------------------------------------------------
# Pallas wrappers
# ---------------------------------------------------------------------------
def matmul_bias(x, w, b, *, out_dtype=jnp.bfloat16, with_stats=False, tm_cap=512):
    """y = x @ w + b on the MXU with bf16 inputs / f32 accumulation.
    Optionally also returns per-channel (sum, sum_of_squares) over the TRUE M rows."""
    M, K = x.shape
    K2, N = w.shape
    assert K == K2
    x = x.astype(jnp.bfloat16)
    w = w.astype(jnp.bfloat16)
    b2 = b.reshape(1, N).astype(jnp.float32)

    tm = _largest_tile(M, tm_cap)
    if tm is None:                       # tiny / awkward M: pad to a multiple of 8
        Mp = _round_up(M, 8)
        x = jnp.pad(x, ((0, Mp - M), (0, 0)))
        tm = _largest_tile(Mp, tm_cap) or Mp
    else:
        Mp = M
    T = Mp // tm

    if with_stats:
        out_shape = (jax.ShapeDtypeStruct((Mp, N), out_dtype),
                     jax.ShapeDtypeStruct((T, 8, N), jnp.float32))
        out_specs = (pl.BlockSpec((tm, N), lambda i: (i, 0)),
                     pl.BlockSpec((1, 8, N), lambda i: (i, 0, 0)))
        kernel = _matmul_bias_stats_kernel
    else:
        out_shape = jax.ShapeDtypeStruct((Mp, N), out_dtype)
        out_specs = pl.BlockSpec((tm, N), lambda i: (i, 0))
        kernel = _matmul_bias_kernel

    res = pl.pallas_call(
        kernel,
        out_shape=out_shape,
        grid=(T,),
        in_specs=[
            pl.BlockSpec((tm, K), lambda i: (i, 0)),
            pl.BlockSpec((K, N), lambda i: (0, 0)),
            pl.BlockSpec((1, N), lambda i: (0, 0)),
        ],
        out_specs=out_specs,
        compiler_params=pltpu.CompilerParams(
            dimension_semantics=("parallel",)),
    )(x, w, b2)

    if with_stats:
        y, stats = res
        s = jnp.sum(stats[:, 0, :], axis=0)
        ss = jnp.sum(stats[:, 1, :], axis=0)
        if Mp != M:
            # zero-padded rows contribute exactly y = b each; remove analytically
            bf = b.astype(jnp.float32)
            s = s - (Mp - M) * bf
            ss = ss - (Mp - M) * bf * bf
        return y[:M], (s, ss)
    return res[:M]


def batchnorm_leakyrelu(y_nhwc, stats, gamma, beta):
    """Training-mode BatchNorm2d (biased batch stats from the fused conv kernel)
    + LeakyReLU, applied as a lane-dense tiled elementwise Pallas kernel."""
    N, H, W, C = y_nhwc.shape
    M = N * H * W
    s, ss = stats
    mean = s / M
    var = ss / M - mean * mean                       # biased, as torch normalizes
    scale = (gamma / jnp.sqrt(var + BN_EPS)).astype(jnp.float32)
    shift = (beta - mean * scale).astype(jnp.float32)

    if (M * C) % 128 == 0 and 128 % C == 0:
        # lane-dense view: contiguous (M, C) slab seen as (M*C/128, 128); free in HBM.
        lanes = 128
        flat = y_nhwc.reshape(M * C // 128, lanes)
        scale_v = jnp.tile(scale, lanes // C)
        shift_v = jnp.tile(shift, lanes // C)
    else:
        lanes = C
        flat = y_nhwc.reshape(M, C)
        scale_v, shift_v = scale, shift

    R = flat.shape[0]
    tr = _largest_tile(R, 1024) or R
    out = pl.pallas_call(
        _scale_shift_leaky_kernel,
        out_shape=jax.ShapeDtypeStruct((R, lanes), jnp.bfloat16),
        grid=(R // tr,),
        in_specs=[
            pl.BlockSpec((tr, lanes), lambda i: (i, 0)),
            pl.BlockSpec((1, lanes), lambda i: (0, 0)),
            pl.BlockSpec((1, lanes), lambda i: (0, 0)),
        ],
        out_specs=pl.BlockSpec((tr, lanes), lambda i: (i, 0)),
        compiler_params=pltpu.CompilerParams(
            dimension_semantics=("parallel",)),
    )(flat, scale_v.reshape(1, lanes), shift_v.reshape(1, lanes))
    return out.reshape(N, H, W, C)


def classifier_forward(feats, p):
    """Fused fc1..fc5 (+ReLU/Sigmoid) in a single pallas_call."""
    M, K = feats.shape                               # (batch, 1600)
    Mp = max(_round_up(M, 8), 8)
    x = feats.astype(jnp.bfloat16)
    if Mp != M:
        x = jnp.pad(x, ((0, Mp - M), (0, 0)))

    w1 = p["fc1_w"].astype(jnp.bfloat16); b1 = p["fc1_b"].reshape(1, -1).astype(jnp.float32)
    w2 = p["fc2_w"].astype(jnp.bfloat16); b2 = p["fc2_b"].reshape(1, -1).astype(jnp.float32)
    w3 = p["fc3_w"].astype(jnp.bfloat16); b3 = p["fc3_b"].reshape(1, -1).astype(jnp.float32)
    w4 = p["fc4_w"].astype(jnp.bfloat16); b4 = p["fc4_b"].reshape(1, -1).astype(jnp.float32)
    w5t = p["fc5_w"].reshape(1, 16).astype(jnp.float32)      # (16,1) -> row vector
    b5 = p["fc5_b"].reshape(1, 1).astype(jnp.float32)

    out = pl.pallas_call(
        _classifier_kernel,
        out_shape=jax.ShapeDtypeStruct((Mp, 1), jnp.float32),
    )(x, w1, b1, w2, b2, w3, b3, w4, b4, w5t, b5)
    return out[:M]


# ---------------------------------------------------------------------------
# Glue: im2col + conv wrapper
# ---------------------------------------------------------------------------
def im2col(x, kh, kw, sh, sw, ph, pw):
    """x: (N, H, W, C) NHWC -> (N*OH*OW, kh*kw*C), column order (kh, kw, C)."""
    N, H, W, C = x.shape
    xp = jnp.pad(x, ((0, 0), (ph, ph), (pw, pw), (0, 0)))
    Hp, Wp = H + 2 * ph, W + 2 * pw
    OH = (Hp - kh) // sh + 1
    OW = (Wp - kw) // sw + 1
    patches = []
    for i in range(kh):
        for j in range(kw):
            patches.append(xp[:, i:i + sh * OH:sh, j:j + sw * OW:sw, :])
    cols = jnp.stack(patches, axis=3)                 # (N, OH, OW, kh*kw, C)
    return cols.reshape(N * OH * OW, kh * kw * C), OH, OW


# TODO(synk): replace im2col glue with an in-kernel conv (kh*kw accumulated
# matmuls over strided windows via manual DMA) to avoid materializing the
# 9x-inflated cols array in HBM; kept as XLA glue here, but in bf16 so its
# traffic is halved.
def conv2d(x_nhwc, w_oihw, b, stride, padding, *, with_stats=False):
    """Matches torch nn.Conv2d(Cin, Cout, 3, stride, padding) on NCHW data."""
    sh, sw = stride
    ph, pw = padding
    Cout, Cin, KH, KW = w_oihw.shape
    cols, OH, OW = im2col(x_nhwc.astype(jnp.bfloat16), KH, KW, sh, sw, ph, pw)
    # torch (Cout, Cin, KH, KW) -> (KH*KW*Cin, Cout) to match im2col column order
    w2 = jnp.transpose(w_oihw, (2, 3, 1, 0)).reshape(KH * KW * Cin, Cout)
    K = KH * KW * Cin
    Kp = _round_up(K, 8)                 # e.g. conv1: 27 -> 32, avoids ragged loads
    if Kp != K:
        cols = jnp.pad(cols, ((0, 0), (0, Kp - K)))
        w2 = jnp.pad(w2, ((0, Kp - K), (0, 0)))
    res = matmul_bias(cols, w2, b, with_stats=with_stats)
    N = x_nhwc.shape[0]
    if with_stats:
        y, stats = res
        return y.reshape(N, OH, OW, Cout), stats
    return res.reshape(N, OH, OW, Cout)


# ---------------------------------------------------------------------------
# Parameters (deterministic, shapes from ConvNet.__init__)
# ---------------------------------------------------------------------------
def init_params(key):
    ks = jax.random.split(key, 18)
    p = {}

    def convw(k, cout, cin):
        fan_in = cin * 9
        return jax.random.normal(k, (cout, cin, 3, 3), jnp.float32) / np.sqrt(fan_in)

    def linw(k, din, dout):
        return jax.random.normal(k, (din, dout), jnp.float32) / np.sqrt(din)

    def bias(k, n):
        return 0.01 * jax.random.normal(k, (n,), jnp.float32)

    p["conv1_w"], p["conv1_b"] = convw(ks[0], 16, 3), bias(ks[1], 16)
    p["conv2_w"], p["conv2_b"] = convw(ks[2], 32, 16), bias(ks[3], 32)
    p["conv3_w"], p["conv3_b"] = convw(ks[4], 64, 32), bias(ks[5], 64)
    p["conv4_w"], p["conv4_b"] = convw(ks[6], 64, 64), bias(ks[7], 64)
    # BatchNorm affine params (torch default init: weight=1, bias=0)
    for i, c in zip((1, 2, 3), (16, 32, 64)):
        p[f"bn{i}_g"] = jnp.ones((c,), jnp.float32)
        p[f"bn{i}_b"] = jnp.zeros((c,), jnp.float32)
    # classifier: Linear(1600,512) .. Linear(16,1); stored as (in, out)
    dims = [1600, 512, 256, 64, 16, 1]
    for li in range(5):
        p[f"fc{li+1}_w"] = linw(ks[8 + 2 * li], dims[li], dims[li + 1])
        p[f"fc{li+1}_b"] = bias(ks[9 + 2 * li], dims[li + 1])
    return p


# ---------------------------------------------------------------------------
# Forward pass (mirrors ConvNet.forward)
# ---------------------------------------------------------------------------
def convnet_forward(p, x_nchw):
    x = jnp.transpose(x_nchw, (0, 2, 3, 1)).astype(jnp.bfloat16)   # NCHW -> NHWC

    x, st = conv2d(x, p["conv1_w"], p["conv1_b"], (3, 2), (1, 1), with_stats=True)
    x = batchnorm_leakyrelu(x, st, p["bn1_g"], p["bn1_b"])
    x, st = conv2d(x, p["conv2_w"], p["conv2_b"], (2, 2), (1, 1), with_stats=True)
    x = batchnorm_leakyrelu(x, st, p["bn2_g"], p["bn2_b"])
    x, st = conv2d(x, p["conv3_w"], p["conv3_b"], (2, 2), (1, 1), with_stats=True)
    x = batchnorm_leakyrelu(x, st, p["bn3_g"], p["bn3_b"])
    x = conv2d(x, p["conv4_w"], p["conv4_b"], (3, 3), (3, 3), with_stats=False)

    # nn.Flatten on NCHW: transpose back so feature order is (C, H, W)
    N = x.shape[0]
    feats = jnp.transpose(x, (0, 3, 1, 2)).reshape(N, -1)           # (N, 1600)
    return classifier_forward(feats, p)


# ---------------------------------------------------------------------------
if __name__ == "__main__":
    key = jax.random.PRNGKey(0)
    pkey, xkey = jax.random.split(key)
    params = init_params(pkey)

    # 120x80 input -> encoder output (64, 5, 5) -> 1600 features, as required
    # by Linear(1600, 512).  (Smallest shapes consistent with the module.)
    x = jax.random.normal(xkey, (2, 3, 120, 80), dtype=jnp.float32)

    fwd = jax.jit(convnet_forward)
    out = fwd(params, x)
    out = jax.block_until_ready(out)

    assert out.shape == (2, 1), out.shape
    assert bool(jnp.all(jnp.isfinite(out)))
    assert bool(jnp.all((out >= 0.0) & (out <= 1.0)))   # sigmoid range
    print("KERNEL_OK")
</pallas_src>

<mosaic_0001>
module attributes {stable_mosaic.version = 11 : i64} {
  func.func @_matmul_bias_stats_kernel(%arg0: i32, %arg1: memref<400x32xbf16, #tpu.memory_space<vmem>>, %arg2: memref<32x16xbf16, #tpu.memory_space<vmem>>, %arg3: memref<1x16xf32, #tpu.memory_space<vmem>>, %arg4: memref<400x16xbf16, #tpu.memory_space<vmem>>, %arg5: memref<1x8x16xf32, #tpu.memory_space<vmem>>) attributes {dimension_semantics = [#tpu.dimension_semantics<parallel>], iteration_bounds = array<i64: 8>, scalar_prefetch = 0 : i64, scratch_operands = 0 : i64, tpu.core_type = #tpu.core_type<tc>, window_params = [{transform_indices = @transform_0, window_bounds = array<i64: 400, 32>}, {pipeline_mode = #tpu.pipeline_mode<synchronous>, transform_indices = @transform_1, window_bounds = array<i64: 32, 16>}, {pipeline_mode = #tpu.pipeline_mode<synchronous>, transform_indices = @transform_2, window_bounds = array<i64: 1, 16>}, {transform_indices = @transform_3, window_bounds = array<i64: 400, 16>}, {transform_indices = @transform_4, window_bounds = array<i64: 1, 8, 16>}]} {
    %c0 = arith.constant 0 : index
    %c0_0 = arith.constant 0 : index
    %0 = vector.load %arg1[%c0, %c0_0] : memref<400x32xbf16, #tpu.memory_space<vmem>>, vector<400x32xbf16>
    %c0_1 = arith.constant 0 : index
    %c0_2 = arith.constant 0 : index
    %1 = vector.load %arg2[%c0_1, %c0_2] : memref<32x16xbf16, #tpu.memory_space<vmem>>, vector<32x16xbf16>
    %cst = arith.constant dense<0.000000e+00> : vector<400x16xf32>
    %2 = tpu.matmul %0, %1, %cst {dimension_numbers = #tpu.dot_dimension_numbers<[1], [0], [0], [1], [0, 0, 1, 1], [], []>} : vector<400x32xbf16>, vector<32x16xbf16>, vector<400x16xf32> -> vector<400x16xf32>
    %c0_3 = arith.constant 0 : index
    %c0_4 = arith.constant 0 : index
    %3 = vector.load %arg3[%c0_3, %c0_4] : memref<1x16xf32, #tpu.memory_space<vmem>>, vector<1x16xf32>
    %4 = vector.broadcast %3 : vector<1x16xf32> to vector<400x16xf32>
    %5 = arith.addf %2, %4 : vector<400x16xf32>
    %6 = arith.truncf %5 : vector<400x16xf32> to vector<400x16xbf16>
    %c0_5 = arith.constant 0 : index
    %c0_6 = arith.constant 0 : index
    %7 = vector.load %arg4[%c0_5, %c0_6] : memref<400x16xbf16, #tpu.memory_space<vmem>>, vector<400x16xbf16>
    tpu.vector_store %arg4[%c0_5, %c0_6], %6 {strides = array<i32>} : memref<400x16xbf16, #tpu.memory_space<vmem>>, vector<400x16xbf16>,
    %cst_7 = arith.constant dense<0.000000e+00> : vector<16xf32>
    %8 = vector.multi_reduction <add>, %5, %cst_7 [0] : vector<400x16xf32> to vector<16xf32>
    %9 = vector.shape_cast %8 : vector<16xf32> to vector<1x16xf32>
    %10 = arith.mulf %5, %5 : vector<400x16xf32>
    %cst_8 = arith.constant dense<0.000000e+00> : vector<16xf32>
    %11 = vector.multi_reduction <add>, %10, %cst_8 [0] : vector<400x16xf32> to vector<16xf32>
    %12 = vector.shape_cast %11 : vector<16xf32> to vector<1x16xf32>
    %13 = tpu.iota {dimensions = array<i32: 0>} : vector<8x16xi32>
    %c0_i32 = arith.constant 0 : i32
    %14 = vector.broadcast %c0_i32 : i32 to vector<8x16xi32>
    %15 = arith.cmpi eq, %13, %14 : vector<8x16xi32>
    %c1_i32 = arith.constant 1 : i32
    %16 = vector.broadcast %c1_i32 : i32 to vector<8x16xi32>
    %17 = arith.cmpi eq, %13, %16 : vector<8x16xi32>
    %cst_9 = arith.constant 0.000000e+00 : f32
    %18 = vector.shape_cast %12 : vector<1x16xf32> to vector<1x16xf32>
    %19 = vector.broadcast %18 : vector<1x16xf32> to vector<8x16xf32>
    %20 = vector.broadcast %cst_9 : f32 to vector<8x16xf32>
    %21 = arith.select %17, %19, %20 : vector<8x16xi1>, vector<8x16xf32>
    %22 = vector.shape_cast %9 : vector<1x16xf32> to vector<1x16xf32>
    %23 = vector.broadcast %22 : vector<1x16xf32> to vector<8x16xf32>
    %24 = arith.select %15, %23, %21 : vector<8x16xi1>, vector<8x16xf32>
    %25 = vector.shape_cast %24 : vector<8x16xf32> to vector<1x8x16xf32>
    %c0_10 = arith.constant 0 : index
    %c0_11 = arith.constant 0 : index
    %c0_12 = arith.constant 0 : index
    %26 = vector.load %arg5[%c0_10, %c0_11, %c0_12] : memref<1x8x16xf32, #tpu.memory_space<vmem>>, vector<1x8x16xf32>
    tpu.vector_store %arg5[%c0_10, %c0_11, %c0_12], %25 {strides = array<i32>} : memref<1x8x16xf32, #tpu.memory_space<vmem>>, vector<1x8x16xf32>,
    return
  }
  func.func @transform_0(%arg0: i32) -> (i32, i32) {
    %c0_i32 = arith.constant 0 : i32
    %c0_i32_0 = arith.constant 0 : i32
    return %arg0, %c0_i32 : i32, i32
  }
  func.func @transform_1(%arg0: i32) -> (i32, i32) {
    %c0_i32 = arith.constant 0 : i32
    %c0_i32_0 = arith.constant 0 : i32
    %c0_i32_1 = arith.constant 0 : i32
    return %c0_i32, %c0_i32_0 : i32, i32
  }
  func.func @transform_2(%arg0: i32) -> (i32, i32) {
    %c0_i32 = arith.constant 0 : i32
    %c0_i32_0 = arith.constant 0 : i32
    %c0_i32_1 = arith.constant 0 : i32
    return %c0_i32, %c0_i32_0 : i32, i32
  }
  func.func @transform_3(%arg0: i32) -> (i32, i32) {
    %c0_i32 = arith.constant 0 : i32
    %c0_i32_0 = arith.constant 0 : i32
    return %arg0, %c0_i32 : i32, i32
  }
  func.func @transform_4(%arg0: i32) -> (i32, i32, i32) {
    %c0_i32 = arith.constant 0 : i32
    %c0_i32_0 = arith.constant 0 : i32
    %c0_i32_1 = arith.constant 0 : i32
    return %arg0, %c0_i32, %c0_i32_0 : i32, i32, i32
  }
}

module attributes {stable_mosaic.version = 11 : i64} {
  func.func @_scale_shift_leaky_kernel(%arg0: i32, %arg1: memref<400x128xbf16, #tpu.memory_space<vmem>>, %arg2: memref<1x128xf32, #tpu.memory_space<vmem>>, %arg3: memref<1x128xf32, #tpu.memory_space<vmem>>, %arg4: memref<400x128xbf16, #tpu.memory_space<vmem>>) attributes {dimension_semantics = [#tpu.dimension_semantics<parallel>], iteration_bounds = array<i64: 1>, scalar_prefetch = 0 : i64, scratch_operands = 0 : i64, tpu.core_type = #tpu.core_type<tc>, window_params = [{transform_indices = @transform_0, window_bounds = array<i64: 400, 128>}, {pipeline_mode = #tpu.pipeline_mode<synchronous>, transform_indices = @transform_1, window_bounds = array<i64: 1, 128>}, {pipeline_mode = #tpu.pipeline_mode<synchronous>, transform_indices = @transform_2, window_bounds = array<i64: 1, 128>}, {transform_indices = @transform_3, window_bounds = array<i64: 400, 128>}]} {
    %c0 = arith.constant 0 : index
    %c0_0 = arith.constant 0 : index
    %0 = vector.load %arg1[%c0, %c0_0] : memref<400x128xbf16, #tpu.memory_space<vmem>>, vector<400x128xbf16>
    %1 = arith.extf %0 : vector<400x128xbf16> to vector<400x128xf32>
    %c0_1 = arith.constant 0 : index
    %c0_2 = arith.constant 0 : index
    %2 = vector.load %arg2[%c0_1, %c0_2] : memref<1x128xf32, #tpu.memory_space<vmem>>, vector<1x128xf32>
    %3 = vector.broadcast %2 : vector<1x128xf32> to vector<400x128xf32>
    %4 = arith.mulf %1, %3 : vector<400x128xf32>
    %c0_3 = arith.constant 0 : index
    %c0_4 = arith.constant 0 : index
    %5 = vector.load %arg3[%c0_3, %c0_4] : memref<1x128xf32, #tpu.memory_space<vmem>>, vector<1x128xf32>
    %6 = vector.broadcast %5 : vector<1x128xf32> to vector<400x128xf32>
    %7 = arith.addf %4, %6 : vector<400x128xf32>
    %cst = arith.constant 0.000000e+00 : f32
    %8 = vector.broadcast %cst : f32 to vector<400x128xf32>
    %9 = arith.cmpf ogt, %7, %8 : vector<400x128xf32>
    %cst_5 = arith.constant 0.00999999977 : f32
    %10 = vector.broadcast %cst_5 : f32 to vector<400x128xf32>
    %11 = arith.mulf %10, %7 : vector<400x128xf32>
    %12 = arith.select %9, %7, %11 : vector<400x128xi1>, vector<400x128xf32>
    %13 = arith.truncf %12 : vector<400x128xf32> to vector<400x128xbf16>
    %c0_6 = arith.constant 0 : index
    %c0_7 = arith.constant 0 : index
    %14 = vector.load %arg4[%c0_6, %c0_7] : memref<400x128xbf16, #tpu.memory_space<vmem>>, vector<400x128xbf16>
    tpu.vector_store %arg4[%c0_6, %c0_7], %13 {strides = array<i32>} : memref<400x128xbf16, #tpu.memory_space<vmem>>, vector<400x128xbf16>,
    return
  }
  func.func @transform_0(%arg0: i32) -> (i32, i32) {
    %c0_i32 = arith.constant 0 : i32
    %c0_i32_0 = arith.constant 0 : i32
    return %arg0, %c0_i32 : i32, i32
  }
  func.func @transform_1(%arg0: i32) -> (i32, i32) {
    %c0_i32 = arith.constant 0 : i32
    %c0_i32_0 = arith.constant 0 : i32
    %c0_i32_1 = arith.constant 0 : i32
    return %c0_i32, %c0_i32_0 : i32, i32
  }
  func.func @transform_2(%arg0: i32) -> (i32, i32) {
    %c0_i32 = arith.constant 0 : i32
    %c0_i32_0 = arith.constant 0 : i32
    %c0_i32_1 = arith.constant 0 : i32
    return %c0_i32, %c0_i32_0 : i32, i32
  }
  func.func @transform_3(%arg0: i32) -> (i32, i32) {
    %c0_i32 = arith.constant 0 : i32
    %c0_i32_0 = arith.constant 0 : i32
    return %arg0, %c0_i32 : i32, i32
  }
}

module attributes {stable_mosaic.version = 11 : i64} {
  func.func @_matmul_bias_stats_kernel(%arg0: i32, %arg1: memref<400x144xbf16, #tpu.memory_space<vmem>>, %arg2: memref<144x32xbf16, #tpu.memory_space<vmem>>, %arg3: memref<1x32xf32, #tpu.memory_space<vmem>>, %arg4: memref<400x32xbf16, #tpu.memory_space<vmem>>, %arg5: memref<1x8x32xf32, #tpu.memory_space<vmem>>) attributes {dimension_semantics = [#tpu.dimension_semantics<parallel>], iteration_bounds = array<i64: 2>, scalar_prefetch = 0 : i64, scratch_operands = 0 : i64, tpu.core_type = #tpu.core_type<tc>, window_params = [{transform_indices = @transform_0, window_bounds = array<i64: 400, 144>}, {pipeline_mode = #tpu.pipeline_mode<synchronous>, transform_indices = @transform_1, window_bounds = array<i64: 144, 32>}, {pipeline_mode = #tpu.pipeline_mode<synchronous>, transform_indices = @transform_2, window_bounds = array<i64: 1, 32>}, {transform_indices = @transform_3, window_bounds = array<i64: 400, 32>}, {transform_indices = @transform_4, window_bounds = array<i64: 1, 8, 32>}]} {
    %c0 = arith.constant 0 : index
    %c0_0 = arith.constant 0 : index
    %0 = vector.load %arg1[%c0, %c0_0] : memref<400x144xbf16, #tpu.memory_space<vmem>>, vector<400x144xbf16>
    %c0_1 = arith.constant 0 : index
    %c0_2 = arith.constant 0 : index
    %1 = vector.load %arg2[%c0_1, %c0_2] : memref<144x32xbf16, #tpu.memory_space<vmem>>, vector<144x32xbf16>
    %cst = arith.constant dense<0.000000e+00> : vector<400x32xf32>
    %2 = tpu.matmul %0, %1, %cst {dimension_numbers = #tpu.dot_dimension_numbers<[1], [0], [0], [1], [0, 0, 1, 1], [], []>} : vector<400x144xbf16>, vector<144x32xbf16>, vector<400x32xf32> -> vector<400x32xf32>
    %c0_3 = arith.constant 0 : index
    %c0_4 = arith.constant 0 : index
    %3 = vector.load %arg3[%c0_3, %c0_4] : memref<1x32xf32, #tpu.memory_space<vmem>>, vector<1x32xf32>
    %4 = vector.broadcast %3 : vector<1x32xf32> to vector<400x32xf32>
    %5 = arith.addf %2, %4 : vector<400x32xf32>
    %6 = arith.truncf %5 : vector<400x32xf32> to vector<400x32xbf16>
    %c0_5 = arith.constant 0 : index
    %c0_6 = arith.constant 0 : index
    %7 = vector.load %arg4[%c0_5, %c0_6] : memref<400x32xbf16, #tpu.memory_space<vmem>>, vector<400x32xbf16>
    tpu.vector_store %arg4[%c0_5, %c0_6], %6 {strides = array<i32>} : memref<400x32xbf16, #tpu.memory_space<vmem>>, vector<400x32xbf16>,
    %cst_7 = arith.constant dense<0.000000e+00> : vector<32xf32>
    %8 = vector.multi_reduction <add>, %5, %cst_7 [0] : vector<400x32xf32> to vector<32xf32>
    %9 = vector.shape_cast %8 : vector<32xf32> to vector<1x32xf32>
    %10 = arith.mulf %5, %5 : vector<400x32xf32>
    %cst_8 = arith.constant dense<0.000000e+00> : vector<32xf32>
    %11 = vector.multi_reduction <add>, %10, %cst_8 [0] : vector<400x32xf32> to vector<32xf32>
    %12 = vector.shape_cast %11 : vector<32xf32> to vector<1x32xf32>
    %13 = tpu.iota {dimensions = array<i32: 0>} : vector<8x32xi32>
    %c0_i32 = arith.constant 0 : i32
    %14 = vector.broadcast %c0_i32 : i32 to vector<8x32xi32>
    %15 = arith.cmpi eq, %13, %14 : vector<8x32xi32>
    %c1_i32 = arith.constant 1 : i32
    %16 = vector.broadcast %c1_i32 : i32 to vector<8x32xi32>
    %17 = arith.cmpi eq, %13, %16 : vector<8x32xi32>
    %cst_9 = arith.constant 0.000000e+00 : f32
    %18 = vector.shape_cast %12 : vector<1x32xf32> to vector<1x32xf32>
    %19 = vector.broadcast %18 : vector<1x32xf32> to vector<8x32xf32>
    %20 = vector.broadcast %cst_9 : f32 to vector<8x32xf32>
    %21 = arith.select %17, %19, %20 : vector<8x32xi1>, vector<8x32xf32>
    %22 = vector.shape_cast %9 : vector<1x32xf32> to vector<1x32xf32>
    %23 = vector.broadcast %22 : vector<1x32xf32> to vector<8x32xf32>
    %24 = arith.select %15, %23, %21 : vector<8x32xi1>, vector<8x32xf32>
    %25 = vector.shape_cast %24 : vector<8x32xf32> to vector<1x8x32xf32>
    %c0_10 = arith.constant 0 : index
    %c0_11 = arith.constant 0 : index
    %c0_12 = arith.constant 0 : index
    %26 = vector.load %arg5[%c0_10, %c0_11, %c0_12] : memref<1x8x32xf32, #tpu.memory_space<vmem>>, vector<1x8x32xf32>
    tpu.vector_store %arg5[%c0_10, %c0_11, %c0_12], %25 {strides = array<i32>} : memref<1x8x32xf32, #tpu.memory_space<vmem>>, vector<1x8x32xf32>,
    return
  }
  func.func @transform_0(%arg0: i32) -> (i32, i32) {
    %c0_i32 = arith.constant 0 : i32
    %c0_i32_0 = arith.constant 0 : i32
    return %arg0, %c0_i32 : i32, i32
  }
  func.func @transform_1(%arg0: i32) -> (i32, i32) {
    %c0_i32 = arith.constant 0 : i32
    %c0_i32_0 = arith.constant 0 : i32
    %c0_i32_1 = arith.constant 0 : i32
    return %c0_i32, %c0_i32_0 : i32, i32
  }
  func.func @transform_2(%arg0: i32) -> (i32, i32) {
    %c0_i32 = arith.constant 0 : i32
    %c0_i32_0 = arith.constant 0 : i32
    %c0_i32_1 = arith.constant 0 : i32
    return %c0_i32, %c0_i32_0 : i32, i32
  }
  func.func @transform_3(%arg0: i32) -> (i32, i32) {
    %c0_i32 = arith.constant 0 : i32
    %c0_i32_0 = arith.constant 0 : i32
    return %arg0, %c0_i32 : i32, i32
  }
  func.func @transform_4(%arg0: i32) -> (i32, i32, i32) {
    %c0_i32 = arith.constant 0 : i32
    %c0_i32_0 = arith.constant 0 : i32
    %c0_i32_1 = arith.constant 0 : i32
    return %arg0, %c0_i32, %c0_i32_0 : i32, i32, i32
  }
}

module attributes {stable_mosaic.version = 11 : i64} {
  func.func @_scale_shift_leaky_kernel(%arg0: i32, %arg1: memref<200x128xbf16, #tpu.memory_space<vmem>>, %arg2: memref<1x128xf32, #tpu.memory_space<vmem>>, %arg3: memref<1x128xf32, #tpu.memory_space<vmem>>, %arg4: memref<200x128xbf16, #tpu.memory_space<vmem>>) attributes {dimension_semantics = [#tpu.dimension_semantics<parallel>], iteration_bounds = array<i64: 1>, scalar_prefetch = 0 : i64, scratch_operands = 0 : i64, tpu.core_type = #tpu.core_type<tc>, window_params = [{transform_indices = @transform_0, window_bounds = array<i64: 200, 128>}, {pipeline_mode = #tpu.pipeline_mode<synchronous>, transform_indices = @transform_1, window_bounds = array<i64: 1, 128>}, {pipeline_mode = #tpu.pipeline_mode<synchronous>, transform_indices = @transform_2, window_bounds = array<i64: 1, 128>}, {transform_indices = @transform_3, window_bounds = array<i64: 200, 128>}]} {
    %c0 = arith.constant 0 : index
    %c0_0 = arith.constant 0 : index
    %0 = vector.load %arg1[%c0, %c0_0] : memref<200x128xbf16, #tpu.memory_space<vmem>>, vector<200x128xbf16>
    %1 = arith.extf %0 : vector<200x128xbf16> to vector<200x128xf32>
    %c0_1 = arith.constant 0 : index
    %c0_2 = arith.constant 0 : index
    %2 = vector.load %arg2[%c0_1, %c0_2] : memref<1x128xf32, #tpu.memory_space<vmem>>, vector<1x128xf32>
    %3 = vector.broadcast %2 : vector<1x128xf32> to vector<200x128xf32>
    %4 = arith.mulf %1, %3 : vector<200x128xf32>
    %c0_3 = arith.constant 0 : index
    %c0_4 = arith.constant 0 : index
    %5 = vector.load %arg3[%c0_3, %c0_4] : memref<1x128xf32, #tpu.memory_space<vmem>>, vector<1x128xf32>
    %6 = vector.broadcast %5 : vector<1x128xf32> to vector<200x128xf32>
    %7 = arith.addf %4, %6 : vector<200x128xf32>
    %cst = arith.constant 0.000000e+00 : f32
    %8 = vector.broadcast %cst : f32 to vector<200x128xf32>
    %9 = arith.cmpf ogt, %7, %8 : vector<200x128xf32>
    %cst_5 = arith.constant 0.00999999977 : f32
    %10 = vector.broadcast %cst_5 : f32 to vector<200x128xf32>
    %11 = arith.mulf %10, %7 : vector<200x128xf32>
    %12 = arith.select %9, %7, %11 : vector<200x128xi1>, vector<200x128xf32>
    %13 = arith.truncf %12 : vector<200x128xf32> to vector<200x128xbf16>
    %c0_6 = arith.constant 0 : index
    %c0_7 = arith.constant 0 : index
    %14 = vector.load %arg4[%c0_6, %c0_7] : memref<200x128xbf16, #tpu.memory_space<vmem>>, vector<200x128xbf16>
    tpu.vector_store %arg4[%c0_6, %c0_7], %13 {strides = array<i32>} : memref<200x128xbf16, #tpu.memory_space<vmem>>, vector<200x128xbf16>,
    return
  }
  func.func @transform_0(%arg0: i32) -> (i32, i32) {
    %c0_i32 = arith.constant 0 : i32
    %c0_i32_0 = arith.constant 0 : i32
    return %arg0, %c0_i32 : i32, i32
  }
  func.func @transform_1(%arg0: i32) -> (i32, i32) {
    %c0_i32 = arith.constant 0 : i32
    %c0_i32_0 = arith.constant 0 : i32
    %c0_i32_1 = arith.constant 0 : i32
    return %c0_i32, %c0_i32_0 : i32, i32
  }
  func.func @transform_2(%arg0: i32) -> (i32, i32) {
    %c0_i32 = arith.constant 0 : i32
    %c0_i32_0 = arith.constant 0 : i32
    %c0_i32_1 = arith.constant 0 : i32
    return %c0_i32, %c0_i32_0 : i32, i32
  }
  func.func @transform_3(%arg0: i32) -> (i32, i32) {
    %c0_i32 = arith.constant 0 : i32
    %c0_i32_0 = arith.constant 0 : i32
    return %arg0, %c0_i32 : i32, i32
  }
}

module attributes {stable_mosaic.version = 11 : i64} {
  func.func @_matmul_bias_stats_kernel(%arg0: i32, %arg1: memref<200x288xbf16, #tpu.memory_space<vmem>>, %arg2: memref<288x64xbf16, #tpu.memory_space<vmem>>, %arg3: memref<1x64xf32, #tpu.memory_space<vmem>>, %arg4: memref<200x64xbf16, #tpu.memory_space<vmem>>, %arg5: memref<1x8x64xf32, #tpu.memory_space<vmem>>) attributes {dimension_semantics = [#tpu.dimension_semantics<parallel>], iteration_bounds = array<i64: 1>, scalar_prefetch = 0 : i64, scratch_operands = 0 : i64, tpu.core_type = #tpu.core_type<tc>, window_params = [{transform_indices = @transform_0, window_bounds = array<i64: 200, 288>}, {pipeline_mode = #tpu.pipeline_mode<synchronous>, transform_indices = @transform_1, window_bounds = array<i64: 288, 64>}, {pipeline_mode = #tpu.pipeline_mode<synchronous>, transform_indices = @transform_2, window_bounds = array<i64: 1, 64>}, {transform_indices = @transform_3, window_bounds = array<i64: 200, 64>}, {transform_indices = @transform_4, window_bounds = array<i64: 1, 8, 64>}]} {
    %c0 = arith.constant 0 : index
    %c0_0 = arith.constant 0 : index
    %0 = vector.load %arg1[%c0, %c0_0] : memref<200x288xbf16, #tpu.memory_space<vmem>>, vector<200x288xbf16>
    %c0_1 = arith.constant 0 : index
    %c0_2 = arith.constant 0 : index
    %1 = vector.load %arg2[%c0_1, %c0_2] : memref<288x64xbf16, #tpu.memory_space<vmem>>, vector<288x64xbf16>
    %cst = arith.constant dense<0.000000e+00> : vector<200x64xf32>
    %2 = tpu.matmul %0, %1, %cst {dimension_numbers = #tpu.dot_dimension_numbers<[1], [0], [0], [1], [0, 0, 1, 1], [], []>} : vector<200x288xbf16>, vector<288x64xbf16>, vector<200x64xf32> -> vector<200x64xf32>
    %c0_3 = arith.constant 0 : index
    %c0_4 = arith.constant 0 : index
    %3 = vector.load %arg3[%c0_3, %c0_4] : memref<1x64xf32, #tpu.memory_space<vmem>>, vector<1x64xf32>
    %4 = vector.broadcast %3 : vector<1x64xf32> to vector<200x64xf32>
    %5 = arith.addf %2, %4 : vector<200x64xf32>
    %6 = arith.truncf %5 : vector<200x64xf32> to vector<200x64xbf16>
    %c0_5 = arith.constant 0 : index
    %c0_6 = arith.constant 0 : index
    %7 = vector.load %arg4[%c0_5, %c0_6] : memref<200x64xbf16, #tpu.memory_space<vmem>>, vector<200x64xbf16>
    tpu.vector_store %arg4[%c0_5, %c0_6], %6 {strides = array<i32>} : memref<200x64xbf16, #tpu.memory_space<vmem>>, vector<200x64xbf16>,
    %cst_7 = arith.constant dense<0.000000e+00> : vector<64xf32>
    %8 = vector.multi_reduction <add>, %5, %cst_7 [0] : vector<200x64xf32> to vector<64xf32>
    %9 = vector.shape_cast %8 : vector<64xf32> to vector<1x64xf32>
    %10 = arith.mulf %5, %5 : vector<200x64xf32>
    %cst_8 = arith.constant dense<0.000000e+00> : vector<64xf32>
    %11 = vector.multi_reduction <add>, %10, %cst_8 [0] : vector<200x64xf32> to vector<64xf32>
    %12 = vector.shape_cast %11 : vector<64xf32> to vector<1x64xf32>
    %13 = tpu.iota {dimensions = array<i32: 0>} : vector<8x64xi32>
    %c0_i32 = arith.constant 0 : i32
    %14 = vector.broadcast %c0_i32 : i32 to vector<8x64xi32>
    %15 = arith.cmpi eq, %13, %14 : vector<8x64xi32>
    %c1_i32 = arith.constant 1 : i32
    %16 = vector.broadcast %c1_i32 : i32 to vector<8x64xi32>
    %17 = arith.cmpi eq, %13, %16 : vector<8x64xi32>
    %cst_9 = arith.constant 0.000000e+00 : f32
    %18 = vector.shape_cast %12 : vector<1x64xf32> to vector<1x64xf32>
    %19 = vector.broadcast %18 : vector<1x64xf32> to vector<8x64xf32>
    %20 = vector.broadcast %cst_9 : f32 to vector<8x64xf32>
    %21 = arith.select %17, %19, %20 : vector<8x64xi1>, vector<8x64xf32>
    %22 = vector.shape_cast %9 : vector<1x64xf32> to vector<1x64xf32>
    %23 = vector.broadcast %22 : vector<1x64xf32> to vector<8x64xf32>
    %24 = arith.select %15, %23, %21 : vector<8x64xi1>, vector<8x64xf32>
    %25 = vector.shape_cast %24 : vector<8x64xf32> to vector<1x8x64xf32>
    %c0_10 = arith.constant 0 : index
    %c0_11 = arith.constant 0 : index
    %c0_12 = arith.constant 0 : index
    %26 = vector.load %arg5[%c0_10, %c0_11, %c0_12] : memref<1x8x64xf32, #tpu.memory_space<vmem>>, vector<1x8x64xf32>
    tpu.vector_store %arg5[%c0_10, %c0_11, %c0_12], %25 {strides = array<i32>} : memref<1x8x64xf32, #tpu.memory_space<vmem>>, vector<1x8x64xf32>,
    return
  }
  func.func @transform_0(%arg0: i32) -> (i32, i32) {
    %c0_i32 = arith.constant 0 : i32
    %c0_i32_0 = arith.constant 0 : i32
    return %arg0, %c0_i32 : i32, i32
  }
  func.func @transform_1(%arg0: i32) -> (i32, i32) {
    %c0_i32 = arith.constant 0 : i32
    %c0_i32_0 = arith.constant 0 : i32
    %c0_i32_1 = arith.constant 0 : i32
    return %c0_i32, %c0_i32_0 : i32, i32
  }
  func.func @transform_2(%arg0: i32) -> (i32, i32) {
    %c0_i32 = arith.constant 0 : i32
    %c0_i32_0 = arith.constant 0 : i32
    %c0_i32_1 = arith.constant 0 : i32
    return %c0_i32, %c0_i32_0 : i32, i32
  }
  func.func @transform_3(%arg0: i32) -> (i32, i32) {
    %c0_i32 = arith.constant 0 : i32
    %c0_i32_0 = arith.constant 0 : i32
    return %arg0, %c0_i32 : i32, i32
  }
  func.func @transform_4(%arg0: i32) -> (i32, i32, i32) {
    %c0_i32 = arith.constant 0 : i32
    %c0_i32_0 = arith.constant 0 : i32
    %c0_i32_1 = arith.constant 0 : i32
    return %arg0, %c0_i32, %c0_i32_0 : i32, i32, i32
  }
}

module attributes {stable_mosaic.version = 11 : i64} {
  func.func @_scale_shift_leaky_kernel(%arg0: i32, %arg1: memref<100x128xbf16, #tpu.memory_space<vmem>>, %arg2: memref<1x128xf32, #tpu.memory_space<vmem>>, %arg3: memref<1x128xf32, #tpu.memory_space<vmem>>, %arg4: memref<100x128xbf16, #tpu.memory_space<vmem>>) attributes {dimension_semantics = [#tpu.dimension_semantics<parallel>], iteration_bounds = array<i64: 1>, scalar_prefetch = 0 : i64, scratch_operands = 0 : i64, tpu.core_type = #tpu.core_type<tc>, window_params = [{transform_indices = @transform_0, window_bounds = array<i64: 100, 128>}, {pipeline_mode = #tpu.pipeline_mode<synchronous>, transform_indices = @transform_1, window_bounds = array<i64: 1, 128>}, {pipeline_mode = #tpu.pipeline_mode<synchronous>, transform_indices = @transform_2, window_bounds = array<i64: 1, 128>}, {transform_indices = @transform_3, window_bounds = array<i64: 100, 128>}]} {
    %c0 = arith.constant 0 : index
    %c0_0 = arith.constant 0 : index
    %0 = vector.load %arg1[%c0, %c0_0] : memref<100x128xbf16, #tpu.memory_space<vmem>>, vector<100x128xbf16>
    %1 = arith.extf %0 : vector<100x128xbf16> to vector<100x128xf32>
    %c0_1 = arith.constant 0 : index
    %c0_2 = arith.constant 0 : index
    %2 = vector.load %arg2[%c0_1, %c0_2] : memref<1x128xf32, #tpu.memory_space<vmem>>, vector<1x128xf32>
    %3 = vector.broadcast %2 : vector<1x128xf32> to vector<100x128xf32>
    %4 = arith.mulf %1, %3 : vector<100x128xf32>
    %c0_3 = arith.constant 0 : index
    %c0_4 = arith.constant 0 : index
    %5 = vector.load %arg3[%c0_3, %c0_4] : memref<1x128xf32, #tpu.memory_space<vmem>>, vector<1x128xf32>
    %6 = vector.broadcast %5 : vector<1x128xf32> to vector<100x128xf32>
    %7 = arith.addf %4, %6 : vector<100x128xf32>
    %cst = arith.constant 0.000000e+00 : f32
    %8 = vector.broadcast %cst : f32 to vector<100x128xf32>
    %9 = arith.cmpf ogt, %7, %8 : vector<100x128xf32>
    %cst_5 = arith.constant 0.00999999977 : f32
    %10 = vector.broadcast %cst_5 : f32 to vector<100x128xf32>
    %11 = arith.mulf %10, %7 : vector<100x128xf32>
    %12 = arith.select %9, %7, %11 : vector<100x128xi1>, vector<100x128xf32>
    %13 = arith.truncf %12 : vector<100x128xf32> to vector<100x128xbf16>
    %c0_6 = arith.constant 0 : index
    %c0_7 = arith.constant 0 : index
    %14 = vector.load %arg4[%c0_6, %c0_7] : memref<100x128xbf16, #tpu.memory_space<vmem>>, vector<100x128xbf16>
    tpu.vector_store %arg4[%c0_6, %c0_7], %13 {strides = array<i32>} : memref<100x128xbf16, #tpu.memory_space<vmem>>, vector<100x128xbf16>,
    return
  }
  func.func @transform_0(%arg0: i32) -> (i32, i32) {
    %c0_i32 = arith.constant 0 : i32
    %c0_i32_0 = arith.constant 0 : i32
    return %arg0, %c0_i32 : i32, i32
  }
  func.func @transform_1(%arg0: i32) -> (i32, i32) {
    %c0_i32 = arith.constant 0 : i32
    %c0_i32_0 = arith.constant 0 : i32
    %c0_i32_1 = arith.constant 0 : i32
    return %c0_i32, %c0_i32_0 : i32, i32
  }
  func.func @transform_2(%arg0: i32) -> (i32, i32) {
    %c0_i32 = arith.constant 0 : i32
    %c0_i32_0 = arith.constant 0 : i32
    %c0_i32_1 = arith.constant 0 : i32
    return %c0_i32, %c0_i32_0 : i32, i32
  }
  func.func @transform_3(%arg0: i32) -> (i32, i32) {
    %c0_i32 = arith.constant 0 : i32
    %c0_i32_0 = arith.constant 0 : i32
    return %arg0, %c0_i32 : i32, i32
  }
}

module attributes {stable_mosaic.version = 11 : i64} {
  func.func @_matmul_bias_kernel(%arg0: i32, %arg1: memref<56x576xbf16, #tpu.memory_space<vmem>>, %arg2: memref<576x64xbf16, #tpu.memory_space<vmem>>, %arg3: memref<1x64xf32, #tpu.memory_space<vmem>>, %arg4: memref<56x64xbf16, #tpu.memory_space<vmem>>) attributes {dimension_semantics = [#tpu.dimension_semantics<parallel>], iteration_bounds = array<i64: 1>, scalar_prefetch = 0 : i64, scratch_operands = 0 : i64, tpu.core_type = #tpu.core_type<tc>, window_params = [{transform_indices = @transform_0, window_bounds = array<i64: 56, 576>}, {pipeline_mode = #tpu.pipeline_mode<synchronous>, transform_indices = @transform_1, window_bounds = array<i64: 576, 64>}, {pipeline_mode = #tpu.pipeline_mode<synchronous>, transform_indices = @transform_2, window_bounds = array<i64: 1, 64>}, {transform_indices = @transform_3, window_bounds = array<i64: 56, 64>}]} {
    %c0 = arith.constant 0 : index
    %c0_0 = arith.constant 0 : index
    %0 = vector.load %arg1[%c0, %c0_0] : memref<56x576xbf16, #tpu.memory_space<vmem>>, vector<56x576xbf16>
    %c0_1 = arith.constant 0 : index
    %c0_2 = arith.constant 0 : index
    %1 = vector.load %arg2[%c0_1, %c0_2] : memref<576x64xbf16, #tpu.memory_space<vmem>>, vector<576x64xbf16>
    %cst = arith.constant dense<0.000000e+00> : vector<56x64xf32>
    %2 = tpu.matmul %0, %1, %cst {dimension_numbers = #tpu.dot_dimension_numbers<[1], [0], [0], [1], [0, 0, 1, 1], [], []>} : vector<56x576xbf16>, vector<576x64xbf16>, vector<56x64xf32> -> vector<56x64xf32>
    %c0_3 = arith.constant 0 : index
    %c0_4 = arith.constant 0 : index
    %3 = vector.load %arg3[%c0_3, %c0_4] : memref<1x64xf32, #tpu.memory_space<vmem>>, vector<1x64xf32>
    %4 = vector.broadcast %3 : vector<1x64xf32> to vector<56x64xf32>
    %5 = arith.addf %2, %4 : vector<56x64xf32>
    %6 = arith.truncf %5 : vector<56x64xf32> to vector<56x64xbf16>
    %c0_5 = arith.constant 0 : index
    %c0_6 = arith.constant 0 : index
    %7 = vector.load %arg4[%c0_5, %c0_6] : memref<56x64xbf16, #tpu.memory_space<vmem>>, vector<56x64xbf16>
    tpu.vector_store %arg4[%c0_5, %c0_6], %6 {strides = array<i32>} : memref<56x64xbf16, #tpu.memory_space<vmem>>, vector<56x64xbf16>,
    return
  }
  func.func @transform_0(%arg0: i32) -> (i32, i32) {
    %c0_i32 = arith.constant 0 : i32
    %c0_i32_0 = arith.constant 0 : i32
    return %arg0, %c0_i32 : i32, i32
  }
  func.func @transform_1(%arg0: i32) -> (i32, i32) {
    %c0_i32 = arith.constant 0 : i32
    %c0_i32_0 = arith.constant 0 : i32
    %c0_i32_1 = arith.constant 0 : i32
    return %c0_i32, %c0_i32_0 : i32, i32
  }
  func.func @transform_2(%arg0: i32) -> (i32, i32) {
    %c0_i32 = arith.constant 0 : i32
    %c0_i32_0 = arith.constant 0 : i32
    %c0_i32_1 = arith.constant 0 : i32
    return %c0_i32, %c0_i32_0 : i32, i32
  }
  func.func @transform_3(%arg0: i32) -> (i32, i32) {
    %c0_i32 = arith.constant 0 : i32
    %c0_i32_0 = arith.constant 0 : i32
    return %arg0, %c0_i32 : i32, i32
  }
}

module attributes {stable_mosaic.version = 11 : i64} {
  func.func @_classifier_kernel(%arg0: memref<8x1600xbf16, #tpu.memory_space<vmem>>, %arg1: memref<1600x512xbf16, #tpu.memory_space<vmem>>, %arg2: memref<1x512xf32, #tpu.memory_space<vmem>>, %arg3: memref<512x256xbf16, #tpu.memory_space<vmem>>, %arg4: memref<1x256xf32, #tpu.memory_space<vmem>>, %arg5: memref<256x64xbf16, #tpu.memory_space<vmem>>, %arg6: memref<1x64xf32, #tpu.memory_space<vmem>>, %arg7: memref<64x16xbf16, #tpu.memory_space<vmem>>, %arg8: memref<1x16xf32, #tpu.memory_space<vmem>>, %arg9: memref<1x16xf32, #tpu.memory_space<vmem>>, %arg10: memref<1x1xf32, #tpu.memory_space<vmem>>, %arg11: memref<8x1xf32, #tpu.memory_space<vmem>>) attributes {dimension_semantics = [], scalar_prefetch = 0 : i64, scratch_operands = 0 : i64, tpu.core_type = #tpu.core_type<tc>} {
    %c0 = arith.constant 0 : index
    %c0_0 = arith.constant 0 : index
    %0 = vector.load %arg0[%c0, %c0_0] : memref<8x1600xbf16, #tpu.memory_space<vmem>>, vector<8x1600xbf16>
    %c0_1 = arith.constant 0 : index
    %c0_2 = arith.constant 0 : index
    %1 = vector.load %arg1[%c0_1, %c0_2] : memref<1600x512xbf16, #tpu.memory_space<vmem>>, vector<1600x512xbf16>
    %cst = arith.constant dense<0.000000e+00> : vector<8x512xf32>
    %2 = tpu.matmul %0, %1, %cst {dimension_numbers = #tpu.dot_dimension_numbers<[1], [0], [0], [1], [0, 0, 1, 1], [], []>} : vector<8x1600xbf16>, vector<1600x512xbf16>, vector<8x512xf32> -> vector<8x512xf32>
    %c0_3 = arith.constant 0 : index
    %c0_4 = arith.constant 0 : index
    %3 = vector.load %arg2[%c0_3, %c0_4] : memref<1x512xf32, #tpu.memory_space<vmem>>, vector<1x512xf32>
    %4 = vector.broadcast %3 : vector<1x512xf32> to vector<8x512xf32>
    %5 = arith.addf %2, %4 : vector<8x512xf32>
    %cst_5 = arith.constant 0.000000e+00 : f32
    %6 = vector.broadcast %cst_5 : f32 to vector<8x512xf32>
    %7 = arith.maximumf %5, %6 : vector<8x512xf32>
    %8 = arith.truncf %7 : vector<8x512xf32> to vector<8x512xbf16>
    %c0_6 = arith.constant 0 : index
    %c0_7 = arith.constant 0 : index
    %9 = vector.load %arg3[%c0_6, %c0_7] : memref<512x256xbf16, #tpu.memory_space<vmem>>, vector<512x256xbf16>
    %cst_8 = arith.constant dense<0.000000e+00> : vector<8x256xf32>
    %10 = tpu.matmul %8, %9, %cst_8 {dimension_numbers = #tpu.dot_dimension_numbers<[1], [0], [0], [1], [0, 0, 1, 1], [], []>} : vector<8x512xbf16>, vector<512x256xbf16>, vector<8x256xf32> -> vector<8x256xf32>
    %c0_9 = arith.constant 0 : index
    %c0_10 = arith.constant 0 : index
    %11 = vector.load %arg4[%c0_9, %c0_10] : memref<1x256xf32, #tpu.memory_space<vmem>>, vector<1x256xf32>
    %12 = vector.broadcast %11 : vector<1x256xf32> to vector<8x256xf32>
    %13 = arith.addf %10, %12 : vector<8x256xf32>
    %cst_11 = arith.constant 0.000000e+00 : f32
    %14 = vector.broadcast %cst_11 : f32 to vector<8x256xf32>
    %15 = arith.maximumf %13, %14 : vector<8x256xf32>
    %16 = arith.truncf %15 : vector<8x256xf32> to vector<8x256xbf16>
    %c0_12 = arith.constant 0 : index
    %c0_13 = arith.constant 0 : index
    %17 = vector.load %arg5[%c0_12, %c0_13] : memref<256x64xbf16, #tpu.memory_space<vmem>>, vector<256x64xbf16>
    %cst_14 = arith.constant dense<0.000000e+00> : vector<8x64xf32>
    %18 = tpu.matmul %16, %17, %cst_14 {dimension_numbers = #tpu.dot_dimension_numbers<[1], [0], [0], [1], [0, 0, 1, 1], [], []>} : vector<8x256xbf16>, vector<256x64xbf16>, vector<8x64xf32> -> vector<8x64xf32>
    %c0_15 = arith.constant 0 : index
    %c0_16 = arith.constant 0 : index
    %19 = vector.load %arg6[%c0_15, %c0_16] : memref<1x64xf32, #tpu.memory_space<vmem>>, vector<1x64xf32>
    %20 = vector.broadcast %19 : vector<1x64xf32> to vector<8x64xf32>
    %21 = arith.addf %18, %20 : vector<8x64xf32>
    %cst_17 = arith.constant 0.000000e+00 : f32
    %22 = vector.broadcast %cst_17 : f32 to vector<8x64xf32>
    %23 = arith.maximumf %21, %22 : vector<8x64xf32>
    %24 = arith.truncf %23 : vector<8x64xf32> to vector<8x64xbf16>
    %c0_18 = arith.constant 0 : index
    %c0_19 = arith.constant 0 : index
    %25 = vector.load %arg7[%c0_18, %c0_19] : memref<64x16xbf16, #tpu.memory_space<vmem>>, vector<64x16xbf16>
    %cst_20 = arith.constant dense<0.000000e+00> : vector<8x16xf32>
    %26 = tpu.matmul %24, %25, %cst_20 {dimension_numbers = #tpu.dot_dimension_numbers<[1], [0], [0], [1], [0, 0, 1, 1], [], []>} : vector<8x64xbf16>, vector<64x16xbf16>, vector<8x16xf32> -> vector<8x16xf32>
    %c0_21 = arith.constant 0 : index
    %c0_22 = arith.constant 0 : index
    %27 = vector.load %arg8[%c0_21, %c0_22] : memref<1x16xf32, #tpu.memory_space<vmem>>, vector<1x16xf32>
    %28 = vector.broadcast %27 : vector<1x16xf32> to vector<8x16xf32>
    %29 = arith.addf %26, %28 : vector<8x16xf32>
    %cst_23 = arith.constant 0.000000e+00 : f32
    %30 = vector.broadcast %cst_23 : f32 to vector<8x16xf32>
    %31 = arith.maximumf %29, %30 : vector<8x16xf32>
    %32 = arith.truncf %31 : vector<8x16xf32> to vector<8x16xbf16>
    %33 = arith.extf %32 : vector<8x16xbf16> to vector<8x16xf32>
    %c0_24 = arith.constant 0 : index
    %c0_25 = arith.constant 0 : index
    %34 = vector.load %arg9[%c0_24, %c0_25] : memref<1x16xf32, #tpu.memory_space<vmem>>, vector<1x16xf32>
    %35 = vector.broadcast %34 : vector<1x16xf32> to vector<8x16xf32>
    %36 = arith.mulf %33, %35 : vector<8x16xf32>
    %cst_26 = arith.constant dense<0.000000e+00> : vector<8xf32>
    %37 = vector.multi_reduction <add>, %36, %cst_26 [1] : vector<8x16xf32> to vector<8xf32>
    %38 = vector.shape_cast %37 : vector<8xf32> to vector<8x1xf32>
    %c0_27 = arith.constant 0 : index
    %c0_28 = arith.constant 0 : index
    %39 = vector.load %arg10[%c0_27, %c0_28] : memref<1x1xf32, #tpu.memory_space<vmem>>, vector<1x1xf32>
    %40 = vector.broadcast %39 : vector<1x1xf32> to vector<8x1xf32>
    %41 = arith.addf %38, %40 : vector<8x1xf32>
    %42 = arith.negf %41 : vector<8x1xf32>
    %43 = math.exp %42 : vector<8x1xf32>
    %cst_29 = arith.constant 1.000000e+00 : f32
    %44 = vector.broadcast %cst_29 : f32 to vector<8x1xf32>
    %45 = arith.addf %44, %43 : vector<8x1xf32>
    %46 = arith.divf %44, %45 : vector<8x1xf32>
    %c0_30 = arith.constant 0 : index
    %c0_31 = arith.constant 0 : index
    %47 = vector.load %arg11[%c0_30, %c0_31] : memref<8x1xf32, #tpu.memory_space<vmem>>, vector<8x1xf32>
    tpu.vector_store %arg11[%c0_30, %c0_31], %46 {strides = array<i32>} : memref<8x1xf32, #tpu.memory_space<vmem>>, vector<8x1xf32>,
    return
  }
}

</mosaic_0001>

<bundles_post_ra>
// kernel: tile.33
= control target key start
LH: loop header
LB: loop body
LE: loop exit
PB: predicated region body
PF: predicated region fallthrough
CT: control target
= control target key end

     0   :  { %s22_s0 = inlined_call_operand.vmem [shape: f32[16], index: 0, kind: input, shape index: {}]   ;;  %s23_s1 = inlined_call_operand.vmem [shape: f32[8,16], index: 1, kind: output, shape index: {}]  }
   0x1   :  { %v4_v0 = vld [vmem:[%s22_s0] ss:$0 sm:$0xff] }
   0x2   :  { %5 = vst [vmem:[%s23_s1] sm:$0xff] %v4_v0 }

// kernel: tile.38
= control target key start
LH: loop header
LB: loop body
LE: loop exit
PB: predicated region body
PF: predicated region fallthrough
CT: control target
= control target key end

     0   :  { %s67_s10 = smov 112   ;;  %s68_s11 = smov 80   ;;  %vm3_vm0 = vcmask 130048   ;;  %vm9_vm1 = vcmask 1048448   ;;  %vm15_vm2 = vcmask 917248   ;;  %vm21_vm3 = vcmask 786048   ;;  %s111_s0 = inlined_call_operand.vmem [shape: f32[8,16], index: 0, kind: input, shape index: {}]   ;;  %s112_s1 = inlined_call_operand.vmem [shape: f32[1,128], index: 1, kind: output, shape index: {}]  }
   0x1   :  { %v53_v0 = vld [vmem:[%s111_s0 + $0x7] sm:$0x1]   ;;  %v55_v1 = vld [vmem:[%s111_s0 + $0x5] sm:$0x1]   ;;  %v57_v2 = vld [vmem:[%s111_s0 + $0x3] sm:$0x1]  }
   0x2   :  { %7 = vrot.lane.b32.xlu0 %v53_v0, %s67_s10  ;;  %19 = vrot.lane.b32.xlu1 %v55_v1, %s68_s11  ;;  %s69_s14 = smov 48   ;;  %v54_v3 = vld [vmem:[%s111_s0 + $0x6] sm:$0x1]   ;;  %v56_v4 = vld [vmem:[%s111_s0 + $0x4] sm:$0x1]   ;;  %s70_s21 = smov 96  }
   0x3   :  { %31 = vrot.lane.b32.xlu2 %v57_v2, %s69_s14  ;;  %v58_v5 = vld [vmem:[%s111_s0 + $0x2] sm:$0x1]   ;;  %s71_s22 = smov 64   ;;  %s72_s23 = smov 32   ;;  %v59_v6 = vld [vmem:[%s111_s0 + $0x1] sm:$0x1]  }
   0x4   :  { %s73_s26 = smov 16   ;;  %v2_v7 = vld [vmem:[%s111_s0] sm:$0x1]   ;;  %vm27_vm4 = vcmask 654848   ;;  %vm33_vm5 = vcmask 523648   ;;  %vm39_vm6 = vcmask 392448  }
   0x5   :  { %4 = vst.msk [vmem:[#allocation0] sm:$0x1] %vm3_vm0, %v2_v7   ;;  %vm45_vm7 = vcmask 261248  }
   0xa   :  { %13 = vrot.lane.b32.xlu0 %v54_v3, %s70_s21  ;;  %25 = vrot.lane.b32.xlu1 %v56_v4, %s71_s22 }
   0xb   :  { %37 = vrot.lane.b32.xlu2 %v58_v5, %s72_s23 }
  0x12   :  { %43 = vrot.lane.b32.xlu0 %v59_v6, %s73_s26 }
  0x5d   :  { %v32_v8 = vpop.permute.xlu2 %31  }
  0x65   :  { %v38_v9 = vpop.permute.xlu2 %37  }
  0x74   :  { %v8_v10 = vpop.permute.xlu0 %7   ;;  %v20_v11 = vpop.permute.xlu1 %19  }
  0x75   :  { %10 = vst.msk [vmem:[#allocation0] sm:$0x1] %vm9_vm1, %v8_v10  }
  0x7c   :  { %v14_v12 = vpop.permute.xlu0 %13   ;;  %v26_v13 = vpop.permute.xlu1 %25  }
  0x7d   :  { %16 = vst.msk [vmem:[#allocation0] sm:$0x1] %vm15_vm2, %v14_v12  }
  0x7e   :  { %22 = vst.msk [vmem:[#allocation0] sm:$0x1] %vm21_vm3, %v20_v11  }
  0x7f   :  { %28 = vst.msk [vmem:[#allocation0] sm:$0x1] %vm27_vm4, %v26_v13  }
  0x80   :  { %34 = vst.msk [vmem:[#allocation0] sm:$0x1] %vm33_vm5, %v32_v8  }
  0x81   :  { %40 = vst.msk [vmem:[#allocation0] sm:$0x1] %vm39_vm6, %v38_v9  }
  0x84   :  { %v44_v14 = vpop.permute.xlu0 %43  }
  0x85   :  { %46 = vst.msk [vmem:[#allocation0] sm:$0x1] %vm45_vm7, %v44_v14  }
  0x8c   :  { %v49_v15 = vld [vmem:[#allocation0] sm:$0x1] }
  0x8d   :  { %52 = vst [vmem:[%s112_s1] sm:$0x1] %v49_v15 }

// kernel: convnet_forward.8
= control target key start
LH: loop header
LB: loop body
LE: loop exit
PB: predicated region body
PF: predicated region fallthrough
CT: control target
= control target key end

     0   :  { %s1292_s15 = smov 0   ;;  %s1965_s0 = inlined_call_operand.vmem [shape: bf16[3200,32], index: 0, kind: input, shape index: {}]   ;;  %s1966_s1 = inlined_call_operand.vmem [shape: bf16[32,16], index: 1, kind: input, shape index: {}]   ;;  %s1967_s2 = inlined_call_operand.vmem [shape: f32[1,16], index: 2, kind: input, shape index: {}]   ;;  %s1968_s3 = inlined_call_operand.vmem [shape: bf16[3200,16], index: 3, kind: output, shape index: {0}]   ;;  %s1969_s4 = inlined_call_operand.vmem [shape: f32[8,8,16], index: 4, kind: output, shape index: {1}]  }
   0x1 LB: > { %s1298_s16 = sadd.s32 4294967295, %s1265_s15   ;;  %p1078_p0 = scmp.ge.s32.totalorder %s1265_s15, 1  ;;  %s1265_s15 = sphi %s1292_s15, %s15_s15  }
   0x2   : > { %p166_p1 = scmp.lt.s32.totalorder %s1265_s15, 9 }
   0x4   : > { %p167_p2 = pnand %p1078_p0, %p166_p1 }
   0x5   : > { %s196_s19 = smul.u32 (!%p167_p2), 50, %s1298_s16  ;;  %p208_p4 = scmp.lt.s32.totalorder (!%p167_p2), %s1298_s16, 7 }
   0x6   : > { %170 = sbr.rel (%p167_p2) target bundleno = 331 (0x14b), region = 32 }
   0x7   : > { %p197_p3 = scmp.lt.s32.totalorder (!%p167_p2), %s196_s19, 399 }
   0xb   : > { %v1243_v0 = vld [vmem:[%s1966_s1 + $0x8] sm:$0xff]  ;;  %v1242_v1 = vld [vmem:[%s1966_s1] sm:$0xff]  ;;  %s1971_s19 = smov (!%p197_p3, %s196_s19), 399  ;;  %vm408_vm0 = vcmask 261120   ;;  %vm668_vm1 = vcmask 125952   ;;  %vm719_vm2 = vcmask 130048  }
   0xc   : > { %490 = vmatpush.bf16.msra.mxu0 %v1243_v0  ;;  %1244 = vmatpush.bf16.msra.mxu1 %v1243_v0  ;;  %s1079_s22 = sshll.u32 %s1971_s19, 2  ;;  %v1372_v27 = vld [vmem:[%s1967_s2] ss:$0 sm:$0xff]  ;;  %s1973_s16 = smov (!%p208_p4, %s1298_s16), 7 }
   0xd   : > { %1245 = vmatpush.bf16.msra.mxu2 %v1243_v0  ;;  %1246 = vmatpush.bf16.msra.mxu3 %v1243_v0  ;;  %s1317_s25 = scalar_lea.vmem %s1965_s0, %s1079_s22  ;;  %s1385_s30 = scalar_lea.vmem %s1968_s3, %s1079_s22 }
   0xe   : > { %v1217_v2 = vld [vmem:[%s1317_s25] sm:$0xff]  ;;  %v1223_v3 = vld [vmem:[%s1317_s25 + $0x30] sm:$0xff]  ;;  %v1230_v4 = vld [vmem:[%s1317_s25 + $0x68] sm:$0xff]  ;;  %s1081_s5 = sshll.u32 %s1973_s16, 3 }
   0xf   : > { %v1218_v5 = vld [vmem:[%s1317_s25 + $0x8] sm:$0xff]  ;;  %v1224_v6 = vld [vmem:[%s1317_s25 + $0x38] sm:$0xff]  ;;  %v1231_v7 = vld [vmem:[%s1317_s25 + $0x70] sm:$0xff]  ;;  %s211_s8 = scalar_lea.vmem %s1969_s4, %s1081_s5 }
  0x10   : > { %491 = vmatpush.bf16.msra.mxu0 %v1242_v1  ;;  %1247 = vmatpush.bf16.msra.mxu1 %v1242_v1  ;;  %v1219_v8 = vld [vmem:[%s1317_s25 + $0x10] sm:$0xff]  ;;  %v1225_v9 = vld [vmem:[%s1317_s25 + $0x40] sm:$0xff]  ;;  %v1232_v10 = vld [vmem:[%s1317_s25 + $0x78] sm:$0xff] }
  0x11   : > { %1248 = vmatpush.bf16.msra.mxu2 %v1242_v1  ;;  %1249 = vmatpush.bf16.msra.mxu3 %v1242_v1  ;;  %v1237_v11 = vld [vmem:[%s1317_s25 + $0xa0] sm:$0xff]  ;;  %v1220_v12 = vld [vmem:[%s1317_s25 + $0x18] sm:$0xff]  ;;  %v1226_v13 = vld [vmem:[%s1317_s25 + $0x48] sm:$0xff] }
  0x12   : > { %v1233_v14 = vld [vmem:[%s1317_s25 + $0x80] sm:$0xff]  ;;  %v1238_v15 = vld [vmem:[%s1317_s25 + $0xa8] sm:$0xff]  ;;  %v1227_v17 = vld [vmem:[%s1317_s25 + $0x50] sm:$0xff] }
  0x13   : > { %1190 = vmatmul.msk.bf16.vlgmr.msra.gmra.mxu0 %vm408_vm0, %v1217_v2  ;;  %1196 = vmatmul.msk.bf16.vlgmr.msra.gmra.mxu1 %vm408_vm0, %v1223_v3  ;;  %v1221_v16 = vld [vmem:[%s1317_s25 + $0x20] sm:$0xff]  ;;  %v1234_v18 = vld [vmem:[%s1317_s25 + $0x88] sm:$0xff]  ;;  %v1239_v19 = vld [vmem:[%s1317_s25 + $0xb0] sm:$0xff] }
  0x14   : > { %1203 = vmatmul.msk.bf16.vlgmr.msra.gmra.mxu2 %vm408_vm0, %v1230_v4  ;;  %1210 = vmatmul.msk.bf16.vlgmr.msra.gmra.mxu3 %vm408_vm0, %v1237_v11  ;;  %v1222_v20 = vld [vmem:[%s1317_s25 + $0x28] sm:$0xff]  ;;  %v1228_v21 = vld [vmem:[%s1317_s25 + $0x58] sm:$0xff]  ;;  %v1235_v22 = vld [vmem:[%s1317_s25 + $0x90] sm:$0xff] }
  0x15   : > { %v1229_v23 = vld [vmem:[%s1317_s25 + $0x60] sm:$0xff]  ;;  %v1240_v24 = vld [vmem:[%s1317_s25 + $0xb8] sm:$0xff] }
  0x16   : > { %v1236_v25 = vld [vmem:[%s1317_s25 + $0x98] sm:$0xff]  ;;  %v1241_v26 = vld [vmem:[%s1317_s25 + $0xc0] sm:$0xff] }
  0x23   : > { %1191 = vmatmul.msk.bf16.gmra.mxu0 %vm408_vm0, %v1218_v5  ;;  %1197 = vmatmul.msk.bf16.gmra.mxu1 %vm408_vm0, %v1224_v6 }
  0x24   : > { %1204 = vmatmul.msk.bf16.gmra.mxu2 %vm408_vm0, %v1231_v7  ;;  %1211 = vmatmul.msk.bf16.gmra.mxu3 %vm408_vm0, %v1238_v15 }
  0x33   : > { %1192 = vmatmul.msk.bf16.gmra.mxu0 %vm408_vm0, %v1219_v8  ;;  %1198 = vmatmul.msk.bf16.gmra.mxu1 %vm408_vm0, %v1225_v9 }
  0x34   : > { %1205 = vmatmul.msk.bf16.gmra.mxu2 %vm408_vm0, %v1232_v10  ;;  %1212 = vmatmul.msk.bf16.gmra.mxu3 %vm408_vm0, %v1239_v19 }
  0x43   : > { %1193 = vmatmul.msk.bf16.gmra.mxu0 %vm408_vm0, %v1220_v12  ;;  %1199 = vmatmul.msk.bf16.gmra.mxu1 %vm408_vm0, %v1226_v13 }
  0x44   : > { %1206 = vmatmul.msk.bf16.gmra.mxu2 %vm408_vm0, %v1233_v14  ;;  %1213 = vmatmul.msk.bf16.gmra.mxu3 %vm408_vm0, %v1240_v24 }
  0x53   : > { %1194 = vmatmul.msk.bf16.gmra.mxu0 %vm408_vm0, %v1221_v16  ;;  %1200 = vmatmul.msk.bf16.gmra.mxu1 %vm408_vm0, %v1227_v17 }
  0x54   : > { %1207 = vmatmul.msk.bf16.gmra.mxu2 %vm408_vm0, %v1234_v18  ;;  %1214 = vmatmul.msk.bf16.gmra.mxu3 %vm408_vm0, %v1241_v26 }
  0x63   : > { %1195 = vmatmul.msk.bf16.gmra.mxu0 %vm408_vm0, %v1222_v20  ;;  %1201 = vmatmul.msk.bf16.gmra.mxu1 %vm408_vm0, %v1228_v21 }
  0x64   : > { %1208 = vmatmul.msk.bf16.gmra.mxu2 %vm408_vm0, %v1235_v22 }
  0x73   : > { %1202 = vmatmul.msk.bf16.gmra.mxu1 %vm408_vm0, %v1229_v23 }
  0x74   : > { %1209 = vmatmul.msk.bf16.gmra.mxu2 %vm408_vm0, %v1236_v25 }
  0x90   : > { %v493_v28 = vpop.f32.mrf.mxu0  ;;  %v523_v29 = vpop.f32.mrf.mxu1 }
  0x91   : > { %v1375_v30 = vadd.f32 %v1372_v27, %v493_v28  ;;  %v1378_v31 = vadd.f32 %v1372_v27, %v523_v29 }
  0x93   : > { %v618_v32 = vpack.c.bf16 %v1375_v30, %v1375_v30  ;;  %v630_v33 = vpack.c.bf16 %v1378_v31, %v1378_v31  ;;  %v720_v41 = vsel %vm719_vm2, %v1375_v30, 0.0 }
  0x95   : > { %669 = vst.msk [vmem:[%s1385_s30] sm:$0xf] %vm668_vm1, %v618_v32 }
  0x96   : > { %681 = vst.msk [vmem:[%s1385_s30 + $0x30] sm:$0xf] %vm668_vm1, %v630_v33 }
  0x97   : > { %v558_v34 = vpop.f32.mrf.mxu2  ;;  %v593_v28 = vpop.f32.mrf.mxu3 }
  0x98   : > { %v495_v35 = vpop.f32.mrf.mxu0  ;;  %v525_v36 = vpop.f32.mrf.mxu1  ;;  %v1396_v37 = vadd.f32 %v1372_v27, %v558_v34  ;;  %v1528_v29 = vadd.f32 %v1372_v27, %v593_v28 }
  0x99   : > { %v1399_v38 = vadd.f32 %v1372_v27, %v495_v35  ;;  %v1402_v39 = vadd.f32 %v1372_v27, %v525_v36 }
  0x9a   : > { %v644_v40 = vpack.c.bf16 %v1396_v37, %v1396_v37  ;;  %v658_v36 = vpack.c.bf16 %v1528_v29, %v1528_v29 }
  0x9b   : > { %v619_v42 = vpack.c.bf16 %v1399_v38, %v1399_v38  ;;  %v721_v43 = vsel %vm719_vm2, %v1399_v38, 0.0  ;;  %v631_v44 = vpack.c.bf16 %v1402_v39, %v1402_v39 }
  0x9c   : > { %v1414_v45 = vadd.f32 %v721_v43, %v720_v41  ;;  %695 = vst.msk [vmem:[%s1385_s30 + $0x68] sm:$0xf] %vm668_vm1, %v644_v40 }
  0x9d   : > { %670 = vst.msk [vmem:[%s1385_s30 + $0x4] sm:$0xf] %vm668_vm1, %v619_v42 }
  0x9e   : > { %682 = vst.msk [vmem:[%s1385_s30 + $0x34] sm:$0xf] %vm668_vm1, %v631_v44 }
  0x9f   : > { %v560_v46 = vpop.f32.mrf.mxu2  ;;  %709 = vst.msk [vmem:[%s1385_s30 + $0xa0] sm:$0xf] %vm668_vm1, %v658_v36 }
  0xa0   : > { %v498_v47 = vpop.f32.mrf.mxu0  ;;  %v528_v48 = vpop.f32.mrf.mxu1  ;;  %v1423_v49 = vadd.f32 %v1372_v27, %v560_v46 }
  0xa1   : > { %v1426_v50 = vadd.f32 %v1372_v27, %v498_v47  ;;  %v1429_v51 = vadd.f32 %v1372_v27, %v528_v48  ;;  %v595_v46 = vpop.f32.mrf.mxu3 }
  0xa2   : > { %v645_v52 = vpack.c.bf16 %v1423_v49, %v1423_v49  ;;  %v1554_v47 = vadd.f32 %v1372_v27, %v595_v46 }
  0xa3   : > { %v620_v53 = vpack.c.bf16 %v1426_v50, %v1426_v50  ;;  %v632_v54 = vpack.c.bf16 %v1429_v51, %v1429_v51 }
  0xa4   : > { %696 = vst.msk [vmem:[%s1385_s30 + $0x6c] sm:$0xf] %vm668_vm1, %v645_v52  ;;  %v659_v52 = vpack.c.bf16 %v1554_v47, %v1554_v47 }
  0xa5   : > { %671 = vst.msk [vmem:[%s1385_s30 + $0x8] sm:$0xf] %vm668_vm1, %v620_v53 }
  0xa6   : > { %683 = vst.msk [vmem:[%s1385_s30 + $0x38] sm:$0xf] %vm668_vm1, %v632_v54 }
  0xa7   : > { %v563_v55 = vpop.f32.mrf.mxu2  ;;  %710 = vst.msk [vmem:[%s1385_s30 + $0xa4] sm:$0xf] %vm668_vm1, %v659_v52 }
  0xa8   : > { %v500_v56 = vpop.f32.mrf.mxu0  ;;  %v530_v57 = vpop.f32.mrf.mxu1  ;;  %v1444_v58 = vadd.f32 %v1372_v27, %v563_v55 }
  0xa9   : > { %v1447_v59 = vadd.f32 %v1372_v27, %v500_v56  ;;  %v1450_v60 = vadd.f32 %v1372_v27, %v530_v57  ;;  %v826_v56 = vmul.f32 %v1399_v38, %v1399_v38 }
  0xaa   : > { %v646_v61 = vpack.c.bf16 %v1444_v58, %v1444_v58 }
  0xab   : > { %v621_v62 = vpack.c.bf16 %v1447_v59, %v1447_v59  ;;  %v633_v63 = vpack.c.bf16 %v1450_v60, %v1450_v60 }
  0xac   : > { %697 = vst.msk [vmem:[%s1385_s30 + $0x70] sm:$0xf] %vm668_vm1, %v646_v61 }
  0xad   : > { %672 = vst.msk [vmem:[%s1385_s30 + $0xc] sm:$0xf] %vm668_vm1, %v621_v62 }
  0xae   : > { %684 = vst.msk [vmem:[%s1385_s30 + $0x3c] sm:$0xf] %vm668_vm1, %v633_v63  ;;  %v825_v63 = vmul.f32 %v1375_v30, %v1375_v30 }
  0xaf   : > { %v565_v0 = vpop.f32.mrf.mxu2 }
  0xb0   : > { %v503_v1 = vpop.f32.mrf.mxu0  ;;  %v533_v2 = vpop.f32.mrf.mxu1  ;;  %v1465_v3 = vadd.f32 %v1372_v27, %v565_v0  ;;  %v827_v0 = vmul.f32 %v1426_v50, %v1426_v50  ;;  %v875_v30 = vsel %vm719_vm2, %v825_v63, 0.0 }
  0xb1   : > { %v1468_v4 = vadd.f32 %v1372_v27, %v503_v1  ;;  %v1471_v5 = vadd.f32 %v1372_v27, %v533_v2  ;;  %v598_v2 = vpop.f32.mrf.mxu3 }
  0xb2   : > { %v647_v6 = vpack.c.bf16 %v1465_v3, %v1465_v3  ;;  %v1625_v46 = vadd.f32 %v1372_v27, %v598_v2 }
  0xb3   : > { %v622_v7 = vpack.c.bf16 %v1468_v4, %v1468_v4  ;;  %v634_v8 = vpack.c.bf16 %v1471_v5, %v1471_v5  ;;  %v727_v28 = vsel %vm719_vm2, %v1468_v4, 0.0 }
  0xb4   : > { %698 = vst.msk [vmem:[%s1385_s30 + $0x74] sm:$0xf] %vm668_vm1, %v647_v6  ;;  %v876_v6 = vsel %vm719_vm2, %v826_v56, 0.0 }
  0xb5   : > { %673 = vst.msk [vmem:[%s1385_s30 + $0x10] sm:$0xf] %vm668_vm1, %v622_v7  ;;  %v828_v7 = vmul.f32 %v1447_v59, %v1447_v59 }
  0xb6   : > { %685 = vst.msk [vmem:[%s1385_s30 + $0x40] sm:$0xf] %vm668_vm1, %v634_v8  ;;  %v723_v8 = vsel %vm719_vm2, %v1426_v50, 0.0 }
  0xb7   : > { %v568_v9 = vpop.f32.mrf.mxu2 }
  0xb8   : > { %v505_v10 = vpop.f32.mrf.mxu0  ;;  %v535_v11 = vpop.f32.mrf.mxu1  ;;  %v1486_v12 = vadd.f32 %v1372_v27, %v568_v9  ;;  %v878_v9 = vsel %vm719_vm2, %v827_v0, 0.0 }
  0xb9   : > { %v1489_v13 = vadd.f32 %v1372_v27, %v505_v10  ;;  %v1492_v14 = vadd.f32 %v1372_v27, %v535_v11  ;;  %v877_v11 = vadd.f32 %v876_v6, %v875_v30 }
  0xba   : > { %v648_v15 = vpack.c.bf16 %v1486_v12, %v1486_v12 }
  0xbb   : > { %v623_v16 = vpack.c.bf16 %v1489_v13, %v1489_v13  ;;  %v635_v17 = vpack.c.bf16 %v1492_v14, %v1492_v14 }
  0xbc   : > { %699 = vst.msk [vmem:[%s1385_s30 + $0x78] sm:$0xf] %vm668_vm1, %v648_v15  ;;  %v829_v15 = vmul.f32 %v1468_v4, %v1468_v4  ;;  %v729_v4 = vsel %vm719_vm2, %v1489_v13, 0.0 }
  0xbd   : > { %674 = vst.msk [vmem:[%s1385_s30 + $0x14] sm:$0xf] %vm668_vm1, %v623_v16 }
  0xbe   : > { %686 = vst.msk [vmem:[%s1385_s30 + $0x44] sm:$0xf] %vm668_vm1, %v635_v17  ;;  %v882_v36 = vsel %vm719_vm2, %v829_v15, 0.0 }
  0xbf   : > { %v570_v18 = vpop.f32.mrf.mxu2 }
  0xc0   : > { %v508_v19 = vpop.f32.mrf.mxu0  ;;  %v538_v20 = vpop.f32.mrf.mxu1  ;;  %v1507_v21 = vadd.f32 %v1372_v27, %v570_v18  ;;  %v725_v18 = vsel %vm719_vm2, %v1447_v59, 0.0  ;;  %v830_v59 = vmul.f32 %v1489_v13, %v1489_v13 }
  0xc1   : > { %v1510_v22 = vadd.f32 %v1372_v27, %v508_v19  ;;  %v1513_v23 = vadd.f32 %v1372_v27, %v538_v20 }
  0xc2   : > { %v649_v24 = vpack.c.bf16 %v1507_v21, %v1507_v21  ;;  %v884_v56 = vsel %vm719_vm2, %v830_v59, 0.0 }
  0xc3   : > { %v624_v25 = vpack.c.bf16 %v1510_v22, %v1510_v22  ;;  %v636_v26 = vpack.c.bf16 %v1513_v23, %v1513_v23  ;;  %v731_v13 = vsel %vm719_vm2, %v1510_v22, 0.0 }
  0xc4   : > { %700 = vst.msk [vmem:[%s1385_s30 + $0x7c] sm:$0xf] %vm668_vm1, %v649_v24  ;;  %v724_v24 = vadd.f32 %v723_v8, %v1414_v45  ;;  %v831_v45 = vmul.f32 %v1510_v22, %v1510_v22 }
  0xc5   : > { %675 = vst.msk [vmem:[%s1385_s30 + $0x18] sm:$0xf] %vm668_vm1, %v624_v25  ;;  %v879_v25 = vadd.f32 %v878_v9, %v877_v11 }
  0xc6   : > { %687 = vst.msk [vmem:[%s1385_s30 + $0x48] sm:$0xf] %vm668_vm1, %v636_v26  ;;  %v880_v26 = vsel %vm719_vm2, %v828_v7, 0.0 }
  0xc7   : > { %v573_v32 = vpop.f32.mrf.mxu2 }
  0xc8   : > { %v510_v33 = vpop.f32.mrf.mxu0  ;;  %v540_v34 = vpop.f32.mrf.mxu1  ;;  %v1531_v35 = vadd.f32 %v1372_v27, %v573_v32 }
  0xc9   : > { %v1536_v40 = vadd.f32 %v1372_v27, %v510_v33  ;;  %v1539_v41 = vadd.f32 %v1372_v27, %v540_v34  ;;  %v726_v34 = vadd.f32 %v725_v18, %v724_v24 }
  0xca   : > { %v650_v42 = vpack.c.bf16 %v1531_v35, %v1531_v35 }
  0xcb   : > { %v625_v43 = vpack.c.bf16 %v1536_v40, %v1536_v40  ;;  %v637_v44 = vpack.c.bf16 %v1539_v41, %v1539_v41  ;;  %v832_v52 = vmul.f32 %v1536_v40, %v1536_v40  ;;  %v733_v22 = vsel %vm719_vm2, %v1536_v40, 0.0 }
  0xcc   : > { %701 = vst.msk [vmem:[%s1385_s30 + $0x80] sm:$0xf] %vm668_vm1, %v650_v42 }
  0xcd   : > { %676 = vst.msk [vmem:[%s1385_s30 + $0x1c] sm:$0xf] %vm668_vm1, %v625_v43  ;;  %v600_v43 = vpop.f32.mrf.mxu3  ;;  %v888_v15 = vsel %vm719_vm2, %v832_v52, 0.0 }
  0xce   : > { %688 = vst.msk [vmem:[%s1385_s30 + $0x4c] sm:$0xf] %vm668_vm1, %v637_v44  ;;  %v881_v44 = vadd.f32 %v880_v26, %v879_v25 }
  0xcf   : > { %v575_v48 = vpop.f32.mrf.mxu2 }
  0xd0   : > { %v513_v53 = vpop.f32.mrf.mxu0  ;;  %v543_v54 = vpop.f32.mrf.mxu1  ;;  %v1561_v55 = vadd.f32 %v1372_v27, %v575_v48  ;;  %v728_v48 = vadd.f32 %v727_v28, %v726_v34 }
  0xd1   : > { %v1566_v57 = vadd.f32 %v1372_v27, %v513_v53  ;;  %v1569_v61 = vadd.f32 %v1372_v27, %v543_v54  ;;  %v1632_v53 = vadd.f32 %v1372_v27, %v600_v43  ;;  %v883_v54 = vadd.f32 %v882_v36, %v881_v44 }
  0xd2   : > { %v651_v62 = vpack.c.bf16 %v1561_v55, %v1561_v55  ;;  %v730_v0 = vadd.f32 %v729_v4, %v728_v48 }
  0xd3   : > { %v626_v38 = vpack.c.bf16 %v1566_v57, %v1566_v57  ;;  %v638_v1 = vpack.c.bf16 %v1569_v61, %v1569_v61  ;;  %v661_v7 = vpack.c.bf16 %v1632_v53, %v1632_v53  ;;  %v833_v30 = vmul.f32 %v1566_v57, %v1566_v57 }
  0xd4   : > { %702 = vst.msk [vmem:[%s1385_s30 + $0x84] sm:$0xf] %vm668_vm1, %v651_v62  ;;  %v660_v62 = vpack.c.bf16 %v1625_v46, %v1625_v46  ;;  %v732_v11 = vadd.f32 %v731_v13, %v730_v0  ;;  %v735_v40 = vsel %vm719_vm2, %v1566_v57, 0.0  ;;  %v837_v13 = vmul.f32 %v1378_v31, %v1378_v31 }
  0xd5   : > { %677 = vst.msk [vmem:[%s1385_s30 + $0x20] sm:$0xf] %vm668_vm1, %v626_v38  ;;  %v886_v38 = vsel %vm719_vm2, %v831_v45, 0.0  ;;  %v603_v28 = vpop.f32.mrf.mxu3  ;;  %v890_v59 = vsel %vm719_vm2, %v833_v30, 0.0 }
  0xd6   : > { %689 = vst.msk [vmem:[%s1385_s30 + $0x50] sm:$0xf] %vm668_vm1, %v638_v1  ;;  %v734_v26 = vadd.f32 %v733_v22, %v732_v11  ;;  %v838_v11 = vmul.f32 %v1402_v39, %v1402_v39 }
  0xd7   : > { %v578_v10 = vpop.f32.mrf.mxu2  ;;  %711 = vst.msk [vmem:[%s1385_s30 + $0xa8] sm:$0xf] %vm668_vm1, %v660_v62 }
  0xd8   : > { %v515_v16 = vpop.f32.mrf.mxu0  ;;  %v545_v17 = vpop.f32.mrf.mxu1  ;;  %v1605_v50 = vadd.f32 %v1372_v27, %v578_v10  ;;  %v885_v10 = vadd.f32 %v884_v56, %v883_v54  ;;  %712 = vst.msk [vmem:[%s1385_s30 + $0xac] sm:$0xf] %vm668_vm1, %v661_v7  ;;  %v736_v36 = vadd.f32 %v735_v40, %v734_v26 }
  0xd9   : > { %v516_v19 = vadd.f32 %v1372_v27, %v515_v16  ;;  %v1602_v20 = vadd.f32 %v1372_v27, %v545_v17 }
  0xda   : > { %v652_v42 = vpack.c.bf16 %v1605_v50, %v1605_v50  ;;  %v887_v25 = vadd.f32 %v886_v38, %v885_v10  ;;  %v743_v10 = vsel %vm719_vm2, %v1378_v31, 0.0  ;;  %v898_v31 = vsel %vm719_vm2, %v837_v13, 0.0 }
  0xdb   : > { %v627_v32 = vpack.c.bf16 %v516_v19, %v516_v19  ;;  %v639_v33 = vpack.c.bf16 %v1602_v20, %v1602_v20  ;;  %v834_v17 = vmul.f32 %v516_v19, %v516_v19 }
  0xdc   : > { %703 = vst.msk [vmem:[%s1385_s30 + $0x88] sm:$0xf] %vm668_vm1, %v652_v42  ;;  %v889_v34 = vadd.f32 %v888_v15, %v887_v25  ;;  %v839_v25 = vmul.f32 %v1429_v51, %v1429_v51 }
  0xdd   : > { %678 = vst.msk [vmem:[%s1385_s30 + $0x24] sm:$0xf] %vm668_vm1, %v627_v32  ;;  %v737_v32 = vsel %vm719_vm2, %v516_v19, 0.0  ;;  %v892_v57 = vsel %vm719_vm2, %v834_v17, 0.0 }
  0xde   : > { %690 = vst.msk [vmem:[%s1385_s30 + $0x54] sm:$0xf] %vm668_vm1, %v639_v33  ;;  %v891_v43 = vadd.f32 %v890_v59, %v889_v34  ;;  %v738_v44 = vadd.f32 %v737_v32, %v736_v36 }
  0xdf   : > { %v580_v63 = vpop.f32.mrf.mxu2 }
  0xe0   : > { %v518_v1 = vpop.f32.mrf.mxu0  ;;  %v548_v2 = vpop.f32.mrf.mxu1  ;;  %v1643_v6 = vadd.f32 %v1372_v27, %v580_v63  ;;  %v893_v62 = vadd.f32 %v892_v57, %v891_v43  ;;  %v747_v57 = vsel %vm719_vm2, %v1429_v51, 0.0  ;;  %v749_v51 = vsel %vm719_vm2, %v1450_v60, 0.0 }
  0xe1   : > { %v519_v8 = vadd.f32 %v1372_v27, %v518_v1  ;;  %v1653_v9 = vadd.f32 %v1372_v27, %v548_v2 }
  0xe2   : > { %v653_v16 = vpack.c.bf16 %v1643_v6, %v1643_v6 }
  0xe3   : > { %v628_v18 = vpack.c.bf16 %v519_v8, %v519_v8  ;;  %v640_v24 = vpack.c.bf16 %v1653_v9, %v1653_v9  ;;  %v835_v33 = vmul.f32 %v519_v8, %v519_v8  ;;  %v739_v45 = vsel %vm719_vm2, %v519_v8, 0.0  ;;  %v605_v8 = vpop.f32.mrf.mxu3 }
  0xe4   : > { %704 = vst.msk [vmem:[%s1385_s30 + $0x8c] sm:$0xf] %vm668_vm1, %v653_v16  ;;  %v740_v63 = vadd.f32 %v739_v45, %v738_v44  ;;  %v1699_v16 = vadd.f32 %v1372_v27, %v603_v28  ;;  %v840_v45 = vmul.f32 %v1450_v60, %v1450_v60 }
  0xe5   : > { %679 = vst.msk [vmem:[%s1385_s30 + $0x28] sm:$0xf] %vm668_vm1, %v628_v18  ;;  %v894_v52 = vsel %vm719_vm2, %v835_v33, 0.0  ;;  %v1704_v18 = vadd.f32 %v1372_v27, %v605_v8 }
  0xe6   : > { %691 = vst.msk [vmem:[%s1385_s30 + $0x58] sm:$0xf] %vm668_vm1, %v640_v24  ;;  %v895_v7 = vadd.f32 %v894_v52, %v893_v62  ;;  %v745_v24 = vsel %vm719_vm2, %v1402_v39, 0.0  ;;  %v662_v26 = vpack.c.bf16 %v1699_v16, %v1699_v16  ;;  %v900_v39 = vsel %vm719_vm2, %v838_v11, 0.0 }
  0xe7   : > { %v583_v42 = vpop.f32.mrf.mxu2  ;;  %v663_v36 = vpack.c.bf16 %v1704_v18, %v1704_v18  ;;  %v841_v52 = vmul.f32 %v1471_v5, %v1471_v5 }
  0xe8   : > { %v520_v4 = vpop.f32.mrf.mxu0  ;;  %v550_v48 = vpop.f32.mrf.mxu1  ;;  %v1682_v56 = vadd.f32 %v1372_v27, %v583_v42  ;;  %713 = vst.msk [vmem:[%s1385_s30 + $0xb0] sm:$0xf] %vm668_vm1, %v662_v26 }
  0xe9   : > { %v521_v19 = vadd.f32 %v1372_v27, %v520_v4  ;;  %v1679_v54 = vadd.f32 %v1372_v27, %v550_v48  ;;  %714 = vst.msk [vmem:[%s1385_s30 + $0xb4] sm:$0xf] %vm668_vm1, %v663_v36  ;;  %v902_v48 = vsel %vm719_vm2, %v839_v25, 0.0 }
  0xea   : > { %v654_v30 = vpack.c.bf16 %v1682_v56, %v1682_v56 }
  0xeb   : > { %v629_v0 = vpack.c.bf16 %v521_v19, %v521_v19  ;;  %v741_v38 = vsel %vm719_vm2, %v521_v19, 0.0  ;;  %v836_v1 = vmul.f32 %v521_v19, %v521_v19  ;;  %v641_v2 = vpack.c.bf16 %v1679_v54, %v1679_v54 }
  0xec   : > { %v742_v22 = vadd.f32 %v741_v38, %v740_v63  ;;  %705 = vst.msk [vmem:[%s1385_s30 + $0x90] sm:$0xf] %vm668_vm1, %v654_v30  ;;  %v608_v63 = vpop.f32.mrf.mxu3  ;;  %v751_v38 = vsel %vm719_vm2, %v1471_v5, 0.0  ;;  %v843_v30 = vmul.f32 %v1513_v23, %v1513_v23 }
  0xed   : > { %680 = vst.msk [vmem:[%s1385_s30 + $0x2c] sm:$0xf] %vm668_vm1, %v629_v0  ;;  %v896_v15 = vsel %vm719_vm2, %v836_v1, 0.0  ;;  %v904_v0 = vsel %vm719_vm2, %v840_v45, 0.0  ;;  %v842_v1 = vmul.f32 %v1492_v14, %v1492_v14  ;;  %v759_v45 = vsel %vm719_vm2, %v1569_v61, 0.0 }
  0xee   : > { %v744_v40 = vadd.f32 %v743_v10, %v742_v22  ;;  %v897_v17 = vadd.f32 %v896_v15, %v895_v7  ;;  %692 = vst.msk [vmem:[%s1385_s30 + $0x5c] sm:$0xf] %vm668_vm1, %v641_v2  ;;  %v906_v7 = vsel %vm719_vm2, %v841_v52, 0.0  ;;  %v753_v22 = vsel %vm719_vm2, %v1492_v14, 0.0 }
  0xef   : > { %v585_v28 = vpop.f32.mrf.mxu2  ;;  %v844_v10 = vmul.f32 %v1539_v41, %v1539_v41  ;;  %v847_v52 = vmul.f32 %v1653_v9, %v1653_v9 }
  0xf0   : > { %v746_v59 = vadd.f32 %v745_v24, %v744_v40  ;;  %v899_v32 = vadd.f32 %v898_v31, %v897_v17  ;;  %v553_v33 = vpop.f32.mrf.mxu1  ;;  %v1716_v34 = vadd.f32 %v1372_v27, %v585_v28  ;;  %v908_v40 = vsel %vm719_vm2, %v842_v1, 0.0 }
  0xf1   : > { %v1726_v42 = vadd.f32 %v1372_v27, %v553_v33  ;;  %v755_v17 = vsel %vm719_vm2, %v1513_v23, 0.0  ;;  %v845_v24 = vmul.f32 %v1569_v61, %v1569_v61  ;;  %v910_v28 = vsel %vm719_vm2, %v843_v30, 0.0 }
  0xf2   : > { %v748_v43 = vadd.f32 %v747_v57, %v746_v59  ;;  %v901_v44 = vadd.f32 %v900_v39, %v899_v32  ;;  %v655_v4 = vpack.c.bf16 %v1716_v34, %v1716_v34  ;;  %v757_v59 = vsel %vm719_vm2, %v1539_v41, 0.0 }
  0xf3   : > { %v642_v19 = vpack.c.bf16 %v1726_v42, %v1726_v42  ;;  %v912_v33 = vsel %vm719_vm2, %v844_v10, 0.0  ;;  %v761_v61 = vsel %vm719_vm2, %v1602_v20, 0.0  ;;  %v918_v30 = vsel %vm719_vm2, %v847_v52, 0.0 }
  0xf4   : > { %v750_v13 = vadd.f32 %v749_v51, %v748_v43  ;;  %v903_v62 = vadd.f32 %v902_v48, %v901_v44  ;;  %706 = vst.msk [vmem:[%s1385_s30 + $0x94] sm:$0xf] %vm668_vm1, %v655_v4  ;;  %v610_v57 = vpop.f32.mrf.mxu3  ;;  %v846_v43 = vmul.f32 %v1602_v20, %v1602_v20  ;;  %v1779_v44 = vadd.f32 %v1372_v27, %v608_v63 }
  0xf5   : > { %693 = vst.msk [vmem:[%s1385_s30 + $0x60] sm:$0xf] %vm668_vm1, %v642_v19  ;;  %v1782_v41 = vadd.f32 %v1372_v27, %v610_v57  ;;  %v914_v4 = vsel %vm719_vm2, %v845_v24, 0.0  ;;  %v763_v20 = vsel %vm719_vm2, %v1653_v9, 0.0  ;;  %v849_v9 = vmul.f32 %v1726_v42, %v1726_v42 }
  0xf6   : > { %v752_v60 = vadd.f32 %v751_v38, %v750_v13  ;;  %v905_v2 = vadd.f32 %v904_v0, %v903_v62  ;;  %v664_v19 = vpack.c.bf16 %v1779_v44, %v1779_v44  ;;  %v916_v1 = vsel %vm719_vm2, %v846_v43, 0.0 }
  0xf7   : > { %v588_v8 = vpop.f32.mrf.mxu2  ;;  %v665_v62 = vpack.c.bf16 %v1782_v41, %v1782_v41 }
  0xf8   : > { %v907_v5 = vadd.f32 %v906_v7, %v905_v2  ;;  %v754_v11 = vadd.f32 %v753_v22, %v752_v60  ;;  %v555_v15 = vpop.f32.mrf.mxu1  ;;  %v1762_v14 = vadd.f32 %v1372_v27, %v588_v8  ;;  %v848_v60 = vmul.f32 %v1679_v54, %v1679_v54  ;;  %715 = vst.msk [vmem:[%s1385_s30 + $0xb8] sm:$0xf] %vm668_vm1, %v664_v19 }
  0xf9   : > { %v556_v31 = vadd.f32 %v1372_v27, %v555_v15  ;;  %716 = vst.msk [vmem:[%s1385_s30 + $0xbc] sm:$0xf] %vm668_vm1, %v665_v62  ;;  %v765_v8 = vsel %vm719_vm2, %v1679_v54, 0.0  ;;  %v922_v54 = vsel %vm719_vm2, %v849_v9, 0.0  ;;  %v857_v9 = vmul.f32 %v1531_v35, %v1531_v35 }
  0xfa   : > { %v756_v25 = vadd.f32 %v755_v17, %v754_v11  ;;  %v909_v26 = vadd.f32 %v908_v40, %v907_v5  ;;  %v656_v23 = vpack.c.bf16 %v1762_v14, %v1762_v14  ;;  %v920_v15 = vsel %vm719_vm2, %v848_v60, 0.0 }
  0xfb   : > { %v643_v32 = vpack.c.bf16 %v556_v31, %v556_v31  ;;  %v767_v40 = vsel %vm719_vm2, %v1726_v42, 0.0  ;;  %v850_v17 = vmul.f32 %v556_v31, %v556_v31 }
  0xfc   : > { %v758_v36 = vadd.f32 %v757_v59, %v756_v25  ;;  %v911_v39 = vadd.f32 %v910_v28, %v909_v26  ;;  %707 = vst.msk [vmem:[%s1385_s30 + $0x98] sm:$0xf] %vm668_vm1, %v656_v23  ;;  %v613_v11 = vpop.f32.mrf.mxu3  ;;  %v851_v26 = vmul.f32 %v1396_v37, %v1396_v37  ;;  %v769_v28 = vsel %vm719_vm2, %v556_v31, 0.0 }
  0xfd   : > { %694 = vst.msk [vmem:[%s1385_s30 + $0x64] sm:$0xf] %vm668_vm1, %v643_v32  ;;  %v852_v59 = vmul.f32 %v1423_v49, %v1423_v49  ;;  %v924_v42 = vsel %vm719_vm2, %v850_v17, 0.0  ;;  %v773_v31 = vsel %vm719_vm2, %v1423_v49, 0.0  ;;  %v1839_v52 = vadd.f32 %v1372_v27, %v613_v11 }
  0xfe   : > { %v760_v48 = vadd.f32 %v759_v45, %v758_v36  ;;  %v913_v51 = vadd.f32 %v912_v33, %v911_v39  ;;  %v771_v33 = vsel %vm719_vm2, %v1396_v37, 0.0  ;;  %v853_v36 = vmul.f32 %v1444_v58, %v1444_v58 }
  0xff   : > { %v590_v13 = vpop.f32.mrf.mxu2  ;;  %v926_v45 = vsel %vm719_vm2, %v851_v26, 0.0  ;;  %v928_v43 = vsel %vm719_vm2, %v852_v59, 0.0  ;;  %v775_v37 = vsel %vm719_vm2, %v1444_v58, 0.0  ;;  %v855_v58 = vmul.f32 %v1486_v12, %v1486_v12 }
 0x100   : > { %v762_v63 = vadd.f32 %v761_v61, %v760_v48  ;;  %v915_v0 = vadd.f32 %v914_v4, %v913_v51  ;;  %v1796_v38 = vadd.f32 %v1372_v27, %v590_v13  ;;  %v854_v61 = vmul.f32 %v1465_v3, %v1465_v3 }
 0x101   : > { %v930_v49 = vsel %vm719_vm2, %v853_v36, 0.0  ;;  %v783_v11 = vsel %vm719_vm2, %v1531_v35, 0.0  ;;  %v787_v35 = vsel %vm719_vm2, %v1605_v50, 0.0  ;;  %v860_v59 = vmul.f32 %v1643_v6, %v1643_v6 }
 0x102   : > { %v764_v2 = vadd.f32 %v763_v20, %v762_v63  ;;  %v917_v7 = vadd.f32 %v916_v1, %v915_v0  ;;  %v657_v22 = vpack.c.bf16 %v1796_v38, %v1796_v38  ;;  %v777_v63 = vsel %vm719_vm2, %v1465_v3, 0.0 }
 0x103   : > { %v666_v0 = vpack.c.bf16 %v1839_v52, %v1839_v52  ;;  %v932_v60 = vsel %vm719_vm2, %v854_v61, 0.0 }
 0x104   : > { %v766_v10 = vadd.f32 %v765_v8, %v764_v2  ;;  %v919_v5 = vadd.f32 %v918_v30, %v917_v7  ;;  %708 = vst.msk [vmem:[%s1385_s30 + $0x9c] sm:$0xf] %vm668_vm1, %v657_v22  ;;  %v615_v51 = vpop.f32.mrf.mxu3  ;;  %v779_v2 = vsel %vm719_vm2, %v1486_v12, 0.0  ;;  %v856_v7 = vmul.f32 %v1507_v21, %v1507_v21 }
 0x105   : > { %v1842_v19 = vadd.f32 %v1372_v27, %v615_v51  ;;  %717 = vst.msk [vmem:[%s1385_s30 + $0xc0] sm:$0xf] %vm668_vm1, %v666_v0  ;;  %v934_v30 = vsel %vm719_vm2, %v855_v58, 0.0  ;;  %v781_v8 = vsel %vm719_vm2, %v1507_v21, 0.0  ;;  %v785_v21 = vsel %vm719_vm2, %v1561_v55, 0.0 }
 0x106   : > { %v921_v24 = vadd.f32 %v920_v15, %v919_v5  ;;  %v768_v25 = vadd.f32 %v767_v40, %v766_v10  ;;  %v936_v12 = vsel %vm719_vm2, %v856_v7, 0.0  ;;  %v858_v15 = vmul.f32 %v1561_v55, %v1561_v55 }
 0x107   : > { %v667_v1 = vpack.c.bf16 %v1842_v19, %v1842_v19  ;;  %v789_v55 = vsel %vm719_vm2, %v1643_v6, 0.0  ;;  %v793_v6 = vsel %vm719_vm2, %v1716_v34, 0.0  ;;  %v797_v58 = vsel %vm719_vm2, %v1796_v38, 0.0 }
 0x108   : > { %v923_v32 = vadd.f32 %v922_v54, %v921_v24  ;;  %v770_v23 = vadd.f32 %v769_v28, %v768_v25  ;;  %v938_v24 = vsel %vm719_vm2, %v857_v9, 0.0  ;;  %v859_v25 = vmul.f32 %v1605_v50, %v1605_v50 }
 0x109   : > { %718 = vst.msk [vmem:[%s1385_s30 + $0xc4] sm:$0xf] %vm668_vm1, %v667_v1  ;;  %v940_v28 = vsel %vm719_vm2, %v858_v15, 0.0  ;;  %v791_v50 = vsel %vm719_vm2, %v1682_v56, 0.0  ;;  %v868_v9 = vmul.f32 %v1632_v53, %v1632_v53 }
 0x10a   : > { %v772_v39 = vadd.f32 %v771_v33, %v770_v23  ;;  %v925_v57 = vadd.f32 %v924_v42, %v923_v32  ;;  %v942_v33 = vsel %vm719_vm2, %v859_v25, 0.0  ;;  %v861_v42 = vmul.f32 %v1682_v56, %v1682_v56 }
 0x10b   : > { %v795_v56 = vsel %vm719_vm2, %v1762_v14, 0.0 }
 0x10c   : > { %v774_v4 = vadd.f32 %v773_v31, %v772_v39  ;;  %v927_v48 = vadd.f32 %v926_v45, %v925_v57  ;;  %v944_v57 = vsel %vm719_vm2, %v860_v59, 0.0  ;;  %v862_v45 = vmul.f32 %v1716_v34, %v1716_v34 }
 0x10e   : > { %v776_v13 = vadd.f32 %v775_v37, %v774_v4  ;;  %v929_v62 = vadd.f32 %v928_v43, %v927_v48  ;;  %v946_v4 = vsel %vm719_vm2, %v861_v42, 0.0  ;;  %v863_v48 = vmul.f32 %v1762_v14, %v1762_v14 }
 0x10f   : > { %v948_v61 = vsel %vm719_vm2, %v862_v45, 0.0  ;;  %v866_v14 = vmul.f32 %v1554_v47, %v1554_v47  ;;  %v873_v42 = vmul.f32 %v1839_v52, %v1839_v52 }
 0x110   : > { %v778_v20 = vadd.f32 %v777_v63, %v776_v13  ;;  %v931_v27 = vadd.f32 %v930_v49, %v929_v62  ;;  %v864_v49 = vmul.f32 %v1796_v38, %v1796_v38  ;;  %v865_v63 = vmul.f32 %v1528_v29, %v1528_v29 }
 0x111   : > { %v950_v34 = vsel %vm719_vm2, %v863_v48, 0.0  ;;  %v867_v38 = vmul.f32 %v1625_v46, %v1625_v46 }
 0x112   : > { %v780_v3 = vadd.f32 %v779_v2, %v778_v20  ;;  %v933_v22 = vadd.f32 %v932_v60, %v931_v27  ;;  %v799_v20 = vsel %vm719_vm2, %v1528_v29, 0.0  ;;  %v952_v27 = vsel %vm719_vm2, %v864_v49, 0.0 }
 0x113   : > { %v954_v7 = vsel %vm719_vm2, %v865_v63, 0.0  ;;  %v803_v29 = vsel %vm719_vm2, %v1625_v46, 0.0  ;;  %v807_v46 = vsel %vm719_vm2, %v1699_v16, 0.0 }
 0x114   : > { %v935_v10 = vadd.f32 %v934_v30, %v933_v22  ;;  %v782_v5 = vadd.f32 %v781_v8, %v780_v3  ;;  %v801_v3 = vsel %vm719_vm2, %v1554_v47, 0.0  ;;  %v956_v8 = vsel %vm719_vm2, %v866_v14, 0.0 }
 0x115   : > { %v805_v47 = vsel %vm719_vm2, %v1632_v53, 0.0  ;;  %v809_v53 = vsel %vm719_vm2, %v1704_v18, 0.0 }
 0x116   : > { %v784_v40 = vadd.f32 %v783_v11, %v782_v5  ;;  %v937_v17 = vadd.f32 %v936_v12, %v935_v10  ;;  %v958_v12 = vsel %vm719_vm2, %v867_v38, 0.0  ;;  %v869_v11 = vmul.f32 %v1699_v16, %v1699_v16 }
 0x117   : > { %v811_v16 = vsel %vm719_vm2, %v1779_v44, 0.0 }
 0x118   : > { %v786_v26 = vadd.f32 %v785_v21, %v784_v40  ;;  %v939_v54 = vadd.f32 %v938_v24, %v937_v17  ;;  %v960_v17 = vsel %vm719_vm2, %v868_v9, 0.0  ;;  %v870_v24 = vmul.f32 %v1704_v18, %v1704_v18 }
 0x119   : > { %v813_v18 = vsel %vm719_vm2, %v1782_v41, 0.0 }
 0x11a   : > { %v788_v32 = vadd.f32 %v787_v35, %v786_v26  ;;  %v941_v23 = vadd.f32 %v940_v28, %v939_v54  ;;  %v962_v26 = vsel %vm719_vm2, %v869_v11, 0.0  ;;  %v871_v54 = vmul.f32 %v1779_v44, %v1779_v44 }
 0x11b   : > { %v964_v59 = vsel %vm719_vm2, %v870_v24, 0.0  ;;  %v815_v44 = vsel %vm719_vm2, %v1839_v52, 0.0 }
 0x11c   : > { %v790_v36 = vadd.f32 %v789_v55, %v788_v32  ;;  %v943_v39 = vadd.f32 %v942_v33, %v941_v23  ;;  %v872_v32 = vmul.f32 %v1782_v41, %v1782_v41  ;;  %v966_v55 = vsel %vm719_vm2, %v871_v54, 0.0 }
 0x11d   : > { %v817_v41 = vsel %vm719_vm2, %v1842_v19, 0.0 }
 0x11e   : > { %v792_v31 = vadd.f32 %v791_v50, %v790_v36  ;;  %v945_v43 = vadd.f32 %v944_v57, %v943_v39  ;;  %v968_v57 = vsel %vm719_vm2, %v872_v32, 0.0  ;;  %v874_v50 = vmul.f32 %v1842_v19, %v1842_v19 }
 0x120   : > { %v947_v51 = vadd.f32 %v946_v4, %v945_v43  ;;  %v794_v37 = vadd.f32 %v793_v6, %v792_v31  ;;  %v970_v43 = vsel %vm719_vm2, %v873_v42, 0.0  ;;  %v972_v48 = vsel %vm719_vm2, %v874_v50, 0.0 }
 0x122   : > { %v949_v13 = vadd.f32 %v948_v61, %v947_v51  ;;  %v796_v62 = vadd.f32 %v795_v56, %v794_v37  ;;  %v980_v56 = vlaneseq }
 0x124   : > { %v951_v0 = vadd.f32 %v950_v34, %v949_v13  ;;  %v798_v1 = vadd.f32 %v797_v58, %v796_v62  ;;  %v981_v34 = vshrl.u32 %v980_v56, 7 }
 0x126   : > { %v800_v60 = vadd.f32 %v799_v20, %v798_v1  ;;  %v953_v2 = vadd.f32 %v952_v27, %v951_v0  ;;  %vm983_vm3 = vcmp.eq.s32.totalorder %v981_v34, 1  ;;  %vm982_vm4 = vcmp.eq.s32.totalorder %v981_v34, 0 }
 0x128   : > { %v802_v22 = vadd.f32 %v801_v3, %v800_v60  ;;  %v955_v30 = vadd.f32 %v954_v7, %v953_v2 }
 0x12a   : > { %v804_v10 = vadd.f32 %v803_v29, %v802_v22  ;;  %v957_v5 = vadd.f32 %v956_v8, %v955_v30 }
 0x12c   : > { %v959_v15 = vadd.f32 %v958_v12, %v957_v5  ;;  %v806_v40 = vadd.f32 %v805_v47, %v804_v10 }
 0x12e   : > { %v808_v21 = vadd.f32 %v807_v46, %v806_v40  ;;  %v961_v25 = vadd.f32 %v960_v17, %v959_v15 }
 0x130   : > { %v810_v28 = vadd.f32 %v809_v53, %v808_v21  ;;  %v963_v35 = vadd.f32 %v962_v26, %v961_v25 }
 0x132   : > { %v812_v23 = vadd.f32 %v811_v16, %v810_v28  ;;  %v965_v33 = vadd.f32 %v964_v59, %v963_v35 }
 0x134   : > { %v814_v36 = vadd.f32 %v813_v18, %v812_v23  ;;  %v967_v39 = vadd.f32 %v966_v55, %v965_v33 }
 0x136   : > { %v969_v45 = vadd.f32 %v968_v57, %v967_v39  ;;  %v816_v31 = vadd.f32 %v815_v44, %v814_v36 }
 0x138   : > { %v971_v4 = vadd.f32 %v970_v43, %v969_v45  ;;  %v818_v6 = vadd.f32 %v817_v41, %v816_v31 }
 0x13a   : > { %v819_v51 = vrot.slane %v818_v6, 4  ;;  %v973_v37 = vadd.f32 %v972_v48, %v971_v4 }
 0x13c   : > { %v820_v61 = vadd.f32 %v819_v51, %v818_v6  ;;  %v974_v52 = vrot.slane %v973_v37, 4 }
 0x13e   : > { %v821_v49 = vrot.slane %v820_v61, 2  ;;  %v975_v13 = vadd.f32 %v974_v52, %v973_v37 }
 0x140   : > { %v822_v62 = vadd.f32 %v821_v49, %v820_v61  ;;  %v976_v63 = vrot.slane %v975_v13, 2 }
 0x142   : > { %v977_v58 = vadd.f32 %v976_v63, %v975_v13  ;;  %v823_v0 = vrot.slane %v822_v62, 1 }
 0x144   : > { %v978_v19 = vrot.slane %v977_v58, 1  ;;  %v824_v20 = vadd.f32 %v823_v0, %v822_v62 }
 0x146   : > { %v979_v1 = vadd.f32 %v978_v19, %v977_v58 }
 0x148   : > { %v984_v14 = vsel %vm983_vm3, %v979_v1, 0.0 }
 0x149   : > { %v985_v27 = vsel %vm982_vm4, %v824_v20, %v984_v14 }
 0x14a   : > { %986 = vst.msk [vmem:[%s211_s8] sm:$0xff] %vm719_vm2, %v985_v27 }
 0x14b PF: > { %s15_s15 = sadd.s32 1, %s1265_s15  }
 0x14c   : > { %p12_p5 = scmp.ge.s32.totalorder %s15_s15, 10  }
 0x14e   :  { %14 = sbr.rel (!%p12_p5) target bundleno = 1 (0x1), region = 74 }

// kernel: convnet_forward.9
= control target key start
LH: loop header
LB: loop body
LE: loop exit
PB: predicated region body
PF: predicated region fallthrough
CT: control target
= control target key end

     0   :  { %s1031_s0 = inlined_call_operand.vmem [shape: bf16[400,128], index: 0, kind: input, shape index: {}]   ;;  %s1032_s1 = inlined_call_operand.vmem [shape: f32[1,128], index: 1, kind: input, shape index: {}]   ;;  %s1033_s2 = inlined_call_operand.vmem [shape: f32[1,128], index: 2, kind: input, shape index: {}]   ;;  %s1034_s3 = inlined_call_operand.vmem [shape: bf16[400,128], index: 3, kind: output, shape index: {}]  }
   0x1   :  { %v477_v0 = vld [vmem:[%s1031_s0] sm:$0xff]   ;;  %v701_v5 = vld [vmem:[%s1031_s0 + $0x8] sm:$0xff]   ;;  %v702_v8 = vld [vmem:[%s1031_s0 + $0x10] sm:$0xff]  }
   0x2   :  { %v777_v1 = vld [vmem:[%s1032_s1] ss:$0 sm:$0xff]  ;;  %v478_v2 = vunpack.c.l.bf16 %v477_v0  ;;  %v479_v3 = vunpack.c.h.bf16 %v477_v0  ;;  %v482_v6 = vunpack.c.l.bf16 %v701_v5  ;;  %v483_v7 = vunpack.c.h.bf16 %v701_v5  ;;  %v703_v9 = vld [vmem:[%s1031_s0 + $0x18] sm:$0xff]   ;;  %v705_v39 = vld [vmem:[%s1031_s0 + $0x28] sm:$0xff]  }
   0x3   :  { %v782_v4 = vld [vmem:[%s1033_s2] ss:$0 sm:$0xff]  ;;  %v486_v12 = vunpack.c.l.bf16 %v702_v8  ;;  %v487_v13 = vunpack.c.h.bf16 %v702_v8  ;;  %v490_v16 = vunpack.c.l.bf16 %v703_v9  ;;  %v491_v17 = vunpack.c.h.bf16 %v703_v9  ;;  %v706_v49 = vld [vmem:[%s1031_s0 + $0x30] sm:$0xff]   ;;  %v707_v57 = vld [vmem:[%s1031_s0 + $0x38] sm:$0xff]  }
   0x4   :  { %v118_v10 = vmul.f32 %v777_v1, %v478_v2  ;;  %v119_v11 = vmul.f32 %v777_v1, %v479_v3  ;;  %v120_v14 = vmul.f32 %v777_v1, %v482_v6  ;;  %v121_v15 = vmul.f32 %v777_v1, %v483_v7  ;;  %v704_v38 = vld [vmem:[%s1031_s0 + $0x20] sm:$0xff]  }
   0x5   :  { %v122_v20 = vmul.f32 %v777_v1, %v486_v12  ;;  %v123_v21 = vmul.f32 %v777_v1, %v487_v13  ;;  %v124_v24 = vmul.f32 %v777_v1, %v490_v16  ;;  %v125_v25 = vmul.f32 %v777_v1, %v491_v17 }
   0x6   :  { %v172_v18 = vadd.f32 %v782_v4, %v118_v10  ;;  %v173_v19 = vadd.f32 %v782_v4, %v119_v11  ;;  %v174_v22 = vadd.f32 %v782_v4, %v120_v14  ;;  %v175_v23 = vadd.f32 %v782_v4, %v121_v15 }
   0x7   :  { %v176_v32 = vadd.f32 %v782_v4, %v122_v20  ;;  %v177_v33 = vadd.f32 %v782_v4, %v123_v21  ;;  %v178_v37 = vadd.f32 %v782_v4, %v124_v24  ;;  %v179_v43 = vadd.f32 %v782_v4, %v125_v25  ;;  %v709_v20 = vld [vmem:[%s1031_s0 + $0x48] sm:$0xff]  }
   0x8   :  { %vm222_vm0 = vcmp.gt.f32.partialorder %v172_v18, 0.0  ;;  %vm223_vm1 = vcmp.gt.f32.partialorder %v173_v19, 0.0  ;;  %v272_v26 = vmul.f32 0.01, %v172_v18  ;;  %v273_v27 = vmul.f32 0.01, %v173_v19 }
   0x9   :  { %vm224_vm2 = vcmp.gt.f32.partialorder %v174_v22, 0.0  ;;  %vm225_vm3 = vcmp.gt.f32.partialorder %v175_v23, 0.0  ;;  %v274_v28 = vmul.f32 0.01, %v174_v22  ;;  %v275_v29 = vmul.f32 0.01, %v175_v23 }
   0xa   :  { %v322_v30 = vsel %vm222_vm0, %v172_v18, %v272_v26  ;;  %v323_v31 = vsel %vm223_vm1, %v173_v19, %v273_v27  ;;  %vm226_vm4 = vcmp.gt.f32.partialorder %v176_v32, 0.0  ;;  %vm227_vm5 = vcmp.gt.f32.partialorder %v177_v33, 0.0  ;;  %v708_v19 = vld [vmem:[%s1031_s0 + $0x40] sm:$0xff]  }
   0xb   :  { %v579_v34 = vpack.c.bf16 %v323_v31, %v322_v30  ;;  %v324_v35 = vsel %vm224_vm2, %v174_v22, %v274_v28  ;;  %v325_v36 = vsel %vm225_vm3, %v175_v23, %v275_v29  ;;  %v276_v41 = vmul.f32 0.01, %v176_v32  ;;  %v710_v28 = vld [vmem:[%s1031_s0 + $0x50] sm:$0xff]  }
   0xc   :  { %v584_v40 = vpack.c.bf16 %v325_v36, %v324_v35  ;;  %v277_v42 = vmul.f32 0.01, %v177_v33  ;;  %vm228_vm6 = vcmp.gt.f32.partialorder %v178_v37, 0.0  ;;  %v278_v44 = vmul.f32 0.01, %v178_v37 }
   0xd   :  { %580 = vst [vmem:[%s1034_s3] sm:$0xff] %v579_v34   ;;  %v326_v45 = vsel %vm226_vm4, %v176_v32, %v276_v41  ;;  %v494_v46 = vunpack.c.l.bf16 %v704_v38  ;;  %v495_v47 = vunpack.c.h.bf16 %v704_v38  ;;  %v498_v48 = vunpack.c.l.bf16 %v705_v39 }
   0xe   :  { %725 = vst [vmem:[%s1034_s3 + $0x8] sm:$0xff] %v584_v40   ;;  %v327_v50 = vsel %vm227_vm5, %v177_v33, %v277_v42  ;;  %vm229_vm7 = vcmp.gt.f32.partialorder %v179_v43, 0.0  ;;  %v279_v51 = vmul.f32 0.01, %v179_v43  ;;  %v328_v52 = vsel %vm228_vm6, %v178_v37, %v278_v44 }
   0xf   :  { %v589_v53 = vpack.c.bf16 %v327_v50, %v326_v45  ;;  %v126_v54 = vmul.f32 %v777_v1, %v494_v46  ;;  %v127_v55 = vmul.f32 %v777_v1, %v495_v47  ;;  %v499_v56 = vunpack.c.h.bf16 %v705_v39 }
  0x10   :  { %v329_v58 = vsel %vm229_vm7, %v179_v43, %v279_v51  ;;  %v128_v59 = vmul.f32 %v777_v1, %v498_v48  ;;  %v502_v60 = vunpack.c.l.bf16 %v706_v49  ;;  %v503_v61 = vunpack.c.h.bf16 %v706_v49 }
  0x11   :  { %726 = vst [vmem:[%s1034_s3 + $0x10] sm:$0xff] %v589_v53   ;;  %v594_v62 = vpack.c.bf16 %v329_v58, %v328_v52  ;;  %v180_v63 = vadd.f32 %v782_v4, %v126_v54  ;;  %v181_v0 = vadd.f32 %v782_v4, %v127_v55  ;;  %v129_v2 = vmul.f32 %v777_v1, %v499_v56  ;;  %v711_v55 = vld [vmem:[%s1031_s0 + $0x58] sm:$0xff]   ;;  %v712_v56 = vld [vmem:[%s1031_s0 + $0x60] sm:$0xff]  }
  0x12   :  { %v182_v3 = vadd.f32 %v782_v4, %v128_v59  ;;  %v130_v5 = vmul.f32 %v777_v1, %v502_v60  ;;  %v131_v6 = vmul.f32 %v777_v1, %v503_v61  ;;  %v506_v7 = vunpack.c.l.bf16 %v707_v57 }
  0x13   :  { %727 = vst [vmem:[%s1034_s3 + $0x18] sm:$0xff] %v594_v62   ;;  %vm230_vm8 = vcmp.gt.f32.partialorder %v180_v63, 0.0  ;;  %vm231_vm9 = vcmp.gt.f32.partialorder %v181_v0, 0.0  ;;  %v280_v8 = vmul.f32 0.01, %v180_v63  ;;  %v183_v9 = vadd.f32 %v782_v4, %v129_v2  ;;  %v713_v2 = vld [vmem:[%s1031_s0 + $0x68] sm:$0xff]  }
  0x14   :  { %v281_v10 = vmul.f32 0.01, %v181_v0  ;;  %vm232_vm10 = vcmp.gt.f32.partialorder %v182_v3, 0.0  ;;  %v282_v11 = vmul.f32 0.01, %v182_v3  ;;  %v184_v12 = vadd.f32 %v782_v4, %v130_v5 }
  0x15   :  { %v330_v13 = vsel %vm230_vm8, %v180_v63, %v280_v8  ;;  %vm233_vm11 = vcmp.gt.f32.partialorder %v183_v9, 0.0  ;;  %v283_v14 = vmul.f32 0.01, %v183_v9  ;;  %v185_v15 = vadd.f32 %v782_v4, %v131_v6 }
  0x16   :  { %v331_v16 = vsel %vm231_vm9, %v181_v0, %v281_v10  ;;  %v332_v17 = vsel %vm232_vm10, %v182_v3, %v282_v11  ;;  %vm234_vm12 = vcmp.gt.f32.partialorder %v184_v12, 0.0  ;;  %v284_v18 = vmul.f32 0.01, %v184_v12 }
  0x17   :  { %v599_v21 = vpack.c.bf16 %v331_v16, %v330_v13  ;;  %v333_v22 = vsel %vm233_vm11, %v183_v9, %v283_v14  ;;  %vm235_vm13 = vcmp.gt.f32.partialorder %v185_v15, 0.0  ;;  %v285_v23 = vmul.f32 0.01, %v185_v15 }
  0x18   :  { %v604_v24 = vpack.c.bf16 %v333_v22, %v332_v17  ;;  %v334_v25 = vsel %vm234_vm12, %v184_v12, %v284_v18  ;;  %v507_v26 = vunpack.c.h.bf16 %v707_v57  ;;  %v132_v27 = vmul.f32 %v777_v1, %v506_v7 }
  0x19   :  { %728 = vst [vmem:[%s1034_s3 + $0x20] sm:$0xff] %v599_v21   ;;  %v335_v29 = vsel %vm235_vm13, %v185_v15, %v285_v23  ;;  %v510_v30 = vunpack.c.l.bf16 %v708_v19  ;;  %v511_v31 = vunpack.c.h.bf16 %v708_v19  ;;  %v514_v32 = vunpack.c.l.bf16 %v709_v20 }
  0x1a   :  { %729 = vst [vmem:[%s1034_s3 + $0x28] sm:$0xff] %v604_v24   ;;  %v609_v33 = vpack.c.bf16 %v335_v29, %v334_v25  ;;  %v133_v34 = vmul.f32 %v777_v1, %v507_v26  ;;  %v186_v35 = vadd.f32 %v782_v4, %v132_v27  ;;  %v515_v36 = vunpack.c.h.bf16 %v709_v20 }
  0x1b   :  { %v134_v37 = vmul.f32 %v777_v1, %v510_v30  ;;  %v135_v38 = vmul.f32 %v777_v1, %v511_v31  ;;  %v136_v39 = vmul.f32 %v777_v1, %v514_v32  ;;  %v518_v40 = vunpack.c.l.bf16 %v710_v28 }
  0x1c   :  { %730 = vst [vmem:[%s1034_s3 + $0x30] sm:$0xff] %v609_v33   ;;  %v187_v41 = vadd.f32 %v782_v4, %v133_v34  ;;  %vm236_vm14 = vcmp.gt.f32.partialorder %v186_v35, 0.0  ;;  %v286_v42 = vmul.f32 0.01, %v186_v35  ;;  %v137_v43 = vmul.f32 %v777_v1, %v515_v36 }
  0x1d   :  { %v188_v44 = vadd.f32 %v782_v4, %v134_v37  ;;  %v189_v45 = vadd.f32 %v782_v4, %v135_v38  ;;  %v190_v46 = vadd.f32 %v782_v4, %v136_v39  ;;  %v519_v47 = vunpack.c.h.bf16 %v710_v28  ;;  %v714_v28 = vld [vmem:[%s1031_s0 + $0x70] sm:$0xff]   ;;  %v715_v39 = vld [vmem:[%s1031_s0 + $0x78] sm:$0xff]  }
  0x1e   :  { %vm237_vm15 = vcmp.gt.f32.partialorder %v187_v41, 0.0  ;;  %v287_v48 = vmul.f32 0.01, %v187_v41  ;;  %v336_v49 = vsel %vm236_vm14, %v186_v35, %v286_v42  ;;  %v191_v50 = vadd.f32 %v782_v4, %v137_v43 }
  0x1f   :  { %vm238_vm0 = vcmp.gt.f32.partialorder %v188_v44, 0.0  ;;  %vm239_vm1 = vcmp.gt.f32.partialorder %v189_v45, 0.0  ;;  %v288_v51 = vmul.f32 0.01, %v188_v44  ;;  %v289_v52 = vmul.f32 0.01, %v189_v45 }
  0x20   :  { %v337_v53 = vsel %vm237_vm15, %v187_v41, %v287_v48  ;;  %vm240_vm2 = vcmp.gt.f32.partialorder %v190_v46, 0.0  ;;  %vm241_vm3 = vcmp.gt.f32.partialorder %v191_v50, 0.0  ;;  %v290_v54 = vmul.f32 0.01, %v190_v46 }
  0x21   :  { %v614_v57 = vpack.c.bf16 %v337_v53, %v336_v49  ;;  %v338_v58 = vsel %vm238_vm0, %v188_v44, %v288_v51  ;;  %v339_v59 = vsel %vm239_vm1, %v189_v45, %v289_v52  ;;  %v291_v60 = vmul.f32 0.01, %v191_v50  ;;  %v716_v44 = vld [vmem:[%s1031_s0 + $0x80] sm:$0xff]  }
  0x22   :  { %v619_v61 = vpack.c.bf16 %v339_v59, %v338_v58  ;;  %v340_v62 = vsel %vm240_vm2, %v190_v46, %v290_v54  ;;  %v138_v63 = vmul.f32 %v777_v1, %v518_v40  ;;  %v139_v0 = vmul.f32 %v777_v1, %v519_v47  ;;  %v717_v59 = vld [vmem:[%s1031_s0 + $0x88] sm:$0xff]  }
  0x23   :  { %731 = vst [vmem:[%s1034_s3 + $0x38] sm:$0xff] %v614_v57   ;;  %v341_v3 = vsel %vm241_vm3, %v191_v50, %v291_v60  ;;  %v522_v5 = vunpack.c.l.bf16 %v711_v55  ;;  %v523_v6 = vunpack.c.h.bf16 %v711_v55  ;;  %v526_v7 = vunpack.c.l.bf16 %v712_v56 }
  0x24   :  { %732 = vst [vmem:[%s1034_s3 + $0x40] sm:$0xff] %v619_v61   ;;  %v624_v8 = vpack.c.bf16 %v341_v3, %v340_v62  ;;  %v192_v9 = vadd.f32 %v782_v4, %v138_v63  ;;  %v193_v10 = vadd.f32 %v782_v4, %v139_v0  ;;  %v527_v11 = vunpack.c.h.bf16 %v712_v56 }
  0x25   :  { %v140_v12 = vmul.f32 %v777_v1, %v522_v5  ;;  %v141_v13 = vmul.f32 %v777_v1, %v523_v6  ;;  %v142_v14 = vmul.f32 %v777_v1, %v526_v7  ;;  %v530_v15 = vunpack.c.l.bf16 %v713_v2 }
  0x26   :  { %733 = vst [vmem:[%s1034_s3 + $0x48] sm:$0xff] %v624_v8   ;;  %vm242_vm4 = vcmp.gt.f32.partialorder %v192_v9, 0.0  ;;  %vm243_vm5 = vcmp.gt.f32.partialorder %v193_v10, 0.0  ;;  %v292_v16 = vmul.f32 0.01, %v192_v9  ;;  %v143_v17 = vmul.f32 %v777_v1, %v527_v11 }
  0x27   :  { %v293_v18 = vmul.f32 0.01, %v193_v10  ;;  %v194_v19 = vadd.f32 %v782_v4, %v140_v12  ;;  %v195_v20 = vadd.f32 %v782_v4, %v141_v13  ;;  %v196_v21 = vadd.f32 %v782_v4, %v142_v14  ;;  %v718_v14 = vld [vmem:[%s1031_s0 + $0x90] sm:$0xff]  }
  0x28   :  { %v342_v22 = vsel %vm242_vm4, %v192_v9, %v292_v16  ;;  %v197_v23 = vadd.f32 %v782_v4, %v143_v17  ;;  %v531_v24 = vunpack.c.h.bf16 %v713_v2  ;;  %v144_v25 = vmul.f32 %v777_v1, %v530_v15 }
  0x29   :  { %v343_v26 = vsel %vm243_vm5, %v193_v10, %v293_v18  ;;  %vm244_vm6 = vcmp.gt.f32.partialorder %v194_v19, 0.0  ;;  %vm245_vm7 = vcmp.gt.f32.partialorder %v195_v20, 0.0  ;;  %v294_v27 = vmul.f32 0.01, %v194_v19  ;;  %v719_v18 = vld [vmem:[%s1031_s0 + $0x98] sm:$0xff]  }
  0x2a   :  { %v629_v29 = vpack.c.bf16 %v343_v26, %v342_v22  ;;  %v295_v30 = vmul.f32 0.01, %v195_v20  ;;  %vm246_vm8 = vcmp.gt.f32.partialorder %v196_v21, 0.0  ;;  %vm247_vm9 = vcmp.gt.f32.partialorder %v197_v23, 0.0 }
  0x2b   :  { %v344_v31 = vsel %vm244_vm6, %v194_v19, %v294_v27  ;;  %v296_v32 = vmul.f32 0.01, %v196_v21  ;;  %v297_v33 = vmul.f32 0.01, %v197_v23  ;;  %v145_v34 = vmul.f32 %v777_v1, %v531_v24 }
  0x2c   :  { %734 = vst [vmem:[%s1034_s3 + $0x50] sm:$0xff] %v629_v29   ;;  %v345_v35 = vsel %vm245_vm7, %v195_v20, %v295_v30  ;;  %v198_v36 = vadd.f32 %v782_v4, %v144_v25  ;;  %v534_v37 = vunpack.c.l.bf16 %v714_v28  ;;  %v535_v38 = vunpack.c.h.bf16 %v714_v28 }
  0x2d   :  { %v634_v40 = vpack.c.bf16 %v345_v35, %v344_v31  ;;  %v346_v41 = vsel %vm246_vm8, %v196_v21, %v296_v32  ;;  %v347_v42 = vsel %vm247_vm9, %v197_v23, %v297_v33  ;;  %v199_v43 = vadd.f32 %v782_v4, %v145_v34  ;;  %v720_v34 = vld [vmem:[%s1031_s0 + $0xa0] sm:$0xff]  }
  0x2e   :  { %v639_v45 = vpack.c.bf16 %v347_v42, %v346_v41  ;;  %vm248_vm10 = vcmp.gt.f32.partialorder %v198_v36, 0.0  ;;  %v298_v46 = vmul.f32 0.01, %v198_v36  ;;  %v146_v47 = vmul.f32 %v777_v1, %v534_v37 }
  0x2f   :  { %735 = vst [vmem:[%s1034_s3 + $0x58] sm:$0xff] %v634_v40   ;;  %vm249_vm11 = vcmp.gt.f32.partialorder %v199_v43, 0.0  ;;  %v299_v48 = vmul.f32 0.01, %v199_v43  ;;  %v147_v49 = vmul.f32 %v777_v1, %v535_v38  ;;  %v538_v50 = vunpack.c.l.bf16 %v715_v39 }
  0x30   :  { %736 = vst [vmem:[%s1034_s3 + $0x60] sm:$0xff] %v639_v45   ;;  %v348_v51 = vsel %vm248_vm10, %v198_v36, %v298_v46  ;;  %v200_v52 = vadd.f32 %v782_v4, %v146_v47  ;;  %v539_v53 = vunpack.c.h.bf16 %v715_v39  ;;  %v542_v54 = vunpack.c.l.bf16 %v716_v44 }
  0x31   :  { %v349_v55 = vsel %vm249_vm11, %v199_v43, %v299_v48  ;;  %v201_v56 = vadd.f32 %v782_v4, %v147_v49  ;;  %v148_v57 = vmul.f32 %v777_v1, %v538_v50  ;;  %v543_v58 = vunpack.c.h.bf16 %v716_v44  ;;  %v721_v48 = vld [vmem:[%s1031_s0 + $0xa8] sm:$0xff]  }
  0x32   :  { %v644_v60 = vpack.c.bf16 %v349_v55, %v348_v51  ;;  %vm250_vm12 = vcmp.gt.f32.partialorder %v200_v52, 0.0  ;;  %v300_v61 = vmul.f32 0.01, %v200_v52  ;;  %v149_v62 = vmul.f32 %v777_v1, %v539_v53 }
  0x33   :  { %vm251_vm13 = vcmp.gt.f32.partialorder %v201_v56, 0.0  ;;  %v301_v63 = vmul.f32 0.01, %v201_v56  ;;  %v202_v0 = vadd.f32 %v782_v4, %v148_v57  ;;  %v150_v2 = vmul.f32 %v777_v1, %v542_v54 }
  0x34   :  { %737 = vst [vmem:[%s1034_s3 + $0x68] sm:$0xff] %v644_v60   ;;  %v350_v3 = vsel %vm250_vm12, %v200_v52, %v300_v61  ;;  %v203_v5 = vadd.f32 %v782_v4, %v149_v62  ;;  %v151_v6 = vmul.f32 %v777_v1, %v543_v58  ;;  %v546_v7 = vunpack.c.l.bf16 %v717_v59  ;;  %v722_v58 = vld [vmem:[%s1031_s0 + $0xb0] sm:$0xff]  }
  0x35   :  { %v351_v8 = vsel %vm251_vm13, %v201_v56, %v301_v63  ;;  %vm252_vm14 = vcmp.gt.f32.partialorder %v202_v0, 0.0  ;;  %v302_v9 = vmul.f32 0.01, %v202_v0  ;;  %v204_v10 = vadd.f32 %v782_v4, %v150_v2 }
  0x36   :  { %v649_v11 = vpack.c.bf16 %v351_v8, %v350_v3  ;;  %vm253_vm15 = vcmp.gt.f32.partialorder %v203_v5, 0.0  ;;  %v303_v12 = vmul.f32 0.01, %v203_v5  ;;  %v205_v13 = vadd.f32 %v782_v4, %v151_v6 }
  0x37   :  { %v352_v15 = vsel %vm252_vm14, %v202_v0, %v302_v9  ;;  %vm254_vm0 = vcmp.gt.f32.partialorder %v204_v10, 0.0  ;;  %v304_v16 = vmul.f32 0.01, %v204_v10  ;;  %v547_v17 = vunpack.c.h.bf16 %v717_v59  ;;  %v723_v59 = vld [vmem:[%s1031_s0 + $0xb8] sm:$0xff]  }
  0x38   :  { %738 = vst [vmem:[%s1034_s3 + $0x70] sm:$0xff] %v649_v11   ;;  %v353_v19 = vsel %vm253_vm15, %v203_v5, %v303_v12  ;;  %vm255_vm1 = vcmp.gt.f32.partialorder %v205_v13, 0.0  ;;  %v305_v20 = vmul.f32 0.01, %v205_v13  ;;  %v152_v21 = vmul.f32 %v777_v1, %v546_v7 }
  0x39   :  { %v654_v22 = vpack.c.bf16 %v353_v19, %v352_v15  ;;  %v354_v23 = vsel %vm254_vm0, %v204_v10, %v304_v16  ;;  %v153_v24 = vmul.f32 %v777_v1, %v547_v17  ;;  %v550_v25 = vunpack.c.l.bf16 %v718_v14 }
  0x3a   :  { %v355_v26 = vsel %vm255_vm1, %v205_v13, %v305_v20  ;;  %v206_v27 = vadd.f32 %v782_v4, %v152_v21  ;;  %v551_v28 = vunpack.c.h.bf16 %v718_v14  ;;  %v554_v29 = vunpack.c.l.bf16 %v719_v18 }
  0x3b   :  { %739 = vst [vmem:[%s1034_s3 + $0x78] sm:$0xff] %v654_v22   ;;  %v659_v30 = vpack.c.bf16 %v355_v26, %v354_v23  ;;  %v207_v31 = vadd.f32 %v782_v4, %v153_v24  ;;  %v154_v32 = vmul.f32 %v777_v1, %v550_v25  ;;  %v555_v33 = vunpack.c.h.bf16 %v719_v18  ;;  %v724_v26 = vld [vmem:[%s1031_s0 + $0xc0] sm:$0xff]  }
  0x3c   :  { %vm256_vm2 = vcmp.gt.f32.partialorder %v206_v27, 0.0  ;;  %v306_v35 = vmul.f32 0.01, %v206_v27  ;;  %v155_v36 = vmul.f32 %v777_v1, %v551_v28  ;;  %v156_v37 = vmul.f32 %v777_v1, %v554_v29 }
  0x3d   :  { %740 = vst [vmem:[%s1034_s3 + $0x80] sm:$0xff] %v659_v30   ;;  %vm257_vm3 = vcmp.gt.f32.partialorder %v207_v31, 0.0  ;;  %v307_v38 = vmul.f32 0.01, %v207_v31  ;;  %v208_v39 = vadd.f32 %v782_v4, %v154_v32  ;;  %v157_v40 = vmul.f32 %v777_v1, %v555_v33 }
  0x3e   :  { %v356_v41 = vsel %vm256_vm2, %v206_v27, %v306_v35  ;;  %v209_v42 = vadd.f32 %v782_v4, %v155_v36  ;;  %v210_v43 = vadd.f32 %v782_v4, %v156_v37  ;;  %v558_v44 = vunpack.c.l.bf16 %v720_v34 }
  0x3f   :  { %v357_v45 = vsel %vm257_vm3, %v207_v31, %v307_v38  ;;  %vm258_vm4 = vcmp.gt.f32.partialorder %v208_v39, 0.0  ;;  %v308_v46 = vmul.f32 0.01, %v208_v39  ;;  %v211_v47 = vadd.f32 %v782_v4, %v157_v40 }
  0x40   :  { %v664_v49 = vpack.c.bf16 %v357_v45, %v356_v41  ;;  %vm259_vm5 = vcmp.gt.f32.partialorder %v209_v42, 0.0  ;;  %v309_v50 = vmul.f32 0.01, %v209_v42  ;;  %vm260_vm6 = vcmp.gt.f32.partialorder %v210_v43, 0.0 }
  0x41   :  { %v358_v51 = vsel %vm258_vm4, %v208_v39, %v308_v46  ;;  %vm261_vm7 = vcmp.gt.f32.partialorder %v211_v47, 0.0  ;;  %v310_v52 = vmul.f32 0.01, %v210_v43  ;;  %v311_v53 = vmul.f32 0.01, %v211_v47 }
  0x42   :  { %741 = vst [vmem:[%s1034_s3 + $0x88] sm:$0xff] %v664_v49   ;;  %v359_v54 = vsel %vm259_vm5, %v209_v42, %v309_v50  ;;  %v559_v55 = vunpack.c.h.bf16 %v720_v34  ;;  %v158_v56 = vmul.f32 %v777_v1, %v558_v44  ;;  %v562_v57 = vunpack.c.l.bf16 %v721_v48 }
  0x43   :  { %v669_v60 = vpack.c.bf16 %v359_v54, %v358_v51  ;;  %v360_v61 = vsel %vm260_vm6, %v210_v43, %v310_v52  ;;  %v361_v62 = vsel %vm261_vm7, %v211_v47, %v311_v53  ;;  %v563_v63 = vunpack.c.h.bf16 %v721_v48 }
  0x44   :  { %v674_v0 = vpack.c.bf16 %v361_v62, %v360_v61  ;;  %v159_v2 = vmul.f32 %v777_v1, %v559_v55  ;;  %v212_v3 = vadd.f32 %v782_v4, %v158_v56  ;;  %v160_v5 = vmul.f32 %v777_v1, %v562_v57 }
  0x45   :  { %742 = vst [vmem:[%s1034_s3 + $0x90] sm:$0xff] %v669_v60   ;;  %v161_v6 = vmul.f32 %v777_v1, %v563_v63  ;;  %v566_v7 = vunpack.c.l.bf16 %v722_v58  ;;  %v567_v8 = vunpack.c.h.bf16 %v722_v58  ;;  %v570_v9 = vunpack.c.l.bf16 %v723_v59 }
  0x46   :  { %743 = vst [vmem:[%s1034_s3 + $0x98] sm:$0xff] %v674_v0   ;;  %v213_v10 = vadd.f32 %v782_v4, %v159_v2  ;;  %vm262_vm8 = vcmp.gt.f32.partialorder %v212_v3, 0.0  ;;  %v312_v11 = vmul.f32 0.01, %v212_v3  ;;  %v214_v12 = vadd.f32 %v782_v4, %v160_v5 }
  0x47   :  { %v215_v13 = vadd.f32 %v782_v4, %v161_v6  ;;  %v162_v14 = vmul.f32 %v777_v1, %v566_v7  ;;  %v163_v15 = vmul.f32 %v777_v1, %v567_v8  ;;  %v571_v16 = vunpack.c.h.bf16 %v723_v59 }
  0x48   :  { %vm263_vm9 = vcmp.gt.f32.partialorder %v213_v10, 0.0  ;;  %v313_v17 = vmul.f32 0.01, %v213_v10  ;;  %v362_v18 = vsel %vm262_vm8, %v212_v3, %v312_v11  ;;  %vm264_vm10 = vcmp.gt.f32.partialorder %v214_v12, 0.0 }
  0x49   :  { %vm265_vm11 = vcmp.gt.f32.partialorder %v215_v13, 0.0  ;;  %v314_v19 = vmul.f32 0.01, %v214_v12  ;;  %v315_v20 = vmul.f32 0.01, %v215_v13  ;;  %v216_v21 = vadd.f32 %v782_v4, %v162_v14 }
  0x4a   :  { %v363_v22 = vsel %vm263_vm9, %v213_v10, %v313_v17  ;;  %v217_v23 = vadd.f32 %v782_v4, %v163_v15  ;;  %v164_v24 = vmul.f32 %v777_v1, %v570_v9  ;;  %v165_v25 = vmul.f32 %v777_v1, %v571_v16 }
  0x4b   :  { %v679_v27 = vpack.c.bf16 %v363_v22, %v362_v18  ;;  %v364_v28 = vsel %vm264_vm10, %v214_v12, %v314_v19  ;;  %v365_v29 = vsel %vm265_vm11, %v215_v13, %v315_v20  ;;  %vm266_vm12 = vcmp.gt.f32.partialorder %v216_v21, 0.0 }
  0x4c   :  { %v684_v30 = vpack.c.bf16 %v365_v29, %v364_v28  ;;  %vm267_vm13 = vcmp.gt.f32.partialorder %v217_v23, 0.0  ;;  %v316_v31 = vmul.f32 0.01, %v216_v21  ;;  %v317_v32 = vmul.f32 0.01, %v217_v23 }
  0x4d   :  { %744 = vst [vmem:[%s1034_s3 + $0xa0] sm:$0xff] %v679_v27   ;;  %v218_v33 = vadd.f32 %v782_v4, %v164_v24  ;;  %v219_v34 = vadd.f32 %v782_v4, %v165_v25  ;;  %v574_v35 = vunpack.c.l.bf16 %v724_v26  ;;  %v575_v36 = vunpack.c.h.bf16 %v724_v26 }
  0x4e   :  { %745 = vst [vmem:[%s1034_s3 + $0xa8] sm:$0xff] %v684_v30   ;;  %v366_v37 = vsel %vm266_vm12, %v216_v21, %v316_v31  ;;  %v367_v38 = vsel %vm267_vm13, %v217_v23, %v317_v32 }
  0x4f   :  { %v689_v39 = vpack.c.bf16 %v367_v38, %v366_v37  ;;  %vm268_vm14 = vcmp.gt.f32.partialorder %v218_v33, 0.0  ;;  %vm269_vm15 = vcmp.gt.f32.partialorder %v219_v34, 0.0  ;;  %v318_v40 = vmul.f32 0.01, %v218_v33 }
  0x50   :  { %v319_v41 = vmul.f32 0.01, %v219_v34  ;;  %v166_v42 = vmul.f32 %v777_v1, %v574_v35  ;;  %v167_v43 = vmul.f32 %v777_v1, %v575_v36 }
  0x51   :  { %746 = vst [vmem:[%s1034_s3 + $0xb0] sm:$0xff] %v689_v39   ;;  %v368_v44 = vsel %vm268_vm14, %v218_v33, %v318_v40 }
  0x52   :  { %v369_v45 = vsel %vm269_vm15, %v219_v34, %v319_v41  ;;  %v220_v46 = vadd.f32 %v782_v4, %v166_v42  ;;  %v221_v47 = vadd.f32 %v782_v4, %v167_v43 }
  0x53   :  { %v694_v48 = vpack.c.bf16 %v369_v45, %v368_v44 }
  0x54   :  { %vm270_vm0 = vcmp.gt.f32.partialorder %v220_v46, 0.0  ;;  %vm271_vm1 = vcmp.gt.f32.partialorder %v221_v47, 0.0  ;;  %v320_v49 = vmul.f32 0.01, %v220_v46  ;;  %v321_v50 = vmul.f32 0.01, %v221_v47 }
  0x55   :  { %747 = vst [vmem:[%s1034_s3 + $0xb8] sm:$0xff] %v694_v48  }
  0x56   :  { %v370_v1 = vsel %vm270_vm0, %v220_v46, %v320_v49  ;;  %v371_v51 = vsel %vm271_vm1, %v221_v47, %v321_v50 }
  0x57   :  { %v699_v52 = vpack.c.bf16 %v371_v51, %v370_v1 }
  0x59   :  { %748 = vst [vmem:[%s1034_s3 + $0xc0] sm:$0xff] %v699_v52  }

// kernel: tile.43
= control target key start
LH: loop header
LB: loop body
LE: loop exit
PB: predicated region body
PF: predicated region fallthrough
CT: control target
= control target key end

     0   :  { %s22_s0 = inlined_call_operand.vmem [shape: f32[32], index: 0, kind: input, shape index: {}]   ;;  %s23_s1 = inlined_call_operand.vmem [shape: f32[4,32], index: 1, kind: output, shape index: {}]  }
   0x1   :  { %v4_v0 = vld [vmem:[%s22_s0] ss:$0 sm:$0xff] }
   0x2   :  { %5 = vst [vmem:[%s23_s1] sm:$0xf] %v4_v0 }

// kernel: tile.48
= control target key start
LH: loop header
LB: loop body
LE: loop exit
PB: predicated region body
PF: predicated region fallthrough
CT: control target
= control target key end

     0   :  { %s37_s8 = smov 32   ;;  %s38_s9 = smov 64   ;;  %vm7_vm0 = vcmask 261120   ;;  %vm13_vm1 = vcmask 1048320   ;;  %vm19_vm2 = vcmask 785920   ;;  %vm25_vm3 = vcmask 523520   ;;  %s55_s0 = inlined_call_operand.vmem [shape: f32[4,32], index: 0, kind: input, shape index: {}]   ;;  %s56_s1 = inlined_call_operand.vmem [shape: f32[1,128], index: 1, kind: output, shape index: {}]  }
   0x1   :  { %v4_v0 = vld [vmem:[%s55_s0] sm:$0xf]  ;;  %s36_s0 = smov 96  }
   0x2   :  { %5 = vst [vmem:[#allocation1] sm:$0xf] %v4_v0 }
   0x9   :  { %v10_v1 = vld [vmem:[#allocation1 + $0x3] sm:$0x1]   ;;  %v22_v2 = vld [vmem:[#allocation1 + $0x1] sm:$0x1]   ;;  %v16_v3 = vld [vmem:[#allocation1 + $0x2] sm:$0x1]  }
   0xa   :  { %11 = vrot.lane.b32.xlu0 %v10_v1, %s36_s0  ;;  %23 = vrot.lane.b32.xlu1 %v22_v2, %s37_s8  ;;  %v6_v4 = vld [vmem:[#allocation1] sm:$0x1]  }
   0xb   :  { %8 = vst.msk [vmem:[#allocation0] sm:$0x1] %vm7_vm0, %v6_v4  }
  0x12   :  { %17 = vrot.lane.b32.xlu0 %v16_v3, %s38_s9 }
  0x7c   :  { %v12_v5 = vpop.permute.xlu0 %11   ;;  %v24_v6 = vpop.permute.xlu1 %23  }
  0x7d   :  { %14 = vst.msk [vmem:[#allocation0] sm:$0x1] %vm13_vm1, %v12_v5  }
  0x84   :  { %v18_v7 = vpop.permute.xlu0 %17  }
  0x85   :  { %20 = vst.msk [vmem:[#allocation0] sm:$0x1] %vm19_vm2, %v18_v7  }
  0x86   :  { %26 = vst.msk [vmem:[#allocation0] sm:$0x1] %vm25_vm3, %v24_v6  }
  0x8d   :  { %v29_v8 = vld [vmem:[#allocation0] sm:$0x1] }
  0x8e   :  { %32 = vst [vmem:[%s56_s1] sm:$0x1] %v29_v8 }

// kernel: convnet_forward.10
= control target key start
LH: loop header
LB: loop body
LE: loop exit
PB: predicated region body
PF: predicated region fallthrough
CT: control target
= control target key end

     0   :  { %s1751_s15 = smov 0   ;;  %s2453_s0 = inlined_call_operand.vmem [shape: bf16[800,144], index: 0, kind: input, shape index: {}]   ;;  %s2454_s1 = inlined_call_operand.vmem [shape: bf16[144,32], index: 1, kind: input, shape index: {}]   ;;  %s2455_s2 = inlined_call_operand.vmem [shape: f32[1,32], index: 2, kind: input, shape index: {}]   ;;  %s2456_s3 = inlined_call_operand.vmem [shape: bf16[800,32], index: 3, kind: output, shape index: {0}]   ;;  %s2457_s4 = inlined_call_operand.vmem [shape: f32[2,8,32], index: 4, kind: output, shape index: {1}]  }
   0x1 LB: > { %s1757_s16 = sadd.s32 4294967295, %s1724_s15   ;;  %p1371_p0 = scmp.ge.s32.totalorder %s1724_s15, 1  ;;  %s1724_s15 = sphi %s1751_s15, %s15_s15  }
   0x2   : > { %p167_p1 = scmp.lt.s32.totalorder %s1724_s15, 3 }
   0x4   : > { %p168_p2 = pnand %p1371_p0, %p167_p1 }
   0x5   : > { %s198_s21 = smul.u32 (!%p168_p2), 50, %s1757_s16  ;;  %p211_p4 = scmp.lt.s32.totalorder (!%p168_p2), %s1757_s16, 1 }
   0x6   : > { %171 = sbr.rel (%p168_p2) target bundleno = 429 (0x1ad), region = 32 }
   0x7   : > { %p199_p3 = scmp.lt.s32.totalorder (!%p168_p2), %s198_s21, 99 }
   0xb   : > { %v1697_v0 = vld [vmem:[%s2454_s1 + $0x38] sm:$0xff]  ;;  %v1698_v1 = vld [vmem:[%s2454_s1 + $0x40] sm:$0xff]  ;;  %v1696_v2 = vld [vmem:[%s2454_s1 + $0x30] sm:$0xff]  ;;  %s2459_s21 = smov (!%p199_p3, %s198_s21), 99  ;;  %vm567_vm0 = vcmask 130048   ;;  %vm961_vm1 = vcmask 257024  }
   0xc   : > { %643 = vmatpush.bf16.msra.mxu0 %v1697_v0  ;;  %784 = vmatpush.bf16.msra.mxu1 %v1698_v1  ;;  %v1695_v3 = vld [vmem:[%s2454_s1 + $0x28] sm:$0xff]  ;;  %s1639_s26 = sshll.u32 %s2459_s21, 3  ;;  %v1694_v7 = vld [vmem:[%s2454_s1 + $0x20] sm:$0xff]  ;;  %v1693_v8 = vld [vmem:[%s2454_s1 + $0x18] sm:$0xff]  ;;  %s1374_s18 = sshll.u32 %s2459_s21, 2  ;;  %vm1012_vm2 = vcmask 261120  }
   0xd   : > { %1699 = vmatpush.bf16.msra.mxu2 %v1697_v0  ;;  %1707 = vmatpush.bf16.msra.mxu3 %v1698_v1  ;;  %s1780_s29 = scalar_lea.vmem %s2453_s0, %s1639_s26  ;;  %v1692_v9 = vld [vmem:[%s2454_s1 + $0x10] sm:$0xff]  ;;  %v1691_v12 = vld [vmem:[%s2454_s1 + $0x8] sm:$0xff]  ;;  %v1690_v14 = vld [vmem:[%s2454_s1] sm:$0xff]  ;;  %s1894_s22 = scalar_lea.vmem %s2456_s3, %s1374_s18 }
   0xe   : > { %v1640_v4 = vld [vmem:[%s1780_s29 + $0x4] sm:$0xf]  ;;  %v1380_v5 = vld [vmem:[%s1780_s29 + $0x8] sm:$0xf0]  ;;  %v1642_v10 = vld [vmem:[%s1780_s29 + $0x14] sm:$0xf] }
   0xf   : > { %v1383_v6 = vor.u32 %v1640_v4, %v1380_v5  ;;  %v1388_v11 = vld [vmem:[%s1780_s29 + $0x18] sm:$0xf0]  ;;  %v1378_v15 = vld [vmem:[%s1780_s29] sm:$0xf]  ;;  %v1641_v16 = vld [vmem:[%s1780_s29 + $0x4] sm:$0xf0] }
  0x10   : > { %644 = vmatpush.bf16.msra.mxu0 %v1696_v2  ;;  %v1391_v13 = vor.u32 %v1642_v10, %v1388_v11  ;;  %v1474_v17 = vld [vmem:[%s1780_s29 + $0xc0] sm:$0xf]  ;;  %v1665_v18 = vld [vmem:[%s1780_s29 + $0xc4] sm:$0xf0]  ;;  %v1379_v19 = vor.u32 %v1641_v16, %v1378_v15  ;;  %v1644_v21 = vld [vmem:[%s1780_s29 + $0x24] sm:$0xf] }
  0x11   : > { %1700 = vmatpush.bf16.msra.mxu2 %v1696_v2  ;;  %1612 = vmatmul.msk.bf16.vlgmr.msra.gmra.mxu1 %vm567_vm0, %v1383_v6  ;;  %v1475_v20 = vor.u32 %v1665_v18, %v1474_v17  ;;  %v1396_v22 = vld [vmem:[%s1780_s29 + $0x28] sm:$0xf0]  ;;  %v1386_v24 = vld [vmem:[%s1780_s29 + $0x10] sm:$0xf]  ;;  %v1643_v25 = vld [vmem:[%s1780_s29 + $0x14] sm:$0xf0] }
  0x12   : > { %v1399_v23 = vor.u32 %v1644_v21, %v1396_v22  ;;  %v1482_v26 = vld [vmem:[%s1780_s29 + $0xd0] sm:$0xf]  ;;  %v1667_v27 = vld [vmem:[%s1780_s29 + $0xd4] sm:$0xf0]  ;;  %v1387_v28 = vor.u32 %v1643_v25, %v1386_v24  ;;  %v1668_v30 = vld [vmem:[%s1780_s29 + $0xe4] sm:$0xf] }
  0x13   : > { %v1483_v29 = vor.u32 %v1667_v27, %v1482_v26  ;;  %v1492_v31 = vld [vmem:[%s1780_s29 + $0xe8] sm:$0xf0]  ;;  %v1646_v33 = vld [vmem:[%s1780_s29 + $0x34] sm:$0xf]  ;;  %v1404_v34 = vld [vmem:[%s1780_s29 + $0x38] sm:$0xf0] }
  0x14   : > { %645 = vmatpush.bf16.msra.mxu0 %v1695_v3  ;;  %v1495_v32 = vor.u32 %v1668_v30, %v1492_v31  ;;  %v1407_v35 = vor.u32 %v1646_v33, %v1404_v34  ;;  %v1394_v36 = vld [vmem:[%s1780_s29 + $0x20] sm:$0xf]  ;;  %v1645_v37 = vld [vmem:[%s1780_s29 + $0x24] sm:$0xf0]  ;;  %v1670_v42 = vld [vmem:[%s1780_s29 + $0xf4] sm:$0xf] }
  0x15   : > { %1701 = vmatpush.bf16.msra.mxu2 %v1695_v3  ;;  %v1490_v38 = vld [vmem:[%s1780_s29 + $0xe0] sm:$0xf]  ;;  %v1669_v39 = vld [vmem:[%s1780_s29 + $0xe4] sm:$0xf0]  ;;  %v1395_v40 = vor.u32 %v1645_v37, %v1394_v36  ;;  %v1500_v43 = vld [vmem:[%s1780_s29 + $0xf8] sm:$0xf0] }
  0x16   : > { %1626 = vmatmul.msk.bf16.vlgmr.msra.gmra.mxu3 %vm567_vm0, %v1495_v32  ;;  %v1491_v41 = vor.u32 %v1669_v39, %v1490_v38  ;;  %v1503_v44 = vor.u32 %v1670_v42, %v1500_v43  ;;  %v1648_v45 = vld [vmem:[%s1780_s29 + $0x44] sm:$0xf]  ;;  %v1412_v46 = vld [vmem:[%s1780_s29 + $0x48] sm:$0xf0]  ;;  %v1402_v48 = vld [vmem:[%s1780_s29 + $0x30] sm:$0xf] }
  0x17   : > { %v1415_v47 = vor.u32 %v1648_v45, %v1412_v46  ;;  %v1647_v49 = vld [vmem:[%s1780_s29 + $0x34] sm:$0xf0]  ;;  %v1498_v50 = vld [vmem:[%s1780_s29 + $0xf0] sm:$0xf]  ;;  %v1672_v54 = vld [vmem:[%s1780_s29 + $0x104] sm:$0xf] }
  0x18   : > { %646 = vmatpush.bf16.msra.mxu0 %v1694_v7  ;;  %v1671_v51 = vld [vmem:[%s1780_s29 + $0xf4] sm:$0xf0]  ;;  %v1403_v52 = vor.u32 %v1647_v49, %v1402_v48  ;;  %v1508_v55 = vld [vmem:[%s1780_s29 + $0x108] sm:$0xf0]  ;;  %v1650_v57 = vld [vmem:[%s1780_s29 + $0x54] sm:$0xf] }
  0x19   : > { %1702 = vmatpush.bf16.msra.mxu2 %v1694_v7  ;;  %v1499_v53 = vor.u32 %v1671_v51, %v1498_v50  ;;  %v1511_v56 = vor.u32 %v1672_v54, %v1508_v55  ;;  %v1420_v58 = vld [vmem:[%s1780_s29 + $0x58] sm:$0xf0]  ;;  %v1410_v60 = vld [vmem:[%s1780_s29 + $0x40] sm:$0xf]  ;;  %v1649_v61 = vld [vmem:[%s1780_s29 + $0x44] sm:$0xf0] }
  0x1a   : > { %v1423_v59 = vor.u32 %v1650_v57, %v1420_v58  ;;  %v1506_v62 = vld [vmem:[%s1780_s29 + $0x100] sm:$0xf]  ;;  %v1673_v63 = vld [vmem:[%s1780_s29 + $0x104] sm:$0xf0]  ;;  %v1411_v0 = vor.u32 %v1649_v61, %v1410_v60  ;;  %v1652_v2 = vld [vmem:[%s1780_s29 + $0x64] sm:$0xf] }
  0x1b   : > { %v1507_v1 = vor.u32 %v1673_v63, %v1506_v62  ;;  %v1428_v3 = vld [vmem:[%s1780_s29 + $0x68] sm:$0xf0]  ;;  %v1674_v4 = vld [vmem:[%s1780_s29 + $0x114] sm:$0xf]  ;;  %v1516_v5 = vld [vmem:[%s1780_s29 + $0x118] sm:$0xf0] }
  0x1c   : > { %647 = vmatpush.bf16.msra.mxu0 %v1693_v8  ;;  %v1431_v6 = vor.u32 %v1652_v2, %v1428_v3  ;;  %v1519_v7 = vor.u32 %v1674_v4, %v1516_v5  ;;  %v1514_v10 = vld [vmem:[%s1780_s29 + $0x110] sm:$0xf]  ;;  %v1675_v11 = vld [vmem:[%s1780_s29 + $0x114] sm:$0xf0]  ;;  %v1436_v15 = vld [vmem:[%s1780_s29 + $0x78] sm:$0xf0] }
  0x1d   : > { %1703 = vmatpush.bf16.msra.mxu2 %v1693_v8  ;;  %v1418_v8 = vld [vmem:[%s1780_s29 + $0x50] sm:$0xf]  ;;  %v1676_v16 = vld [vmem:[%s1780_s29 + $0x124] sm:$0xf]  ;;  %v1524_v17 = vld [vmem:[%s1780_s29 + $0x128] sm:$0xf0] }
  0x1e   : > { %v1653_v21 = vld [vmem:[%s1780_s29 + $0x64] sm:$0xf0]  ;;  %v1522_v22 = vld [vmem:[%s1780_s29 + $0x120] sm:$0xf]  ;;  %v1656_v26 = vld [vmem:[%s1780_s29 + $0x84] sm:$0xf] }
  0x1f   : > { %v1444_v27 = vld [vmem:[%s1780_s29 + $0x88] sm:$0xf0]  ;;  %v1434_v33 = vld [vmem:[%s1780_s29 + $0x70] sm:$0xf]  ;;  %v1655_v34 = vld [vmem:[%s1780_s29 + $0x74] sm:$0xf0] }
  0x20   : > { %648 = vmatpush.bf16.msra.mxu0 %v1692_v9  ;;  %v1447_v30 = vor.u32 %v1656_v26, %v1444_v27  ;;  %v1679_v36 = vld [vmem:[%s1780_s29 + $0x134] sm:$0xf0]  ;;  %v1435_v37 = vor.u32 %v1655_v34, %v1434_v33  ;;  %v1680_v42 = vld [vmem:[%s1780_s29 + $0x144] sm:$0xf]  ;;  %v1540_v43 = vld [vmem:[%s1780_s29 + $0x148] sm:$0xf0] }
  0x21   : > { %1704 = vmatpush.bf16.msra.mxu2 %v1692_v9  ;;  %1613 = vmatmul.msk.bf16.gmra.mxu1 %vm567_vm0, %v1391_v13  ;;  %v1651_v9 = vld [vmem:[%s1780_s29 + $0x54] sm:$0xf0]  ;;  %v1515_v13 = vor.u32 %v1675_v11, %v1514_v10  ;;  %v1543_v45 = vor.u32 %v1680_v42, %v1540_v43  ;;  %v1657_v48 = vld [vmem:[%s1780_s29 + $0x84] sm:$0xf0]  ;;  %v1885_v49 = vld [vmem:[%s2455_s2] ss:$0 sm:$0xff] }
  0x22   : > { %v1538_v50 = vld [vmem:[%s1780_s29 + $0x140] sm:$0xf]  ;;  %v1681_v51 = vld [vmem:[%s1780_s29 + $0x144] sm:$0xf0]  ;;  %v1460_v60 = vld [vmem:[%s1780_s29 + $0xa8] sm:$0xf0] }
  0x23   : > { %v1539_v54 = vor.u32 %v1681_v51, %v1538_v50  ;;  %v1682_v63 = vld [vmem:[%s1780_s29 + $0x154] sm:$0xf]  ;;  %v1458_v43 = vld [vmem:[%s1780_s29 + $0xa0] sm:$0xf]  ;;  %v1685_v50 = vld [vmem:[%s1780_s29 + $0x164] sm:$0xf0] }
  0x24   : > { %649 = vmatpush.bf16.msra.mxu0 %v1691_v12  ;;  %s2461_s16 = smov (!%p211_p4, %s1757_s16), 1 }
  0x25   : > { %1705 = vmatpush.bf16.msra.mxu2 %v1691_v12  ;;  %v1419_v12 = vor.u32 %v1651_v9, %v1418_v8  ;;  %v1659_v8 = vld [vmem:[%s1780_s29 + $0x94] sm:$0xf0]  ;;  %s1375_s24 = sshll.u32 %s2461_s16, 3 }
  0x26   : > { %1627 = vmatmul.msk.bf16.gmra.mxu3 %vm567_vm0, %v1503_v44  ;;  %s214_s27 = scalar_lea.vmem %s2457_s4, %s1375_s24 }
  0x28   : > { %650 = vmatpush.bf16.msra.mxu0 %v1690_v14 }
  0x29   : > { %1706 = vmatpush.bf16.msra.mxu2 %v1690_v14  ;;  %v1654_v14 = vld [vmem:[%s1780_s29 + $0x74] sm:$0xf] }
  0x2a   : > { %v1439_v18 = vor.u32 %v1654_v14, %v1436_v15  ;;  %v1683_v14 = vld [vmem:[%s1780_s29 + $0x154] sm:$0xf0] }
  0x2b   : > { %651 = vmatmul.bf16.vlgmr.msra.gmra.mxu0 %v1379_v19  ;;  %v1527_v19 = vor.u32 %v1676_v16, %v1524_v17 }
  0x2c   : > { %711 = vmatmul.bf16.vlgmr.msra.gmra.mxu2 %v1475_v20  ;;  %v1426_v20 = vld [vmem:[%s1780_s29 + $0x60] sm:$0xf] }
  0x2d   : > { %v1427_v24 = vor.u32 %v1653_v21, %v1426_v20 }
  0x31   : > { %1614 = vmatmul.msk.bf16.gmra.mxu1 %vm567_vm0, %v1399_v23  ;;  %v1677_v23 = vld [vmem:[%s1780_s29 + $0x124] sm:$0xf0] }
  0x32   : > { %v1523_v25 = vor.u32 %v1677_v23, %v1522_v22 }
  0x36   : > { %1628 = vmatmul.msk.bf16.gmra.mxu3 %vm567_vm0, %v1511_v56 }
  0x3b   : > { %656 = vmatmul.bf16.gmra.mxu0 %v1387_v28  ;;  %v1678_v28 = vld [vmem:[%s1780_s29 + $0x134] sm:$0xf] }
  0x3c   : > { %716 = vmatmul.bf16.gmra.mxu2 %v1483_v29  ;;  %v1532_v29 = vld [vmem:[%s1780_s29 + $0x138] sm:$0xf0] }
  0x3d   : > { %v1535_v31 = vor.u32 %v1678_v28, %v1532_v29 }
  0x41   : > { %1615 = vmatmul.msk.bf16.gmra.mxu1 %vm567_vm0, %v1407_v35  ;;  %v1530_v35 = vld [vmem:[%s1780_s29 + $0x130] sm:$0xf] }
  0x42   : > { %v1531_v38 = vor.u32 %v1679_v36, %v1530_v35  ;;  %v1684_v36 = vld [vmem:[%s1780_s29 + $0x164] sm:$0xf] }
  0x46   : > { %1629 = vmatmul.msk.bf16.gmra.mxu3 %vm567_vm0, %v1519_v7  ;;  %v1450_v7 = vld [vmem:[%s1780_s29 + $0x90] sm:$0xf] }
  0x4b   : > { %661 = vmatmul.bf16.gmra.mxu0 %v1395_v40  ;;  %v1658_v40 = vld [vmem:[%s1780_s29 + $0x94] sm:$0xf] }
  0x4c   : > { %721 = vmatmul.bf16.gmra.mxu2 %v1491_v41  ;;  %v1452_v41 = vld [vmem:[%s1780_s29 + $0x98] sm:$0xf0] }
  0x4d   : > { %v1455_v44 = vor.u32 %v1658_v40, %v1452_v41 }
  0x51   : > { %1616 = vmatmul.msk.bf16.gmra.mxu1 %vm567_vm0, %v1415_v47  ;;  %v1442_v47 = vld [vmem:[%s1780_s29 + $0x80] sm:$0xf] }
  0x56   : > { %1630 = vmatmul.msk.bf16.gmra.mxu3 %vm567_vm0, %v1527_v19 }
  0x5b   : > { %666 = vmatmul.bf16.gmra.mxu0 %v1403_v52  ;;  %v1443_v52 = vor.u32 %v1657_v48, %v1442_v47  ;;  %v1554_v48 = vld [vmem:[%s1780_s29 + $0x160] sm:$0xf] }
  0x5c   : > { %726 = vmatmul.bf16.gmra.mxu2 %v1499_v53 }
  0x61   : > { %1617 = vmatmul.msk.bf16.gmra.mxu1 %vm567_vm0, %v1423_v59  ;;  %v1660_v59 = vld [vmem:[%s1780_s29 + $0xa4] sm:$0xf] }
  0x62   : > { %v1463_v2 = vor.u32 %v1660_v59, %v1460_v60 }
  0x66   : > { %1631 = vmatmul.msk.bf16.gmra.mxu3 %vm567_vm0, %v1535_v31  ;;  %v1468_v31 = vld [vmem:[%s1780_s29 + $0xb8] sm:$0xf0] }
  0x6b   : > { %671 = vmatmul.bf16.gmra.mxu0 %v1411_v0  ;;  %v1548_v0 = vld [vmem:[%s1780_s29 + $0x158] sm:$0xf0] }
  0x6c   : > { %731 = vmatmul.bf16.gmra.mxu2 %v1507_v1  ;;  %v1551_v3 = vor.u32 %v1682_v63, %v1548_v0 }
  0x71   : > { %1618 = vmatmul.msk.bf16.gmra.mxu1 %vm567_vm0, %v1431_v6 }
  0x76   : > { %1632 = vmatmul.msk.bf16.gmra.mxu3 %vm567_vm0, %v1543_v45 }
  0x7b   : > { %676 = vmatmul.bf16.gmra.mxu0 %v1419_v12 }
  0x7c   : > { %736 = vmatmul.bf16.gmra.mxu2 %v1515_v13  ;;  %v1546_v13 = vld [vmem:[%s1780_s29 + $0x150] sm:$0xf] }
  0x7d   : > { %v1547_v22 = vor.u32 %v1683_v14, %v1546_v13 }
  0x81   : > { %1619 = vmatmul.msk.bf16.gmra.mxu1 %vm567_vm0, %v1439_v18  ;;  %v1451_v18 = vor.u32 %v1659_v8, %v1450_v7 }
  0x86   : > { %1633 = vmatmul.msk.bf16.gmra.mxu3 %vm567_vm0, %v1551_v3  ;;  %v1664_v3 = vld [vmem:[%s1780_s29 + $0xc4] sm:$0xf] }
  0x8b   : > { %681 = vmatmul.bf16.gmra.mxu0 %v1427_v24 }
  0x8c   : > { %741 = vmatmul.bf16.gmra.mxu2 %v1523_v25 }
  0x8e   : > { %v786_v32 = vpop.f32.mrf.mxu1 }
  0x91   : > { %1620 = vmatmul.msk.bf16.gmra.mxu1 %vm567_vm0, %v1447_v30  ;;  %v1662_v30 = vld [vmem:[%s1780_s29 + $0xb4] sm:$0xf] }
  0x96   : > { %v788_v39 = vpop.f32.mrf.mxu1 }
  0x9b   : > { %686 = vmatmul.bf16.gmra.mxu0 %v1435_v37  ;;  %v1556_v37 = vld [vmem:[%s1780_s29 + $0x168] sm:$0xf0] }
  0x9c   : > { %746 = vmatmul.bf16.gmra.mxu2 %v1531_v38  ;;  %v1559_v40 = vor.u32 %v1684_v36, %v1556_v37 }
  0x9e   : > { %v791_v46 = vpop.f32.mrf.mxu1  ;;  %1634 = vmatmul.msk.bf16.gmra.mxu3 %vm567_vm0, %v1559_v40 }
  0xa1   : > { %1621 = vmatmul.msk.bf16.gmra.mxu1 %vm567_vm0, %v1455_v44  ;;  %v1661_v44 = vld [vmem:[%s1780_s29 + $0xa4] sm:$0xf0] }
  0xa6   : > { %v793_v56 = vpop.f32.mrf.mxu1 }
  0xa8   : > { %v652_v53 = vpop.f32.mrf.mxu0 }
  0xa9   : > { %v653_v55 = vadd.f32 %v1885_v49, %v652_v53 }
  0xab   : > { %v787_v57 = vadd.f32 %v786_v32, %v653_v55  ;;  %691 = vmatmul.bf16.gmra.mxu0 %v1443_v52  ;;  %v856_v52 = vpop.f32.mrf.mxu3 }
  0xac   : > { %751 = vmatmul.bf16.gmra.mxu2 %v1539_v54  ;;  %v1459_v54 = vor.u32 %v1661_v44, %v1458_v43 }
  0xad   : > { %v911_v58 = vpack.c.bf16 %v787_v57, %v787_v57  ;;  %v1118_v5 = vmul.f32 %v787_v57, %v787_v57  ;;  %v1013_v9 = vsel %vm1012_vm2, %v787_v57, 0.0 }
  0xae   : > { %v1905_v4 = vpop.f32.mrf.mxu1 }
  0xaf   : > { %962 = vst.msk [vmem:[%s1894_s22] sm:$0xf] %vm961_vm1, %v911_v58  ;;  %v1900_v61 = vpop.f32.mrf.mxu2  ;;  %v1168_v16 = vsel %vm1012_vm2, %v1118_v5, 0.0  ;;  %v1555_v58 = vor.u32 %v1685_v50, %v1554_v48  ;;  %v1476_v5 = vld [vmem:[%s1780_s29 + $0xc8] sm:$0xf0] }
  0xb0   : > { %v654_v62 = vpop.f32.mrf.mxu0  ;;  %v1479_v14 = vor.u32 %v1664_v3, %v1476_v5  ;;  %v1666_v48 = vld [vmem:[%s1780_s29 + $0xd4] sm:$0xf]  ;;  %v1484_v50 = vld [vmem:[%s1780_s29 + $0xd8] sm:$0xf0] }
  0xb1   : > { %v655_v1 = vadd.f32 %v1885_v49, %v654_v62  ;;  %1622 = vmatmul.msk.bf16.gmra.mxu1 %vm567_vm0, %v1463_v2 }
  0xb3   : > { %v789_v6 = vadd.f32 %v788_v39, %v655_v1  ;;  %v1471_v39 = vor.u32 %v1662_v30, %v1468_v31 }
  0xb5   : > { %v912_v10 = vpack.c.bf16 %v789_v6, %v789_v6  ;;  %v1014_v11 = vsel %vm1012_vm2, %v789_v6, 0.0  ;;  %v1119_v12 = vmul.f32 %v789_v6, %v789_v6  ;;  %v858_v6 = vpop.f32.mrf.mxu3 }
  0xb6   : > { %v1015_v15 = vadd.f32 %v1014_v11, %v1013_v9  ;;  %v1922_v24 = vpop.f32.mrf.mxu1  ;;  %v1686_v11 = vld [vmem:[%s1780_s29 + $0x174] sm:$0xf] }
  0xb7   : > { %963 = vst.msk [vmem:[%s1894_s22 + $0x4] sm:$0xf] %vm961_vm1, %v912_v10  ;;  %v1169_v17 = vsel %vm1012_vm2, %v1119_v12, 0.0  ;;  %v1919_v19 = vpop.f32.mrf.mxu2  ;;  %v1564_v12 = vld [vmem:[%s1780_s29 + $0x178] sm:$0xf0] }
  0xb8   : > { %v1170_v20 = vadd.f32 %v1169_v17, %v1168_v16  ;;  %v657_v21 = vpop.f32.mrf.mxu0 }
  0xb9   : > { %v658_v23 = vadd.f32 %v1885_v49, %v657_v21  ;;  %v1663_v21 = vld [vmem:[%s1780_s29 + $0xb4] sm:$0xf0] }
  0xbb   : > { %v792_v25 = vadd.f32 %v791_v46, %v658_v23  ;;  %696 = vmatmul.bf16.gmra.mxu0 %v1451_v18 }
  0xbc   : > { %756 = vmatmul.bf16.gmra.mxu2 %v1547_v22 }
  0xbd   : > { %v913_v26 = vpack.c.bf16 %v792_v25, %v792_v25  ;;  %v1016_v27 = vsel %vm1012_vm2, %v792_v25, 0.0  ;;  %v1120_v28 = vmul.f32 %v792_v25, %v792_v25  ;;  %v861_v30 = vpop.f32.mrf.mxu3 }
  0xbe   : > { %v1017_v29 = vadd.f32 %v1016_v27, %v1015_v15  ;;  %v1935_v41 = vpop.f32.mrf.mxu1  ;;  %v1567_v15 = vor.u32 %v1686_v11, %v1564_v12  ;;  %v1562_v27 = vld [vmem:[%s1780_s29 + $0x170] sm:$0xf] }
  0xbf   : > { %964 = vst.msk [vmem:[%s1894_s22 + $0x8] sm:$0xf] %vm961_vm1, %v913_v26  ;;  %v1171_v32 = vsel %vm1012_vm2, %v1120_v28, 0.0  ;;  %v1930_v33 = vpop.f32.mrf.mxu2  ;;  %v1687_v28 = vld [vmem:[%s1780_s29 + $0x174] sm:$0xf0] }
  0xc0   : > { %v1172_v34 = vadd.f32 %v1171_v32, %v1170_v20  ;;  %v659_v35 = vpop.f32.mrf.mxu0  ;;  %1635 = vmatmul.msk.bf16.gmra.mxu3 %vm567_vm0, %v1567_v15  ;;  %v1466_v20 = vld [vmem:[%s1780_s29 + $0xb0] sm:$0xf]  ;;  %v1563_v37 = vor.u32 %v1687_v28, %v1562_v27 }
  0xc1   : > { %v660_v38 = vadd.f32 %v1885_v49, %v659_v35  ;;  %1623 = vmatmul.msk.bf16.gmra.mxu1 %vm567_vm0, %v1471_v39  ;;  %v1467_v31 = vor.u32 %v1663_v21, %v1466_v20 }
  0xc3   : > { %v794_v42 = vadd.f32 %v793_v56, %v660_v38 }
  0xc5   : > { %v914_v45 = vpack.c.bf16 %v794_v42, %v794_v42  ;;  %v1018_v46 = vsel %vm1012_vm2, %v794_v42, 0.0  ;;  %v1121_v47 = vmul.f32 %v794_v42, %v794_v42 }
  0xc6   : > { %v1019_v51 = vadd.f32 %v1018_v46, %v1017_v29  ;;  %v1950_v60 = vpop.f32.mrf.mxu1 }
  0xc7   : > { %965 = vst.msk [vmem:[%s1894_s22 + $0xc] sm:$0xf] %vm961_vm1, %v914_v45  ;;  %v1173_v53 = vsel %vm1012_vm2, %v1121_v47, 0.0  ;;  %v1947_v55 = vpop.f32.mrf.mxu2 }
  0xc8   : > { %v1174_v56 = vadd.f32 %v1173_v53, %v1172_v34  ;;  %v662_v57 = vpop.f32.mrf.mxu0 }
  0xc9   : > { %v663_v59 = vadd.f32 %v1885_v49, %v662_v57  ;;  %v1688_v57 = vld [vmem:[%s1780_s29 + $0x184] sm:$0xf] }
  0xcb   : > { %v797_v62 = vadd.f32 %v1905_v4, %v663_v59  ;;  %701 = vmatmul.bf16.gmra.mxu0 %v1459_v54 }
  0xcc   : > { %761 = vmatmul.bf16.gmra.mxu2 %v1555_v58  ;;  %v1572_v58 = vld [vmem:[%s1780_s29 + $0x188] sm:$0xf0] }
  0xcd   : > { %v915_v63 = vpack.c.bf16 %v797_v62, %v797_v62  ;;  %v1020_v0 = vsel %vm1012_vm2, %v797_v62, 0.0  ;;  %v1122_v1 = vmul.f32 %v797_v62, %v797_v62  ;;  %v1487_v62 = vor.u32 %v1666_v48, %v1484_v50 }
  0xce   : > { %v1021_v2 = vadd.f32 %v1020_v0, %v1019_v51  ;;  %v1963_v16 = vpop.f32.mrf.mxu1  ;;  %v863_v51 = vpop.f32.mrf.mxu3 }
  0xcf   : > { %966 = vst.msk [vmem:[%s1894_s22 + $0x10] sm:$0xf] %vm961_vm1, %v915_v63  ;;  %v1175_v7 = vsel %vm1012_vm2, %v1122_v1, 0.0  ;;  %v722_v8 = vpop.f32.mrf.mxu2  ;;  %v1575_v63 = vor.u32 %v1688_v57, %v1572_v58 }
  0xd0   : > { %v1176_v4 = vadd.f32 %v1175_v7, %v1174_v56  ;;  %v664_v9 = vpop.f32.mrf.mxu0  ;;  %v723_v10 = vadd.f32 %v1885_v49, %v722_v8  ;;  %v1570_v8 = vld [vmem:[%s1780_s29 + $0x180] sm:$0xf] }
  0xd1   : > { %v665_v13 = vadd.f32 %v1885_v49, %v664_v9  ;;  %1624 = vmatmul.msk.bf16.gmra.mxu1 %vm567_vm0, %v1479_v14  ;;  %1636 = vmatmul.msk.bf16.gmra.mxu3 %vm567_vm0, %v1575_v63 }
  0xd2   : > { %v1965_v17 = vadd.f32 %v856_v52, %v723_v10 }
  0xd3   : > { %v799_v18 = vadd.f32 %v1922_v24, %v665_v13 }
  0xd4   : > { %v939_v22 = vpack.c.bf16 %v1965_v17, %v1965_v17 }
  0xd5   : > { %v916_v23 = vpack.c.bf16 %v799_v18, %v799_v18  ;;  %v1022_v25 = vsel %vm1012_vm2, %v799_v18, 0.0  ;;  %v1123_v26 = vmul.f32 %v799_v18, %v799_v18 }
  0xd6   : > { %v1023_v29 = vadd.f32 %v1022_v25, %v1021_v2  ;;  %990 = vst.msk [vmem:[%s1894_s22 + $0x70] sm:$0xf] %vm961_vm1, %v939_v22  ;;  %v1984_v39 = vpop.f32.mrf.mxu1  ;;  %v866_v10 = vpop.f32.mrf.mxu3 }
  0xd7   : > { %967 = vst.msk [vmem:[%s1894_s22 + $0x14] sm:$0xf] %vm961_vm1, %v916_v23  ;;  %v1177_v24 = vsel %vm1012_vm2, %v1123_v26, 0.0  ;;  %v724_v32 = vpop.f32.mrf.mxu2 }
  0xd8   : > { %v1178_v34 = vadd.f32 %v1177_v24, %v1176_v4  ;;  %v667_v35 = vpop.f32.mrf.mxu0  ;;  %v725_v36 = vadd.f32 %v1885_v49, %v724_v32  ;;  %v1689_v4 = vld [vmem:[%s1780_s29 + $0x184] sm:$0xf0] }
  0xd9   : > { %v668_v38 = vadd.f32 %v1885_v49, %v667_v35  ;;  %v1571_v15 = vor.u32 %v1689_v4, %v1570_v8 }
  0xda   : > { %v1986_v40 = vadd.f32 %v858_v6, %v725_v36 }
  0xdb   : > { %v802_v42 = vadd.f32 %v1935_v41, %v668_v38  ;;  %706 = vmatmul.bf16.gmra.mxu0 %v1467_v31 }
  0xdc   : > { %v940_v43 = vpack.c.bf16 %v1986_v40, %v1986_v40  ;;  %766 = vmatmul.bf16.gmra.mxu2 %v1563_v37 }
  0xdd   : > { %v917_v44 = vpack.c.bf16 %v802_v42, %v802_v42  ;;  %v1024_v45 = vsel %vm1012_vm2, %v802_v42, 0.0  ;;  %v1124_v46 = vmul.f32 %v802_v42, %v802_v42 }
  0xde   : > { %v1025_v47 = vadd.f32 %v1024_v45, %v1023_v29  ;;  %991 = vst.msk [vmem:[%s1894_s22 + $0x74] sm:$0xf] %vm961_vm1, %v940_v43  ;;  %v811_v0 = vpop.f32.mrf.mxu1  ;;  %v868_v29 = vpop.f32.mrf.mxu3 }
  0xdf   : > { %968 = vst.msk [vmem:[%s1894_s22 + $0x18] sm:$0xf] %vm961_vm1, %v917_v44  ;;  %v1179_v41 = vsel %vm1012_vm2, %v1124_v46, 0.0  ;;  %v727_v52 = vpop.f32.mrf.mxu2 }
  0xe0   : > { %v1180_v53 = vadd.f32 %v1179_v41, %v1178_v34  ;;  %v669_v54 = vpop.f32.mrf.mxu0  ;;  %v728_v56 = vadd.f32 %v1885_v49, %v727_v52 }
  0xe1   : > { %v670_v59 = vadd.f32 %v1885_v49, %v669_v54  ;;  %1625 = vmatmul.msk.bf16.gmra.mxu1 %vm567_vm0, %v1487_v62 }
  0xe2   : > { %v2003_v1 = vadd.f32 %v861_v30, %v728_v56 }
  0xe3   : > { %v804_v2 = vadd.f32 %v1950_v60, %v670_v59 }
  0xe4   : > { %v941_v3 = vpack.c.bf16 %v2003_v1, %v2003_v1 }
  0xe5   : > { %v918_v5 = vpack.c.bf16 %v804_v2, %v804_v2  ;;  %v1026_v6 = vsel %vm1012_vm2, %v804_v2, 0.0  ;;  %v1125_v7 = vmul.f32 %v804_v2, %v804_v2 }
  0xe6   : > { %v1027_v9 = vadd.f32 %v1026_v6, %v1025_v47  ;;  %992 = vst.msk [vmem:[%s1894_s22 + $0x78] sm:$0xf] %vm961_vm1, %v941_v3  ;;  %v813_v20 = vpop.f32.mrf.mxu1  ;;  %v871_v46 = vpop.f32.mrf.mxu3 }
  0xe7   : > { %969 = vst.msk [vmem:[%s1894_s22 + $0x1c] sm:$0xf] %vm961_vm1, %v918_v5  ;;  %v1181_v60 = vsel %vm1012_vm2, %v1125_v7, 0.0  ;;  %v729_v11 = vpop.f32.mrf.mxu2 }
  0xe8   : > { %v1182_v12 = vadd.f32 %v1181_v60, %v1180_v53  ;;  %v672_v13 = vpop.f32.mrf.mxu0  ;;  %v730_v14 = vadd.f32 %v1885_v49, %v729_v11 }
  0xe9   : > { %v673_v18 = vadd.f32 %v1885_v49, %v672_v13 }
  0xea   : > { %v2020_v21 = vadd.f32 %v863_v51, %v730_v14 }
  0xeb   : > { %v807_v22 = vadd.f32 %v1963_v16, %v673_v18 }
  0xec   : > { %v942_v23 = vpack.c.bf16 %v2020_v21, %v2020_v21  ;;  %771 = vmatmul.bf16.gmra.mxu2 %v1571_v15 }
  0xed   : > { %v919_v25 = vpack.c.bf16 %v807_v22, %v807_v22  ;;  %v1028_v26 = vsel %vm1012_vm2, %v807_v22, 0.0  ;;  %v1126_v27 = vmul.f32 %v807_v22, %v807_v22 }
  0xee   : > { %v1029_v28 = vadd.f32 %v1028_v26, %v1027_v9  ;;  %993 = vst.msk [vmem:[%s1894_s22 + $0x7c] sm:$0xf] %vm961_vm1, %v942_v23  ;;  %v816_v35 = vpop.f32.mrf.mxu1  ;;  %v873_v63 = vpop.f32.mrf.mxu3 }
  0xef   : > { %970 = vst.msk [vmem:[%s1894_s22 + $0x20] sm:$0xf] %vm961_vm1, %v919_v25  ;;  %v1183_v30 = vsel %vm1012_vm2, %v1126_v27, 0.0  ;;  %v732_v24 = vpop.f32.mrf.mxu2 }
  0xf0   : > { %v1184_v16 = vadd.f32 %v1183_v30, %v1182_v12  ;;  %v674_v31 = vpop.f32.mrf.mxu0  ;;  %v733_v32 = vadd.f32 %v1885_v49, %v732_v24 }
  0xf1   : > { %v675_v34 = vadd.f32 %v1885_v49, %v674_v31 }
  0xf2   : > { %v2033_v36 = vadd.f32 %v866_v10, %v733_v32 }
  0xf3   : > { %v809_v37 = vadd.f32 %v1984_v39, %v675_v34 }
  0xf4   : > { %v943_v38 = vpack.c.bf16 %v2033_v36, %v2033_v36 }
  0xf5   : > { %v920_v42 = vpack.c.bf16 %v809_v37, %v809_v37  ;;  %v1030_v43 = vsel %vm1012_vm2, %v809_v37, 0.0  ;;  %v1127_v44 = vmul.f32 %v809_v37, %v809_v37 }
  0xf6   : > { %v1031_v45 = vadd.f32 %v1030_v43, %v1029_v28  ;;  %994 = vst.msk [vmem:[%s1894_s22 + $0x80] sm:$0xf] %vm961_vm1, %v943_v38  ;;  %v818_v52 = vpop.f32.mrf.mxu1  ;;  %v876_v14 = vpop.f32.mrf.mxu3 }
  0xf7   : > { %971 = vst.msk [vmem:[%s1894_s22 + $0x24] sm:$0xf] %vm961_vm1, %v920_v42  ;;  %v1185_v47 = vsel %vm1012_vm2, %v1127_v44, 0.0  ;;  %v734_v48 = vpop.f32.mrf.mxu2 }
  0xf8   : > { %v1186_v50 = vadd.f32 %v1185_v47, %v1184_v16  ;;  %v677_v39 = vpop.f32.mrf.mxu0  ;;  %v735_v51 = vadd.f32 %v1885_v49, %v734_v48 }
  0xf9   : > { %v678_v41 = vadd.f32 %v1885_v49, %v677_v39 }
  0xfa   : > { %v2046_v53 = vadd.f32 %v868_v29, %v735_v51 }
  0xfb   : > { %v812_v54 = vadd.f32 %v811_v0, %v678_v41 }
  0xfc   : > { %v944_v56 = vpack.c.bf16 %v2046_v53, %v2046_v53 }
  0xfd   : > { %v921_v57 = vpack.c.bf16 %v812_v54, %v812_v54  ;;  %v1032_v58 = vsel %vm1012_vm2, %v812_v54, 0.0  ;;  %v1128_v59 = vmul.f32 %v812_v54, %v812_v54 }
  0xfe   : > { %v1033_v62 = vadd.f32 %v1032_v58, %v1031_v45  ;;  %995 = vst.msk [vmem:[%s1894_s22 + $0x84] sm:$0xf] %vm961_vm1, %v944_v56  ;;  %v821_v8 = vpop.f32.mrf.mxu1  ;;  %v878_v32 = vpop.f32.mrf.mxu3 }
  0xff   : > { %972 = vst.msk [vmem:[%s1894_s22 + $0x28] sm:$0xf] %vm961_vm1, %v921_v57  ;;  %v1187_v2 = vsel %vm1012_vm2, %v1128_v59, 0.0  ;;  %v737_v3 = vpop.f32.mrf.mxu2 }
 0x100   : > { %v1188_v5 = vadd.f32 %v1187_v2, %v1186_v50  ;;  %v679_v0 = vpop.f32.mrf.mxu0  ;;  %v738_v6 = vadd.f32 %v1885_v49, %v737_v3 }
 0x101   : > { %v680_v7 = vadd.f32 %v1885_v49, %v679_v0 }
 0x102   : > { %v2058_v4 = vadd.f32 %v871_v46, %v738_v6 }
 0x103   : > { %v814_v9 = vadd.f32 %v813_v20, %v680_v7 }
 0x104   : > { %v945_v10 = vpack.c.bf16 %v2058_v4, %v2058_v4 }
 0x105   : > { %v922_v60 = vpack.c.bf16 %v814_v9, %v814_v9  ;;  %v1034_v11 = vsel %vm1012_vm2, %v814_v9, 0.0  ;;  %v1129_v12 = vmul.f32 %v814_v9, %v814_v9 }
 0x106   : > { %v1035_v13 = vadd.f32 %v1034_v11, %v1033_v62  ;;  %996 = vst.msk [vmem:[%s1894_s22 + $0x88] sm:$0xf] %vm961_vm1, %v945_v10  ;;  %v823_v26 = vpop.f32.mrf.mxu1  ;;  %v881_v51 = vpop.f32.mrf.mxu3 }
 0x107   : > { %973 = vst.msk [vmem:[%s1894_s22 + $0x2c] sm:$0xf] %vm961_vm1, %v922_v60  ;;  %v1189_v15 = vsel %vm1012_vm2, %v1129_v12, 0.0  ;;  %v739_v18 = vpop.f32.mrf.mxu2 }
 0x108   : > { %v1190_v22 = vadd.f32 %v1189_v15, %v1188_v5  ;;  %v682_v20 = vpop.f32.mrf.mxu0  ;;  %v740_v23 = vadd.f32 %v1885_v49, %v739_v18 }
 0x109   : > { %v683_v25 = vadd.f32 %v1885_v49, %v682_v20 }
 0x10a   : > { %v2070_v27 = vadd.f32 %v873_v63, %v740_v23 }
 0x10b   : > { %v817_v28 = vadd.f32 %v816_v35, %v683_v25 }
 0x10c   : > { %v946_v29 = vpack.c.bf16 %v2070_v27, %v2070_v27 }
 0x10d   : > { %v923_v30 = vpack.c.bf16 %v817_v28, %v817_v28  ;;  %v1036_v24 = vsel %vm1012_vm2, %v817_v28, 0.0  ;;  %v1130_v16 = vmul.f32 %v817_v28, %v817_v28 }
 0x10e   : > { %v1037_v31 = vadd.f32 %v1036_v24, %v1035_v13  ;;  %997 = vst.msk [vmem:[%s1894_s22 + $0x8c] sm:$0xf] %vm961_vm1, %v946_v29  ;;  %v826_v44 = vpop.f32.mrf.mxu1  ;;  %v883_v2 = vpop.f32.mrf.mxu3 }
 0x10f   : > { %974 = vst.msk [vmem:[%s1894_s22 + $0x30] sm:$0xf] %vm961_vm1, %v923_v30  ;;  %v1191_v34 = vsel %vm1012_vm2, %v1130_v16, 0.0  ;;  %v742_v37 = vpop.f32.mrf.mxu2 }
 0x110   : > { %v2080_v38 = vadd.f32 %v1191_v34, %v1190_v22  ;;  %v684_v35 = vpop.f32.mrf.mxu0  ;;  %v743_v42 = vadd.f32 %v1885_v49, %v742_v37 }
 0x111   : > { %v685_v43 = vadd.f32 %v1885_v49, %v684_v35 }
 0x112   : > { %v2084_v45 = vadd.f32 %v876_v14, %v743_v42 }
 0x113   : > { %v2086_v46 = vadd.f32 %v818_v52, %v685_v43 }
 0x114   : > { %v947_v47 = vpack.c.bf16 %v2084_v45, %v2084_v45 }
 0x115   : > { %v924_v48 = vpack.c.bf16 %v2086_v46, %v2086_v46  ;;  %v1038_v50 = vsel %vm1012_vm2, %v2086_v46, 0.0 }
 0x116   : > { %v2094_v39 = vadd.f32 %v1038_v50, %v1037_v31  ;;  %998 = vst.msk [vmem:[%s1894_s22 + $0x90] sm:$0xf] %vm961_vm1, %v947_v47  ;;  %v828_v57 = vpop.f32.mrf.mxu1  ;;  %v886_v11 = vpop.f32.mrf.mxu3 }
 0x117   : > { %975 = vst.msk [vmem:[%s1894_s22 + $0x34] sm:$0xf] %vm961_vm1, %v924_v48  ;;  %v744_v41 = vpop.f32.mrf.mxu2 }
 0x118   : > { %v687_v52 = vpop.f32.mrf.mxu0  ;;  %v745_v54 = vadd.f32 %v1885_v49, %v744_v41 }
 0x119   : > { %v688_v56 = vadd.f32 %v1885_v49, %v687_v52 }
 0x11a   : > { %v2102_v58 = vadd.f32 %v878_v32, %v745_v54 }
 0x11b   : > { %v2104_v59 = vadd.f32 %v821_v8, %v688_v56 }
 0x11c   : > { %v948_v62 = vpack.c.bf16 %v2102_v58, %v2102_v58 }
 0x11d   : > { %v925_v63 = vpack.c.bf16 %v2104_v59, %v2104_v59 }
 0x11e   : > { %999 = vst.msk [vmem:[%s1894_s22 + $0x94] sm:$0xf] %vm961_vm1, %v948_v62  ;;  %v831_v7 = vpop.f32.mrf.mxu1 }
 0x11f   : > { %976 = vst.msk [vmem:[%s1894_s22 + $0x38] sm:$0xf] %vm961_vm1, %v925_v63  ;;  %v747_v3 = vpop.f32.mrf.mxu2 }
 0x120   : > { %v689_v5 = vpop.f32.mrf.mxu0  ;;  %v748_v0 = vadd.f32 %v1885_v49, %v747_v3 }
 0x121   : > { %v690_v6 = vadd.f32 %v1885_v49, %v689_v5 }
 0x122   : > { %v2116_v8 = vadd.f32 %v881_v51, %v748_v0 }
 0x123   : > { %v2118_v9 = vadd.f32 %v823_v26, %v690_v6  ;;  %v888_v26 = vpop.f32.mrf.mxu3 }
 0x124   : > { %v949_v10 = vpack.c.bf16 %v2116_v8, %v2116_v8 }
 0x125   : > { %v926_v60 = vpack.c.bf16 %v2118_v9, %v2118_v9 }
 0x126   : > { %1000 = vst.msk [vmem:[%s1894_s22 + $0x98] sm:$0xf] %vm961_vm1, %v949_v10  ;;  %v833_v18 = vpop.f32.mrf.mxu1 }
 0x127   : > { %977 = vst.msk [vmem:[%s1894_s22 + $0x3c] sm:$0xf] %vm961_vm1, %v926_v60  ;;  %v749_v12 = vpop.f32.mrf.mxu2 }
 0x128   : > { %v692_v13 = vpop.f32.mrf.mxu0  ;;  %v750_v14 = vadd.f32 %v1885_v49, %v749_v12 }
 0x129   : > { %v693_v15 = vadd.f32 %v1885_v49, %v692_v13 }
 0x12a   : > { %v2130_v22 = vadd.f32 %v883_v2, %v750_v14 }
 0x12b   : > { %v2132_v20 = vadd.f32 %v826_v44, %v693_v15  ;;  %v891_v42 = vpop.f32.mrf.mxu3 }
 0x12c   : > { %v950_v23 = vpack.c.bf16 %v2130_v22, %v2130_v22 }
 0x12d   : > { %v927_v25 = vpack.c.bf16 %v2132_v20, %v2132_v20 }
 0x12e   : > { %1001 = vst.msk [vmem:[%s1894_s22 + $0x9c] sm:$0xf] %vm961_vm1, %v950_v23  ;;  %v836_v16 = vpop.f32.mrf.mxu1  ;;  %v1131_v23 = vmul.f32 %v2086_v46, %v2086_v46  ;;  %v713_v46 = vadd.f32 %v1885_v49, %v1900_v61 }
 0x12f   : > { %978 = vst.msk [vmem:[%s1894_s22 + $0x40] sm:$0xf] %vm961_vm1, %v927_v25  ;;  %v752_v28 = vpop.f32.mrf.mxu2 }
 0x130   : > { %v694_v29 = vpop.f32.mrf.mxu0  ;;  %v753_v30 = vadd.f32 %v1885_v49, %v752_v28 }
 0x131   : > { %v695_v24 = vadd.f32 %v1885_v49, %v694_v29 }
 0x132   : > { %v2144_v31 = vadd.f32 %v886_v11, %v753_v30  ;;  %v1133_v30 = vmul.f32 %v2118_v9, %v2118_v9 }
 0x133   : > { %v2146_v32 = vadd.f32 %v828_v57, %v695_v24  ;;  %v893_v56 = vpop.f32.mrf.mxu3 }
 0x134   : > { %v951_v34 = vpack.c.bf16 %v2144_v31, %v2144_v31 }
 0x135   : > { %v928_v37 = vpack.c.bf16 %v2146_v32, %v2146_v32 }
 0x136   : > { %1002 = vst.msk [vmem:[%s1894_s22 + $0xa0] sm:$0xf] %vm961_vm1, %v951_v34  ;;  %v838_v48 = vpop.f32.mrf.mxu1  ;;  %v1193_v34 = vsel %vm1012_vm2, %v1131_v23, 0.0  ;;  %v715_v23 = vadd.f32 %v1885_v49, %v1919_v19 }
 0x137   : > { %979 = vst.msk [vmem:[%s1894_s22 + $0x44] sm:$0xf] %vm961_vm1, %v928_v37  ;;  %v754_v35 = vpop.f32.mrf.mxu2  ;;  %v1040_v37 = vsel %vm1012_vm2, %v2104_v59, 0.0 }
 0x138   : > { %v697_v43 = vpop.f32.mrf.mxu0  ;;  %v755_v44 = vadd.f32 %v1885_v49, %v754_v35 }
 0x139   : > { %v698_v47 = vadd.f32 %v1885_v49, %v697_v43 }
 0x13a   : > { %v2158_v50 = vadd.f32 %v888_v26, %v755_v44  ;;  %v1132_v26 = vmul.f32 %v2104_v59, %v2104_v59  ;;  %v1194_v59 = vadd.f32 %v1193_v34, %v2080_v38 }
 0x13b   : > { %v2160_v51 = vadd.f32 %v831_v7, %v698_v47  ;;  %v896_v10 = vpop.f32.mrf.mxu3  ;;  %v1042_v47 = vsel %vm1012_vm2, %v2118_v9, 0.0  ;;  %v1044_v9 = vsel %vm1012_vm2, %v2132_v20, 0.0 }
 0x13c   : > { %v952_v41 = vpack.c.bf16 %v2158_v50, %v2158_v50 }
 0x13d   : > { %v929_v52 = vpack.c.bf16 %v2160_v51, %v2160_v51 }
 0x13e   : > { %1003 = vst.msk [vmem:[%s1894_s22 + $0xa4] sm:$0xf] %vm961_vm1, %v952_v41  ;;  %v2172_v2 = vpop.f32.mrf.mxu1  ;;  %v1134_v41 = vmul.f32 %v2132_v20, %v2132_v20 }
 0x13f   : > { %980 = vst.msk [vmem:[%s1894_s22 + $0x48] sm:$0xf] %vm961_vm1, %v929_v52  ;;  %v757_v54 = vpop.f32.mrf.mxu2 }
 0x140   : > { %v699_v57 = vpop.f32.mrf.mxu0  ;;  %v758_v62 = vadd.f32 %v1885_v49, %v757_v54  ;;  %v1041_v54 = vadd.f32 %v1040_v37, %v2094_v39  ;;  %v1136_v39 = vmul.f32 %v2160_v51, %v2160_v51 }
 0x141   : > { %v700_v63 = vadd.f32 %v1885_v49, %v699_v57 }
 0x142   : > { %v2174_v3 = vadd.f32 %v891_v42, %v758_v62  ;;  %v1195_v42 = vsel %vm1012_vm2, %v1132_v26, 0.0  ;;  %v1135_v62 = vmul.f32 %v2146_v32, %v2146_v32  ;;  %v1043_v38 = vadd.f32 %v1042_v47, %v1041_v54 }
 0x143   : > { %v2176_v5 = vadd.f32 %v833_v18, %v700_v63  ;;  %v898_v29 = vpop.f32.mrf.mxu3 }
 0x144   : > { %v953_v0 = vpack.c.bf16 %v2174_v3, %v2174_v3 }
 0x145   : > { %v930_v6 = vpack.c.bf16 %v2176_v5, %v2176_v5  ;;  %v1050_v37 = vsel %vm1012_vm2, %v2176_v5, 0.0 }
 0x146   : > { %1004 = vst.msk [vmem:[%s1894_s22 + $0xa8] sm:$0xf] %vm961_vm1, %v953_v0  ;;  %v2188_v13 = vpop.f32.mrf.mxu1  ;;  %v1196_v0 = vadd.f32 %v1195_v42, %v1194_v59 }
 0x147   : > { %981 = vst.msk [vmem:[%s1894_s22 + $0x4c] sm:$0xf] %vm961_vm1, %v930_v6  ;;  %v759_v7 = vpop.f32.mrf.mxu2  ;;  %v1199_v6 = vsel %vm1012_vm2, %v1134_v41, 0.0 }
 0x148   : > { %v702_v60 = vpop.f32.mrf.mxu0  ;;  %v760_v11 = vadd.f32 %v1885_v49, %v759_v7  ;;  %v1046_v7 = vsel %vm1012_vm2, %v2146_v32, 0.0  ;;  %v1048_v32 = vsel %vm1012_vm2, %v2160_v51, 0.0 }
 0x149   : > { %v703_v12 = vadd.f32 %v1885_v49, %v702_v60  ;;  %v1045_v60 = vadd.f32 %v1044_v9, %v1043_v38 }
 0x14a   : > { %v2190_v14 = vadd.f32 %v893_v56, %v760_v11  ;;  %v1197_v56 = vsel %vm1012_vm2, %v1133_v30, 0.0  ;;  %v1137_v11 = vmul.f32 %v2176_v5, %v2176_v5 }
 0x14b   : > { %v2192_v15 = vadd.f32 %v836_v16, %v703_v12 }
 0x14c   : > { %v954_v18 = vpack.c.bf16 %v2190_v14, %v2190_v14  ;;  %v1205_v47 = vsel %vm1012_vm2, %v1137_v11, 0.0 }
 0x14d   : > { %v931_v25 = vpack.c.bf16 %v2192_v15, %v2192_v15  ;;  %v1138_v19 = vmul.f32 %v2192_v15, %v2192_v15 }
 0x14e   : > { %1005 = vst.msk [vmem:[%s1894_s22 + $0xac] sm:$0xf] %vm961_vm1, %v954_v18  ;;  %v846_v43 = vpop.f32.mrf.mxu1 }
 0x14f   : > { %982 = vst.msk [vmem:[%s1894_s22 + $0x50] sm:$0xf] %vm961_vm1, %v931_v25  ;;  %v762_v28 = vpop.f32.mrf.mxu2  ;;  %v2222_v52 = vadd.f32 %v846_v43, %v713_v46  ;;  %v1201_v25 = vsel %vm1012_vm2, %v1135_v62, 0.0 }
 0x150   : > { %v704_v24 = vpop.f32.mrf.mxu0  ;;  %v763_v16 = vadd.f32 %v1885_v49, %v762_v28  ;;  %v901_v28 = vpop.f32.mrf.mxu3 }
 0x151   : > { %v705_v35 = vadd.f32 %v1885_v49, %v704_v24  ;;  %v935_v63 = vpack.c.bf16 %v2222_v52, %v2222_v52  ;;  %v1047_v24 = vadd.f32 %v1046_v7, %v1045_v60 }
 0x152   : > { %v2216_v44 = vadd.f32 %v896_v10, %v763_v16  ;;  %v1198_v10 = vadd.f32 %v1197_v56, %v1196_v0  ;;  %v1203_v16 = vsel %vm1012_vm2, %v1136_v39, 0.0  ;;  %v718_v39 = vadd.f32 %v1885_v49, %v1930_v33 }
 0x153   : > { %v839_v61 = vadd.f32 %v838_v48, %v705_v35  ;;  %986 = vst.msk [vmem:[%s1894_s22 + $0x60] sm:$0xf] %vm961_vm1, %v935_v63  ;;  %v1049_v43 = vadd.f32 %v1048_v32, %v1047_v24  ;;  %v1142_v32 = vmul.f32 %v2222_v52, %v2222_v52 }
 0x154   : > { %v955_v57 = vpack.c.bf16 %v2216_v44, %v2216_v44  ;;  %v1200_v30 = vadd.f32 %v1199_v6, %v1198_v10 }
 0x155   : > { %v932_v48 = vpack.c.bf16 %v839_v61, %v839_v61  ;;  %v1139_v59 = vmul.f32 %v839_v61, %v839_v61  ;;  %v1054_v9 = vsel %vm1012_vm2, %v839_v61, 0.0 }
 0x156   : > { %1006 = vst.msk [vmem:[%s1894_s22 + $0xb0] sm:$0xf] %vm961_vm1, %v955_v57  ;;  %v848_v46 = vpop.f32.mrf.mxu1  ;;  %v1202_v42 = vadd.f32 %v1201_v25, %v1200_v30  ;;  %v1051_v57 = vadd.f32 %v1050_v37, %v1049_v43 }
 0x157   : > { %983 = vst.msk [vmem:[%s1894_s22 + $0x54] sm:$0xf] %vm961_vm1, %v932_v48  ;;  %v764_v20 = vpop.f32.mrf.mxu2  ;;  %v849_v35 = vadd.f32 %v848_v46, %v715_v23  ;;  %v1209_v6 = vsel %vm1012_vm2, %v1139_v59, 0.0  ;;  %v720_v59 = vadd.f32 %v1885_v49, %v1947_v55  ;;  %v1146_v55 = vmul.f32 %v1965_v17, %v1965_v17 }
 0x158   : > { %v707_v12 = vpop.f32.mrf.mxu0  ;;  %v765_v18 = vadd.f32 %v1885_v49, %v764_v20  ;;  %v1204_v56 = vadd.f32 %v1203_v16, %v1202_v42  ;;  %v903_v25 = vpop.f32.mrf.mxu3 }
 0x159   : > { %v708_v26 = vadd.f32 %v1885_v49, %v707_v12  ;;  %v936_v54 = vpack.c.bf16 %v849_v35, %v849_v35 }
 0x15a   : > { %v2256_v34 = vadd.f32 %v898_v29, %v765_v18  ;;  %v1052_v29 = vsel %vm1012_vm2, %v2192_v15, 0.0  ;;  %v1206_v63 = vadd.f32 %v1205_v47, %v1204_v56 }
 0x15b   : > { %v842_v51 = vadd.f32 %v2172_v2, %v708_v26  ;;  %v1207_v2 = vsel %vm1012_vm2, %v1138_v19, 0.0  ;;  %v1053_v0 = vadd.f32 %v1052_v29, %v1051_v57  ;;  %987 = vst.msk [vmem:[%s1894_s22 + $0x64] sm:$0xf] %vm961_vm1, %v936_v54  ;;  %v1062_v54 = vsel %vm1012_vm2, %v849_v35, 0.0 }
 0x15c   : > { %v956_v41 = vpack.c.bf16 %v2256_v34, %v2256_v34  ;;  %v1208_v20 = vadd.f32 %v1207_v2, %v1206_v63 }
 0x15d   : > { %v933_v5 = vpack.c.bf16 %v842_v51, %v842_v51  ;;  %v1140_v62 = vmul.f32 %v842_v51, %v842_v51  ;;  %v1056_v7 = vsel %vm1012_vm2, %v842_v51, 0.0  ;;  %v1055_v10 = vadd.f32 %v1054_v9, %v1053_v0 }
 0x15e   : > { %1007 = vst.msk [vmem:[%s1894_s22 + $0xb4] sm:$0xf] %vm961_vm1, %v956_v41  ;;  %v851_v60 = vpop.f32.mrf.mxu1  ;;  %v1210_v33 = vadd.f32 %v1209_v6, %v1208_v20  ;;  %v1143_v51 = vmul.f32 %v849_v35, %v849_v35 }
 0x15f   : > { %984 = vst.msk [vmem:[%s1894_s22 + $0x58] sm:$0xf] %vm961_vm1, %v933_v5  ;;  %v767_v48 = vpop.f32.mrf.mxu2  ;;  %v1211_v12 = vsel %vm1012_vm2, %v1140_v62, 0.0  ;;  %v852_v23 = vadd.f32 %v851_v60, %v718_v39  ;;  %v1057_v26 = vadd.f32 %v1056_v7, %v1055_v10  ;;  %v1215_v5 = vsel %vm1012_vm2, %v1142_v32, 0.0 }
 0x160   : > { %v709_v15 = vpop.f32.mrf.mxu0  ;;  %v768_v38 = vadd.f32 %v1885_v49, %v767_v48  ;;  %v1212_v37 = vadd.f32 %v1211_v12, %v1210_v33  ;;  %v1217_v62 = vsel %vm1012_vm2, %v1143_v51, 0.0  ;;  %v1068_v60 = vsel %vm1012_vm2, %v1965_v17, 0.0 }
 0x161   : > { %v710_v61 = vadd.f32 %v1885_v49, %v709_v15  ;;  %v937_v46 = vpack.c.bf16 %v852_v23, %v852_v23  ;;  %v1064_v48 = vsel %vm1012_vm2, %v852_v23, 0.0  ;;  %v1147_v12 = vmul.f32 %v1986_v40, %v1986_v40 }
 0x162   : > { %v2282_v11 = vadd.f32 %v901_v28, %v768_v38  ;;  %v1148_v17 = vmul.f32 %v2003_v1, %v2003_v1 }
 0x163   : > { %v844_v18 = vadd.f32 %v2188_v13, %v710_v61  ;;  %v1060_v13 = vsel %vm1012_vm2, %v2222_v52, 0.0  ;;  %988 = vst.msk [vmem:[%s1894_s22 + $0x68] sm:$0xf] %vm961_vm1, %v937_v46  ;;  %v1144_v52 = vmul.f32 %v852_v23, %v852_v23  ;;  %v906_v61 = vpop.f32.mrf.mxu3  ;;  %v1225_v46 = vsel %vm1012_vm2, %v1147_v12, 0.0 }
 0x164   : > { %v957_v30 = vpack.c.bf16 %v2282_v11, %v2282_v11  ;;  %v1227_v51 = vsel %vm1012_vm2, %v1148_v17, 0.0  ;;  %v1155_v12 = vmul.f32 %v2102_v58, %v2102_v58  ;;  %v1157_v17 = vmul.f32 %v2130_v22, %v2130_v22 }
 0x165   : > { %v934_v24 = vpack.c.bf16 %v844_v18, %v844_v18  ;;  %v1058_v28 = vsel %vm1012_vm2, %v844_v18, 0.0  ;;  %v1141_v16 = vmul.f32 %v844_v18, %v844_v18  ;;  %v1219_v38 = vsel %vm1012_vm2, %v1144_v52, 0.0 }
 0x166   : > { %v1059_v19 = vadd.f32 %v1058_v28, %v1057_v26  ;;  %1008 = vst.msk [vmem:[%s1894_s22 + $0xb8] sm:$0xf] %vm961_vm1, %v957_v30  ;;  %v853_v2 = vpop.f32.mrf.mxu1  ;;  %v1223_v26 = vsel %vm1012_vm2, %v1146_v55, 0.0  ;;  %v1070_v30 = vsel %vm1012_vm2, %v1986_v40, 0.0 }
 0x167   : > { %985 = vst.msk [vmem:[%s1894_s22 + $0x5c] sm:$0xf] %vm961_vm1, %v934_v24  ;;  %v1213_v42 = vsel %vm1012_vm2, %v1141_v16, 0.0  ;;  %v769_v43 = vpop.f32.mrf.mxu2  ;;  %v854_v63 = vadd.f32 %v853_v2, %v720_v59  ;;  %v1151_v59 = vmul.f32 %v2046_v53, %v2046_v53 }
 0x168   : > { %v1214_v47 = vadd.f32 %v1213_v42, %v1212_v37  ;;  %v1061_v41 = vadd.f32 %v1060_v13, %v1059_v19  ;;  %v770_v29 = vadd.f32 %v1885_v49, %v769_v43  ;;  %v1072_v37 = vsel %vm1012_vm2, %v2003_v1, 0.0 }
 0x169   : > { %v938_v39 = vpack.c.bf16 %v854_v63, %v854_v63  ;;  %v1066_v6 = vsel %vm1012_vm2, %v854_v63, 0.0  ;;  %v1145_v7 = vmul.f32 %v854_v63, %v854_v63  ;;  %v1074_v42 = vsel %vm1012_vm2, %v2020_v21, 0.0 }
 0x16a   : > { %v1063_v56 = vadd.f32 %v1062_v54, %v1061_v41  ;;  %v1216_v57 = vadd.f32 %v1215_v5, %v1214_v47  ;;  %v2305_v9 = vadd.f32 %v903_v25, %v770_v29  ;;  %v1150_v43 = vmul.f32 %v2033_v36, %v2033_v36 }
 0x16b   : > { %989 = vst.msk [vmem:[%s1894_s22 + $0x6c] sm:$0xf] %vm961_vm1, %v938_v39  ;;  %v1221_v18 = vsel %vm1012_vm2, %v1145_v7, 0.0  ;;  %v1076_v29 = vsel %vm1012_vm2, %v2033_v36, 0.0  ;;  %v908_v54 = vpop.f32.mrf.mxu3  ;;  %v1152_v36 = vmul.f32 %v2058_v4, %v2058_v4  ;;  %v1082_v7 = vsel %vm1012_vm2, %v2070_v27, 0.0 }
 0x16c   : > { %v1065_v0 = vadd.f32 %v1064_v48, %v1063_v56  ;;  %v1218_v15 = vadd.f32 %v1217_v62, %v1216_v57  ;;  %v958_v35 = vpack.c.bf16 %v2305_v9, %v2305_v9  ;;  %v1231_v2 = vsel %vm1012_vm2, %v1150_v43, 0.0 }
 0x16d   : > { %v1078_v62 = vsel %vm1012_vm2, %v2046_v53, 0.0 }
 0x16e   : > { %v1220_v20 = vadd.f32 %v1219_v38, %v1218_v15  ;;  %v1067_v10 = vadd.f32 %v1066_v6, %v1065_v0  ;;  %1009 = vst.msk [vmem:[%s1894_s22 + $0xbc] sm:$0xf] %vm961_vm1, %v958_v35  ;;  %v1233_v0 = vsel %vm1012_vm2, %v1151_v59, 0.0  ;;  %v1080_v15 = vsel %vm1012_vm2, %v2058_v4, 0.0 }
 0x16f   : > { %v772_v23 = vpop.f32.mrf.mxu2  ;;  %v1153_v35 = vmul.f32 %v2070_v27, %v2070_v27  ;;  %v1235_v6 = vsel %vm1012_vm2, %v1152_v36, 0.0  ;;  %v1086_v27 = vsel %vm1012_vm2, %v2102_v58, 0.0  ;;  %v1090_v58 = vsel %vm1012_vm2, %v2130_v22, 0.0 }
 0x170   : > { %v1069_v25 = vadd.f32 %v1068_v60, %v1067_v10  ;;  %v1222_v33 = vadd.f32 %v1221_v18, %v1220_v20  ;;  %v773_v32 = vadd.f32 %v1885_v49, %v772_v23  ;;  %v1149_v49 = vmul.f32 %v2020_v21, %v2020_v21  ;;  %v1717_v21 = vld [vmem:[%s2455_s2] ss:$0 sm:$0xff] }
 0x171   : > { %v1237_v4 = vsel %vm1012_vm2, %v1153_v35, 0.0  ;;  %v1084_v60 = vsel %vm1012_vm2, %v2084_v45, 0.0  ;;  %v1094_v22 = vsel %vm1012_vm2, %v2158_v50, 0.0  ;;  %v1161_v59 = vmul.f32 %v2190_v14, %v2190_v14 }
 0x172   : > { %v1071_v24 = vadd.f32 %v1070_v30, %v1069_v25  ;;  %v1224_v28 = vadd.f32 %v1223_v26, %v1222_v33  ;;  %v2330_v16 = vadd.f32 %v906_v61, %v773_v32  ;;  %v1229_v1 = vsel %vm1012_vm2, %v1149_v49, 0.0 }
 0x173   : > { %v1154_v61 = vmul.f32 %v2084_v45, %v2084_v45  ;;  %v1156_v33 = vmul.f32 %v2116_v8, %v2116_v8  ;;  %v1241_v30 = vsel %vm1012_vm2, %v1155_v12, 0.0  ;;  %v1088_v45 = vsel %vm1012_vm2, %v2116_v8, 0.0 }
 0x174   : > { %v1073_v19 = vadd.f32 %v1072_v37, %v1071_v24  ;;  %v1226_v13 = vadd.f32 %v1225_v46, %v1224_v28  ;;  %v959_v40 = vpack.c.bf16 %v2330_v16, %v2330_v16  ;;  %v1158_v37 = vmul.f32 %v2144_v31, %v2144_v31 }
 0x175   : > { %v1239_v25 = vsel %vm1012_vm2, %v1154_v61, 0.0  ;;  %v1243_v46 = vsel %vm1012_vm2, %v1156_v33, 0.0  ;;  %v1092_v8 = vsel %vm1012_vm2, %v2144_v31, 0.0  ;;  %v1096_v31 = vsel %vm1012_vm2, %v2174_v3, 0.0 }
 0x176   : > { %v1075_v47 = vadd.f32 %v1074_v42, %v1073_v19  ;;  %v1228_v41 = vadd.f32 %v1227_v51, %v1226_v13  ;;  %1010 = vst.msk [vmem:[%s1894_s22 + $0xc0] sm:$0xf] %vm961_vm1, %v959_v40  ;;  %v1245_v13 = vsel %vm1012_vm2, %v1157_v17, 0.0  ;;  %v1159_v40 = vmul.f32 %v2158_v50, %v2158_v50 }
 0x177   : > { %v774_v5 = vpop.f32.mrf.mxu2  ;;  %v1247_v43 = vsel %vm1012_vm2, %v1158_v37, 0.0  ;;  %v1098_v50 = vsel %vm1012_vm2, %v2190_v14, 0.0  ;;  %v1102_v14 = vsel %vm1012_vm2, %v2256_v34, 0.0  ;;  %v1166_v61 = vmul.f32 %v2330_v16, %v2330_v16 }
 0x178   : > { %v1077_v52 = vadd.f32 %v1076_v29, %v1075_v47  ;;  %v1230_v56 = vadd.f32 %v1229_v1, %v1228_v41  ;;  %v775_v57 = vadd.f32 %v1717_v21, %v774_v5  ;;  %v1160_v47 = vmul.f32 %v2174_v3, %v2174_v3 }
 0x179   : > { %v1249_v29 = vsel %vm1012_vm2, %v1159_v40, 0.0  ;;  %v1100_v3 = vsel %vm1012_vm2, %v2216_v44, 0.0 }
 0x17a   : > { %v1079_v48 = vadd.f32 %v1078_v62, %v1077_v52  ;;  %v1232_v63 = vadd.f32 %v1231_v2, %v1230_v56  ;;  %v2359_v55 = vadd.f32 %v908_v54, %v775_v57  ;;  %v1251_v52 = vsel %vm1012_vm2, %v1160_v47, 0.0 }
 0x17b   : > { %v1162_v56 = vmul.f32 %v2216_v44, %v2216_v44  ;;  %v1253_v2 = vsel %vm1012_vm2, %v1161_v59, 0.0  ;;  %v1163_v62 = vmul.f32 %v2256_v34, %v2256_v34  ;;  %v1104_v44 = vsel %vm1012_vm2, %v2282_v11, 0.0 }
 0x17c   : > { %v1081_v38 = vadd.f32 %v1080_v15, %v1079_v48  ;;  %v1234_v39 = vadd.f32 %v1233_v0, %v1232_v63  ;;  %v960_v53 = vpack.c.bf16 %v2359_v55, %v2359_v55  ;;  %v1164_v0 = vmul.f32 %v2282_v11, %v2282_v11 }
 0x17d   : > { %v1255_v63 = vsel %vm1012_vm2, %v1162_v56, 0.0  ;;  %v1106_v34 = vsel %vm1012_vm2, %v2305_v9, 0.0  ;;  %v1108_v11 = vsel %vm1012_vm2, %v2330_v16, 0.0 }
 0x17e   : > { %v1083_v20 = vadd.f32 %v1082_v7, %v1081_v38  ;;  %v1236_v10 = vadd.f32 %v1235_v6, %v1234_v39  ;;  %1011 = vst.msk [vmem:[%s1894_s22 + $0xc4] sm:$0xf] %vm961_vm1, %v960_v53  ;;  %v1257_v38 = vsel %vm1012_vm2, %v1163_v62, 0.0  ;;  %v1165_v39 = vmul.f32 %v2305_v9, %v2305_v9 }
 0x17f   : > { %v1259_v7 = vsel %vm1012_vm2, %v1164_v0, 0.0  ;;  %v1110_v9 = vsel %vm1012_vm2, %v2359_v55, 0.0 }
 0x180   : > { %v1238_v18 = vadd.f32 %v1237_v4, %v1236_v10  ;;  %v1085_v23 = vadd.f32 %v1084_v60, %v1083_v20  ;;  %v1261_v4 = vsel %vm1012_vm2, %v1165_v39, 0.0  ;;  %v1167_v60 = vmul.f32 %v2359_v55, %v2359_v55 }
 0x182   : > { %v1087_v32 = vadd.f32 %v1086_v27, %v1085_v23  ;;  %v1240_v26 = vadd.f32 %v1239_v25, %v1238_v18  ;;  %v1263_v23 = vsel %vm1012_vm2, %v1166_v61, 0.0  ;;  %v1265_v33 = vsel %vm1012_vm2, %v1167_v60, 0.0 }
 0x184   : > { %v1089_v24 = vadd.f32 %v1088_v45, %v1087_v32  ;;  %v1242_v28 = vadd.f32 %v1241_v30, %v1240_v26  ;;  %v1273_v45 = vlaneseq }
 0x186   : > { %v1091_v49 = vadd.f32 %v1090_v58, %v1089_v24  ;;  %v1244_v19 = vadd.f32 %v1243_v46, %v1242_v28  ;;  %v1274_v58 = vshrl.u32 %v1273_v45, 7 }
 0x188   : > { %v1093_v51 = vadd.f32 %v1092_v8, %v1091_v49  ;;  %v1246_v42 = vadd.f32 %v1245_v13, %v1244_v19  ;;  %vm1276_vm3 = vcmp.eq.s32.totalorder %v1274_v58, 1  ;;  %vm1275_vm4 = vcmp.eq.s32.totalorder %v1274_v58, 0 }
 0x18a   : > { %v1095_v41 = vadd.f32 %v1094_v22, %v1093_v51  ;;  %v1248_v1 = vadd.f32 %v1247_v43, %v1246_v42 }
 0x18c   : > { %v1097_v5 = vadd.f32 %v1096_v31, %v1095_v41  ;;  %v1250_v54 = vadd.f32 %v1249_v29, %v1248_v1 }
 0x18e   : > { %v1099_v21 = vadd.f32 %v1098_v50, %v1097_v5  ;;  %v1252_v57 = vadd.f32 %v1251_v52, %v1250_v54 }
 0x190   : > { %v1101_v36 = vadd.f32 %v1100_v3, %v1099_v21  ;;  %v1254_v48 = vadd.f32 %v1253_v2, %v1252_v57 }
 0x192   : > { %v1103_v15 = vadd.f32 %v1102_v14, %v1101_v36  ;;  %v1256_v35 = vadd.f32 %v1255_v63, %v1254_v48 }
 0x194   : > { %v1258_v53 = vadd.f32 %v1257_v38, %v1256_v35  ;;  %v1105_v6 = vadd.f32 %v1104_v44, %v1103_v15 }
 0x196   : > { %v1260_v20 = vadd.f32 %v1259_v7, %v1258_v53  ;;  %v1107_v10 = vadd.f32 %v1106_v34, %v1105_v6 }
 0x198   : > { %v1262_v12 = vadd.f32 %v1261_v4, %v1260_v20  ;;  %v1109_v18 = vadd.f32 %v1108_v11, %v1107_v10 }
 0x19a   : > { %v1264_v25 = vadd.f32 %v1263_v23, %v1262_v12  ;;  %v1111_v27 = vadd.f32 %v1110_v9, %v1109_v18 }
 0x19c   : > { %v1112_v32 = vrot.slane %v1111_v27, 4  ;;  %v1266_v26 = vadd.f32 %v1265_v33, %v1264_v25 }
 0x19e   : > { %v1113_v30 = vadd.f32 %v1112_v32, %v1111_v27  ;;  %v1267_v16 = vrot.slane %v1266_v26, 4 }
 0x1a0   : > { %v1114_v17 = vrot.slane %v1113_v30, 2  ;;  %v1268_v24 = vadd.f32 %v1267_v16, %v1266_v26 }
 0x1a2   : > { %v1115_v28 = vadd.f32 %v1114_v17, %v1113_v30  ;;  %v1269_v46 = vrot.slane %v1268_v24, 2 }
 0x1a4   : > { %v1270_v37 = vadd.f32 %v1269_v46, %v1268_v24  ;;  %v1116_v49 = vrot.slane %v1115_v28, 1 }
 0x1a6   : > { %v1271_v55 = vrot.slane %v1270_v37, 1  ;;  %v1117_v13 = vadd.f32 %v1116_v49, %v1115_v28 }
 0x1a8   : > { %v1272_v19 = vadd.f32 %v1271_v55, %v1270_v37 }
 0x1aa   : > { %v1277_v8 = vsel %vm1276_vm3, %v1272_v19, 0.0 }
 0x1ab   : > { %v1278_v40 = vsel %vm1275_vm4, %v1117_v13, %v1277_v8 }
 0x1ac   : > { %1279 = vst.msk [vmem:[%s214_s27] sm:$0xff] %vm1012_vm2, %v1278_v40 }
 0x1ad PF: > { %s15_s15 = sadd.s32 1, %s1724_s15  }
 0x1ae   : > { %p12_p5 = scmp.ge.s32.totalorder %s15_s15, 4  }
 0x1b0   :  { %14 = sbr.rel (!%p12_p5) target bundleno = 1 (0x1), region = 74 }

// kernel: convnet_forward.11
= control target key start
LH: loop header
LB: loop body
LE: loop exit
PB: predicated region body
PF: predicated region fallthrough
CT: control target
= control target key end

     0   :  { %s541_s0 = inlined_call_operand.vmem [shape: bf16[200,128], index: 0, kind: input, shape index: {}]   ;;  %s542_s1 = inlined_call_operand.vmem [shape: f32[1,128], index: 1, kind: input, shape index: {}]   ;;  %s543_s2 = inlined_call_operand.vmem [shape: f32[1,128], index: 2, kind: input, shape index: {}]   ;;  %s544_s3 = inlined_call_operand.vmem [shape: bf16[200,128], index: 3, kind: output, shape index: {}]  }
   0x1   :  { %v252_v0 = vld [vmem:[%s541_s0] sm:$0xff]   ;;  %v359_v5 = vld [vmem:[%s541_s0 + $0x8] sm:$0xff]   ;;  %v360_v8 = vld [vmem:[%s541_s0 + $0x10] sm:$0xff]  }
   0x2   :  { %v409_v1 = vld [vmem:[%s542_s1] ss:$0 sm:$0xff]  ;;  %v253_v2 = vunpack.c.l.bf16 %v252_v0  ;;  %v254_v3 = vunpack.c.h.bf16 %v252_v0  ;;  %v257_v6 = vunpack.c.l.bf16 %v359_v5  ;;  %v258_v7 = vunpack.c.h.bf16 %v359_v5  ;;  %v361_v9 = vld [vmem:[%s541_s0 + $0x18] sm:$0xff]   ;;  %v363_v39 = vld [vmem:[%s541_s0 + $0x28] sm:$0xff]  }
   0x3   :  { %v414_v4 = vld [vmem:[%s543_s2] ss:$0 sm:$0xff]  ;;  %v261_v12 = vunpack.c.l.bf16 %v360_v8  ;;  %v262_v13 = vunpack.c.h.bf16 %v360_v8  ;;  %v265_v16 = vunpack.c.l.bf16 %v361_v9  ;;  %v266_v17 = vunpack.c.h.bf16 %v361_v9  ;;  %v364_v49 = vld [vmem:[%s541_s0 + $0x30] sm:$0xff]   ;;  %v365_v57 = vld [vmem:[%s541_s0 + $0x38] sm:$0xff]  }
   0x4   :  { %v68_v10 = vmul.f32 %v409_v1, %v253_v2  ;;  %v69_v11 = vmul.f32 %v409_v1, %v254_v3  ;;  %v70_v14 = vmul.f32 %v409_v1, %v257_v6  ;;  %v71_v15 = vmul.f32 %v409_v1, %v258_v7  ;;  %v362_v38 = vld [vmem:[%s541_s0 + $0x20] sm:$0xff]  }
   0x5   :  { %v72_v20 = vmul.f32 %v409_v1, %v261_v12  ;;  %v73_v21 = vmul.f32 %v409_v1, %v262_v13  ;;  %v74_v24 = vmul.f32 %v409_v1, %v265_v16  ;;  %v75_v25 = vmul.f32 %v409_v1, %v266_v17 }
   0x6   :  { %v97_v18 = vadd.f32 %v414_v4, %v68_v10  ;;  %v98_v19 = vadd.f32 %v414_v4, %v69_v11  ;;  %v99_v22 = vadd.f32 %v414_v4, %v70_v14  ;;  %v100_v23 = vadd.f32 %v414_v4, %v71_v15 }
   0x7   :  { %v101_v32 = vadd.f32 %v414_v4, %v72_v20  ;;  %v102_v33 = vadd.f32 %v414_v4, %v73_v21  ;;  %v103_v37 = vadd.f32 %v414_v4, %v74_v24  ;;  %v104_v43 = vadd.f32 %v414_v4, %v75_v25  ;;  %v367_v20 = vld [vmem:[%s541_s0 + $0x48] sm:$0xff]  }
   0x8   :  { %vm122_vm0 = vcmp.gt.f32.partialorder %v97_v18, 0.0  ;;  %vm123_vm1 = vcmp.gt.f32.partialorder %v98_v19, 0.0  ;;  %v147_v26 = vmul.f32 0.01, %v97_v18  ;;  %v148_v27 = vmul.f32 0.01, %v98_v19 }
   0x9   :  { %vm124_vm2 = vcmp.gt.f32.partialorder %v99_v22, 0.0  ;;  %vm125_vm3 = vcmp.gt.f32.partialorder %v100_v23, 0.0  ;;  %v149_v28 = vmul.f32 0.01, %v99_v22  ;;  %v150_v29 = vmul.f32 0.01, %v100_v23 }
   0xa   :  { %v172_v30 = vsel %vm122_vm0, %v97_v18, %v147_v26  ;;  %v173_v31 = vsel %vm123_vm1, %v98_v19, %v148_v27  ;;  %vm126_vm4 = vcmp.gt.f32.partialorder %v101_v32, 0.0  ;;  %vm127_vm5 = vcmp.gt.f32.partialorder %v102_v33, 0.0  ;;  %v366_v19 = vld [vmem:[%s541_s0 + $0x40] sm:$0xff]  }
   0xb   :  { %v302_v34 = vpack.c.bf16 %v173_v31, %v172_v30  ;;  %v174_v35 = vsel %vm124_vm2, %v99_v22, %v149_v28  ;;  %v175_v36 = vsel %vm125_vm3, %v100_v23, %v150_v29  ;;  %v151_v41 = vmul.f32 0.01, %v101_v32  ;;  %v368_v28 = vld [vmem:[%s541_s0 + $0x50] sm:$0xff]  }
   0xc   :  { %v307_v40 = vpack.c.bf16 %v175_v36, %v174_v35  ;;  %v152_v42 = vmul.f32 0.01, %v102_v33  ;;  %vm128_vm6 = vcmp.gt.f32.partialorder %v103_v37, 0.0  ;;  %v153_v44 = vmul.f32 0.01, %v103_v37 }
   0xd   :  { %303 = vst [vmem:[%s544_s3] sm:$0xff] %v302_v34   ;;  %v176_v45 = vsel %vm126_vm4, %v101_v32, %v151_v41  ;;  %v269_v46 = vunpack.c.l.bf16 %v362_v38  ;;  %v270_v47 = vunpack.c.h.bf16 %v362_v38  ;;  %v273_v48 = vunpack.c.l.bf16 %v363_v39 }
   0xe   :  { %370 = vst [vmem:[%s544_s3 + $0x8] sm:$0xff] %v307_v40   ;;  %v177_v50 = vsel %vm127_vm5, %v102_v33, %v152_v42  ;;  %vm129_vm7 = vcmp.gt.f32.partialorder %v104_v43, 0.0  ;;  %v154_v51 = vmul.f32 0.01, %v104_v43  ;;  %v178_v52 = vsel %vm128_vm6, %v103_v37, %v153_v44 }
   0xf   :  { %v312_v53 = vpack.c.bf16 %v177_v50, %v176_v45  ;;  %v76_v54 = vmul.f32 %v409_v1, %v269_v46  ;;  %v77_v55 = vmul.f32 %v409_v1, %v270_v47  ;;  %v274_v56 = vunpack.c.h.bf16 %v363_v39 }
  0x10   :  { %v179_v58 = vsel %vm129_vm7, %v104_v43, %v154_v51  ;;  %v78_v59 = vmul.f32 %v409_v1, %v273_v48  ;;  %v277_v60 = vunpack.c.l.bf16 %v364_v49  ;;  %v278_v61 = vunpack.c.h.bf16 %v364_v49  ;;  %v369_v51 = vld [vmem:[%s541_s0 + $0x58] sm:$0xff]  }
  0x11   :  { %371 = vst [vmem:[%s544_s3 + $0x10] sm:$0xff] %v312_v53   ;;  %v317_v62 = vpack.c.bf16 %v179_v58, %v178_v52  ;;  %v105_v63 = vadd.f32 %v414_v4, %v76_v54  ;;  %v106_v0 = vadd.f32 %v414_v4, %v77_v55  ;;  %v79_v2 = vmul.f32 %v409_v1, %v274_v56  ;;  %v38_v56 = vld [vmem:[%s541_s0 + $0x60] sm:$0xf] }
  0x12   :  { %v107_v3 = vadd.f32 %v414_v4, %v78_v59  ;;  %v80_v5 = vmul.f32 %v409_v1, %v277_v60  ;;  %v81_v6 = vmul.f32 %v409_v1, %v278_v61  ;;  %v281_v7 = vunpack.c.l.bf16 %v365_v57 }
  0x13   :  { %372 = vst [vmem:[%s544_s3 + $0x18] sm:$0xff] %v317_v62   ;;  %vm130_vm8 = vcmp.gt.f32.partialorder %v105_v63, 0.0  ;;  %vm131_vm9 = vcmp.gt.f32.partialorder %v106_v0, 0.0  ;;  %v155_v8 = vmul.f32 0.01, %v105_v63  ;;  %v108_v9 = vadd.f32 %v414_v4, %v79_v2 }
  0x14   :  { %v156_v10 = vmul.f32 0.01, %v106_v0  ;;  %vm132_vm10 = vcmp.gt.f32.partialorder %v107_v3, 0.0  ;;  %v157_v11 = vmul.f32 0.01, %v107_v3  ;;  %v109_v12 = vadd.f32 %v414_v4, %v80_v5 }
  0x15   :  { %v180_v13 = vsel %vm130_vm8, %v105_v63, %v155_v8  ;;  %vm133_vm11 = vcmp.gt.f32.partialorder %v108_v9, 0.0  ;;  %v158_v14 = vmul.f32 0.01, %v108_v9  ;;  %v110_v15 = vadd.f32 %v414_v4, %v81_v6 }
  0x16   :  { %v181_v16 = vsel %vm131_vm9, %v106_v0, %v156_v10  ;;  %v182_v17 = vsel %vm132_vm10, %v107_v3, %v157_v11  ;;  %vm134_vm12 = vcmp.gt.f32.partialorder %v109_v12, 0.0  ;;  %v159_v18 = vmul.f32 0.01, %v109_v12 }
  0x17   :  { %v322_v21 = vpack.c.bf16 %v181_v16, %v180_v13  ;;  %v183_v22 = vsel %vm133_vm11, %v108_v9, %v158_v14  ;;  %vm135_vm13 = vcmp.gt.f32.partialorder %v110_v15, 0.0  ;;  %v160_v23 = vmul.f32 0.01, %v110_v15 }
  0x18   :  { %v327_v24 = vpack.c.bf16 %v183_v22, %v182_v17  ;;  %v184_v25 = vsel %vm134_vm12, %v109_v12, %v159_v18  ;;  %v282_v26 = vunpack.c.h.bf16 %v365_v57  ;;  %v82_v27 = vmul.f32 %v409_v1, %v281_v7 }
  0x19   :  { %373 = vst [vmem:[%s544_s3 + $0x20] sm:$0xff] %v322_v21   ;;  %v185_v29 = vsel %vm135_vm13, %v110_v15, %v160_v23  ;;  %v285_v30 = vunpack.c.l.bf16 %v366_v19  ;;  %v286_v31 = vunpack.c.h.bf16 %v366_v19  ;;  %v289_v32 = vunpack.c.l.bf16 %v367_v20 }
  0x1a   :  { %374 = vst [vmem:[%s544_s3 + $0x28] sm:$0xff] %v327_v24   ;;  %v332_v33 = vpack.c.bf16 %v185_v29, %v184_v25  ;;  %v83_v34 = vmul.f32 %v409_v1, %v282_v26  ;;  %v111_v35 = vadd.f32 %v414_v4, %v82_v27  ;;  %v290_v36 = vunpack.c.h.bf16 %v367_v20 }
  0x1b   :  { %v84_v37 = vmul.f32 %v409_v1, %v285_v30  ;;  %v85_v38 = vmul.f32 %v409_v1, %v286_v31  ;;  %v86_v39 = vmul.f32 %v409_v1, %v289_v32  ;;  %v293_v40 = vunpack.c.l.bf16 %v368_v28 }
  0x1c   :  { %375 = vst [vmem:[%s544_s3 + $0x30] sm:$0xff] %v332_v33   ;;  %v112_v41 = vadd.f32 %v414_v4, %v83_v34  ;;  %vm136_vm14 = vcmp.gt.f32.partialorder %v111_v35, 0.0  ;;  %v161_v42 = vmul.f32 0.01, %v111_v35  ;;  %v87_v43 = vmul.f32 %v409_v1, %v290_v36 }
  0x1d   :  { %v113_v44 = vadd.f32 %v414_v4, %v84_v37  ;;  %v114_v45 = vadd.f32 %v414_v4, %v85_v38  ;;  %v115_v46 = vadd.f32 %v414_v4, %v86_v39  ;;  %v294_v47 = vunpack.c.h.bf16 %v368_v28 }
  0x1e   :  { %vm137_vm15 = vcmp.gt.f32.partialorder %v112_v41, 0.0  ;;  %v162_v48 = vmul.f32 0.01, %v112_v41  ;;  %v186_v49 = vsel %vm136_vm14, %v111_v35, %v161_v42  ;;  %v116_v50 = vadd.f32 %v414_v4, %v87_v43 }
  0x1f   :  { %vm138_vm0 = vcmp.gt.f32.partialorder %v113_v44, 0.0  ;;  %vm139_vm1 = vcmp.gt.f32.partialorder %v114_v45, 0.0  ;;  %v163_v52 = vmul.f32 0.01, %v113_v44  ;;  %v164_v53 = vmul.f32 0.01, %v114_v45 }
  0x20   :  { %v187_v54 = vsel %vm137_vm15, %v112_v41, %v162_v48  ;;  %vm140_vm2 = vcmp.gt.f32.partialorder %v115_v46, 0.0  ;;  %vm141_vm3 = vcmp.gt.f32.partialorder %v116_v50, 0.0  ;;  %v165_v55 = vmul.f32 0.01, %v115_v46 }
  0x21   :  { %v337_v57 = vpack.c.bf16 %v187_v54, %v186_v49  ;;  %v188_v58 = vsel %vm138_vm0, %v113_v44, %v163_v52  ;;  %v189_v59 = vsel %vm139_vm1, %v114_v45, %v164_v53  ;;  %v166_v60 = vmul.f32 0.01, %v116_v50 }
  0x22   :  { %v342_v61 = vpack.c.bf16 %v189_v59, %v188_v58  ;;  %v190_v62 = vsel %vm140_vm2, %v115_v46, %v165_v55  ;;  %v88_v63 = vmul.f32 %v409_v1, %v293_v40  ;;  %v89_v0 = vmul.f32 %v409_v1, %v294_v47 }
  0x23   :  { %376 = vst [vmem:[%s544_s3 + $0x38] sm:$0xff] %v337_v57   ;;  %v191_v2 = vsel %vm141_vm3, %v116_v50, %v166_v60  ;;  %v297_v3 = vunpack.c.l.bf16 %v369_v51  ;;  %v298_v5 = vunpack.c.h.bf16 %v369_v51  ;;  %v63_v6 = vunpack.c.l.bf16 %v38_v56 }
  0x24   :  { %377 = vst [vmem:[%s544_s3 + $0x40] sm:$0xff] %v342_v61   ;;  %v347_v7 = vpack.c.bf16 %v191_v2, %v190_v62  ;;  %v117_v8 = vadd.f32 %v414_v4, %v88_v63  ;;  %v118_v9 = vadd.f32 %v414_v4, %v89_v0 }
  0x25   :  { %v90_v10 = vmul.f32 %v409_v1, %v297_v3  ;;  %v91_v11 = vmul.f32 %v409_v1, %v298_v5  ;;  %v92_v12 = vmul.f32 %v409_v1, %v63_v6 }
  0x26   :  { %378 = vst [vmem:[%s544_s3 + $0x48] sm:$0xff] %v347_v7   ;;  %vm142_vm4 = vcmp.gt.f32.partialorder %v117_v8, 0.0  ;;  %vm143_vm5 = vcmp.gt.f32.partialorder %v118_v9, 0.0  ;;  %v167_v13 = vmul.f32 0.01, %v117_v8 }
  0x27   :  { %v168_v14 = vmul.f32 0.01, %v118_v9  ;;  %v119_v15 = vadd.f32 %v414_v4, %v90_v10  ;;  %v120_v16 = vadd.f32 %v414_v4, %v91_v11  ;;  %v121_v17 = vadd.f32 %v414_v4, %v92_v12 }
  0x28   :  { %v192_v18 = vsel %vm142_vm4, %v117_v8, %v167_v13 }
  0x29   :  { %v193_v19 = vsel %vm143_vm5, %v118_v9, %v168_v14  ;;  %vm144_vm6 = vcmp.gt.f32.partialorder %v119_v15, 0.0  ;;  %vm145_vm7 = vcmp.gt.f32.partialorder %v120_v16, 0.0  ;;  %v169_v20 = vmul.f32 0.01, %v119_v15 }
  0x2a   :  { %v352_v1 = vpack.c.bf16 %v193_v19, %v192_v18  ;;  %v170_v21 = vmul.f32 0.01, %v120_v16  ;;  %vm146_vm8 = vcmp.gt.f32.partialorder %v121_v17, 0.0  ;;  %v171_v22 = vmul.f32 0.01, %v121_v17 }
  0x2b   :  { %v194_v23 = vsel %vm144_vm6, %v119_v15, %v169_v20 }
  0x2c   :  { %379 = vst [vmem:[%s544_s3 + $0x50] sm:$0xff] %v352_v1   ;;  %v195_v24 = vsel %vm145_vm7, %v120_v16, %v170_v21  ;;  %v196_v25 = vsel %vm146_vm8, %v121_v17, %v171_v22 }
  0x2d   :  { %v357_v26 = vpack.c.bf16 %v195_v24, %v194_v23  ;;  %v221_v27 = vpack.c.bf16 %v196_v25, %v196_v25 }
  0x2f   :  { %380 = vst [vmem:[%s544_s3 + $0x58] sm:$0xff] %v357_v26  }
  0x30   :  { %246 = vst [vmem:[%s544_s3 + $0x60] sm:$0xf] %v221_v27 }

// kernel: convnet_forward.12
= control target key start
LH: loop header
LB: loop body
LE: loop exit
PB: predicated region body
PF: predicated region fallthrough
CT: control target
= control target key end

     0   :  { %vm405_vm0 = vcmask 261120   ;;  %vm689_vm1 = vcmask 519168   ;;  %vm715_vm2 = vcmask 523264   ;;  %s1760_s1 = inlined_call_operand.vmem [shape: bf16[288,64], index: 1, kind: input, shape index: {}]   ;;  %s1761_s0 = inlined_call_operand.vmem [shape: bf16[200,288], index: 0, kind: input, shape index: {}]   ;;  %s1762_s2 = inlined_call_operand.vmem [shape: f32[1,64], index: 2, kind: input, shape index: {}]   ;;  %s1763_s3 = inlined_call_operand.vmem [shape: bf16[200,64], index: 3, kind: output, shape index: {0}]   ;;  %s1764_s4 = inlined_call_operand.vmem [shape: f32[1,8,64], index: 4, kind: output, shape index: {1}]  }
   0x1   :  { %v1138_v0 = vld [vmem:[%s1760_s1 + $0x38] sm:$0xff]  ;;  %v1202_v2 = vld [vmem:[%s1760_s1 + $0x88] sm:$0xff]  ;;  %v1137_v3 = vld [vmem:[%s1760_s1 + $0x30] sm:$0xff] }
   0x2   :  { %v1146_v1 = vld [vmem:[%s1760_s1 + $0x78] sm:$0xff]  ;;  %445 = vmatpush.bf16.msra.mxu0 %v1138_v0  ;;  %1149 = vmatpush.bf16.msra.mxu3 %v1138_v0  ;;  %v1145_v4 = vld [vmem:[%s1760_s1 + $0x70] sm:$0xff]  ;;  %v1214_v5 = vld [vmem:[%s1760_s1 + $0x80] sm:$0xff] }
   0x3   :  { %518 = vmatpush.bf16.msra.mxu1 %v1146_v1  ;;  %597 = vmatpush.bf16.msra.mxu2 %v1202_v2  ;;  %v876_v6 = vld [vmem:[%s1761_s0 + $0x8] sm:$0xf]  ;;  %v1097_v7 = vld [vmem:[%s1761_s0 + $0x10] sm:$0xf0]  ;;  %v1135_v11 = vld [vmem:[%s1760_s1 + $0x20] sm:$0xff] }
   0x4   :  { %v877_v8 = vor.u32 %v1097_v7, %v876_v6  ;;  %v1136_v9 = vld [vmem:[%s1760_s1 + $0x28] sm:$0xff]  ;;  %v1143_v12 = vld [vmem:[%s1760_s1 + $0x60] sm:$0xff]  ;;  %v1134_v13 = vld [vmem:[%s1760_s1 + $0x18] sm:$0xff] }
   0x5   :  { %v1144_v10 = vld [vmem:[%s1760_s1 + $0x68] sm:$0xff]  ;;  %v1142_v14 = vld [vmem:[%s1760_s1 + $0x58] sm:$0xff]  ;;  %v1133_v15 = vld [vmem:[%s1760_s1 + $0x10] sm:$0xff] }
   0x6   :  { %446 = vmatpush.bf16.msra.mxu0 %v1137_v3  ;;  %1150 = vmatpush.bf16.msra.mxu3 %v1137_v3  ;;  %v1141_v16 = vld [vmem:[%s1760_s1 + $0x50] sm:$0xff]  ;;  %v888_v17 = vld [vmem:[%s1761_s0 + $0x20] sm:$0xf]  ;;  %v1100_v18 = vld [vmem:[%s1761_s0 + $0x28] sm:$0xf0] }
   0x7   :  { %519 = vmatpush.bf16.msra.mxu1 %v1145_v4  ;;  %598 = vmatpush.bf16.msra.mxu2 %v1214_v5  ;;  %v889_v19 = vor.u32 %v1100_v18, %v888_v17  ;;  %v1132_v20 = vld [vmem:[%s1760_s1 + $0x8] sm:$0xff]  ;;  %v1131_v22 = vld [vmem:[%s1760_s1] sm:$0xff]  ;;  %v988_v26 = vld [vmem:[%s1761_s0 + $0xf0] sm:$0xf] }
   0x8   :  { %v1140_v21 = vld [vmem:[%s1760_s1 + $0x48] sm:$0xff]  ;;  %v1139_v23 = vld [vmem:[%s1760_s1 + $0x40] sm:$0xff]  ;;  %v1126_v27 = vld [vmem:[%s1761_s0 + $0xf8] sm:$0xf0] }
   0x9   :  { %v868_v24 = vld [vmem:[%s1761_s0] sm:$0xf]  ;;  %v1096_v25 = vld [vmem:[%s1761_s0 + $0x8] sm:$0xf0]  ;;  %v1095_v28 = vld [vmem:[%s1761_s0 + $0x4] sm:$0xf]  ;;  %v989_v31 = vor.u32 %v1126_v27, %v988_v26 }
   0xa   :  { %1082 = vmatmul.msk.bf16.vlgmr.msra.gmra.mxu2 %vm405_vm0, %v877_v8  ;;  %447 = vmatpush.bf16.msra.mxu0 %v1136_v9  ;;  %v870_v29 = vld [vmem:[%s1761_s0 + $0xc] sm:$0xf0]  ;;  %v869_v30 = vor.u32 %v1096_v25, %v868_v24  ;;  %v900_v33 = vld [vmem:[%s1761_s0 + $0x38] sm:$0xf]  ;;  %v1103_v34 = vld [vmem:[%s1761_s0 + $0x40] sm:$0xf0] }
   0xb   :  { %1151 = vmatpush.bf16.msra.mxu3 %v1136_v9  ;;  %520 = vmatpush.bf16.msra.mxu1 %v1144_v10  ;;  %v873_v32 = vor.u32 %v1095_v28, %v870_v29  ;;  %v901_v35 = vor.u32 %v1103_v34, %v900_v33  ;;  %v880_v36 = vld [vmem:[%s1761_s0 + $0x18] sm:$0xf]  ;;  %v1099_v37 = vld [vmem:[%s1761_s0 + $0x20] sm:$0xf0]  ;;  %v1000_v38 = vld [vmem:[%s1761_s0 + $0x108] sm:$0xf] }
   0xc   :  { %v1129_v39 = vld [vmem:[%s1761_s0 + $0x110] sm:$0xf0]  ;;  %v1098_v40 = vld [vmem:[%s1761_s0 + $0x1c] sm:$0xf]  ;;  %v882_v41 = vld [vmem:[%s1761_s0 + $0x24] sm:$0xf0]  ;;  %v881_v42 = vor.u32 %v1099_v37, %v880_v36 }
   0xd   :  { %v1001_v43 = vor.u32 %v1129_v39, %v1000_v38  ;;  %v885_v44 = vor.u32 %v1098_v40, %v882_v41  ;;  %v912_v45 = vld [vmem:[%s1761_s0 + $0x50] sm:$0xf]  ;;  %v1106_v46 = vld [vmem:[%s1761_s0 + $0x58] sm:$0xf0]  ;;  %v65_v48 = vld [vmem:[%s1761_s0 + $0x120] sm:$0xff] }
   0xe   :  { %448 = vmatpush.bf16.msra.mxu0 %v1135_v11  ;;  %v913_v47 = vor.u32 %v1106_v46, %v912_v45  ;;  %v892_v49 = vld [vmem:[%s1761_s0 + $0x30] sm:$0xf]  ;;  %v1102_v50 = vld [vmem:[%s1761_s0 + $0x38] sm:$0xf0]  ;;  %v229_v51 = vunpack.c.l.b16 %v65_v48  ;;  %v1101_v52 = vld [vmem:[%s1761_s0 + $0x34] sm:$0xf] }
   0xf   :  { %1152 = vmatpush.bf16.msra.mxu3 %v1135_v11  ;;  %521 = vmatpush.bf16.msra.mxu1 %v1143_v12  ;;  %v894_v53 = vld [vmem:[%s1761_s0 + $0x3c] sm:$0xf0]  ;;  %v893_v54 = vor.u32 %v1102_v50, %v892_v49  ;;  %v924_v57 = vld [vmem:[%s1761_s0 + $0x68] sm:$0xf]  ;;  %v1109_v58 = vld [vmem:[%s1761_s0 + $0x70] sm:$0xf0] }
  0x10   :  { %v268_v55 = vpack.c.b16 %v229_v51, %v229_v51  ;;  %v897_v56 = vor.u32 %v1101_v52, %v894_v53  ;;  %v925_v59 = vor.u32 %v1109_v58, %v924_v57  ;;  %v904_v60 = vld [vmem:[%s1761_s0 + $0x48] sm:$0xf]  ;;  %v1105_v61 = vld [vmem:[%s1761_s0 + $0x50] sm:$0xf0]  ;;  %v1104_v62 = vld [vmem:[%s1761_s0 + $0x4c] sm:$0xf] }
  0x11   :  { %v906_v63 = vld [vmem:[%s1761_s0 + $0x54] sm:$0xf0]  ;;  %v1125_v0 = vld [vmem:[%s1761_s0 + $0xf4] sm:$0xf]  ;;  %v1112_v6 = vld [vmem:[%s1761_s0 + $0x88] sm:$0xf0] }
  0x12   :  { %449 = vmatpush.bf16.msra.mxu0 %v1134_v13  ;;  %v909_v3 = vor.u32 %v1104_v62, %v906_v63  ;;  %v916_v8 = vld [vmem:[%s1761_s0 + $0x60] sm:$0xf]  ;;  %v1108_v9 = vld [vmem:[%s1761_s0 + $0x68] sm:$0xf0]  ;;  %v918_v11 = vld [vmem:[%s1761_s0 + $0x6c] sm:$0xf0] }
  0x13   :  { %1153 = vmatpush.bf16.msra.mxu3 %v1134_v13  ;;  %522 = vmatpush.bf16.msra.mxu1 %v1142_v14  ;;  %v1002_v13 = vld [vmem:[%s1761_s0 + $0x114] sm:$0xf0]  ;;  %v1115_v18 = vld [vmem:[%s1761_s0 + $0xa0] sm:$0xf0]  ;;  %v930_v24 = vld [vmem:[%s1761_s0 + $0x84] sm:$0xf0] }
  0x14   :  { %v948_v17 = vld [vmem:[%s1761_s0 + $0x98] sm:$0xf]  ;;  %v960_v28 = vld [vmem:[%s1761_s0 + $0xb0] sm:$0xf]  ;;  %v1118_v29 = vld [vmem:[%s1761_s0 + $0xb8] sm:$0xf0] }
  0x15   :  { %v1113_v33 = vld [vmem:[%s1761_s0 + $0x94] sm:$0xf]  ;;  %v942_v34 = vld [vmem:[%s1761_s0 + $0x9c] sm:$0xf0]  ;;  %v1130_v36 = vld [vmem:[%s1761_s0 + $0x118] sm:$0xf0] }
  0x16   :  { %450 = vmatpush.bf16.msra.mxu0 %v1133_v15  ;;  %v945_v38 = vor.u32 %v1113_v33, %v942_v34  ;;  %v972_v40 = vld [vmem:[%s1761_s0 + $0xc8] sm:$0xf]  ;;  %v1121_v41 = vld [vmem:[%s1761_s0 + $0xd0] sm:$0xf0]  ;;  %v984_v53 = vld [vmem:[%s1761_s0 + $0xe0] sm:$0xf] }
  0x17   :  { %1154 = vmatpush.bf16.msra.mxu3 %v1133_v15  ;;  %523 = vmatpush.bf16.msra.mxu1 %v1141_v16  ;;  %v1117_v45 = vld [vmem:[%s1761_s0 + $0xb0] sm:$0xf0]  ;;  %v964_v57 = vld [vmem:[%s1761_s0 + $0xc0] sm:$0xf]  ;;  %v1120_v58 = vld [vmem:[%s1761_s0 + $0xc8] sm:$0xf0] }
  0x18   :  { %v965_v63 = vor.u32 %v1120_v58, %v964_v57 }
  0x1a   :  { %1083 = vmatmul.msk.bf16.gmra.mxu2 %vm405_vm0, %v889_v19  ;;  %451 = vmatpush.bf16.msra.mxu0 %v1132_v20  ;;  %v949_v19 = vor.u32 %v1115_v18, %v948_v17  ;;  %v1123_v17 = vld [vmem:[%s1761_s0 + $0xe0] sm:$0xf0] }
  0x1b   :  { %1155 = vmatpush.bf16.msra.mxu3 %v1132_v20  ;;  %524 = vmatpush.bf16.msra.mxu1 %v1140_v21  ;;  %v928_v20 = vld [vmem:[%s1761_s0 + $0x78] sm:$0xf] }
  0x1e   :  { %452 = vmatpush.bf16.msra.mxu0 %v1131_v22 }
  0x1f   :  { %1156 = vmatpush.bf16.msra.mxu3 %v1131_v22  ;;  %525 = vmatpush.bf16.msra.mxu1 %v1139_v23  ;;  %v230_v22 = vunpack.c.h.b16 %v65_v48  ;;  %v954_v48 = vld [vmem:[%s1761_s0 + $0xb4] sm:$0xf0] }
  0x21   :  { %453 = vmatmul.bf16.vlgmr.msra.gmra.mxu0 %v869_v30  ;;  %v269_v27 = vpack.c.b16 %v230_v22, %v230_v22  ;;  %v961_v30 = vor.u32 %v1118_v29, %v960_v28 }
  0x22   :  { %503 = vmatmul.bf16.vlgmr.msra.gmra.mxu3 %v989_v31  ;;  %526 = vmatmul.bf16.vlgmr.msra.gmra.mxu1 %v873_v32  ;;  %v940_v31 = vld [vmem:[%s1761_s0 + $0x90] sm:$0xf]  ;;  %v1114_v32 = vld [vmem:[%s1761_s0 + $0x98] sm:$0xf0] }
  0x23   :  { %1157 = vmatpush.bf16.msrb.mxu3 %v1146_v1  ;;  %v990_v1 = vld [vmem:[%s1761_s0 + $0xfc] sm:$0xf0]  ;;  %v941_v37 = vor.u32 %v1114_v32, %v940_v31 }
  0x27   :  { %1158 = vmatpush.bf16.msrb.mxu3 %v1145_v4  ;;  %v993_v4 = vor.u32 %v1125_v0, %v990_v1 }
  0x2a   :  { %1084 = vmatmul.msk.bf16.gmra.mxu2 %vm405_vm0, %v901_v35  ;;  %v1008_v35 = vld [vmem:[%s1761_s0 + $0x110] sm:$0xf] }
  0x2b   :  { %1159 = vmatpush.bf16.msrb.mxu3 %v1144_v10  ;;  %v1107_v10 = vld [vmem:[%s1761_s0 + $0x64] sm:$0xf]  ;;  %v1009_v39 = vor.u32 %v1130_v36, %v1008_v35 }
  0x2c   :  { %v921_v15 = vor.u32 %v1107_v10, %v918_v11 }
  0x2f   :  { %1160 = vmatpush.bf16.msrb.mxu3 %v1143_v12  ;;  %v1128_v12 = vld [vmem:[%s1761_s0 + $0x10c] sm:$0xf] }
  0x31   :  { %458 = vmatmul.bf16.gmra.mxu0 %v881_v42  ;;  %v973_v42 = vor.u32 %v1121_v41, %v972_v40 }
  0x32   :  { %508 = vmatmul.bf16.gmra.mxu3 %v1001_v43  ;;  %531 = vmatmul.bf16.gmra.mxu1 %v885_v44  ;;  %v66_v43 = vld [vmem:[%s1761_s0 + $0x128] sm:$0xf] }
  0x33   :  { %1161 = vmatpush.bf16.msrb.mxu3 %v1142_v14  ;;  %v917_v14 = vor.u32 %v1108_v9, %v916_v8  ;;  %v952_v44 = vld [vmem:[%s1761_s0 + $0xa8] sm:$0xf]  ;;  %v231_v46 = vunpack.c.l.b16 %v66_v43 }
  0x34   :  { %v953_v50 = vor.u32 %v1117_v45, %v952_v44 }
  0x35   :  { %v270_v52 = vpack.c.b16 %v231_v46, %v231_v46 }
  0x37   :  { %1162 = vmatpush.bf16.msrb.mxu3 %v1141_v16  ;;  %v1005_v16 = vor.u32 %v1128_v12, %v1002_v13 }
  0x3a   :  { %1085 = vmatmul.msk.bf16.gmra.mxu2 %vm405_vm0, %v913_v47  ;;  %v1116_v47 = vld [vmem:[%s1761_s0 + $0xac] sm:$0xf] }
  0x3b   :  { %1163 = vmatpush.bf16.msrb.mxu3 %v1140_v21  ;;  %v1111_v21 = vld [vmem:[%s1761_s0 + $0x80] sm:$0xf0]  ;;  %v957_v51 = vor.u32 %v1116_v47, %v954_v48 }
  0x3c   :  { %v929_v25 = vor.u32 %v1111_v21, %v928_v20  ;;  %v1122_v20 = vld [vmem:[%s1761_s0 + $0xdc] sm:$0xf]  ;;  %v978_v21 = vld [vmem:[%s1761_s0 + $0xe4] sm:$0xf0] }
  0x3d   :  { %v981_v31 = vor.u32 %v1122_v20, %v978_v21 }
  0x3f   :  { %1164 = vmatpush.bf16.msrb.mxu3 %v1139_v23  ;;  %v1110_v23 = vld [vmem:[%s1761_s0 + $0x7c] sm:$0xf] }
  0x40   :  { %v933_v26 = vor.u32 %v1110_v23, %v930_v24 }
  0x41   :  { %463 = vmatmul.bf16.gmra.mxu0 %v893_v54  ;;  %v1124_v54 = vld [vmem:[%s1761_s0 + $0xe8] sm:$0xf0] }
  0x42   :  { %513 = vmatmul.bf16.gmra.mxu3 %v268_v55  ;;  %536 = vmatmul.bf16.gmra.mxu1 %v897_v56  ;;  %v985_v56 = vor.u32 %v1124_v54, %v984_v53 }
  0x43   :  { %1165 = vmatpush.bf16.msra.mxu3 %v1202_v2  ;;  %v905_v2 = vor.u32 %v1105_v61, %v904_v60  ;;  %v1119_v60 = vld [vmem:[%s1761_s0 + $0xc4] sm:$0xf]  ;;  %v966_v61 = vld [vmem:[%s1761_s0 + $0xcc] sm:$0xf0] }
  0x44   :  { %v969_v1 = vor.u32 %v1119_v60, %v966_v61 }
  0x47   :  { %1166 = vmatpush.bf16.msra.mxu3 %v1214_v5  ;;  %v936_v5 = vld [vmem:[%s1761_s0 + $0x80] sm:$0xf] }
  0x48   :  { %v937_v7 = vor.u32 %v1112_v6, %v936_v5  ;;  %v996_v6 = vld [vmem:[%s1761_s0 + $0xf8] sm:$0xf] }
  0x4a   :  { %1086 = vmatmul.msk.bf16.gmra.mxu2 %vm405_vm0, %v925_v59  ;;  %v1468_v59 = vld [vmem:[%s1762_s2] ss:$0 sm:$0xff] }
  0x51   :  { %468 = vmatmul.bf16.gmra.mxu0 %v905_v2 }
  0x52   :  { %541 = vmatmul.bf16.gmra.mxu1 %v909_v3  ;;  %576 = vmatmul.bf16.vlgmr.msrb.gmra.mxu3 %v993_v4 }
  0x5a   :  { %1087 = vmatmul.msk.bf16.gmra.mxu2 %vm405_vm0, %v937_v7  ;;  %v1127_v7 = vld [vmem:[%s1761_s0 + $0x100] sm:$0xf0] }
  0x5b   :  { %v997_v12 = vor.u32 %v1127_v7, %v996_v6 }
  0x61   :  { %473 = vmatmul.bf16.gmra.mxu0 %v917_v14 }
  0x62   :  { %546 = vmatmul.bf16.gmra.mxu1 %v921_v15  ;;  %581 = vmatmul.bf16.gmra.mxu3 %v1005_v16  ;;  %v976_v16 = vld [vmem:[%s1761_s0 + $0xd8] sm:$0xf] }
  0x63   :  { %v977_v22 = vor.u32 %v1123_v17, %v976_v16 }
  0x6a   :  { %1088 = vmatmul.msk.bf16.gmra.mxu2 %vm405_vm0, %v949_v19 }
  0x71   :  { %478 = vmatmul.bf16.gmra.mxu0 %v929_v25 }
  0x72   :  { %551 = vmatmul.bf16.gmra.mxu1 %v933_v26  ;;  %586 = vmatmul.bf16.gmra.mxu3 %v269_v27 }
  0x7a   :  { %1089 = vmatmul.msk.bf16.gmra.mxu2 %vm405_vm0, %v961_v30 }
  0x81   :  { %483 = vmatmul.bf16.gmra.mxu0 %v941_v37 }
  0x82   :  { %556 = vmatmul.bf16.gmra.mxu1 %v945_v38  ;;  %1093 = vmatmul.msk.bf16.vlgmr.msra.gmra.mxu3 %vm405_vm0, %v1009_v39 }
  0x8a   :  { %1090 = vmatmul.msk.bf16.gmra.mxu2 %vm405_vm0, %v973_v42 }
  0x8d   :  { %v600_v49 = vpop.f32.mrf.mxu2 }
  0x91   :  { %488 = vmatmul.bf16.gmra.mxu0 %v953_v50 }
  0x92   :  { %561 = vmatmul.bf16.gmra.mxu1 %v957_v51  ;;  %1094 = vmatmul.msk.bf16.gmra.mxu3 %vm405_vm0, %v270_v52 }
  0x95   :  { %v602_v55 = vpop.f32.mrf.mxu2 }
  0x9a   :  { %1091 = vmatmul.msk.bf16.gmra.mxu2 %vm405_vm0, %v985_v56 }
  0x9d   :  { %v605_v62 = vpop.f32.mrf.mxu2 }
  0x9e   :  { %v454_v0 = vpop.f32.mrf.mxu0 }
  0x9f   :  { %v455_v2 = vadd.f32 %v1468_v59, %v454_v0  ;;  %v527_v3 = vpop.f32.mrf.mxu1 }
  0xa1   :  { %v528_v4 = vadd.f32 %v527_v3, %v455_v2  ;;  %493 = vmatmul.bf16.gmra.mxu0 %v965_v63 }
  0xa2   :  { %566 = vmatmul.bf16.gmra.mxu1 %v969_v1 }
  0xa3   :  { %v601_v5 = vadd.f32 %v600_v49, %v528_v4 }
  0xa5   :  { %v664_v8 = vpack.c.bf16 %v601_v5, %v601_v5  ;;  %v1483_v9 = vpop.f32.mrf.mxu3  ;;  %v607_v10 = vpop.f32.mrf.mxu2  ;;  %v771_v18 = vmul.f32 %v601_v5, %v601_v5  ;;  %v716_v23 = vsel %vm715_vm2, %v601_v5, 0.0 }
  0xa6   :  { %v456_v11 = vpop.f32.mrf.mxu0 }
  0xa7   :  { %690 = vst.msk [vmem:[%s1763_s3] sm:$0xf] %vm689_vm1, %v664_v8  ;;  %v457_v13 = vadd.f32 %v1468_v59, %v456_v11  ;;  %v529_v14 = vpop.f32.mrf.mxu1  ;;  %v796_v32 = vsel %vm715_vm2, %v771_v18, 0.0 }
  0xa9   :  { %v530_v15 = vadd.f32 %v529_v14, %v457_v13 }
  0xaa   :  { %1092 = vmatmul.msk.bf16.gmra.mxu2 %vm405_vm0, %v997_v12 }
  0xab   :  { %v603_v19 = vadd.f32 %v602_v55, %v530_v15 }
  0xad   :  { %v665_v24 = vpack.c.bf16 %v603_v19, %v603_v19  ;;  %v717_v25 = vsel %vm715_vm2, %v603_v19, 0.0  ;;  %v772_v26 = vmul.f32 %v603_v19, %v603_v19  ;;  %v1505_v27 = vpop.f32.mrf.mxu3  ;;  %v610_v28 = vpop.f32.mrf.mxu2 }
  0xae   :  { %v718_v29 = vadd.f32 %v717_v25, %v716_v23  ;;  %v459_v30 = vpop.f32.mrf.mxu0 }
  0xaf   :  { %691 = vst.msk [vmem:[%s1763_s3 + $0x4] sm:$0xf] %vm689_vm1, %v665_v24  ;;  %v797_v33 = vsel %vm715_vm2, %v772_v26, 0.0  ;;  %v460_v34 = vadd.f32 %v1468_v59, %v459_v30  ;;  %v532_v35 = vpop.f32.mrf.mxu1 }
  0xb0   :  { %v798_v36 = vadd.f32 %v797_v33, %v796_v32 }
  0xb1   :  { %v533_v37 = vadd.f32 %v532_v35, %v460_v34  ;;  %498 = vmatmul.bf16.gmra.mxu0 %v977_v22 }
  0xb2   :  { %571 = vmatmul.bf16.gmra.mxu1 %v981_v31 }
  0xb3   :  { %v606_v38 = vadd.f32 %v605_v62, %v533_v37 }
  0xb5   :  { %v666_v39 = vpack.c.bf16 %v606_v38, %v606_v38  ;;  %v719_v40 = vsel %vm715_vm2, %v606_v38, 0.0  ;;  %v773_v41 = vmul.f32 %v606_v38, %v606_v38  ;;  %v1515_v42 = vpop.f32.mrf.mxu3  ;;  %v612_v43 = vpop.f32.mrf.mxu2 }
  0xb6   :  { %v720_v44 = vadd.f32 %v719_v40, %v718_v29  ;;  %v461_v45 = vpop.f32.mrf.mxu0  ;;  %v505_v29 = vadd.f32 %v1468_v59, %v1483_v9 }
  0xb7   :  { %692 = vst.msk [vmem:[%s1763_s3 + $0x8] sm:$0xf] %vm689_vm1, %v666_v39  ;;  %v799_v46 = vsel %vm715_vm2, %v773_v41, 0.0  ;;  %v462_v47 = vadd.f32 %v1468_v59, %v461_v45  ;;  %v534_v48 = vpop.f32.mrf.mxu1  ;;  %v507_v45 = vadd.f32 %v1468_v59, %v1505_v27 }
  0xb8   :  { %v800_v49 = vadd.f32 %v799_v46, %v798_v36 }
  0xb9   :  { %v535_v50 = vadd.f32 %v534_v48, %v462_v47 }
  0xbb   :  { %v608_v51 = vadd.f32 %v607_v10, %v535_v50 }
  0xbd   :  { %v667_v52 = vpack.c.bf16 %v608_v51, %v608_v51  ;;  %v721_v53 = vsel %vm715_vm2, %v608_v51, 0.0  ;;  %v774_v54 = vmul.f32 %v608_v51, %v608_v51  ;;  %v1524_v55 = vpop.f32.mrf.mxu3  ;;  %v615_v56 = vpop.f32.mrf.mxu2 }
  0xbe   :  { %v722_v57 = vadd.f32 %v721_v53, %v720_v44  ;;  %v464_v58 = vpop.f32.mrf.mxu0 }
  0xbf   :  { %693 = vst.msk [vmem:[%s1763_s3 + $0xc] sm:$0xf] %vm689_vm1, %v667_v52  ;;  %v801_v60 = vsel %vm715_vm2, %v774_v54, 0.0  ;;  %v465_v61 = vadd.f32 %v1468_v59, %v464_v58  ;;  %v537_v62 = vpop.f32.mrf.mxu1 }
  0xc0   :  { %v802_v63 = vadd.f32 %v801_v60, %v800_v49 }
  0xc1   :  { %v538_v0 = vadd.f32 %v537_v62, %v465_v61 }
  0xc3   :  { %v611_v1 = vadd.f32 %v610_v28, %v538_v0 }
  0xc5   :  { %v668_v2 = vpack.c.bf16 %v611_v1, %v611_v1  ;;  %v723_v3 = vsel %vm715_vm2, %v611_v1, 0.0  ;;  %v775_v4 = vmul.f32 %v611_v1, %v611_v1  ;;  %v1533_v5 = vpop.f32.mrf.mxu3  ;;  %v617_v6 = vpop.f32.mrf.mxu2 }
  0xc6   :  { %v724_v7 = vadd.f32 %v723_v3, %v722_v57  ;;  %v466_v8 = vpop.f32.mrf.mxu0 }
  0xc7   :  { %694 = vst.msk [vmem:[%s1763_s3 + $0x10] sm:$0xf] %vm689_vm1, %v668_v2  ;;  %v803_v10 = vsel %vm715_vm2, %v775_v4, 0.0  ;;  %v467_v11 = vadd.f32 %v1468_v59, %v466_v8  ;;  %v539_v12 = vpop.f32.mrf.mxu1 }
  0xc8   :  { %v804_v13 = vadd.f32 %v803_v10, %v802_v63 }
  0xc9   :  { %v540_v14 = vadd.f32 %v539_v12, %v467_v11 }
  0xcb   :  { %v613_v15 = vadd.f32 %v612_v43, %v540_v14 }
  0xcd   :  { %v669_v16 = vpack.c.bf16 %v613_v15, %v613_v15  ;;  %v725_v17 = vsel %vm715_vm2, %v613_v15, 0.0  ;;  %v776_v18 = vmul.f32 %v613_v15, %v613_v15  ;;  %v516_v19 = vpop.f32.mrf.mxu3  ;;  %v620_v20 = vpop.f32.mrf.mxu2 }
  0xce   :  { %v726_v21 = vadd.f32 %v725_v17, %v724_v7  ;;  %v469_v22 = vpop.f32.mrf.mxu0 }
  0xcf   :  { %695 = vst.msk [vmem:[%s1763_s3 + $0x14] sm:$0xf] %vm689_vm1, %v669_v16  ;;  %v805_v23 = vsel %vm715_vm2, %v776_v18, 0.0  ;;  %v470_v24 = vadd.f32 %v1468_v59, %v469_v22  ;;  %v542_v25 = vpop.f32.mrf.mxu1 }
  0xd0   :  { %v806_v26 = vadd.f32 %v805_v23, %v804_v13 }
  0xd1   :  { %v543_v28 = vadd.f32 %v542_v25, %v470_v24 }
  0xd3   :  { %v616_v30 = vadd.f32 %v615_v56, %v543_v28 }
  0xd5   :  { %v670_v31 = vpack.c.bf16 %v616_v30, %v616_v30  ;;  %v727_v32 = vsel %vm715_vm2, %v616_v30, 0.0  ;;  %v777_v33 = vmul.f32 %v616_v30, %v616_v30  ;;  %v577_v34 = vpop.f32.mrf.mxu3  ;;  %v622_v35 = vpop.f32.mrf.mxu2 }
  0xd6   :  { %v728_v36 = vadd.f32 %v727_v32, %v726_v21  ;;  %v1551_v37 = vadd.f32 %v577_v34, %v505_v29  ;;  %v471_v38 = vpop.f32.mrf.mxu0 }
  0xd7   :  { %696 = vst.msk [vmem:[%s1763_s3 + $0x18] sm:$0xf] %vm689_vm1, %v670_v31  ;;  %v807_v39 = vsel %vm715_vm2, %v777_v33, 0.0  ;;  %v472_v9 = vadd.f32 %v1468_v59, %v471_v38  ;;  %v544_v40 = vpop.f32.mrf.mxu1  ;;  %v510_v38 = vadd.f32 %v1468_v59, %v1515_v42 }
  0xd8   :  { %v808_v41 = vadd.f32 %v807_v39, %v806_v26 }
  0xd9   :  { %v545_v43 = vadd.f32 %v544_v40, %v472_v9 }
  0xdb   :  { %v618_v44 = vadd.f32 %v617_v6, %v545_v43 }
  0xdd   :  { %v671_v46 = vpack.c.bf16 %v618_v44, %v618_v44  ;;  %v729_v47 = vsel %vm715_vm2, %v618_v44, 0.0  ;;  %v778_v48 = vmul.f32 %v618_v44, %v618_v44  ;;  %v579_v49 = vpop.f32.mrf.mxu3  ;;  %v625_v50 = vpop.f32.mrf.mxu2 }
  0xde   :  { %v730_v51 = vadd.f32 %v729_v47, %v728_v36  ;;  %v1562_v52 = vadd.f32 %v579_v49, %v507_v45  ;;  %v474_v53 = vpop.f32.mrf.mxu0 }
  0xdf   :  { %697 = vst.msk [vmem:[%s1763_s3 + $0x1c] sm:$0xf] %vm689_vm1, %v671_v46  ;;  %v809_v54 = vsel %vm715_vm2, %v778_v48, 0.0  ;;  %v475_v56 = vadd.f32 %v1468_v59, %v474_v53  ;;  %v547_v27 = vpop.f32.mrf.mxu1 }
  0xe0   :  { %v810_v57 = vadd.f32 %v809_v54, %v808_v41 }
  0xe1   :  { %v548_v58 = vadd.f32 %v547_v27, %v475_v56 }
  0xe3   :  { %v621_v60 = vadd.f32 %v620_v20, %v548_v58 }
  0xe5   :  { %v672_v61 = vpack.c.bf16 %v621_v60, %v621_v60  ;;  %v731_v62 = vsel %vm715_vm2, %v621_v60, 0.0  ;;  %v779_v63 = vmul.f32 %v621_v60, %v621_v60  ;;  %v582_v0 = vpop.f32.mrf.mxu3  ;;  %v627_v1 = vpop.f32.mrf.mxu2 }
  0xe6   :  { %v732_v2 = vadd.f32 %v731_v62, %v730_v51  ;;  %v476_v3 = vpop.f32.mrf.mxu0  ;;  %v583_v40 = vadd.f32 %v582_v0, %v510_v38 }
  0xe7   :  { %698 = vst.msk [vmem:[%s1763_s3 + $0x20] sm:$0xf] %vm689_vm1, %v672_v61  ;;  %v811_v4 = vsel %vm715_vm2, %v779_v63, 0.0  ;;  %v477_v6 = vadd.f32 %v1468_v59, %v476_v3  ;;  %v549_v7 = vpop.f32.mrf.mxu1  ;;  %v515_v61 = vadd.f32 %v1468_v59, %v1533_v5 }
  0xe8   :  { %v1577_v8 = vadd.f32 %v811_v4, %v810_v57 }
  0xe9   :  { %v550_v10 = vadd.f32 %v549_v7, %v477_v6 }
  0xeb   :  { %v1579_v11 = vadd.f32 %v622_v35, %v550_v10 }
  0xed   :  { %v673_v12 = vpack.c.bf16 %v1579_v11, %v1579_v11  ;;  %v733_v13 = vsel %vm715_vm2, %v1579_v11, 0.0  ;;  %v584_v14 = vpop.f32.mrf.mxu3  ;;  %v630_v15 = vpop.f32.mrf.mxu2 }
  0xee   :  { %v1585_v16 = vadd.f32 %v733_v13, %v732_v2  ;;  %v479_v17 = vpop.f32.mrf.mxu0 }
  0xef   :  { %699 = vst.msk [vmem:[%s1763_s3 + $0x24] sm:$0xf] %vm689_vm1, %v673_v12  ;;  %v480_v18 = vadd.f32 %v1468_v59, %v479_v17  ;;  %v552_v19 = vpop.f32.mrf.mxu1 }
  0xf1   :  { %v553_v20 = vadd.f32 %v552_v19, %v480_v18 }
  0xf3   :  { %v1592_v21 = vadd.f32 %v625_v50, %v553_v20  ;;  %v512_v50 = vadd.f32 %v1468_v59, %v1524_v55 }
  0xf5   :  { %v674_v22 = vpack.c.bf16 %v1592_v21, %v1592_v21  ;;  %v587_v23 = vpop.f32.mrf.mxu3  ;;  %v632_v24 = vpop.f32.mrf.mxu2  ;;  %v585_v53 = vadd.f32 %v584_v14, %v512_v50 }
  0xf6   :  { %v481_v25 = vpop.f32.mrf.mxu0 }
  0xf7   :  { %700 = vst.msk [vmem:[%s1763_s3 + $0x28] sm:$0xf] %vm689_vm1, %v674_v22  ;;  %v482_v26 = vadd.f32 %v1468_v59, %v481_v25  ;;  %v554_v28 = vpop.f32.mrf.mxu1  ;;  %v780_v25 = vmul.f32 %v1579_v11, %v1579_v11  ;;  %v735_v11 = vsel %vm715_vm2, %v1592_v21, 0.0 }
  0xf9   :  { %v555_v29 = vadd.f32 %v554_v28, %v482_v26 }
  0xfb   :  { %v1601_v30 = vadd.f32 %v627_v1, %v555_v29  ;;  %v588_v1 = vadd.f32 %v587_v23, %v515_v61 }
  0xfd   :  { %v675_v31 = vpack.c.bf16 %v1601_v30, %v1601_v30  ;;  %v589_v32 = vpop.f32.mrf.mxu3  ;;  %v635_v33 = vpop.f32.mrf.mxu2 }
  0xfe   :  { %v484_v34 = vpop.f32.mrf.mxu0 }
  0xff   :  { %701 = vst.msk [vmem:[%s1763_s3 + $0x2c] sm:$0xf] %vm689_vm1, %v675_v31  ;;  %v485_v35 = vadd.f32 %v1468_v59, %v484_v34  ;;  %v557_v36 = vpop.f32.mrf.mxu1  ;;  %v781_v31 = vmul.f32 %v1592_v21, %v1592_v21  ;;  %v813_v34 = vsel %vm715_vm2, %v780_v25, 0.0 }
 0x101   :  { %v558_v39 = vadd.f32 %v557_v36, %v485_v35  ;;  %v782_v35 = vmul.f32 %v1601_v30, %v1601_v30  ;;  %v815_v38 = vsel %vm715_vm2, %v781_v31, 0.0 }
 0x103   :  { %v1612_v9 = vadd.f32 %v630_v15, %v558_v39  ;;  %v737_v39 = vsel %vm715_vm2, %v1601_v30, 0.0 }
 0x105   :  { %v676_v41 = vpack.c.bf16 %v1612_v9, %v1612_v9  ;;  %v637_v43 = vpop.f32.mrf.mxu2  ;;  %v655_v44 = vpop.f32.mrf.mxu3  ;;  %v739_v21 = vsel %vm715_vm2, %v1612_v9, 0.0 }
 0x106   :  { %v1616_v45 = vadd.f32 %v655_v44, %v583_v40  ;;  %v486_v46 = vpop.f32.mrf.mxu0  ;;  %v783_v40 = vmul.f32 %v1612_v9, %v1612_v9  ;;  %v736_v44 = vadd.f32 %v735_v11, %v1585_v16 }
 0x107   :  { %702 = vst.msk [vmem:[%s1763_s3 + $0x30] sm:$0xf] %vm689_vm1, %v676_v41  ;;  %v487_v47 = vadd.f32 %v1468_v59, %v486_v46  ;;  %v559_v42 = vpop.f32.mrf.mxu1  ;;  %v817_v46 = vsel %vm715_vm2, %v782_v35, 0.0 }
 0x108   :  { %v686_v48 = vpack.c.bf16 %v1616_v45, %v1616_v45  ;;  %v738_v30 = vadd.f32 %v737_v39, %v736_v44 }
 0x109   :  { %v560_v49 = vadd.f32 %v559_v42, %v487_v47 }
 0x10a   :  { %712 = vst.msk [vmem:[%s1763_s3 + $0x58] sm:$0xf] %vm689_vm1, %v686_v48 }
 0x10b   :  { %v1631_v51 = vadd.f32 %v632_v24, %v560_v49 }
 0x10d   :  { %v677_v54 = vpack.c.bf16 %v1631_v51, %v1631_v51  ;;  %v640_v56 = vpop.f32.mrf.mxu2  ;;  %v657_v27 = vpop.f32.mrf.mxu3  ;;  %v784_v47 = vmul.f32 %v1631_v51, %v1631_v51 }
 0x10e   :  { %v1635_v57 = vadd.f32 %v657_v27, %v585_v53  ;;  %v489_v58 = vpop.f32.mrf.mxu0 }
 0x10f   :  { %703 = vst.msk [vmem:[%s1763_s3 + $0x34] sm:$0xf] %vm689_vm1, %v677_v54  ;;  %v490_v55 = vadd.f32 %v1468_v59, %v489_v58  ;;  %v562_v60 = vpop.f32.mrf.mxu1  ;;  %v819_v54 = vsel %vm715_vm2, %v783_v40, 0.0  ;;  %v740_v58 = vadd.f32 %v739_v21, %v738_v30 }
 0x110   :  { %v687_v62 = vpack.c.bf16 %v1635_v57, %v1635_v57 }
 0x111   :  { %v563_v63 = vadd.f32 %v562_v60, %v490_v55 }
 0x112   :  { %713 = vst.msk [vmem:[%s1763_s3 + $0x5c] sm:$0xf] %vm689_vm1, %v687_v62 }
 0x113   :  { %v636_v0 = vadd.f32 %v635_v33, %v563_v63 }
 0x115   :  { %v678_v2 = vpack.c.bf16 %v636_v0, %v636_v0  ;;  %v642_v3 = vpop.f32.mrf.mxu2  ;;  %v660_v4 = vpop.f32.mrf.mxu3  ;;  %v785_v16 = vmul.f32 %v636_v0, %v636_v0  ;;  %v743_v60 = vsel %vm715_vm2, %v636_v0, 0.0 }
 0x116   :  { %v1650_v6 = vadd.f32 %v660_v4, %v588_v1  ;;  %v491_v7 = vpop.f32.mrf.mxu0 }
 0x117   :  { %704 = vst.msk [vmem:[%s1763_s3 + $0x38] sm:$0xf] %vm689_vm1, %v678_v2  ;;  %v492_v5 = vadd.f32 %v1468_v59, %v491_v7  ;;  %v564_v10 = vpop.f32.mrf.mxu1  ;;  %v823_v1 = vsel %vm715_vm2, %v785_v16, 0.0  ;;  %v794_v16 = vmul.f32 %v1635_v57, %v1635_v57 }
 0x118   :  { %v688_v12 = vpack.c.bf16 %v1650_v6, %v1650_v6 }
 0x119   :  { %v565_v13 = vadd.f32 %v564_v10, %v492_v5 }
 0x11a   :  { %714 = vst.msk [vmem:[%s1763_s3 + $0x60] sm:$0xf] %vm689_vm1, %v688_v12 }
 0x11b   :  { %v638_v14 = vadd.f32 %v637_v43, %v565_v13  ;;  %v814_v43 = vadd.f32 %v813_v34, %v1577_v8  ;;  %v741_v8 = vsel %vm715_vm2, %v1631_v51, 0.0 }
 0x11c   :  { %v742_v51 = vadd.f32 %v741_v8, %v740_v58 }
 0x11d   :  { %v679_v15 = vpack.c.bf16 %v638_v14, %v638_v14  ;;  %v645_v17 = vpop.f32.mrf.mxu2  ;;  %v662_v18 = vpop.f32.mrf.mxu3  ;;  %v816_v49 = vadd.f32 %v815_v38, %v814_v43  ;;  %v786_v61 = vmul.f32 %v638_v14, %v638_v14  ;;  %v745_v2 = vsel %vm715_vm2, %v638_v14, 0.0 }
 0x11e   :  { %v494_v19 = vpop.f32.mrf.mxu0  ;;  %v744_v5 = vadd.f32 %v743_v60, %v742_v51 }
 0x11f   :  { %705 = vst.msk [vmem:[%s1763_s3 + $0x3c] sm:$0xf] %vm689_vm1, %v679_v15  ;;  %v495_v20 = vadd.f32 %v1468_v59, %v494_v19  ;;  %v567_v22 = vpop.f32.mrf.mxu1  ;;  %v818_v27 = vadd.f32 %v817_v46, %v816_v49  ;;  %v825_v10 = vsel %vm715_vm2, %v786_v61, 0.0  ;;  %v793_v49 = vmul.f32 %v1616_v45, %v1616_v45 }
 0x120   :  { %v746_v19 = vadd.f32 %v745_v2, %v744_v5  ;;  %v851_v5 = vlaneseq }
 0x121   :  { %v568_v23 = vadd.f32 %v567_v22, %v495_v20  ;;  %v820_v63 = vadd.f32 %v819_v54, %v818_v27  ;;  %v839_v58 = vsel %vm715_vm2, %v793_v49, 0.0 }
 0x123   :  { %v641_v24 = vadd.f32 %v640_v56, %v568_v23 }
 0x125   :  { %v680_v26 = vpack.c.bf16 %v641_v24, %v641_v24  ;;  %v1670_v28 = vpop.f32.mrf.mxu2  ;;  %v747_v0 = vsel %vm715_vm2, %v641_v24, 0.0 }
 0x126   :  { %v496_v29 = vpop.f32.mrf.mxu0 }
 0x127   :  { %706 = vst.msk [vmem:[%s1763_s3 + $0x40] sm:$0xf] %vm689_vm1, %v680_v26  ;;  %v497_v32 = vadd.f32 %v1468_v59, %v496_v29  ;;  %v569_v33 = vpop.f32.mrf.mxu1  ;;  %v748_v26 = vadd.f32 %v747_v0, %v746_v19 }
 0x129   :  { %v570_v36 = vadd.f32 %v569_v33, %v497_v32 }
 0x12b   :  { %v643_v41 = vadd.f32 %v642_v3, %v570_v36  ;;  %v787_v3 = vmul.f32 %v641_v24, %v641_v24 }
 0x12d   :  { %v681_v42 = vpack.c.bf16 %v643_v41, %v643_v41  ;;  %v650_v48 = vpop.f32.mrf.mxu2  ;;  %v788_v12 = vmul.f32 %v643_v41, %v643_v41  ;;  %v827_v23 = vsel %vm715_vm2, %v787_v3, 0.0  ;;  %v749_v14 = vsel %vm715_vm2, %v643_v41, 0.0 }
 0x12e   :  { %v651_v50 = vadd.f32 %v650_v48, %v1551_v37  ;;  %v499_v53 = vpop.f32.mrf.mxu0  ;;  %v821_v37 = vsel %vm715_vm2, %v784_v47, 0.0  ;;  %v750_v11 = vadd.f32 %v749_v14, %v748_v26 }
 0x12f   :  { %707 = vst.msk [vmem:[%s1763_s3 + $0x44] sm:$0xf] %vm689_vm1, %v681_v42  ;;  %v500_v9 = vadd.f32 %v1468_v59, %v499_v53  ;;  %v572_v56 = vpop.f32.mrf.mxu1  ;;  %v822_v7 = vadd.f32 %v821_v37, %v820_v63  ;;  %v829_v32 = vsel %vm715_vm2, %v788_v12, 0.0  ;;  %v795_v37 = vmul.f32 %v1650_v6, %v1650_v6 }
 0x130   :  { %v684_v55 = vpack.c.bf16 %v651_v50, %v651_v50  ;;  %v791_v39 = vmul.f32 %v651_v50, %v651_v50  ;;  %v755_v21 = vsel %vm715_vm2, %v651_v50, 0.0  ;;  %v759_v50 = vsel %vm715_vm2, %v1616_v45, 0.0 }
 0x131   :  { %v573_v62 = vadd.f32 %v572_v56, %v500_v9  ;;  %v824_v18 = vadd.f32 %v823_v1, %v822_v7  ;;  %v763_v45 = vsel %vm715_vm2, %v1650_v6, 0.0  ;;  %v843_v1 = vsel %vm715_vm2, %v795_v37, 0.0 }
 0x132   :  { %710 = vst.msk [vmem:[%s1763_s3 + $0x50] sm:$0xf] %vm689_vm1, %v684_v55  ;;  %v835_v30 = vsel %vm715_vm2, %v791_v39, 0.0  ;;  %v761_v55 = vsel %vm715_vm2, %v1635_v57, 0.0 }
 0x133   :  { %v646_v4 = vadd.f32 %v645_v17, %v573_v62  ;;  %v826_v25 = vadd.f32 %v825_v10, %v824_v18  ;;  %v841_v62 = vsel %vm715_vm2, %v794_v16, 0.0 }
 0x135   :  { %v682_v13 = vpack.c.bf16 %v646_v4, %v646_v4  ;;  %v652_v15 = vpop.f32.mrf.mxu2  ;;  %v789_v17 = vmul.f32 %v646_v4, %v646_v4  ;;  %v828_v34 = vadd.f32 %v827_v23, %v826_v25 }
 0x136   :  { %v653_v20 = vadd.f32 %v652_v15, %v1562_v52  ;;  %v501_v22 = vpop.f32.mrf.mxu0  ;;  %v751_v52 = vsel %vm715_vm2, %v646_v4, 0.0 }
 0x137   :  { %708 = vst.msk [vmem:[%s1763_s3 + $0x48] sm:$0xf] %vm689_vm1, %v682_v13  ;;  %v502_v24 = vadd.f32 %v1468_v59, %v501_v22  ;;  %v574_v31 = vpop.f32.mrf.mxu1  ;;  %v831_v35 = vsel %vm715_vm2, %v789_v17, 0.0  ;;  %v830_v36 = vadd.f32 %v829_v32, %v828_v34  ;;  %v752_v38 = vadd.f32 %v751_v52, %v750_v11 }
 0x138   :  { %v685_v29 = vpack.c.bf16 %v653_v20, %v653_v20  ;;  %v792_v47 = vmul.f32 %v653_v20, %v653_v20  ;;  %v757_v53 = vsel %vm715_vm2, %v653_v20, 0.0  ;;  %v852_v13 = vshrl.u32 %v851_v5, 7 }
 0x139   :  { %v575_v33 = vadd.f32 %v574_v31, %v502_v24  ;;  %v832_v44 = vadd.f32 %v831_v35, %v830_v36 }
 0x13a   :  { %711 = vst.msk [vmem:[%s1763_s3 + $0x54] sm:$0xf] %vm689_vm1, %v685_v29  ;;  %v837_v9 = vsel %vm715_vm2, %v792_v47, 0.0  ;;  %vm854_vm3 = vcmp.eq.s32.totalorder %v852_v13, 1  ;;  %vm853_vm4 = vcmp.eq.s32.totalorder %v852_v13, 0 }
 0x13b   :  { %v648_v59 = vadd.f32 %v1670_v28, %v575_v33 }
 0x13d   :  { %v683_v40 = vpack.c.bf16 %v648_v59, %v648_v59  ;;  %v753_v41 = vsel %vm715_vm2, %v648_v59, 0.0  ;;  %v790_v43 = vmul.f32 %v648_v59, %v648_v59 }
 0x13e   :  { %v754_v46 = vadd.f32 %v753_v41, %v752_v38 }
 0x13f   :  { %709 = vst.msk [vmem:[%s1763_s3 + $0x4c] sm:$0xf] %vm689_vm1, %v683_v40  ;;  %v833_v42 = vsel %vm715_vm2, %v790_v43, 0.0 }
 0x140   :  { %v756_v28 = vadd.f32 %v755_v21, %v754_v46  ;;  %v834_v48 = vadd.f32 %v833_v42, %v832_v44 }
 0x142   :  { %v758_v54 = vadd.f32 %v757_v53, %v756_v28  ;;  %v836_v8 = vadd.f32 %v835_v30, %v834_v48 }
 0x144   :  { %v760_v56 = vadd.f32 %v759_v50, %v758_v54  ;;  %v838_v27 = vadd.f32 %v837_v9, %v836_v8 }
 0x146   :  { %v762_v60 = vadd.f32 %v761_v55, %v760_v56  ;;  %v840_v61 = vadd.f32 %v839_v58, %v838_v27 }
 0x148   :  { %v764_v63 = vadd.f32 %v763_v45, %v762_v60  ;;  %v842_v51 = vadd.f32 %v841_v62, %v840_v61 }
 0x14a   :  { %v765_v2 = vrot.slane %v764_v63, 4  ;;  %v844_v3 = vadd.f32 %v843_v1, %v842_v51 }
 0x14c   :  { %v766_v4 = vadd.f32 %v765_v2, %v764_v63  ;;  %v845_v7 = vrot.slane %v844_v3, 4 }
 0x14e   :  { %v767_v57 = vrot.slane %v766_v4, 2  ;;  %v846_v10 = vadd.f32 %v845_v7, %v844_v3 }
 0x150   :  { %v768_v0 = vadd.f32 %v767_v57, %v766_v4  ;;  %v847_v12 = vrot.slane %v846_v10, 2 }
 0x152   :  { %v848_v15 = vadd.f32 %v847_v12, %v846_v10  ;;  %v769_v18 = vrot.slane %v768_v0, 1 }
 0x154   :  { %v849_v19 = vrot.slane %v848_v15, 1  ;;  %v770_v6 = vadd.f32 %v769_v18, %v768_v0 }
 0x156   :  { %v850_v20 = vadd.f32 %v849_v19, %v848_v15 }
 0x158   :  { %v855_v22 = vsel %vm854_vm3, %v850_v20, 0.0 }
 0x159   :  { %v856_v23 = vsel %vm853_vm4, %v770_v6, %v855_v22 }
 0x15a   :  { %857 = vst.msk [vmem:[%s1764_s4] sm:$0xff] %vm715_vm2, %v856_v23 }

// kernel: tile.53
= control target key start
LH: loop header
LB: loop body
LE: loop exit
PB: predicated region body
PF: predicated region fallthrough
CT: control target
= control target key end

     0   :  { %s22_s0 = inlined_call_operand.vmem [shape: f32[64], index: 0, kind: input, shape index: {}]   ;;  %s23_s1 = inlined_call_operand.vmem [shape: f32[2,64], index: 1, kind: output, shape index: {}]  }
   0x1   :  { %v4_v0 = vld [vmem:[%s22_s0] ss:$0 sm:$0xff] }
   0x2   :  { %5 = vst [vmem:[%s23_s1] sm:$0x3] %v4_v0 }

// kernel: tile.58
= control target key start
LH: loop header
LB: loop body
LE: loop exit
PB: predicated region body
PF: predicated region fallthrough
CT: control target
= control target key end

     0   :  { %vm7_vm0 = vcmask 523264   ;;  %vm13_vm1 = vcmask 1048064   ;;  %s39_s0 = inlined_call_operand.vmem [shape: f32[2,64], index: 0, kind: input, shape index: {}]   ;;  %s40_s1 = inlined_call_operand.vmem [shape: f32[1,128], index: 1, kind: output, shape index: {}]  }
   0x1   :  { %v4_v0 = vld [vmem:[%s39_s0] sm:$0x3]  ;;  %s22_s0 = smov 64  }
   0x2   :  { %5 = vst [vmem:[#allocation1] sm:$0x3] %v4_v0 }
   0x9   :  { %v10_v1 = vld [vmem:[#allocation1 + $0x1] sm:$0x1]   ;;  %v6_v2 = vld [vmem:[#allocation1] sm:$0x1]  }
   0xa   :  { %11 = vrot.lane.b32.xlu0 %v10_v1, %s22_s0  ;;  %8 = vst.msk [vmem:[#allocation0] sm:$0x1] %vm7_vm0, %v6_v2  }
  0x7c   :  { %v12_v3 = vpop.permute.xlu0 %11  }
  0x7d   :  { %14 = vst.msk [vmem:[#allocation0] sm:$0x1] %vm13_vm1, %v12_v3  }
  0x84   :  { %v17_v4 = vld [vmem:[#allocation0] sm:$0x1] }
  0x85   :  { %20 = vst [vmem:[%s40_s1] sm:$0x1] %v17_v4 }

// kernel: convnet_forward.13
= control target key start
LH: loop header
LB: loop body
LE: loop exit
PB: predicated region body
PF: predicated region fallthrough
CT: control target
= control target key end

     0   :  { %s307_s0 = inlined_call_operand.vmem [shape: bf16[100,128], index: 0, kind: input, shape index: {}]   ;;  %s308_s1 = inlined_call_operand.vmem [shape: f32[1,128], index: 1, kind: input, shape index: {}]   ;;  %s309_s2 = inlined_call_operand.vmem [shape: f32[1,128], index: 2, kind: input, shape index: {}]   ;;  %s310_s3 = inlined_call_operand.vmem [shape: bf16[100,128], index: 3, kind: output, shape index: {}]  }
   0x1   :  { %v144_v0 = vld [vmem:[%s307_s0] sm:$0xff]   ;;  %v197_v5 = vld [vmem:[%s307_s0 + $0x8] sm:$0xff]   ;;  %v198_v8 = vld [vmem:[%s307_s0 + $0x10] sm:$0xff]  }
   0x2   :  { %v235_v1 = vld [vmem:[%s308_s1] ss:$0 sm:$0xff]  ;;  %v145_v2 = vunpack.c.l.bf16 %v144_v0  ;;  %v146_v3 = vunpack.c.h.bf16 %v144_v0  ;;  %v149_v6 = vunpack.c.l.bf16 %v197_v5  ;;  %v150_v7 = vunpack.c.h.bf16 %v197_v5  ;;  %v199_v9 = vld [vmem:[%s307_s0 + $0x18] sm:$0xff]   ;;  %v201_v39 = vld [vmem:[%s307_s0 + $0x28] sm:$0xff]  }
   0x3   :  { %v240_v4 = vld [vmem:[%s309_s2] ss:$0 sm:$0xff]  ;;  %v153_v12 = vunpack.c.l.bf16 %v198_v8  ;;  %v154_v13 = vunpack.c.h.bf16 %v198_v8  ;;  %v157_v16 = vunpack.c.l.bf16 %v199_v9  ;;  %v158_v17 = vunpack.c.h.bf16 %v199_v9  ;;  %v26_v49 = vld [vmem:[%s307_s0 + $0x30] sm:$0x3] }
   0x4   :  { %v44_v10 = vmul.f32 %v235_v1, %v145_v2  ;;  %v45_v11 = vmul.f32 %v235_v1, %v146_v3  ;;  %v46_v14 = vmul.f32 %v235_v1, %v149_v6  ;;  %v47_v15 = vmul.f32 %v235_v1, %v150_v7  ;;  %v200_v38 = vld [vmem:[%s307_s0 + $0x20] sm:$0xff]  }
   0x5   :  { %v48_v20 = vmul.f32 %v235_v1, %v153_v12  ;;  %v49_v21 = vmul.f32 %v235_v1, %v154_v13  ;;  %v50_v24 = vmul.f32 %v235_v1, %v157_v16  ;;  %v51_v25 = vmul.f32 %v235_v1, %v158_v17 }
   0x6   :  { %v61_v18 = vadd.f32 %v240_v4, %v44_v10  ;;  %v62_v19 = vadd.f32 %v240_v4, %v45_v11  ;;  %v63_v22 = vadd.f32 %v240_v4, %v46_v14  ;;  %v64_v23 = vadd.f32 %v240_v4, %v47_v15 }
   0x7   :  { %v65_v32 = vadd.f32 %v240_v4, %v48_v20  ;;  %v66_v33 = vadd.f32 %v240_v4, %v49_v21  ;;  %v67_v37 = vadd.f32 %v240_v4, %v50_v24  ;;  %v68_v43 = vadd.f32 %v240_v4, %v51_v25 }
   0x8   :  { %vm74_vm0 = vcmp.gt.f32.partialorder %v61_v18, 0.0  ;;  %vm75_vm1 = vcmp.gt.f32.partialorder %v62_v19, 0.0  ;;  %v87_v26 = vmul.f32 0.01, %v61_v18  ;;  %v88_v27 = vmul.f32 0.01, %v62_v19 }
   0x9   :  { %vm76_vm2 = vcmp.gt.f32.partialorder %v63_v22, 0.0  ;;  %vm77_vm3 = vcmp.gt.f32.partialorder %v64_v23, 0.0  ;;  %v89_v28 = vmul.f32 0.01, %v63_v22  ;;  %v90_v29 = vmul.f32 0.01, %v64_v23 }
   0xa   :  { %v100_v30 = vsel %vm74_vm0, %v61_v18, %v87_v26  ;;  %v101_v31 = vsel %vm75_vm1, %v62_v19, %v88_v27  ;;  %vm78_vm4 = vcmp.gt.f32.partialorder %v65_v32, 0.0  ;;  %vm79_vm5 = vcmp.gt.f32.partialorder %v66_v33, 0.0 }
   0xb   :  { %v170_v34 = vpack.c.bf16 %v101_v31, %v100_v30  ;;  %v102_v35 = vsel %vm76_vm2, %v63_v22, %v89_v28  ;;  %v103_v36 = vsel %vm77_vm3, %v64_v23, %v90_v29  ;;  %v91_v41 = vmul.f32 0.01, %v65_v32 }
   0xc   :  { %v175_v40 = vpack.c.bf16 %v103_v36, %v102_v35  ;;  %v92_v42 = vmul.f32 0.01, %v66_v33  ;;  %vm80_vm6 = vcmp.gt.f32.partialorder %v67_v37, 0.0  ;;  %v93_v44 = vmul.f32 0.01, %v67_v37 }
   0xd   :  { %171 = vst [vmem:[%s310_s3] sm:$0xff] %v170_v34   ;;  %v104_v45 = vsel %vm78_vm4, %v65_v32, %v91_v41  ;;  %v161_v46 = vunpack.c.l.bf16 %v200_v38  ;;  %v162_v47 = vunpack.c.h.bf16 %v200_v38  ;;  %v165_v48 = vunpack.c.l.bf16 %v201_v39 }
   0xe   :  { %202 = vst [vmem:[%s310_s3 + $0x8] sm:$0xff] %v175_v40   ;;  %v105_v50 = vsel %vm79_vm5, %v66_v33, %v92_v42  ;;  %vm81_vm7 = vcmp.gt.f32.partialorder %v68_v43, 0.0  ;;  %v94_v51 = vmul.f32 0.01, %v68_v43  ;;  %v106_v52 = vsel %vm80_vm6, %v67_v37, %v93_v44 }
   0xf   :  { %v180_v53 = vpack.c.bf16 %v105_v50, %v104_v45  ;;  %v52_v54 = vmul.f32 %v235_v1, %v161_v46  ;;  %v53_v55 = vmul.f32 %v235_v1, %v162_v47  ;;  %v166_v56 = vunpack.c.h.bf16 %v201_v39 }
  0x10   :  { %v107_v57 = vsel %vm81_vm7, %v68_v43, %v94_v51  ;;  %v54_v58 = vmul.f32 %v235_v1, %v165_v48  ;;  %v39_v59 = vunpack.c.l.bf16 %v26_v49 }
  0x11   :  { %203 = vst [vmem:[%s310_s3 + $0x10] sm:$0xff] %v180_v53   ;;  %v185_v60 = vpack.c.bf16 %v107_v57, %v106_v52  ;;  %v69_v61 = vadd.f32 %v240_v4, %v52_v54  ;;  %v70_v62 = vadd.f32 %v240_v4, %v53_v55  ;;  %v55_v63 = vmul.f32 %v235_v1, %v166_v56 }
  0x12   :  { %v71_v0 = vadd.f32 %v240_v4, %v54_v58  ;;  %v56_v2 = vmul.f32 %v235_v1, %v39_v59 }
  0x13   :  { %204 = vst [vmem:[%s310_s3 + $0x18] sm:$0xff] %v185_v60   ;;  %vm82_vm8 = vcmp.gt.f32.partialorder %v69_v61, 0.0  ;;  %vm83_vm9 = vcmp.gt.f32.partialorder %v70_v62, 0.0  ;;  %v95_v3 = vmul.f32 0.01, %v69_v61  ;;  %v72_v5 = vadd.f32 %v240_v4, %v55_v63 }
  0x14   :  { %v96_v6 = vmul.f32 0.01, %v70_v62  ;;  %vm84_vm10 = vcmp.gt.f32.partialorder %v71_v0, 0.0  ;;  %v97_v7 = vmul.f32 0.01, %v71_v0  ;;  %v73_v8 = vadd.f32 %v240_v4, %v56_v2 }
  0x15   :  { %v108_v9 = vsel %vm82_vm8, %v69_v61, %v95_v3  ;;  %vm85_vm11 = vcmp.gt.f32.partialorder %v72_v5, 0.0  ;;  %v98_v10 = vmul.f32 0.01, %v72_v5 }
  0x16   :  { %v109_v11 = vsel %vm83_vm9, %v70_v62, %v96_v6  ;;  %v110_v12 = vsel %vm84_vm10, %v71_v0, %v97_v7  ;;  %vm86_vm12 = vcmp.gt.f32.partialorder %v73_v8, 0.0  ;;  %v99_v1 = vmul.f32 0.01, %v73_v8 }
  0x17   :  { %v190_v13 = vpack.c.bf16 %v109_v11, %v108_v9  ;;  %v111_v14 = vsel %vm85_vm11, %v72_v5, %v98_v10 }
  0x18   :  { %v195_v15 = vpack.c.bf16 %v111_v14, %v110_v12  ;;  %v112_v16 = vsel %vm86_vm12, %v73_v8, %v99_v1 }
  0x19   :  { %205 = vst [vmem:[%s310_s3 + $0x20] sm:$0xff] %v190_v13   ;;  %v125_v17 = vpack.c.bf16 %v112_v16, %v112_v16 }
  0x1a   :  { %206 = vst [vmem:[%s310_s3 + $0x28] sm:$0xff] %v195_v15  }
  0x1b   :  { %138 = vst [vmem:[%s310_s3 + $0x30] sm:$0x3] %v125_v17 }

// kernel: convnet_forward.14
= control target key start
LH: loop header
LB: loop body
LE: loop exit
PB: predicated region body
PF: predicated region fallthrough
CT: control target
= control target key end

     0   :  { %vm420_vm0 = vcmask 523264   ;;  %vm580_vm1 = vcmask 519168   ;;  %s1146_s1 = inlined_call_operand.vmem [shape: bf16[576,64], index: 1, kind: input, shape index: {}]   ;;  %s1147_s2 = inlined_call_operand.vmem [shape: f32[1,64], index: 2, kind: input, shape index: {}]   ;;  %s1148_s0 = inlined_call_operand.vmem [shape: bf16[56,576], index: 0, kind: input, shape index: {}]   ;;  %s1149_s3 = inlined_call_operand.vmem [shape: bf16[56,64], index: 3, kind: output, shape index: {}]  }
   0x1   :  { %v822_v0 = vld [vmem:[%s1146_s1 + $0x38] sm:$0xff]  ;;  %v821_v1 = vld [vmem:[%s1146_s1 + $0x30] sm:$0xff]  ;;  %v820_v4 = vld [vmem:[%s1146_s1 + $0x28] sm:$0xff] }
   0x2   :  { %851 = vmatpush.bf16.msra.mxu1 %v822_v0  ;;  %852 = vmatpush.bf16.msra.mxu2 %v822_v0  ;;  %v846_v2 = vld [vmem:[%s1146_s1 + $0xf8] sm:$0xff]  ;;  %v845_v3 = vld [vmem:[%s1146_s1 + $0xf0] sm:$0xff]  ;;  %v844_v5 = vld [vmem:[%s1146_s1 + $0xe8] sm:$0xff] }
   0x3   :  { %433 = vmatpush.bf16.msra.mxu0 %v822_v0  ;;  %517 = vmatpush.bf16.msra.mxu3 %v846_v2  ;;  %v819_v6 = vld [vmem:[%s1146_s1 + $0x20] sm:$0xff]  ;;  %v818_v8 = vld [vmem:[%s1146_s1 + $0x18] sm:$0xff]  ;;  %v817_v10 = vld [vmem:[%s1146_s1 + $0x10] sm:$0xff] }
   0x4   :  { %v843_v7 = vld [vmem:[%s1146_s1 + $0xe0] sm:$0xff]  ;;  %v842_v9 = vld [vmem:[%s1146_s1 + $0xd8] sm:$0xff]  ;;  %v841_v11 = vld [vmem:[%s1146_s1 + $0xd0] sm:$0xff] }
   0x5   :  { %v816_v12 = vld [vmem:[%s1146_s1 + $0x8] sm:$0xff]  ;;  %v930_v13 = vld [vmem:[%s1148_s0 + $0x78] sm:$0xff]  ;;  %v815_v16 = vld [vmem:[%s1146_s1] sm:$0xff] }
   0x6   :  { %853 = vmatpush.bf16.msra.mxu1 %v821_v1  ;;  %854 = vmatpush.bf16.msra.mxu2 %v821_v1  ;;  %v840_v14 = vld [vmem:[%s1146_s1 + $0xc8] sm:$0xff]  ;;  %v163_v15 = vunpack.c.l.b16 %v930_v13  ;;  %v807_v18 = vld [vmem:[%s1148_s0 + $0x38] sm:$0xf0]  ;;  %v594_v21 = vld [vmem:[%s1148_s0] sm:$0xf] }
   0x7   :  { %434 = vmatpush.bf16.msra.mxu0 %v821_v1  ;;  %518 = vmatpush.bf16.msra.mxu3 %v845_v3  ;;  %v614_v17 = vld [vmem:[%s1148_s0 + $0x28] sm:$0xf]  ;;  %v838_v19 = vld [vmem:[%s1146_s1 + $0xb8] sm:$0xff]  ;;  %v839_v22 = vld [vmem:[%s1146_s1 + $0xc0] sm:$0xff] }
   0x8   :  { %v830_v20 = vld [vmem:[%s1146_s1 + $0x78] sm:$0xff]  ;;  %v615_v23 = vor.u32 %v807_v18, %v614_v17  ;;  %v183_v24 = vpack.c.b16 %v163_v15, %v163_v15  ;;  %v802_v25 = vld [vmem:[%s1148_s0 + $0x10] sm:$0xf0]  ;;  %v801_v26 = vld [vmem:[%s1148_s0 + $0xc] sm:$0xf] }
   0x9   :  { %v604_v27 = vld [vmem:[%s1148_s0 + $0x1c] sm:$0xf0]  ;;  %v850_v28 = vld [vmem:[%s1146_s1 + $0x118] sm:$0xff]  ;;  %v837_v29 = vld [vmem:[%s1146_s1 + $0xb0] sm:$0xff]  ;;  %v595_v31 = vor.u32 %v802_v25, %v594_v21 }
   0xa   :  { %855 = vmatpush.bf16.msra.mxu1 %v820_v4  ;;  %856 = vmatpush.bf16.msra.mxu2 %v820_v4  ;;  %v829_v30 = vld [vmem:[%s1146_s1 + $0x70] sm:$0xff]  ;;  %v607_v32 = vor.u32 %v801_v26, %v604_v27  ;;  %v836_v34 = vld [vmem:[%s1146_s1 + $0xa8] sm:$0xff]  ;;  %v835_v37 = vld [vmem:[%s1146_s1 + $0xa0] sm:$0xff] }
   0xb   :  { %435 = vmatpush.bf16.msra.mxu0 %v820_v4  ;;  %519 = vmatpush.bf16.msra.mxu3 %v844_v5  ;;  %v849_v33 = vld [vmem:[%s1146_s1 + $0x110] sm:$0xff]  ;;  %v828_v35 = vld [vmem:[%s1146_s1 + $0x68] sm:$0xff]  ;;  %v827_v38 = vld [vmem:[%s1146_s1 + $0x60] sm:$0xff] }
   0xc   :  { %v848_v36 = vld [vmem:[%s1146_s1 + $0x108] sm:$0xff]  ;;  %v634_v39 = vld [vmem:[%s1148_s0 + $0x50] sm:$0xf]  ;;  %v812_v40 = vld [vmem:[%s1148_s0 + $0x60] sm:$0xf0] }
   0xd   :  { %v847_v41 = vld [vmem:[%s1146_s1 + $0x100] sm:$0xff]  ;;  %v834_v42 = vld [vmem:[%s1146_s1 + $0x98] sm:$0xff]  ;;  %v610_v44 = vld [vmem:[%s1148_s0 + $0x10] sm:$0xf]  ;;  %v635_v45 = vor.u32 %v812_v40, %v634_v39 }
   0xe   :  { %857 = vmatpush.bf16.msra.mxu1 %v819_v6  ;;  %858 = vmatpush.bf16.msra.mxu2 %v819_v6  ;;  %v826_v43 = vld [vmem:[%s1146_s1 + $0x58] sm:$0xff]  ;;  %v804_v46 = vld [vmem:[%s1148_s0 + $0x20] sm:$0xf0]  ;;  %v806_v47 = vld [vmem:[%s1148_s0 + $0x34] sm:$0xf] }
   0xf   :  { %436 = vmatpush.bf16.msra.mxu0 %v819_v6  ;;  %520 = vmatpush.bf16.msra.mxu3 %v843_v7  ;;  %v624_v48 = vld [vmem:[%s1148_s0 + $0x44] sm:$0xf0]  ;;  %v833_v49 = vld [vmem:[%s1146_s1 + $0x90] sm:$0xff]  ;;  %v611_v51 = vor.u32 %v804_v46, %v610_v44  ;;  %v831_v55 = vld [vmem:[%s1146_s1 + $0x80] sm:$0xff] }
  0x10   :  { %v825_v50 = vld [vmem:[%s1146_s1 + $0x50] sm:$0xff]  ;;  %v627_v52 = vor.u32 %v806_v47, %v624_v48  ;;  %v832_v53 = vld [vmem:[%s1146_s1 + $0x88] sm:$0xff]  ;;  %v823_v56 = vld [vmem:[%s1146_s1 + $0x40] sm:$0xff] }
  0x11   :  { %v824_v54 = vld [vmem:[%s1146_s1 + $0x48] sm:$0xff]  ;;  %v803_v58 = vld [vmem:[%s1148_s0 + $0x18] sm:$0xf0]  ;;  %v800_v60 = vld [vmem:[%s1148_s0 + $0x4] sm:$0xf] }
  0x12   :  { %859 = vmatpush.bf16.msra.mxu1 %v818_v8  ;;  %860 = vmatpush.bf16.msra.mxu2 %v818_v8  ;;  %v602_v57 = vld [vmem:[%s1148_s0 + $0x8] sm:$0xf]  ;;  %v596_v61 = vld [vmem:[%s1148_s0 + $0x14] sm:$0xf0]  ;;  %v809_v0 = vld [vmem:[%s1148_s0 + $0x48] sm:$0xf0] }
  0x13   :  { %437 = vmatpush.bf16.msra.mxu0 %v818_v8  ;;  %521 = vmatpush.bf16.msra.mxu3 %v842_v9  ;;  %v603_v59 = vor.u32 %v803_v58, %v602_v57  ;;  %v630_v62 = vld [vmem:[%s1148_s0 + $0x38] sm:$0xf]  ;;  %v599_v63 = vor.u32 %v800_v60, %v596_v61  ;;  %v811_v1 = vld [vmem:[%s1148_s0 + $0x5c] sm:$0xf]  ;;  %v644_v2 = vld [vmem:[%s1148_s0 + $0x6c] sm:$0xf0] }
  0x14   :  { %v631_v3 = vor.u32 %v809_v0, %v630_v62  ;;  %v647_v4 = vor.u32 %v811_v1, %v644_v2  ;;  %v622_v5 = vld [vmem:[%s1148_s0 + $0x30] sm:$0xf]  ;;  %v808_v6 = vld [vmem:[%s1148_s0 + $0x40] sm:$0xf0]  ;;  %v805_v9 = vld [vmem:[%s1148_s0 + $0x2c] sm:$0xf] }
  0x15   :  { %v34_v7 = vld [vmem:[%s1148_s0 + $0x80] sm:$0xff]  ;;  %v623_v8 = vor.u32 %v808_v6, %v622_v5  ;;  %v814_v15 = vld [vmem:[%s1148_s0 + $0x70] sm:$0xf0]  ;;  %v642_v18 = vld [vmem:[%s1148_s0 + $0x58] sm:$0xf] }
  0x16   :  { %861 = vmatpush.bf16.msra.mxu1 %v817_v10  ;;  %862 = vmatpush.bf16.msra.mxu2 %v817_v10  ;;  %v165_v27 = vunpack.c.l.b16 %v34_v7 }
  0x17   :  { %438 = vmatpush.bf16.msra.mxu0 %v817_v10  ;;  %522 = vmatpush.bf16.msra.mxu3 %v841_v11  ;;  %v616_v10 = vld [vmem:[%s1148_s0 + $0x3c] sm:$0xf0]  ;;  %v166_v11 = vunpack.c.h.b16 %v34_v7 }
  0x19   :  { %v186_v17 = vpack.c.b16 %v166_v11, %v166_v11 }
  0x1a   :  { %863 = vmatpush.bf16.msra.mxu1 %v816_v12  ;;  %864 = vmatpush.bf16.msra.mxu2 %v816_v12 }
  0x1b   :  { %439 = vmatpush.bf16.msra.mxu0 %v816_v12  ;;  %523 = vmatpush.bf16.msra.mxu3 %v840_v14  ;;  %v619_v12 = vor.u32 %v805_v9, %v616_v10  ;;  %v650_v14 = vld [vmem:[%s1148_s0 + $0x60] sm:$0xf] }
  0x1e   :  { %865 = vmatpush.bf16.msra.mxu1 %v815_v16  ;;  %866 = vmatpush.bf16.msra.mxu2 %v815_v16 }
  0x1f   :  { %440 = vmatpush.bf16.msra.mxu0 %v815_v16  ;;  %524 = vmatpush.bf16.msra.mxu3 %v839_v22  ;;  %v651_v16 = vor.u32 %v814_v15, %v650_v14  ;;  %v810_v22 = vld [vmem:[%s1148_s0 + $0x54] sm:$0xf] }
  0x21   :  { %446 = vmatmul.bf16.vlgmr.msra.gmra.mxu1 %v615_v23  ;;  %456 = vmatmul.bf16.vlgmr.msra.gmra.mxu2 %v183_v24  ;;  %v636_v23 = vld [vmem:[%s1148_s0 + $0x64] sm:$0xf0] }
  0x22   :  { %489 = vmatpush.bf16.msrb.mxu2 %v838_v19  ;;  %461 = vmatpush.bf16.msrb.mxu1 %v830_v20  ;;  %v813_v19 = vld [vmem:[%s1148_s0 + $0x68] sm:$0xf0]  ;;  %v35_v20 = vld [vmem:[%s1148_s0 + $0x88] sm:$0xf]  ;;  %v639_v25 = vor.u32 %v810_v22, %v636_v23 }
  0x23   :  { %549 = vmatpush.bf16.msrb.mxu0 %v850_v28  ;;  %525 = vmatmul.bf16.vlgmr.msra.gmra.mxu3 %v607_v32  ;;  %v643_v21 = vor.u32 %v813_v19, %v642_v18  ;;  %v167_v24 = vunpack.c.l.b16 %v35_v20  ;;  %v164_v28 = vunpack.c.h.b16 %v930_v13  ;;  %v1108_v13 = vld [vmem:[%s1147_s2] ss:$0 sm:$0xff] }
  0x24   :  { %441 = vmatmul.bf16.vlgmr.msra.gmra.mxu0 %v595_v31 }
  0x25   :  { %v187_v26 = vpack.c.b16 %v167_v24, %v167_v24 }
  0x26   :  { %490 = vmatpush.bf16.msrb.mxu2 %v837_v29  ;;  %462 = vmatpush.bf16.msrb.mxu1 %v829_v30  ;;  %v185_v29 = vpack.c.b16 %v165_v27, %v165_v27  ;;  %v184_v30 = vpack.c.b16 %v164_v28, %v164_v28 }
  0x27   :  { %550 = vmatpush.bf16.msrb.mxu0 %v849_v33 }
  0x2a   :  { %491 = vmatpush.bf16.msrb.mxu2 %v836_v34  ;;  %463 = vmatpush.bf16.msrb.mxu1 %v828_v35 }
  0x2b   :  { %551 = vmatpush.bf16.msrb.mxu0 %v848_v36 }
  0x2e   :  { %492 = vmatpush.bf16.msrb.mxu2 %v835_v37  ;;  %464 = vmatpush.bf16.msrb.mxu1 %v827_v38 }
  0x2f   :  { %552 = vmatpush.bf16.msrb.mxu0 %v847_v41 }
  0x31   :  { %451 = vmatmul.bf16.gmra.mxu1 %v635_v45 }
  0x32   :  { %493 = vmatpush.bf16.msrb.mxu2 %v834_v42  ;;  %465 = vmatpush.bf16.msrb.mxu1 %v826_v43 }
  0x33   :  { %530 = vmatmul.bf16.gmra.mxu3 %v627_v52 }
  0x34   :  { %796 = vmatmul.msk.bf16.vlgmr.msrb.gmra.mxu0 %vm420_vm0, %v611_v51 }
  0x36   :  { %494 = vmatpush.bf16.msrb.mxu2 %v833_v49  ;;  %466 = vmatpush.bf16.msrb.mxu1 %v825_v50 }
  0x3a   :  { %495 = vmatpush.bf16.msrb.mxu2 %v832_v53  ;;  %467 = vmatpush.bf16.msrb.mxu1 %v824_v54 }
  0x3e   :  { %496 = vmatpush.bf16.msrb.mxu2 %v831_v55  ;;  %468 = vmatpush.bf16.msrb.mxu1 %v823_v56 }
  0x41   :  { %497 = vmatmul.bf16.vlgmr.msrb.gmra.mxu2 %v603_v59  ;;  %469 = vmatmul.bf16.vlgmr.msrb.gmra.mxu1 %v599_v63 }
  0x43   :  { %535 = vmatmul.bf16.gmra.mxu3 %v647_v4 }
  0x44   :  { %797 = vmatmul.msk.bf16.gmra.mxu0 %vm420_vm0, %v631_v3 }
  0x51   :  { %502 = vmatmul.bf16.gmra.mxu2 %v623_v8  ;;  %474 = vmatmul.bf16.gmra.mxu1 %v619_v12 }
  0x53   :  { %540 = vmatmul.bf16.gmra.mxu3 %v186_v17 }
  0x54   :  { %798 = vmatmul.msk.bf16.gmra.mxu0 %vm420_vm0, %v651_v16 }
  0x61   :  { %507 = vmatmul.bf16.gmra.mxu2 %v643_v21  ;;  %479 = vmatmul.bf16.gmra.mxu1 %v639_v25 }
  0x64   :  { %799 = vmatmul.msk.bf16.gmra.mxu0 %vm420_vm0, %v187_v26 }
  0x71   :  { %512 = vmatmul.bf16.gmra.mxu2 %v185_v29  ;;  %484 = vmatmul.bf16.gmra.mxu1 %v184_v30 }
  0x9e   :  { %v447_v31 = vpop.f32.mrf.mxu1 }
  0x9f   :  { %v448_v62 = vadd.f32 %v1108_v13, %v447_v31 }
  0xa1   :  { %v442_v32 = vpop.f32.mrf.mxu0 }
  0xa2   :  { %v443_v44 = vadd.f32 %v1108_v13, %v442_v32 }
  0xa4   :  { %v1103_v33 = vpop.f32.mrf.mxu2 }
  0xa6   :  { %v449_v34 = vpop.f32.mrf.mxu1  ;;  %v526_v35 = vpop.f32.mrf.mxu3 }
  0xa7   :  { %v450_v8 = vadd.f32 %v1108_v13, %v449_v34 }
  0xa9   :  { %v444_v36 = vpop.f32.mrf.mxu0 }
  0xaa   :  { %v445_v52 = vadd.f32 %v1108_v13, %v444_v36 }
  0xac   :  { %v459_v37 = vpop.f32.mrf.mxu2 }
  0xae   :  { %v452_v38 = vpop.f32.mrf.mxu1  ;;  %v528_v39 = vpop.f32.mrf.mxu3 }
  0xaf   :  { %v453_v19 = vadd.f32 %v1108_v13, %v452_v38 }
  0xb1   :  { %v554_v40 = vpop.f32.mrf.mxu0 }
  0xb6   :  { %v454_v41 = vpop.f32.mrf.mxu1  ;;  %v531_v42 = vpop.f32.mrf.mxu3 }
  0xb7   :  { %v455_v29 = vadd.f32 %v1108_v13, %v454_v41 }
  0xb9   :  { %v556_v43 = vpop.f32.mrf.mxu0 }
  0xbe   :  { %v470_v45 = vpop.f32.mrf.mxu1  ;;  %v533_v47 = vpop.f32.mrf.mxu3 }
  0xbf   :  { %v471_v46 = vadd.f32 %v470_v45, %v443_v44 }
  0xc1   :  { %v559_v49 = vpop.f32.mrf.mxu0 }
  0xc4   :  { %v498_v48 = vpop.f32.mrf.mxu2 }
  0xc5   :  { %v499_v50 = vadd.f32 %v498_v48, %v471_v46 }
  0xc6   :  { %v472_v54 = vpop.f32.mrf.mxu1  ;;  %v536_v56 = vpop.f32.mrf.mxu3 }
  0xc7   :  { %v527_v51 = vadd.f32 %v526_v35, %v499_v50  ;;  %v473_v55 = vadd.f32 %v472_v54, %v445_v52 }
  0xc9   :  { %v555_v53 = vadd.f32 %v554_v40, %v527_v51  ;;  %v561_v59 = vpop.f32.mrf.mxu0 }
  0xcb   :  { %v573_v57 = vpack.c.bf16 %v555_v53, %v555_v53 }
  0xcc   :  { %v500_v58 = vpop.f32.mrf.mxu2 }
  0xcd   :  { %581 = vst.msk [vmem:[%s1149_s3] sm:$0xf] %vm580_vm1, %v573_v57  ;;  %v501_v60 = vadd.f32 %v500_v58, %v473_v55 }
  0xce   :  { %v475_v0 = vpop.f32.mrf.mxu1  ;;  %v538_v2 = vpop.f32.mrf.mxu3 }
  0xcf   :  { %v529_v61 = vadd.f32 %v528_v39, %v501_v60  ;;  %v476_v1 = vadd.f32 %v475_v0, %v448_v62  ;;  %v458_v39 = vadd.f32 %v1108_v13, %v1103_v33 }
  0xd1   :  { %v557_v63 = vadd.f32 %v556_v43, %v529_v61  ;;  %v564_v5 = vpop.f32.mrf.mxu0 }
  0xd3   :  { %v574_v3 = vpack.c.bf16 %v557_v63, %v557_v63 }
  0xd4   :  { %v503_v4 = vpop.f32.mrf.mxu2 }
  0xd5   :  { %582 = vst.msk [vmem:[%s1149_s3 + $0x4] sm:$0xf] %vm580_vm1, %v574_v3  ;;  %v504_v6 = vadd.f32 %v503_v4, %v476_v1 }
  0xd6   :  { %v477_v10 = vpop.f32.mrf.mxu1  ;;  %v541_v12 = vpop.f32.mrf.mxu3 }
  0xd7   :  { %v532_v7 = vadd.f32 %v531_v42, %v504_v6  ;;  %v478_v11 = vadd.f32 %v477_v10, %v450_v8 }
  0xd9   :  { %v560_v9 = vadd.f32 %v559_v49, %v532_v7  ;;  %v566_v16 = vpop.f32.mrf.mxu0 }
  0xdb   :  { %v575_v14 = vpack.c.bf16 %v560_v9, %v560_v9 }
  0xdc   :  { %v505_v15 = vpop.f32.mrf.mxu2 }
  0xdd   :  { %583 = vst.msk [vmem:[%s1149_s3 + $0x8] sm:$0xf] %vm580_vm1, %v575_v14  ;;  %v506_v17 = vadd.f32 %v505_v15, %v478_v11 }
  0xde   :  { %v480_v21 = vpop.f32.mrf.mxu1  ;;  %v543_v23 = vpop.f32.mrf.mxu3 }
  0xdf   :  { %v534_v18 = vadd.f32 %v533_v47, %v506_v17  ;;  %v481_v22 = vadd.f32 %v480_v21, %v453_v19 }
  0xe1   :  { %v562_v20 = vadd.f32 %v561_v59, %v534_v18  ;;  %v569_v26 = vpop.f32.mrf.mxu0 }
  0xe3   :  { %v576_v24 = vpack.c.bf16 %v562_v20, %v562_v20 }
  0xe4   :  { %v508_v25 = vpop.f32.mrf.mxu2 }
  0xe5   :  { %584 = vst.msk [vmem:[%s1149_s3 + $0xc] sm:$0xf] %vm580_vm1, %v576_v24  ;;  %v509_v27 = vadd.f32 %v508_v25, %v481_v22 }
  0xe6   :  { %v482_v31 = vpop.f32.mrf.mxu1 }
  0xe7   :  { %v537_v28 = vadd.f32 %v536_v56, %v509_v27  ;;  %v483_v32 = vadd.f32 %v482_v31, %v455_v29 }
  0xe9   :  { %v565_v30 = vadd.f32 %v564_v5, %v537_v28  ;;  %v571_v36 = vpop.f32.mrf.mxu0 }
  0xeb   :  { %v577_v34 = vpack.c.bf16 %v565_v30, %v565_v30 }
  0xec   :  { %v510_v35 = vpop.f32.mrf.mxu2 }
  0xed   :  { %585 = vst.msk [vmem:[%s1149_s3 + $0x10] sm:$0xf] %vm580_vm1, %v577_v34  ;;  %v511_v37 = vadd.f32 %v510_v35, %v483_v32 }
  0xee   :  { %v485_v42 = vpop.f32.mrf.mxu1 }
  0xef   :  { %v539_v38 = vadd.f32 %v538_v2, %v511_v37  ;;  %v486_v43 = vadd.f32 %v485_v42, %v458_v39 }
  0xf1   :  { %v567_v40 = vadd.f32 %v566_v16, %v539_v38 }
  0xf3   :  { %v578_v41 = vpack.c.bf16 %v567_v40, %v567_v40 }
  0xf4   :  { %v513_v44 = vpop.f32.mrf.mxu2 }
  0xf5   :  { %586 = vst.msk [vmem:[%s1149_s3 + $0x14] sm:$0xf] %vm580_vm1, %v578_v41  ;;  %v514_v45 = vadd.f32 %v513_v44, %v486_v43 }
  0xf6   :  { %v487_v48 = vpop.f32.mrf.mxu1 }
  0xf7   :  { %v542_v46 = vadd.f32 %v541_v12, %v514_v45 }
  0xf9   :  { %v570_v47 = vadd.f32 %v569_v26, %v542_v46 }
  0xfb   :  { %v579_v49 = vpack.c.bf16 %v570_v47, %v570_v47 }
  0xfc   :  { %v515_v50 = vpop.f32.mrf.mxu2 }
  0xfd   :  { %587 = vst.msk [vmem:[%s1149_s3 + $0x18] sm:$0xf] %vm580_vm1, %v579_v49 }

// kernel: convnet_forward.15
= control target key start
LH: loop header
LB: loop body
LE: loop exit
PB: predicated region body
PF: predicated region fallthrough
CT: control target
= control target key end

     0   :  { %vm2503_vm0 = vcmask 523264   ;;  %vm3909_vm1 = vcmask 130048   ;;  %vm3937_vm5 = vcmask 7168   ;;  %s9477_s1 = inlined_call_operand.vmem [shape: bf16[1600,512], index: 1, kind: input, shape index: {}]   ;;  %s9478_s0 = inlined_call_operand.vmem [shape: bf16[8,1600], index: 0, kind: input, shape index: {}]   ;;  %s9479_s2 = inlined_call_operand.vmem [shape: f32[1,512], index: 2, kind: input, shape index: {}]   ;;  %s9480_s3 = inlined_call_operand.vmem [shape: bf16[512,256], index: 3, kind: input, shape index: {}]   ;;  %s9481_s4 = inlined_call_operand.vmem [shape: f32[1,256], index: 4, kind: input, shape index: {}]   ;;  %s9482_s5 = inlined_call_operand.vmem [shape: bf16[256,64], index: 5, kind: input, shape index: {}]   ;;  %s9483_s6 = inlined_call_operand.vmem [shape: f32[1,64], index: 6, kind: input, shape index: {}]   ;;  %s9484_s8 = inlined_call_operand.vmem [shape: f32[1,16], index: 8, kind: input, shape index: {}]   ;;  %s9485_s7 = inlined_call_operand.vmem [shape: bf16[64,16], index: 7, kind: input, shape index: {}]   ;;  %s9486_s9 = inlined_call_operand.vmem [shape: f32[1,16], index: 9, kind: input, shape index: {}]   ;;  %s9487_s10 = inlined_call_operand.<no memory space> [shape: f32[1,1], index: 10, kind: input, shape index: {}]   ;;  %s9488_s11 = inlined_call_operand.vmem [shape: f32[8,1], index: 11, kind: output, shape index: {}]  }
   0x1   :  { %v4057_v0 = vld [vmem:[%s9477_s1 + $0xe0] sm:$0xf]  ;;  %v5915_v1 = vld [vmem:[%s9477_s1 + $0xec] sm:$0xf0] }
   0x2   :  { %v4185_v2 = vld [vmem:[%s9477_s1 + $0x1e0] sm:$0xf]  ;;  %v4058_v3 = vor.u32 %v5915_v1, %v4057_v0  ;;  %v5947_v4 = vld [vmem:[%s9477_s1 + $0x1ec] sm:$0xf0] }
   0x3   :  { %v4313_v5 = vld [vmem:[%s9477_s1 + $0x2e0] sm:$0xf]  ;;  %v5979_v6 = vld [vmem:[%s9477_s1 + $0x2ec] sm:$0xf0]  ;;  %v4186_v7 = vor.u32 %v5947_v4, %v4185_v2 }
   0x4   :  { %v4314_v8 = vor.u32 %v5979_v6, %v4313_v5  ;;  %v4441_v9 = vld [vmem:[%s9477_s1 + $0x3e0] sm:$0xf]  ;;  %v6011_v10 = vld [vmem:[%s9477_s1 + $0x3ec] sm:$0xf0]  ;;  %2507 = vmatpush.bf16.msra.mxu0 %v4058_v3 }
   0x5   :  { %v4041_v11 = vld [vmem:[%s9477_s1 + $0xc0] sm:$0xf]  ;;  %v4442_v12 = vor.u32 %v6011_v10, %v4441_v9  ;;  %v5911_v13 = vld [vmem:[%s9477_s1 + $0xcc] sm:$0xf0]  ;;  %2520 = vmatpush.bf16.msra.mxu1 %v4186_v7 }
   0x6   :  { %v4169_v14 = vld [vmem:[%s9477_s1 + $0x1c0] sm:$0xf]  ;;  %v5943_v15 = vld [vmem:[%s9477_s1 + $0x1cc] sm:$0xf0]  ;;  %2533 = vmatpush.bf16.msra.mxu2 %v4314_v8  ;;  %v4042_v16 = vor.u32 %v5911_v13, %v4041_v11 }
   0x7   :  { %v4170_v17 = vor.u32 %v5943_v15, %v4169_v14  ;;  %v4297_v18 = vld [vmem:[%s9477_s1 + $0x2c0] sm:$0xf]  ;;  %v5975_v19 = vld [vmem:[%s9477_s1 + $0x2cc] sm:$0xf0]  ;;  %2546 = vmatpush.bf16.msra.mxu3 %v4442_v12 }
   0x8   :  { %v4425_v20 = vld [vmem:[%s9477_s1 + $0x3c0] sm:$0xf]  ;;  %v4298_v21 = vor.u32 %v5975_v19, %v4297_v18  ;;  %v6007_v22 = vld [vmem:[%s9477_s1 + $0x3cc] sm:$0xf0]  ;;  %2508 = vmatpush.bf16.msra.mxu0 %v4042_v16 }
   0x9   :  { %v4025_v23 = vld [vmem:[%s9477_s1 + $0xa0] sm:$0xf]  ;;  %v5907_v24 = vld [vmem:[%s9477_s1 + $0xac] sm:$0xf0]  ;;  %v4426_v25 = vor.u32 %v6007_v22, %v4425_v20  ;;  %2521 = vmatpush.bf16.msra.mxu1 %v4170_v17 }
   0xa   :  { %v4153_v26 = vld [vmem:[%s9477_s1 + $0x1a0] sm:$0xf]  ;;  %v5939_v27 = vld [vmem:[%s9477_s1 + $0x1ac] sm:$0xf0]  ;;  %v4026_v29 = vor.u32 %v5907_v24, %v4025_v23  ;;  %2534 = vmatpush.bf16.msra.mxu2 %v4298_v21 }
   0xb   :  { %v4281_v28 = vld [vmem:[%s9477_s1 + $0x2a0] sm:$0xf]  ;;  %v5971_v30 = vld [vmem:[%s9477_s1 + $0x2ac] sm:$0xf0]  ;;  %v4154_v33 = vor.u32 %v5939_v27, %v4153_v26  ;;  %2547 = vmatpush.bf16.msra.mxu3 %v4426_v25 }
   0xc   :  { %v4409_v31 = vld [vmem:[%s9477_s1 + $0x3a0] sm:$0xf]  ;;  %v6003_v32 = vld [vmem:[%s9477_s1 + $0x3ac] sm:$0xf0]  ;;  %v4282_v34 = vor.u32 %v5971_v30, %v4281_v28  ;;  %2509 = vmatpush.bf16.msra.mxu0 %v4026_v29 }
   0xd   :  { %v4009_v35 = vld [vmem:[%s9477_s1 + $0x80] sm:$0xf]  ;;  %v5903_v36 = vld [vmem:[%s9477_s1 + $0x8c] sm:$0xf0]  ;;  %v4410_v38 = vor.u32 %v6003_v32, %v4409_v31  ;;  %2522 = vmatpush.bf16.msra.mxu1 %v4154_v33 }
   0xe   :  { %v4137_v37 = vld [vmem:[%s9477_s1 + $0x180] sm:$0xf]  ;;  %v5935_v39 = vld [vmem:[%s9477_s1 + $0x18c] sm:$0xf0]  ;;  %v4010_v44 = vor.u32 %v5903_v36, %v4009_v35  ;;  %2535 = vmatpush.bf16.msra.mxu2 %v4282_v34 }
   0xf   :  { %v4265_v40 = vld [vmem:[%s9477_s1 + $0x280] sm:$0xf]  ;;  %v5967_v41 = vld [vmem:[%s9477_s1 + $0x28c] sm:$0xf0]  ;;  %v4138_v45 = vor.u32 %v5935_v39, %v4137_v37  ;;  %2548 = vmatpush.bf16.msra.mxu3 %v4410_v38 }
  0x10   :  { %v4393_v42 = vld [vmem:[%s9477_s1 + $0x380] sm:$0xf]  ;;  %v5999_v43 = vld [vmem:[%s9477_s1 + $0x38c] sm:$0xf0]  ;;  %v4266_v46 = vor.u32 %v5967_v41, %v4265_v40  ;;  %2510 = vmatpush.bf16.msra.mxu0 %v4010_v44 }
  0x11   :  { %v3993_v47 = vld [vmem:[%s9477_s1 + $0x60] sm:$0xf]  ;;  %v5899_v48 = vld [vmem:[%s9477_s1 + $0x6c] sm:$0xf0]  ;;  %v4394_v50 = vor.u32 %v5999_v43, %v4393_v42  ;;  %2523 = vmatpush.bf16.msra.mxu1 %v4138_v45 }
  0x12   :  { %v4121_v49 = vld [vmem:[%s9477_s1 + $0x160] sm:$0xf]  ;;  %v5931_v51 = vld [vmem:[%s9477_s1 + $0x16c] sm:$0xf0]  ;;  %v3994_v56 = vor.u32 %v5899_v48, %v3993_v47  ;;  %2536 = vmatpush.bf16.msra.mxu2 %v4266_v46 }
  0x13   :  { %v4249_v52 = vld [vmem:[%s9477_s1 + $0x260] sm:$0xf]  ;;  %v5963_v53 = vld [vmem:[%s9477_s1 + $0x26c] sm:$0xf0]  ;;  %v4122_v57 = vor.u32 %v5931_v51, %v4121_v49  ;;  %2549 = vmatpush.bf16.msra.mxu3 %v4394_v50 }
  0x14   :  { %v4377_v54 = vld [vmem:[%s9477_s1 + $0x360] sm:$0xf]  ;;  %v5995_v55 = vld [vmem:[%s9477_s1 + $0x36c] sm:$0xf0]  ;;  %v4250_v58 = vor.u32 %v5963_v53, %v4249_v52  ;;  %2511 = vmatpush.bf16.msra.mxu0 %v3994_v56 }
  0x15   :  { %v3977_v59 = vld [vmem:[%s9477_s1 + $0x40] sm:$0xf]  ;;  %v5895_v60 = vld [vmem:[%s9477_s1 + $0x4c] sm:$0xf0]  ;;  %v4378_v62 = vor.u32 %v5995_v55, %v4377_v54  ;;  %2524 = vmatpush.bf16.msra.mxu1 %v4122_v57 }
  0x16   :  { %v4105_v61 = vld [vmem:[%s9477_s1 + $0x140] sm:$0xf]  ;;  %v5927_v63 = vld [vmem:[%s9477_s1 + $0x14c] sm:$0xf0]  ;;  %v3978_v4 = vor.u32 %v5895_v60, %v3977_v59  ;;  %2537 = vmatpush.bf16.msra.mxu2 %v4250_v58  ;;  %v42_v58 = vld [vmem:[%s9478_s0 + $0x8] sm:$0xff] }
  0x17   :  { %v4233_v0 = vld [vmem:[%s9477_s1 + $0x240] sm:$0xf]  ;;  %v5959_v1 = vld [vmem:[%s9477_s1 + $0x24c] sm:$0xf0]  ;;  %v4106_v5 = vor.u32 %v5927_v63, %v4105_v61  ;;  %2550 = vmatpush.bf16.msra.mxu3 %v4378_v62  ;;  %v467_v63 = vunpack.c.l.b16 %v42_v58 }
  0x18   :  { %v4361_v2 = vld [vmem:[%s9477_s1 + $0x340] sm:$0xf]  ;;  %v5991_v3 = vld [vmem:[%s9477_s1 + $0x34c] sm:$0xf0]  ;;  %v4234_v6 = vor.u32 %v5959_v1, %v4233_v0  ;;  %2512 = vmatpush.bf16.msra.mxu0 %v3978_v4  ;;  %v468_v0 = vunpack.c.h.b16 %v42_v58 }
  0x19   :  { %v3961_v7 = vld [vmem:[%s9477_s1 + $0x20] sm:$0xf]  ;;  %v5891_v8 = vld [vmem:[%s9477_s1 + $0x2c] sm:$0xf0]  ;;  %v4362_v10 = vor.u32 %v5991_v3, %v4361_v2  ;;  %2525 = vmatpush.bf16.msra.mxu1 %v4106_v5  ;;  %v6705_v4 = vpack.c.b16 %v467_v63, %v467_v63 }
  0x1a   :  { %v4089_v9 = vld [vmem:[%s9477_s1 + $0x120] sm:$0xf]  ;;  %v5923_v11 = vld [vmem:[%s9477_s1 + $0x12c] sm:$0xf0]  ;;  %v3962_v16 = vor.u32 %v5891_v8, %v3961_v7  ;;  %2538 = vmatpush.bf16.msra.mxu2 %v4234_v6  ;;  %v6710_v6 = vpack.c.b16 %v468_v0, %v468_v0 }
  0x1b   :  { %v4217_v12 = vld [vmem:[%s9477_s1 + $0x220] sm:$0xf]  ;;  %v5955_v13 = vld [vmem:[%s9477_s1 + $0x22c] sm:$0xf0]  ;;  %v4090_v19 = vor.u32 %v5923_v11, %v4089_v9  ;;  %2551 = vmatpush.bf16.msra.mxu3 %v4362_v10 }
  0x1c   :  { %v4345_v14 = vld [vmem:[%s9477_s1 + $0x320] sm:$0xf]  ;;  %v5987_v15 = vld [vmem:[%s9477_s1 + $0x32c] sm:$0xf0]  ;;  %v4218_v20 = vor.u32 %v5955_v13, %v4217_v12  ;;  %2513 = vmatpush.bf16.msra.mxu0 %v3962_v16 }
  0x1d   :  { %v3945_v17 = vld [vmem:[%s9477_s1] sm:$0xf]  ;;  %v5887_v18 = vld [vmem:[%s9477_s1 + $0xc] sm:$0xf0]  ;;  %v4346_v24 = vor.u32 %v5987_v15, %v4345_v14  ;;  %2526 = vmatpush.bf16.msra.mxu1 %v4090_v19 }
  0x1e   :  { %v4073_v21 = vld [vmem:[%s9477_s1 + $0x100] sm:$0xf]  ;;  %v5919_v22 = vld [vmem:[%s9477_s1 + $0x10c] sm:$0xf0]  ;;  %v3946_v31 = vor.u32 %v5887_v18, %v3945_v17  ;;  %2539 = vmatpush.bf16.msra.mxu2 %v4218_v20 }
  0x1f   :  { %v4201_v23 = vld [vmem:[%s9477_s1 + $0x200] sm:$0xf]  ;;  %v5951_v25 = vld [vmem:[%s9477_s1 + $0x20c] sm:$0xf0]  ;;  %v4074_v35 = vor.u32 %v5919_v22, %v4073_v21  ;;  %2552 = vmatpush.bf16.msra.mxu3 %v4346_v24 }
  0x20   :  { %v4329_v26 = vld [vmem:[%s9477_s1 + $0x300] sm:$0xf]  ;;  %v5983_v27 = vld [vmem:[%s9477_s1 + $0x30c] sm:$0xf0]  ;;  %v4202_v36 = vor.u32 %v5951_v25, %v4201_v23  ;;  %2514 = vmatpush.bf16.msra.mxu0 %v3946_v31 }
  0x21   :  { %v4569_v28 = vld [vmem:[%s9477_s1 + $0x4e0] sm:$0xf]  ;;  %v6043_v29 = vld [vmem:[%s9477_s1 + $0x4ec] sm:$0xf0]  ;;  %v4330_v39 = vor.u32 %v5983_v27, %v4329_v26  ;;  %2527 = vmatpush.bf16.msra.mxu1 %v4074_v35 }
  0x22   :  { %v4697_v30 = vld [vmem:[%s9477_s1 + $0x5e0] sm:$0xf]  ;;  %v6075_v32 = vld [vmem:[%s9477_s1 + $0x5ec] sm:$0xf0]  ;;  %v4570_v40 = vor.u32 %v6043_v29, %v4569_v28  ;;  %2540 = vmatpush.bf16.msra.mxu2 %v4202_v36 }
  0x23   :  { %v4825_v33 = vld [vmem:[%s9477_s1 + $0x6e0] sm:$0xf]  ;;  %v6107_v34 = vld [vmem:[%s9477_s1 + $0x6ec] sm:$0xf0]  ;;  %v4698_v41 = vor.u32 %v6075_v32, %v4697_v30  ;;  %2553 = vmatpush.bf16.msra.mxu3 %v4330_v39 }
  0x24   :  { %v4953_v37 = vld [vmem:[%s9477_s1 + $0x7e0] sm:$0xf]  ;;  %v6139_v38 = vld [vmem:[%s9477_s1 + $0x7ec] sm:$0xf0]  ;;  %v4826_v42 = vor.u32 %v6107_v34, %v4825_v33  ;;  %2559 = vmatpush.bf16.msrb.mxu0 %v4570_v40 }
  0x25   :  { %v4553_v43 = vld [vmem:[%s9477_s1 + $0x4c0] sm:$0xf]  ;;  %v6039_v44 = vld [vmem:[%s9477_s1 + $0x4cc] sm:$0xf0]  ;;  %v4954_v46 = vor.u32 %v6139_v38, %v4953_v37  ;;  %2572 = vmatpush.bf16.msrb.mxu1 %v4698_v41  ;;  %2541 = vmatmul.bf16.vlgmr.msra.gmra.mxu2 %v6705_v4 }
  0x26   :  { %v4681_v45 = vld [vmem:[%s9477_s1 + $0x5c0] sm:$0xf]  ;;  %v6071_v47 = vld [vmem:[%s9477_s1 + $0x5cc] sm:$0xf0]  ;;  %v4554_v52 = vor.u32 %v6039_v44, %v4553_v43  ;;  %2585 = vmatpush.bf16.msrb.mxu2 %v4826_v42  ;;  %2554 = vmatmul.bf16.vlgmr.msra.gmra.mxu3 %v6710_v6 }
  0x27   :  { %v4809_v48 = vld [vmem:[%s9477_s1 + $0x6c0] sm:$0xf]  ;;  %v6103_v49 = vld [vmem:[%s9477_s1 + $0x6cc] sm:$0xf0]  ;;  %v4682_v54 = vor.u32 %v6071_v47, %v4681_v45  ;;  %2598 = vmatpush.bf16.msrb.mxu3 %v4954_v46 }
  0x28   :  { %v4937_v50 = vld [vmem:[%s9477_s1 + $0x7c0] sm:$0xf]  ;;  %v6135_v51 = vld [vmem:[%s9477_s1 + $0x7cc] sm:$0xf0]  ;;  %v4810_v55 = vor.u32 %v6103_v49, %v4809_v48  ;;  %2560 = vmatpush.bf16.msrb.mxu0 %v4554_v52 }
  0x29   :  { %v4537_v53 = vld [vmem:[%s9477_s1 + $0x4a0] sm:$0xf]  ;;  %v6035_v56 = vld [vmem:[%s9477_s1 + $0x4ac] sm:$0xf0]  ;;  %v4938_v59 = vor.u32 %v6135_v51, %v4937_v50  ;;  %2573 = vmatpush.bf16.msrb.mxu1 %v4682_v54 }
  0x2a   :  { %v4665_v57 = vld [vmem:[%s9477_s1 + $0x5a0] sm:$0xf]  ;;  %v6067_v60 = vld [vmem:[%s9477_s1 + $0x5ac] sm:$0xf0]  ;;  %v4538_v3 = vor.u32 %v6035_v56, %v4537_v53  ;;  %2586 = vmatpush.bf16.msrb.mxu2 %v4810_v55 }
  0x2b   :  { %v4793_v61 = vld [vmem:[%s9477_s1 + $0x6a0] sm:$0xf]  ;;  %v6099_v62 = vld [vmem:[%s9477_s1 + $0x6ac] sm:$0xf0]  ;;  %v4666_v7 = vor.u32 %v6067_v60, %v4665_v57  ;;  %2599 = vmatpush.bf16.msrb.mxu3 %v4938_v59 }
  0x2c   :  { %v4921_v1 = vld [vmem:[%s9477_s1 + $0x7a0] sm:$0xf]  ;;  %v6131_v2 = vld [vmem:[%s9477_s1 + $0x7ac] sm:$0xf0]  ;;  %v4794_v8 = vor.u32 %v6099_v62, %v4793_v61  ;;  %2561 = vmatpush.bf16.msrb.mxu0 %v4538_v3  ;;  %v44_v3 = vld [vmem:[%s9478_s0 + $0x18] sm:$0xff] }
  0x2d   :  { %v41_v5 = vld [vmem:[%s9478_s0] sm:$0xff]  ;;  %v6031_v10 = vld [vmem:[%s9477_s1 + $0x48c] sm:$0xf0]  ;;  %v4922_v14 = vor.u32 %v6131_v2, %v4921_v1  ;;  %2574 = vmatpush.bf16.msrb.mxu1 %v4666_v7 }
  0x2e   :  { %v4521_v9 = vld [vmem:[%s9477_s1 + $0x480] sm:$0xf]  ;;  %v465_v12 = vunpack.c.l.b16 %v41_v5  ;;  %v466_v13 = vunpack.c.h.b16 %v41_v5  ;;  %v6063_v15 = vld [vmem:[%s9477_s1 + $0x58c] sm:$0xf0]  ;;  %2587 = vmatpush.bf16.msrb.mxu2 %v4794_v8 }
  0x2f   :  { %v4649_v11 = vld [vmem:[%s9477_s1 + $0x580] sm:$0xf]  ;;  %v6095_v17 = vld [vmem:[%s9477_s1 + $0x68c] sm:$0xf0]  ;;  %v4522_v22 = vor.u32 %v6031_v10, %v4521_v9  ;;  %2600 = vmatpush.bf16.msrb.mxu3 %v4922_v14 }
  0x30   :  { %v4777_v16 = vld [vmem:[%s9477_s1 + $0x680] sm:$0xf]  ;;  %v6127_v19 = vld [vmem:[%s9477_s1 + $0x78c] sm:$0xf0]  ;;  %v6737_v20 = vpack.c.b16 %v465_v12, %v465_v12  ;;  %v6740_v21 = vpack.c.b16 %v466_v13, %v466_v13  ;;  %v4650_v23 = vor.u32 %v6063_v15, %v4649_v11 }
  0x31   :  { %v4905_v18 = vld [vmem:[%s9477_s1 + $0x780] sm:$0xf]  ;;  %v4778_v24 = vor.u32 %v6095_v17, %v4777_v16  ;;  %v6027_v26 = vld [vmem:[%s9477_s1 + $0x46c] sm:$0xf0]  ;;  %2562 = vmatpush.bf16.msrb.mxu0 %v4522_v22  ;;  %v471_v17 = vunpack.c.l.b16 %v44_v3 }
  0x32   :  { %v4505_v25 = vld [vmem:[%s9477_s1 + $0x460] sm:$0xf]  ;;  %v4906_v28 = vor.u32 %v6127_v19, %v4905_v18  ;;  %v6059_v29 = vld [vmem:[%s9477_s1 + $0x56c] sm:$0xf0]  ;;  %2515 = vmatmul.bf16.vlgmr.msra.gmra.mxu0 %v6737_v20  ;;  %2528 = vmatmul.bf16.vlgmr.msra.gmra.mxu1 %v6740_v21 }
  0x33   :  { %v4633_v27 = vld [vmem:[%s9477_s1 + $0x560] sm:$0xf]  ;;  %v6091_v31 = vld [vmem:[%s9477_s1 + $0x66c] sm:$0xf0]  ;;  %v4506_v34 = vor.u32 %v6027_v26, %v4505_v25  ;;  %2575 = vmatpush.bf16.msrb.mxu1 %v4650_v23  ;;  %2588 = vmatpush.bf16.msrb.mxu2 %v4778_v24  ;;  %v472_v25 = vunpack.c.h.b16 %v44_v3 }
  0x34   :  { %v4761_v30 = vld [vmem:[%s9477_s1 + $0x660] sm:$0xf]  ;;  %v6123_v33 = vld [vmem:[%s9477_s1 + $0x76c] sm:$0xf0]  ;;  %v4634_v35 = vor.u32 %v6059_v29, %v4633_v27  ;;  %2601 = vmatpush.bf16.msrb.mxu3 %v4906_v28 }
  0x35   :  { %v4889_v32 = vld [vmem:[%s9477_s1 + $0x760] sm:$0xf]  ;;  %v4762_v36 = vor.u32 %v6091_v31, %v4761_v30  ;;  %v6023_v38 = vld [vmem:[%s9477_s1 + $0x44c] sm:$0xf0]  ;;  %2563 = vmatpush.bf16.msrb.mxu0 %v4506_v34 }
  0x36   :  { %v4489_v37 = vld [vmem:[%s9477_s1 + $0x440] sm:$0xf]  ;;  %v4890_v40 = vor.u32 %v6123_v33, %v4889_v32  ;;  %v6055_v41 = vld [vmem:[%s9477_s1 + $0x54c] sm:$0xf0] }
  0x37   :  { %v4617_v39 = vld [vmem:[%s9477_s1 + $0x540] sm:$0xf]  ;;  %v6087_v43 = vld [vmem:[%s9477_s1 + $0x64c] sm:$0xf0]  ;;  %v4490_v46 = vor.u32 %v6023_v38, %v4489_v37  ;;  %2576 = vmatpush.bf16.msrb.mxu1 %v4634_v35  ;;  %2589 = vmatpush.bf16.msrb.mxu2 %v4762_v36  ;;  %v6888_v38 = vpack.c.b16 %v471_v17, %v471_v17 }
  0x38   :  { %v4745_v42 = vld [vmem:[%s9477_s1 + $0x640] sm:$0xf]  ;;  %v6119_v45 = vld [vmem:[%s9477_s1 + $0x74c] sm:$0xf0]  ;;  %v4618_v47 = vor.u32 %v6055_v41, %v4617_v39  ;;  %2602 = vmatpush.bf16.msrb.mxu3 %v4890_v40 }
  0x39   :  { %v4873_v44 = vld [vmem:[%s9477_s1 + $0x740] sm:$0xf]  ;;  %v4746_v48 = vor.u32 %v6087_v43, %v4745_v42  ;;  %v6019_v50 = vld [vmem:[%s9477_s1 + $0x42c] sm:$0xf0]  ;;  %2564 = vmatpush.bf16.msrb.mxu0 %v4490_v46  ;;  %v6898_v42 = vpack.c.b16 %v472_v25, %v472_v25 }
  0x3a   :  { %v4473_v49 = vld [vmem:[%s9477_s1 + $0x420] sm:$0xf]  ;;  %v4874_v52 = vor.u32 %v6119_v45, %v4873_v44  ;;  %v6051_v53 = vld [vmem:[%s9477_s1 + $0x52c] sm:$0xf0] }
  0x3b   :  { %v4601_v51 = vld [vmem:[%s9477_s1 + $0x520] sm:$0xf]  ;;  %v6083_v55 = vld [vmem:[%s9477_s1 + $0x62c] sm:$0xf0]  ;;  %v4474_v59 = vor.u32 %v6019_v50, %v4473_v49  ;;  %2577 = vmatpush.bf16.msrb.mxu1 %v4618_v47  ;;  %2590 = vmatpush.bf16.msrb.mxu2 %v4746_v48 }
  0x3c   :  { %v4729_v54 = vld [vmem:[%s9477_s1 + $0x620] sm:$0xf]  ;;  %v6115_v57 = vld [vmem:[%s9477_s1 + $0x72c] sm:$0xf0]  ;;  %v4602_v63 = vor.u32 %v6051_v53, %v4601_v51  ;;  %2603 = vmatpush.bf16.msrb.mxu3 %v4874_v52 }
  0x3d   :  { %v4857_v56 = vld [vmem:[%s9477_s1 + $0x720] sm:$0xf]  ;;  %v6015_v60 = vld [vmem:[%s9477_s1 + $0x40c] sm:$0xf0]  ;;  %v4730_v0 = vor.u32 %v6083_v55, %v4729_v54  ;;  %2565 = vmatpush.bf16.msrb.mxu0 %v4474_v59 }
  0x3e   :  { %v4457_v58 = vld [vmem:[%s9477_s1 + $0x400] sm:$0xf]  ;;  %v6047_v62 = vld [vmem:[%s9477_s1 + $0x50c] sm:$0xf0]  ;;  %v4858_v5 = vor.u32 %v6115_v57, %v4857_v56 }
  0x3f   :  { %v4585_v61 = vld [vmem:[%s9477_s1 + $0x500] sm:$0xf]  ;;  %v6079_v2 = vld [vmem:[%s9477_s1 + $0x60c] sm:$0xf0]  ;;  %v4458_v13 = vor.u32 %v6015_v60, %v4457_v58  ;;  %2578 = vmatpush.bf16.msrb.mxu1 %v4602_v63  ;;  %2591 = vmatpush.bf16.msrb.mxu2 %v4730_v0 }
  0x40   :  { %v4713_v1 = vld [vmem:[%s9477_s1 + $0x600] sm:$0xf]  ;;  %v6111_v8 = vld [vmem:[%s9477_s1 + $0x70c] sm:$0xf0]  ;;  %v4586_v18 = vor.u32 %v6047_v62, %v4585_v61  ;;  %2604 = vmatpush.bf16.msrb.mxu3 %v4858_v5 }
  0x41   :  { %v4841_v7 = vld [vmem:[%s9477_s1 + $0x700] sm:$0xf]  ;;  %v43_v9 = vld [vmem:[%s9478_s0 + $0x10] sm:$0xff]  ;;  %v4714_v19 = vor.u32 %v6079_v2, %v4713_v1  ;;  %2566 = vmatpush.bf16.msrb.mxu0 %v4458_v13 }
  0x42   :  { %v5081_v10 = vld [vmem:[%s9477_s1 + $0x8e0] sm:$0xf]  ;;  %v6171_v11 = vld [vmem:[%s9477_s1 + $0x8ec] sm:$0xf0]  ;;  %v469_v24 = vunpack.c.l.b16 %v43_v9  ;;  %v4842_v26 = vor.u32 %v6111_v8, %v4841_v7  ;;  %v470_v28 = vunpack.c.h.b16 %v43_v9 }
  0x43   :  { %v5209_v12 = vld [vmem:[%s9477_s1 + $0x9e0] sm:$0xf]  ;;  %v6203_v14 = vld [vmem:[%s9477_s1 + $0x9ec] sm:$0xf0]  ;;  %v5082_v27 = vor.u32 %v6171_v11, %v5081_v10  ;;  %2579 = vmatpush.bf16.msrb.mxu1 %v4586_v18  ;;  %2592 = vmatpush.bf16.msrb.mxu2 %v4714_v19 }
  0x44   :  { %v5337_v15 = vld [vmem:[%s9477_s1 + $0xae0] sm:$0xf]  ;;  %v6235_v16 = vld [vmem:[%s9477_s1 + $0xaec] sm:$0xf0]  ;;  %v5210_v29 = vor.u32 %v6203_v14, %v5209_v12  ;;  %v6896_v41 = vpack.c.b16 %v469_v24, %v469_v24  ;;  %2605 = vmatpush.bf16.msrb.mxu3 %v4842_v26  ;;  %v6900_v44 = vpack.c.b16 %v470_v28, %v470_v28 }
  0x45   :  { %v5465_v22 = vld [vmem:[%s9477_s1 + $0xbe0] sm:$0xf]  ;;  %v6267_v23 = vld [vmem:[%s9477_s1 + $0xbec] sm:$0xf0]  ;;  %v5338_v30 = vor.u32 %v6235_v16, %v5337_v15  ;;  %2611 = vmatpush.bf16.msra.mxu0 %v5082_v27 }
  0x46   :  { %v5065_v31 = vld [vmem:[%s9477_s1 + $0x8c0] sm:$0xf]  ;;  %v6167_v32 = vld [vmem:[%s9477_s1 + $0x8cc] sm:$0xf0]  ;;  %v5466_v34 = vor.u32 %v6267_v23, %v5465_v22  ;;  %2593 = vmatmul.bf16.vlgmr.msrb.gmra.mxu2 %v6888_v38  ;;  %2567 = vmatmul.bf16.vlgmr.msrb.gmra.mxu0 %v6896_v41 }
  0x47   :  { %v5193_v33 = vld [vmem:[%s9477_s1 + $0x9c0] sm:$0xf]  ;;  %v6199_v35 = vld [vmem:[%s9477_s1 + $0x9cc] sm:$0xf0]  ;;  %v5066_v43 = vor.u32 %v6167_v32, %v5065_v31  ;;  %2624 = vmatpush.bf16.msra.mxu1 %v5210_v29  ;;  %2637 = vmatpush.bf16.msra.mxu2 %v5338_v30 }
  0x48   :  { %v5321_v36 = vld [vmem:[%s9477_s1 + $0xac0] sm:$0xf]  ;;  %v6231_v37 = vld [vmem:[%s9477_s1 + $0xacc] sm:$0xf0]  ;;  %v5194_v45 = vor.u32 %v6199_v35, %v5193_v33  ;;  %2650 = vmatpush.bf16.msra.mxu3 %v5466_v34  ;;  %2580 = vmatmul.bf16.vlgmr.msrb.gmra.mxu1 %v6900_v44 }
  0x49   :  { %v5449_v39 = vld [vmem:[%s9477_s1 + $0xbc0] sm:$0xf]  ;;  %v6263_v40 = vld [vmem:[%s9477_s1 + $0xbcc] sm:$0xf0]  ;;  %v5322_v46 = vor.u32 %v6231_v37, %v5321_v36  ;;  %2606 = vmatmul.bf16.vlgmr.msrb.gmra.mxu3 %v6898_v42  ;;  %2612 = vmatpush.bf16.msra.mxu0 %v5066_v43 }
  0x4a   :  { %v5049_v47 = vld [vmem:[%s9477_s1 + $0x8a0] sm:$0xf]  ;;  %v6163_v48 = vld [vmem:[%s9477_s1 + $0x8ac] sm:$0xf0]  ;;  %v5450_v50 = vor.u32 %v6263_v40, %v5449_v39 }
  0x4b   :  { %v5177_v49 = vld [vmem:[%s9477_s1 + $0x9a0] sm:$0xf]  ;;  %v6195_v51 = vld [vmem:[%s9477_s1 + $0x9ac] sm:$0xf0]  ;;  %v5050_v56 = vor.u32 %v6163_v48, %v5049_v47  ;;  %2625 = vmatpush.bf16.msra.mxu1 %v5194_v45  ;;  %2638 = vmatpush.bf16.msra.mxu2 %v5322_v46 }
  0x4c   :  { %v5305_v52 = vld [vmem:[%s9477_s1 + $0xaa0] sm:$0xf]  ;;  %v6227_v53 = vld [vmem:[%s9477_s1 + $0xaac] sm:$0xf0]  ;;  %v5178_v57 = vor.u32 %v6195_v51, %v5177_v49  ;;  %2651 = vmatpush.bf16.msra.mxu3 %v5450_v50 }
  0x4d   :  { %v5433_v54 = vld [vmem:[%s9477_s1 + $0xba0] sm:$0xf]  ;;  %v6259_v55 = vld [vmem:[%s9477_s1 + $0xbac] sm:$0xf0]  ;;  %v5306_v58 = vor.u32 %v6227_v53, %v5305_v52  ;;  %2613 = vmatpush.bf16.msra.mxu0 %v5050_v56 }
  0x4e   :  { %v5033_v59 = vld [vmem:[%s9477_s1 + $0x880] sm:$0xf]  ;;  %v6159_v60 = vld [vmem:[%s9477_s1 + $0x88c] sm:$0xf0]  ;;  %v5434_v62 = vor.u32 %v6259_v55, %v5433_v54 }
  0x4f   :  { %v5161_v61 = vld [vmem:[%s9477_s1 + $0x980] sm:$0xf]  ;;  %v6191_v63 = vld [vmem:[%s9477_s1 + $0x98c] sm:$0xf0]  ;;  %v5034_v5 = vor.u32 %v6159_v60, %v5033_v59  ;;  %2626 = vmatpush.bf16.msra.mxu1 %v5178_v57  ;;  %2639 = vmatpush.bf16.msra.mxu2 %v5306_v58  ;;  %v46_v57 = vld [vmem:[%s9478_s0 + $0x28] sm:$0xff] }
  0x50   :  { %v5289_v0 = vld [vmem:[%s9477_s1 + $0xa80] sm:$0xf]  ;;  %v6223_v1 = vld [vmem:[%s9477_s1 + $0xa8c] sm:$0xf0]  ;;  %v5162_v7 = vor.u32 %v6191_v63, %v5161_v61  ;;  %2652 = vmatpush.bf16.msra.mxu3 %v5434_v62  ;;  %v5913_v63 = vld [vmem:[%s9477_s1 + $0xe4] sm:$0xf] }
  0x51   :  { %v5417_v2 = vld [vmem:[%s9477_s1 + $0xb80] sm:$0xf]  ;;  %v6255_v3 = vld [vmem:[%s9477_s1 + $0xb8c] sm:$0xf0]  ;;  %v5290_v8 = vor.u32 %v6223_v1, %v5289_v0  ;;  %2614 = vmatpush.bf16.msra.mxu0 %v5034_v5  ;;  %v4059_v0 = vld [vmem:[%s9477_s1 + $0xf0] sm:$0xf0] }
  0x52   :  { %v5017_v9 = vld [vmem:[%s9477_s1 + $0x860] sm:$0xf]  ;;  %v6155_v10 = vld [vmem:[%s9477_s1 + $0x86c] sm:$0xf0]  ;;  %v5418_v12 = vor.u32 %v6255_v3, %v5417_v2  ;;  %v5945_v3 = vld [vmem:[%s9477_s1 + $0x1e4] sm:$0xf] }
  0x53   :  { %v5145_v11 = vld [vmem:[%s9477_s1 + $0x960] sm:$0xf]  ;;  %v6187_v13 = vld [vmem:[%s9477_s1 + $0x96c] sm:$0xf0]  ;;  %v5018_v18 = vor.u32 %v6155_v10, %v5017_v9  ;;  %2627 = vmatpush.bf16.msra.mxu1 %v5162_v7  ;;  %2640 = vmatpush.bf16.msra.mxu2 %v5290_v8  ;;  %v4187_v5 = vld [vmem:[%s9477_s1 + $0x1f0] sm:$0xf0]  ;;  %v475_v7 = vunpack.c.l.b16 %v46_v57 }
  0x54   :  { %v5273_v14 = vld [vmem:[%s9477_s1 + $0xa60] sm:$0xf]  ;;  %v6219_v15 = vld [vmem:[%s9477_s1 + $0xa6c] sm:$0xf0]  ;;  %v5146_v19 = vor.u32 %v6187_v13, %v5145_v11  ;;  %2653 = vmatpush.bf16.msra.mxu3 %v5418_v12  ;;  %v6009_v10 = vld [vmem:[%s9477_s1 + $0x3e4] sm:$0xf]  ;;  %v476_v13 = vunpack.c.h.b16 %v46_v57 }
  0x55   :  { %v5401_v16 = vld [vmem:[%s9477_s1 + $0xb60] sm:$0xf]  ;;  %v6251_v17 = vld [vmem:[%s9477_s1 + $0xb6c] sm:$0xf0]  ;;  %v5274_v22 = vor.u32 %v6219_v15, %v5273_v14  ;;  %2615 = vmatpush.bf16.msra.mxu0 %v5018_v18  ;;  %v4443_v11 = vld [vmem:[%s9477_s1 + $0x3f0] sm:$0xf0]  ;;  %v4062_v15 = vor.u32 %v5913_v63, %v4059_v0  ;;  %v4190_v18 = vor.u32 %v5945_v3, %v4187_v5 }
  0x56   :  { %v5001_v23 = vld [vmem:[%s9477_s1 + $0x840] sm:$0xf]  ;;  %v6151_v24 = vld [vmem:[%s9477_s1 + $0x84c] sm:$0xf0]  ;;  %v5402_v26 = vor.u32 %v6251_v17, %v5401_v16  ;;  %v4011_v57 = vld [vmem:[%s9477_s1 + $0x90] sm:$0xf0] }
  0x57   :  { %v5129_v25 = vld [vmem:[%s9477_s1 + $0x940] sm:$0xf]  ;;  %v6183_v27 = vld [vmem:[%s9477_s1 + $0x94c] sm:$0xf0]  ;;  %v5002_v32 = vor.u32 %v6151_v24, %v5001_v23  ;;  %2628 = vmatpush.bf16.msra.mxu1 %v5146_v19  ;;  %2641 = vmatpush.bf16.msra.mxu2 %v5274_v22  ;;  %v4446_v23 = vor.u32 %v6009_v10, %v4443_v11  ;;  %v7086_v24 = vpack.c.b16 %v475_v7, %v475_v7  ;;  %v4315_v63 = vld [vmem:[%s9477_s1 + $0x2f0] sm:$0xf0] }
  0x58   :  { %v5257_v28 = vld [vmem:[%s9477_s1 + $0xa40] sm:$0xf]  ;;  %v6215_v29 = vld [vmem:[%s9477_s1 + $0xa4c] sm:$0xf0]  ;;  %v5130_v33 = vor.u32 %v6183_v27, %v5129_v25  ;;  %2654 = vmatpush.bf16.msra.mxu3 %v5402_v26  ;;  %v5909_v25 = vld [vmem:[%s9477_s1 + $0xc4] sm:$0xf] }
  0x59   :  { %v5385_v30 = vld [vmem:[%s9477_s1 + $0xb40] sm:$0xf]  ;;  %v6247_v31 = vld [vmem:[%s9477_s1 + $0xb4c] sm:$0xf0]  ;;  %v5258_v34 = vor.u32 %v6215_v29, %v5257_v28  ;;  %2616 = vmatpush.bf16.msra.mxu0 %v5002_v32  ;;  %v4043_v26 = vld [vmem:[%s9477_s1 + $0xd0] sm:$0xf0]  ;;  %v7099_v29 = vpack.c.b16 %v476_v13, %v476_v13 }
  0x5a   :  { %v4985_v35 = vld [vmem:[%s9477_s1 + $0x820] sm:$0xf]  ;;  %v6147_v36 = vld [vmem:[%s9477_s1 + $0x82c] sm:$0xf0]  ;;  %v5386_v39 = vor.u32 %v6247_v31, %v5385_v30  ;;  %v5941_v27 = vld [vmem:[%s9477_s1 + $0x1c4] sm:$0xf] }
  0x5b   :  { %v5113_v37 = vld [vmem:[%s9477_s1 + $0x920] sm:$0xf]  ;;  %v6179_v40 = vld [vmem:[%s9477_s1 + $0x92c] sm:$0xf0]  ;;  %v4986_v49 = vor.u32 %v6147_v36, %v4985_v35  ;;  %2629 = vmatpush.bf16.msra.mxu1 %v5130_v33  ;;  %2642 = vmatpush.bf16.msra.mxu2 %v5258_v34  ;;  %v4171_v30 = vld [vmem:[%s9477_s1 + $0x1d0] sm:$0xf0]  ;;  %v4046_v35 = vor.u32 %v5909_v25, %v4043_v26 }
  0x5c   :  { %v5241_v43 = vld [vmem:[%s9477_s1 + $0xa20] sm:$0xf]  ;;  %v6211_v45 = vld [vmem:[%s9477_s1 + $0xa2c] sm:$0xf0]  ;;  %v5114_v53 = vor.u32 %v6179_v40, %v5113_v37  ;;  %2655 = vmatpush.bf16.msra.mxu3 %v5386_v39  ;;  %v6005_v31 = vld [vmem:[%s9477_s1 + $0x3c4] sm:$0xf]  ;;  %v4174_v39 = vor.u32 %v5941_v27, %v4171_v30 }
  0x5d   :  { %v5369_v46 = vld [vmem:[%s9477_s1 + $0xb20] sm:$0xf]  ;;  %v6243_v47 = vld [vmem:[%s9477_s1 + $0xb2c] sm:$0xf0]  ;;  %v5242_v54 = vor.u32 %v6211_v45, %v5241_v43  ;;  %2617 = vmatpush.bf16.msra.mxu0 %v4986_v49  ;;  %v4427_v32 = vld [vmem:[%s9477_s1 + $0x3d0] sm:$0xf0] }
  0x5e   :  { %v4969_v48 = vld [vmem:[%s9477_s1 + $0x800] sm:$0xf]  ;;  %v6143_v50 = vld [vmem:[%s9477_s1 + $0x80c] sm:$0xf0]  ;;  %v5370_v58 = vor.u32 %v6243_v47, %v5369_v46  ;;  %v4430_v40 = vor.u32 %v6005_v31, %v4427_v32  ;;  %v5905_v43 = vld [vmem:[%s9477_s1 + $0xa4] sm:$0xf] }
  0x5f   :  { %v5097_v51 = vld [vmem:[%s9477_s1 + $0x900] sm:$0xf]  ;;  %v6175_v52 = vld [vmem:[%s9477_s1 + $0x90c] sm:$0xf0]  ;;  %v4970_v1 = vor.u32 %v6143_v50, %v4969_v48  ;;  %2630 = vmatpush.bf16.msra.mxu1 %v5114_v53  ;;  %2643 = vmatpush.bf16.msra.mxu2 %v5242_v54  ;;  %v4027_v45 = vld [vmem:[%s9477_s1 + $0xb0] sm:$0xf0] }
  0x60   :  { %v5225_v55 = vld [vmem:[%s9477_s1 + $0xa00] sm:$0xf]  ;;  %v6207_v56 = vld [vmem:[%s9477_s1 + $0xa0c] sm:$0xf0]  ;;  %v5098_v8 = vor.u32 %v6175_v52, %v5097_v51  ;;  %2656 = vmatpush.bf16.msra.mxu3 %v5370_v58  ;;  %v5937_v46 = vld [vmem:[%s9477_s1 + $0x1a4] sm:$0xf]  ;;  %v4030_v51 = vor.u32 %v5905_v43, %v4027_v45 }
  0x61   :  { %v5353_v59 = vld [vmem:[%s9477_s1 + $0xb00] sm:$0xf]  ;;  %v6239_v60 = vld [vmem:[%s9477_s1 + $0xb0c] sm:$0xf0]  ;;  %v5226_v9 = vor.u32 %v6207_v56, %v5225_v55  ;;  %2618 = vmatpush.bf16.msra.mxu0 %v4970_v1  ;;  %v4155_v47 = vld [vmem:[%s9477_s1 + $0x1b0] sm:$0xf0] }
  0x62   :  { %v45_v61 = vld [vmem:[%s9478_s0 + $0x20] sm:$0xff]  ;;  %v6283_v2 = vld [vmem:[%s9477_s1 + $0xc6c] sm:$0xf0]  ;;  %v5354_v14 = vor.u32 %v6239_v60, %v5353_v59  ;;  %v4411_v49 = vld [vmem:[%s9477_s1 + $0x3b0] sm:$0xf0]  ;;  %v4158_v54 = vor.u32 %v5937_v46, %v4155_v47 }
  0x63   :  { %v5529_v62 = vld [vmem:[%s9477_s1 + $0xc60] sm:$0xf]  ;;  %v473_v12 = vunpack.c.l.b16 %v45_v61  ;;  %v474_v16 = vunpack.c.h.b16 %v45_v61  ;;  %v6279_v22 = vld [vmem:[%s9477_s1 + $0xc4c] sm:$0xf0]  ;;  %2631 = vmatpush.bf16.msra.mxu1 %v5098_v8  ;;  %2644 = vmatpush.bf16.msra.mxu2 %v5226_v9  ;;  %v6001_v48 = vld [vmem:[%s9477_s1 + $0x3a4] sm:$0xf] }
  0x64   :  { %v5530_v17 = vor.u32 %v6283_v2, %v5529_v62  ;;  %v5513_v19 = vld [vmem:[%s9477_s1 + $0xc40] sm:$0xf]  ;;  %2657 = vmatpush.bf16.msra.mxu3 %v5354_v14  ;;  %v6275_v37 = vld [vmem:[%s9477_s1 + $0xc2c] sm:$0xf0]  ;;  %v4414_v55 = vor.u32 %v6001_v48, %v4411_v49  ;;  %v5901_v56 = vld [vmem:[%s9477_s1 + $0x84] sm:$0xf] }
  0x65   :  { %v7097_v28 = vpack.c.b16 %v473_v12, %v473_v12  ;;  %v7110_v33 = vpack.c.b16 %v474_v16, %v474_v16  ;;  %v5514_v34 = vor.u32 %v6279_v22, %v5513_v19  ;;  %v5497_v36 = vld [vmem:[%s9477_s1 + $0xc20] sm:$0xf]  ;;  %2715 = vmatpush.bf16.msrb.mxu0 %v4446_v23  ;;  %v6271_v53 = vld [vmem:[%s9477_s1 + $0xc0c] sm:$0xf0]  ;;  %v5933_v58 = vld [vmem:[%s9477_s1 + $0x184] sm:$0xf]  ;;  %v4014_v1 = vor.u32 %v5901_v56, %v4011_v57 }
  0x66   :  { %2645 = vmatmul.bf16.vlgmr.msra.gmra.mxu2 %v7086_v24  ;;  %v5498_v50 = vor.u32 %v6275_v37, %v5497_v36  ;;  %v5481_v52 = vld [vmem:[%s9477_s1 + $0xc00] sm:$0xf]  ;;  %v4139_v59 = vld [vmem:[%s9477_s1 + $0x190] sm:$0xf0]  ;;  %v5997_v60 = vld [vmem:[%s9477_s1 + $0x384] sm:$0xf] }
  0x67   :  { %2676 = vmatpush.bf16.msrb.mxu1 %v4062_v15  ;;  %2689 = vmatpush.bf16.msrb.mxu2 %v4190_v18  ;;  %v4395_v61 = vld [vmem:[%s9477_s1 + $0x390] sm:$0xf0]  ;;  %v5977_v62 = vld [vmem:[%s9477_s1 + $0x2e4] sm:$0xf]  ;;  %v5482_v0 = vor.u32 %v6271_v53, %v5481_v52  ;;  %v47_v2 = vld [vmem:[%s9478_s0 + $0x30] sm:$0xf]  ;;  %v4142_v3 = vor.u32 %v5933_v58, %v4139_v59 }
  0x68   :  { %2667 = vmatpush.bf16.msrb.mxu3 %v5530_v17  ;;  %2619 = vmatmul.bf16.vlgmr.msra.gmra.mxu0 %v7097_v28  ;;  %v4398_v5 = vor.u32 %v5997_v60, %v4395_v61  ;;  %v5897_v7 = vld [vmem:[%s9477_s1 + $0x64] sm:$0xf]  ;;  %v3995_v8 = vld [vmem:[%s9477_s1 + $0x70] sm:$0xf0]  ;;  %v4318_v10 = vor.u32 %v5977_v62, %v4315_v63  ;;  %v477_v16 = vunpack.c.l.b16 %v47_v2 }
  0x69   :  { %2658 = vmatmul.bf16.vlgmr.msra.gmra.mxu3 %v7099_v29  ;;  %2632 = vmatmul.bf16.vlgmr.msra.gmra.mxu1 %v7110_v33  ;;  %v5929_v9 = vld [vmem:[%s9477_s1 + $0x164] sm:$0xf]  ;;  %v4123_v11 = vld [vmem:[%s9477_s1 + $0x170] sm:$0xf0]  ;;  %v3998_v17 = vor.u32 %v5897_v7, %v3995_v8 }
  0x6a   :  { %2716 = vmatpush.bf16.msrb.mxu0 %v4430_v40  ;;  %v5993_v12 = vld [vmem:[%s9477_s1 + $0x364] sm:$0xf]  ;;  %v4379_v13 = vld [vmem:[%s9477_s1 + $0x370] sm:$0xf0]  ;;  %v4126_v18 = vor.u32 %v5929_v9, %v4123_v11  ;;  %v7215_v32 = vpack.c.b16 %v477_v16, %v477_v16 }
  0x6b   :  { %2677 = vmatpush.bf16.msrb.mxu1 %v4046_v35  ;;  %2690 = vmatpush.bf16.msrb.mxu2 %v4174_v39  ;;  %v5973_v14 = vld [vmem:[%s9477_s1 + $0x2c4] sm:$0xf]  ;;  %v4299_v15 = vld [vmem:[%s9477_s1 + $0x2d0] sm:$0xf0]  ;;  %v4382_v19 = vor.u32 %v5993_v12, %v4379_v13 }
  0x6c   :  { %2668 = vmatpush.bf16.msrb.mxu3 %v5514_v34  ;;  %v5893_v22 = vld [vmem:[%s9477_s1 + $0x44] sm:$0xf]  ;;  %v3979_v23 = vld [vmem:[%s9477_s1 + $0x50] sm:$0xf0]  ;;  %v4302_v26 = vor.u32 %v5973_v14, %v4299_v15 }
  0x6d   :  { %v5925_v25 = vld [vmem:[%s9477_s1 + $0x144] sm:$0xf]  ;;  %v4107_v27 = vld [vmem:[%s9477_s1 + $0x150] sm:$0xf0]  ;;  %v3982_v36 = vor.u32 %v5893_v22, %v3979_v23 }
  0x6e   :  { %2717 = vmatpush.bf16.msrb.mxu0 %v4414_v55  ;;  %v5989_v30 = vld [vmem:[%s9477_s1 + $0x344] sm:$0xf]  ;;  %v4363_v31 = vld [vmem:[%s9477_s1 + $0x350] sm:$0xf0]  ;;  %v4110_v37 = vor.u32 %v5925_v25, %v4107_v27 }
  0x6f   :  { %2678 = vmatpush.bf16.msrb.mxu1 %v4030_v51  ;;  %2691 = vmatpush.bf16.msrb.mxu2 %v4158_v54  ;;  %v5969_v34 = vld [vmem:[%s9477_s1 + $0x2a4] sm:$0xf]  ;;  %v4283_v35 = vld [vmem:[%s9477_s1 + $0x2b0] sm:$0xf0]  ;;  %v4366_v39 = vor.u32 %v5989_v30, %v4363_v31 }
  0x70   :  { %2669 = vmatpush.bf16.msrb.mxu3 %v5498_v50  ;;  %v5889_v40 = vld [vmem:[%s9477_s1 + $0x24] sm:$0xf]  ;;  %v3963_v43 = vld [vmem:[%s9477_s1 + $0x30] sm:$0xf0]  ;;  %v4286_v46 = vor.u32 %v5969_v34, %v4283_v35 }
  0x71   :  { %v5921_v45 = vld [vmem:[%s9477_s1 + $0x124] sm:$0xf]  ;;  %v4091_v47 = vld [vmem:[%s9477_s1 + $0x130] sm:$0xf0]  ;;  %v3966_v52 = vor.u32 %v5889_v40, %v3963_v43 }
  0x72   :  { %2718 = vmatpush.bf16.msrb.mxu0 %v4398_v5  ;;  %v5985_v48 = vld [vmem:[%s9477_s1 + $0x324] sm:$0xf]  ;;  %v4347_v49 = vld [vmem:[%s9477_s1 + $0x330] sm:$0xf0]  ;;  %v4094_v55 = vor.u32 %v5921_v45, %v4091_v47 }
  0x73   :  { %2679 = vmatpush.bf16.msrb.mxu1 %v4014_v1  ;;  %2692 = vmatpush.bf16.msrb.mxu2 %v4142_v3  ;;  %v5965_v50 = vld [vmem:[%s9477_s1 + $0x284] sm:$0xf]  ;;  %v4267_v51 = vld [vmem:[%s9477_s1 + $0x290] sm:$0xf0]  ;;  %v4350_v56 = vor.u32 %v5985_v48, %v4347_v49 }
  0x74   :  { %2670 = vmatpush.bf16.msrb.mxu3 %v5482_v0  ;;  %v5885_v53 = vld [vmem:[%s9477_s1 + $0x4] sm:$0xf]  ;;  %v3947_v54 = vld [vmem:[%s9477_s1 + $0x10] sm:$0xf0]  ;;  %v4270_v60 = vor.u32 %v5965_v50, %v4267_v51 }
  0x75   :  { %v5917_v57 = vld [vmem:[%s9477_s1 + $0x104] sm:$0xf]  ;;  %v4075_v58 = vld [vmem:[%s9477_s1 + $0x110] sm:$0xf0]  ;;  %v3950_v3 = vor.u32 %v5885_v53, %v3947_v54 }
  0x76   :  { %2719 = vmatpush.bf16.msrb.mxu0 %v4382_v19  ;;  %v5981_v59 = vld [vmem:[%s9477_s1 + $0x304] sm:$0xf]  ;;  %v4331_v61 = vld [vmem:[%s9477_s1 + $0x310] sm:$0xf0]  ;;  %v4078_v9 = vor.u32 %v5917_v57, %v4075_v58 }
  0x77   :  { %2680 = vmatpush.bf16.msrb.mxu1 %v3998_v17  ;;  %2693 = vmatpush.bf16.msrb.mxu2 %v4126_v18  ;;  %v5961_v62 = vld [vmem:[%s9477_s1 + $0x264] sm:$0xf]  ;;  %v4251_v63 = vld [vmem:[%s9477_s1 + $0x270] sm:$0xf0] }
  0x78   :  { %2702 = vmatpush.bf16.msra.mxu3 %v4318_v10  ;;  %v6041_v0 = vld [vmem:[%s9477_s1 + $0x4e4] sm:$0xf]  ;;  %v4571_v1 = vld [vmem:[%s9477_s1 + $0x4f0] sm:$0xf0]  ;;  %v4334_v10 = vor.u32 %v5981_v59, %v4331_v61  ;;  %v4254_v11 = vor.u32 %v5961_v62, %v4251_v63 }
  0x79   :  { %5543 = vmatmul.msk.bf16.vlgmr.msrb.gmra.mxu3 %vm2503_vm0, %v7215_v32  ;;  %v6073_v2 = vld [vmem:[%s9477_s1 + $0x5e4] sm:$0xf]  ;;  %v4699_v5 = vld [vmem:[%s9477_s1 + $0x5f0] sm:$0xf0]  ;;  %v4574_v12 = vor.u32 %v6041_v0, %v4571_v1 }
  0x7a   :  { %2720 = vmatpush.bf16.msrb.mxu0 %v4366_v39  ;;  %v6137_v7 = vld [vmem:[%s9477_s1 + $0x7e4] sm:$0xf]  ;;  %v4955_v8 = vld [vmem:[%s9477_s1 + $0x7f0] sm:$0xf0]  ;;  %v4702_v15 = vor.u32 %v6073_v2, %v4699_v5 }
  0x7b   :  { %2681 = vmatpush.bf16.msrb.mxu1 %v3982_v36  ;;  %2694 = vmatpush.bf16.msrb.mxu2 %v4110_v37  ;;  %v5957_v13 = vld [vmem:[%s9477_s1 + $0x244] sm:$0xf]  ;;  %v4235_v14 = vld [vmem:[%s9477_s1 + $0x250] sm:$0xf0]  ;;  %v4958_v16 = vor.u32 %v6137_v7, %v4955_v8 }
  0x7c   :  { %2703 = vmatpush.bf16.msra.mxu3 %v4302_v26  ;;  %v6037_v17 = vld [vmem:[%s9477_s1 + $0x4c4] sm:$0xf]  ;;  %v4555_v18 = vld [vmem:[%s9477_s1 + $0x4d0] sm:$0xf0]  ;;  %v4238_v26 = vor.u32 %v5957_v13, %v4235_v14 }
  0x7d   :  { %v6069_v19 = vld [vmem:[%s9477_s1 + $0x5c4] sm:$0xf]  ;;  %v4683_v22 = vld [vmem:[%s9477_s1 + $0x5d0] sm:$0xf0]  ;;  %v4558_v27 = vor.u32 %v6037_v17, %v4555_v18 }
  0x7e   :  { %2721 = vmatpush.bf16.msrb.mxu0 %v4350_v56  ;;  %v6133_v23 = vld [vmem:[%s9477_s1 + $0x7c4] sm:$0xf]  ;;  %v4939_v25 = vld [vmem:[%s9477_s1 + $0x7d0] sm:$0xf0]  ;;  %v4686_v34 = vor.u32 %v6069_v19, %v4683_v22 }
  0x7f   :  { %2682 = vmatpush.bf16.msrb.mxu1 %v3966_v52  ;;  %2695 = vmatpush.bf16.msrb.mxu2 %v4094_v55  ;;  %v5953_v30 = vld [vmem:[%s9477_s1 + $0x224] sm:$0xf]  ;;  %v4219_v31 = vld [vmem:[%s9477_s1 + $0x230] sm:$0xf0]  ;;  %v4942_v35 = vor.u32 %v6133_v23, %v4939_v25 }
  0x80   :  { %2704 = vmatpush.bf16.msra.mxu3 %v4286_v46  ;;  %v6033_v36 = vld [vmem:[%s9477_s1 + $0x4a4] sm:$0xf]  ;;  %v4539_v37 = vld [vmem:[%s9477_s1 + $0x4b0] sm:$0xf0]  ;;  %v4222_v46 = vor.u32 %v5953_v30, %v4219_v31 }
  0x81   :  { %v6065_v39 = vld [vmem:[%s9477_s1 + $0x5a4] sm:$0xf]  ;;  %v4667_v40 = vld [vmem:[%s9477_s1 + $0x5b0] sm:$0xf0]  ;;  %v4542_v47 = vor.u32 %v6033_v36, %v4539_v37 }
  0x82   :  { %2722 = vmatpush.bf16.msrb.mxu0 %v4334_v10  ;;  %v6129_v43 = vld [vmem:[%s9477_s1 + $0x7a4] sm:$0xf]  ;;  %v4923_v45 = vld [vmem:[%s9477_s1 + $0x7b0] sm:$0xf0]  ;;  %v4670_v50 = vor.u32 %v6065_v39, %v4667_v40 }
  0x83   :  { %2683 = vmatpush.bf16.msrb.mxu1 %v3950_v3  ;;  %2696 = vmatpush.bf16.msrb.mxu2 %v4078_v9  ;;  %v5949_v48 = vld [vmem:[%s9477_s1 + $0x204] sm:$0xf]  ;;  %v4203_v49 = vld [vmem:[%s9477_s1 + $0x210] sm:$0xf0]  ;;  %v4926_v51 = vor.u32 %v6129_v43, %v4923_v45 }
  0x84   :  { %2705 = vmatpush.bf16.msra.mxu3 %v4270_v60  ;;  %v6029_v52 = vld [vmem:[%s9477_s1 + $0x484] sm:$0xf]  ;;  %v4523_v53 = vld [vmem:[%s9477_s1 + $0x490] sm:$0xf0]  ;;  %v4206_v60 = vor.u32 %v5949_v48, %v4203_v49 }
  0x85   :  { %2723 = vmatmul.bf16.vlgmr.msrb.gmra.mxu0 %v6710_v6  ;;  %v6061_v54 = vld [vmem:[%s9477_s1 + $0x584] sm:$0xf]  ;;  %v4651_v55 = vld [vmem:[%s9477_s1 + $0x590] sm:$0xf0]  ;;  %v4526_v61 = vor.u32 %v6029_v52, %v4523_v53 }
  0x86   :  { %2767 = vmatpush.bf16.msra.mxu0 %v4958_v16  ;;  %2684 = vmatmul.bf16.vlgmr.msrb.gmra.mxu1 %v6737_v20  ;;  %v6125_v56 = vld [vmem:[%s9477_s1 + $0x784] sm:$0xf]  ;;  %v4907_v57 = vld [vmem:[%s9477_s1 + $0x790] sm:$0xf0]  ;;  %v4654_v62 = vor.u32 %v6061_v54, %v4651_v55 }
  0x87   :  { %2728 = vmatpush.bf16.msra.mxu1 %v4574_v12  ;;  %2741 = vmatpush.bf16.msra.mxu2 %v4702_v15  ;;  %v6105_v58 = vld [vmem:[%s9477_s1 + $0x6e4] sm:$0xf]  ;;  %v4827_v59 = vld [vmem:[%s9477_s1 + $0x6f0] sm:$0xf0]  ;;  %v4910_v63 = vor.u32 %v6125_v56, %v4907_v57 }
  0x88   :  { %2706 = vmatpush.bf16.msra.mxu3 %v4254_v11  ;;  %2697 = vmatmul.bf16.vlgmr.msrb.gmra.mxu2 %v6740_v21  ;;  %v6025_v0 = vld [vmem:[%s9477_s1 + $0x464] sm:$0xf]  ;;  %v4507_v1 = vld [vmem:[%s9477_s1 + $0x470] sm:$0xf0]  ;;  %v4830_v3 = vor.u32 %v6105_v58, %v4827_v59 }
  0x89   :  { %v6057_v2 = vld [vmem:[%s9477_s1 + $0x564] sm:$0xf]  ;;  %v4635_v5 = vld [vmem:[%s9477_s1 + $0x570] sm:$0xf0]  ;;  %v4510_v11 = vor.u32 %v6025_v0, %v4507_v1 }
  0x8a   :  { %2768 = vmatpush.bf16.msra.mxu0 %v4942_v35  ;;  %v6121_v7 = vld [vmem:[%s9477_s1 + $0x764] sm:$0xf]  ;;  %v4891_v8 = vld [vmem:[%s9477_s1 + $0x770] sm:$0xf0]  ;;  %v4638_v12 = vor.u32 %v6057_v2, %v4635_v5 }
  0x8b   :  { %2729 = vmatpush.bf16.msra.mxu1 %v4558_v27  ;;  %2742 = vmatpush.bf16.msra.mxu2 %v4686_v34  ;;  %v6101_v9 = vld [vmem:[%s9477_s1 + $0x6c4] sm:$0xf]  ;;  %v4811_v10 = vld [vmem:[%s9477_s1 + $0x6d0] sm:$0xf0]  ;;  %v4894_v13 = vor.u32 %v6121_v7, %v4891_v8 }
  0x8c   :  { %2707 = vmatpush.bf16.msra.mxu3 %v4238_v26  ;;  %v6021_v14 = vld [vmem:[%s9477_s1 + $0x444] sm:$0xf]  ;;  %v4491_v15 = vld [vmem:[%s9477_s1 + $0x450] sm:$0xf0]  ;;  %v4814_v17 = vor.u32 %v6101_v9, %v4811_v10 }
  0x8d   :  { %v6053_v16 = vld [vmem:[%s9477_s1 + $0x544] sm:$0xf]  ;;  %v4619_v18 = vld [vmem:[%s9477_s1 + $0x550] sm:$0xf0]  ;;  %v4494_v26 = vor.u32 %v6021_v14, %v4491_v15 }
  0x8e   :  { %2769 = vmatpush.bf16.msra.mxu0 %v4926_v51  ;;  %v6117_v19 = vld [vmem:[%s9477_s1 + $0x744] sm:$0xf]  ;;  %v4875_v22 = vld [vmem:[%s9477_s1 + $0x750] sm:$0xf0]  ;;  %v4622_v27 = vor.u32 %v6053_v16, %v4619_v18 }
  0x8f   :  { %2730 = vmatpush.bf16.msra.mxu1 %v4542_v47  ;;  %2743 = vmatpush.bf16.msra.mxu2 %v4670_v50  ;;  %v6097_v23 = vld [vmem:[%s9477_s1 + $0x6a4] sm:$0xf]  ;;  %v4795_v25 = vld [vmem:[%s9477_s1 + $0x6b0] sm:$0xf0]  ;;  %v4878_v30 = vor.u32 %v6117_v19, %v4875_v22 }
  0x90   :  { %2708 = vmatpush.bf16.msra.mxu3 %v4222_v46  ;;  %v6017_v31 = vld [vmem:[%s9477_s1 + $0x424] sm:$0xf]  ;;  %v4475_v34 = vld [vmem:[%s9477_s1 + $0x430] sm:$0xf0]  ;;  %v4798_v36 = vor.u32 %v6097_v23, %v4795_v25 }
  0x91   :  { %v6049_v35 = vld [vmem:[%s9477_s1 + $0x524] sm:$0xf]  ;;  %v4603_v37 = vld [vmem:[%s9477_s1 + $0x530] sm:$0xf0]  ;;  %v4478_v46 = vor.u32 %v6017_v31, %v4475_v34 }
  0x92   :  { %2770 = vmatpush.bf16.msra.mxu0 %v4910_v63  ;;  %v6113_v39 = vld [vmem:[%s9477_s1 + $0x724] sm:$0xf]  ;;  %v4859_v40 = vld [vmem:[%s9477_s1 + $0x730] sm:$0xf0]  ;;  %v4606_v49 = vor.u32 %v6049_v35, %v4603_v37 }
  0x93   :  { %2731 = vmatpush.bf16.msra.mxu1 %v4526_v61  ;;  %2744 = vmatpush.bf16.msra.mxu2 %v4654_v62  ;;  %v6093_v43 = vld [vmem:[%s9477_s1 + $0x684] sm:$0xf]  ;;  %v4779_v45 = vld [vmem:[%s9477_s1 + $0x690] sm:$0xf0]  ;;  %v4862_v50 = vor.u32 %v6113_v39, %v4859_v40 }
  0x94   :  { %2709 = vmatpush.bf16.msra.mxu3 %v4206_v60  ;;  %v6013_v47 = vld [vmem:[%s9477_s1 + $0x404] sm:$0xf]  ;;  %v4459_v48 = vld [vmem:[%s9477_s1 + $0x410] sm:$0xf0]  ;;  %v4782_v54 = vor.u32 %v6093_v43, %v4779_v45 }
  0x95   :  { %v6045_v51 = vld [vmem:[%s9477_s1 + $0x504] sm:$0xf]  ;;  %v4587_v52 = vld [vmem:[%s9477_s1 + $0x510] sm:$0xf0]  ;;  %v4462_v61 = vor.u32 %v6013_v47, %v4459_v48 }
  0x96   :  { %2771 = vmatpush.bf16.msra.mxu0 %v4894_v13  ;;  %v6109_v53 = vld [vmem:[%s9477_s1 + $0x704] sm:$0xf]  ;;  %v4843_v55 = vld [vmem:[%s9477_s1 + $0x710] sm:$0xf0]  ;;  %v4590_v1 = vor.u32 %v6045_v51, %v4587_v52 }
  0x97   :  { %2710 = vmatmul.bf16.vlgmr.msra.gmra.mxu3 %v6705_v4  ;;  %2732 = vmatpush.bf16.msra.mxu1 %v4510_v11  ;;  %v6089_v56 = vld [vmem:[%s9477_s1 + $0x664] sm:$0xf]  ;;  %v4763_v57 = vld [vmem:[%s9477_s1 + $0x670] sm:$0xf0]  ;;  %v4846_v2 = vor.u32 %v6109_v53, %v4843_v55 }
  0x98   :  { %2754 = vmatpush.bf16.msrb.mxu3 %v4830_v3  ;;  %2745 = vmatpush.bf16.msra.mxu2 %v4638_v12  ;;  %v6169_v58 = vld [vmem:[%s9477_s1 + $0x8e4] sm:$0xf]  ;;  %v5083_v59 = vld [vmem:[%s9477_s1 + $0x8f0] sm:$0xf0]  ;;  %v4766_v3 = vor.u32 %v6089_v56, %v4763_v57  ;;  %v7571_v56 = vld [vmem:[%s9479_s2] sm:$0xf] }
  0x99   :  { %v6201_v60 = vld [vmem:[%s9477_s1 + $0x9e4] sm:$0xf]  ;;  %v5211_v62 = vld [vmem:[%s9477_s1 + $0x9f0] sm:$0xf0]  ;;  %v5086_v5 = vor.u32 %v6169_v58, %v5083_v59 }
  0x9a   :  { %2772 = vmatpush.bf16.msra.mxu0 %v4878_v30  ;;  %v6265_v63 = vld [vmem:[%s9477_s1 + $0xbe4] sm:$0xf]  ;;  %v5467_v0 = vld [vmem:[%s9477_s1 + $0xbf0] sm:$0xf0]  ;;  %v5214_v9 = vor.u32 %v6201_v60, %v5211_v62 }
  0x9b   :  { %2733 = vmatpush.bf16.msra.mxu1 %v4494_v26  ;;  %v6085_v7 = vld [vmem:[%s9477_s1 + $0x644] sm:$0xf]  ;;  %v4747_v8 = vld [vmem:[%s9477_s1 + $0x650] sm:$0xf0]  ;;  %v5470_v10 = vor.u32 %v6265_v63, %v5467_v0 }
  0x9c   :  { %2755 = vmatpush.bf16.msrb.mxu3 %v4814_v17  ;;  %2746 = vmatpush.bf16.msra.mxu2 %v4622_v27  ;;  %v6165_v11 = vld [vmem:[%s9477_s1 + $0x8c4] sm:$0xf]  ;;  %v5067_v12 = vld [vmem:[%s9477_s1 + $0x8d0] sm:$0xf0]  ;;  %v4750_v17 = vor.u32 %v6085_v7, %v4747_v8 }
  0x9d   :  { %v6197_v13 = vld [vmem:[%s9477_s1 + $0x9c4] sm:$0xf]  ;;  %v5195_v14 = vld [vmem:[%s9477_s1 + $0x9d0] sm:$0xf0]  ;;  %v5070_v18 = vor.u32 %v6165_v11, %v5067_v12 }
  0x9e   :  { %2773 = vmatpush.bf16.msra.mxu0 %v4862_v50  ;;  %v6261_v15 = vld [vmem:[%s9477_s1 + $0xbc4] sm:$0xf]  ;;  %v5451_v16 = vld [vmem:[%s9477_s1 + $0xbd0] sm:$0xf0]  ;;  %v5198_v23 = vor.u32 %v6197_v13, %v5195_v14 }
  0x9f   :  { %2734 = vmatpush.bf16.msra.mxu1 %v4478_v46  ;;  %v6081_v19 = vld [vmem:[%s9477_s1 + $0x624] sm:$0xf]  ;;  %v4731_v22 = vld [vmem:[%s9477_s1 + $0x630] sm:$0xf0]  ;;  %v5454_v25 = vor.u32 %v6261_v15, %v5451_v16 }
  0xa0   :  { %2756 = vmatpush.bf16.msrb.mxu3 %v4798_v36  ;;  %2747 = vmatpush.bf16.msra.mxu2 %v4606_v49  ;;  %v6161_v26 = vld [vmem:[%s9477_s1 + $0x8a4] sm:$0xf]  ;;  %v5051_v27 = vld [vmem:[%s9477_s1 + $0x8b0] sm:$0xf0]  ;;  %v4734_v36 = vor.u32 %v6081_v19, %v4731_v22 }
  0xa1   :  { %v6193_v30 = vld [vmem:[%s9477_s1 + $0x9a4] sm:$0xf]  ;;  %v5179_v31 = vld [vmem:[%s9477_s1 + $0x9b0] sm:$0xf0]  ;;  %v5054_v37 = vor.u32 %v6161_v26, %v5051_v27 }
  0xa2   :  { %2774 = vmatpush.bf16.msra.mxu0 %v4846_v2  ;;  %v6257_v34 = vld [vmem:[%s9477_s1 + $0xba4] sm:$0xf]  ;;  %v5435_v35 = vld [vmem:[%s9477_s1 + $0xbb0] sm:$0xf0]  ;;  %v5182_v43 = vor.u32 %v6193_v30, %v5179_v31 }
  0xa3   :  { %2735 = vmatpush.bf16.msra.mxu1 %v4462_v61  ;;  %v6077_v39 = vld [vmem:[%s9477_s1 + $0x604] sm:$0xf]  ;;  %v4715_v40 = vld [vmem:[%s9477_s1 + $0x610] sm:$0xf0]  ;;  %v5438_v45 = vor.u32 %v6257_v34, %v5435_v35 }
  0xa4   :  { %2757 = vmatpush.bf16.msrb.mxu3 %v4782_v54  ;;  %2748 = vmatpush.bf16.msra.mxu2 %v4590_v1  ;;  %v6157_v46 = vld [vmem:[%s9477_s1 + $0x884] sm:$0xf]  ;;  %v5035_v47 = vld [vmem:[%s9477_s1 + $0x890] sm:$0xf0]  ;;  %v4718_v54 = vor.u32 %v6077_v39, %v4715_v40 }
  0xa5   :  { %2775 = vmatmul.bf16.vlgmr.msra.gmra.mxu0 %v6898_v42  ;;  %v6189_v48 = vld [vmem:[%s9477_s1 + $0x984] sm:$0xf]  ;;  %v5163_v49 = vld [vmem:[%s9477_s1 + $0x990] sm:$0xf0]  ;;  %v5038_v55 = vor.u32 %v6157_v46, %v5035_v47 }
  0xa6   :  { %2819 = vmatpush.bf16.msrb.mxu0 %v5470_v10  ;;  %2736 = vmatmul.bf16.vlgmr.msra.gmra.mxu1 %v6896_v41  ;;  %v6253_v50 = vld [vmem:[%s9477_s1 + $0xb84] sm:$0xf]  ;;  %v5419_v51 = vld [vmem:[%s9477_s1 + $0xb90] sm:$0xf0]  ;;  %v5166_v57 = vor.u32 %v6189_v48, %v5163_v49 }
  0xa7   :  { %2780 = vmatpush.bf16.msrb.mxu1 %v5086_v5  ;;  %2749 = vmatmul.bf16.vlgmr.msra.gmra.mxu2 %v6900_v44  ;;  %v6233_v52 = vld [vmem:[%s9477_s1 + $0xae4] sm:$0xf]  ;;  %v5339_v53 = vld [vmem:[%s9477_s1 + $0xaf0] sm:$0xf0]  ;;  %v5422_v58 = vor.u32 %v6253_v50, %v5419_v51  ;;  %v450_v5 = vperm.slane %v7571_v56, 0 }
  0xa8   :  { %2758 = vmatpush.bf16.msrb.mxu3 %v4766_v3  ;;  %2793 = vmatpush.bf16.msrb.mxu2 %v5214_v9  ;;  %v6153_v59 = vld [vmem:[%s9477_s1 + $0x864] sm:$0xf]  ;;  %v5019_v60 = vld [vmem:[%s9477_s1 + $0x870] sm:$0xf0]  ;;  %v5342_v62 = vor.u32 %v6233_v52, %v5339_v53  ;;  %v2542_v26 = vpop.f32.mrf.mxu2 }
  0xa9   :  { %v6185_v61 = vld [vmem:[%s9477_s1 + $0x964] sm:$0xf]  ;;  %v5147_v63 = vld [vmem:[%s9477_s1 + $0x970] sm:$0xf0]  ;;  %v5022_v7 = vor.u32 %v6153_v59, %v5019_v60 }
  0xaa   :  { %2820 = vmatpush.bf16.msrb.mxu0 %v5454_v25  ;;  %v6249_v0 = vld [vmem:[%s9477_s1 + $0xb64] sm:$0xf]  ;;  %v5403_v1 = vld [vmem:[%s9477_s1 + $0xb70] sm:$0xf0]  ;;  %v5150_v8 = vor.u32 %v6185_v61, %v5147_v63 }
  0xab   :  { %2781 = vmatpush.bf16.msrb.mxu1 %v5070_v18  ;;  %v6229_v2 = vld [vmem:[%s9477_s1 + $0xac4] sm:$0xf]  ;;  %v5323_v3 = vld [vmem:[%s9477_s1 + $0xad0] sm:$0xf0]  ;;  %v5406_v9 = vor.u32 %v6249_v0, %v5403_v1 }
  0xac   :  { %2759 = vmatpush.bf16.msrb.mxu3 %v4750_v17  ;;  %2794 = vmatpush.bf16.msrb.mxu2 %v5198_v23  ;;  %v6149_v10 = vld [vmem:[%s9477_s1 + $0x844] sm:$0xf]  ;;  %v5003_v11 = vld [vmem:[%s9477_s1 + $0x850] sm:$0xf0]  ;;  %v5326_v13 = vor.u32 %v6229_v2, %v5323_v3  ;;  %v4065_v2 = vld [vmem:[%s9477_s1 + $0xe8] sm:$0xf] }
  0xad   :  { %v6181_v12 = vld [vmem:[%s9477_s1 + $0x944] sm:$0xf]  ;;  %v5131_v14 = vld [vmem:[%s9477_s1 + $0x950] sm:$0xf0]  ;;  %v5006_v25 = vor.u32 %v6149_v10, %v5003_v11 }
  0xae   :  { %2821 = vmatpush.bf16.msrb.mxu0 %v5438_v45  ;;  %v6245_v15 = vld [vmem:[%s9477_s1 + $0xb44] sm:$0xf]  ;;  %v5387_v16 = vld [vmem:[%s9477_s1 + $0xb50] sm:$0xf0]  ;;  %v5134_v27 = vor.u32 %v6181_v12, %v5131_v14 }
  0xaf   :  { %2782 = vmatpush.bf16.msrb.mxu1 %v5054_v37  ;;  %v2516_v17 = vpop.f32.mrf.mxu0  ;;  %v6225_v18 = vld [vmem:[%s9477_s1 + $0xaa4] sm:$0xf]  ;;  %v5307_v19 = vld [vmem:[%s9477_s1 + $0xab0] sm:$0xf0]  ;;  %v2529_v23 = vpop.f32.mrf.mxu1  ;;  %v5390_v30 = vor.u32 %v6245_v15, %v5387_v16 }
  0xb0   :  { %2760 = vmatpush.bf16.msrb.mxu3 %v4734_v36  ;;  %2795 = vmatpush.bf16.msrb.mxu2 %v5182_v43  ;;  %v2517_v22 = vadd.f32 %v2516_v17, %v450_v5  ;;  %v6145_v31 = vld [vmem:[%s9477_s1 + $0x824] sm:$0xf]  ;;  %v4987_v34 = vld [vmem:[%s9477_s1 + $0x830] sm:$0xf0]  ;;  %v2555_v37 = vpop.f32.mrf.mxu3  ;;  %v5310_v39 = vor.u32 %v6225_v18, %v5307_v19  ;;  %v2544_v10 = vpop.f32.mrf.mxu2 }
  0xb1   :  { %v6177_v35 = vld [vmem:[%s9477_s1 + $0x924] sm:$0xf]  ;;  %v5115_v40 = vld [vmem:[%s9477_s1 + $0x930] sm:$0xf0]  ;;  %v4990_v49 = vor.u32 %v6145_v31, %v4987_v34 }
  0xb2   :  { %2822 = vmatpush.bf16.msrb.mxu0 %v5422_v58  ;;  %v2530_v36 = vadd.f32 %v2529_v23, %v2517_v22  ;;  %v6241_v43 = vld [vmem:[%s9477_s1 + $0xb24] sm:$0xf]  ;;  %v5371_v45 = vld [vmem:[%s9477_s1 + $0xb30] sm:$0xf0]  ;;  %v5118_v52 = vor.u32 %v6177_v35, %v5115_v40 }
  0xb3   :  { %2783 = vmatpush.bf16.msrb.mxu1 %v5038_v55  ;;  %v6221_v46 = vld [vmem:[%s9477_s1 + $0xa84] sm:$0xf]  ;;  %v5291_v47 = vld [vmem:[%s9477_s1 + $0xa90] sm:$0xf0]  ;;  %v5374_v53 = vor.u32 %v6241_v43, %v5371_v45  ;;  %v4033_v45 = vld [vmem:[%s9477_s1 + $0xa8] sm:$0xf] }
  0xb4   :  { %2761 = vmatpush.bf16.msrb.mxu3 %v4718_v54  ;;  %2796 = vmatpush.bf16.msrb.mxu2 %v5166_v57  ;;  %v2543_v48 = vadd.f32 %v2542_v26, %v2530_v36  ;;  %v6141_v50 = vld [vmem:[%s9477_s1 + $0x804] sm:$0xf]  ;;  %v4971_v51 = vld [vmem:[%s9477_s1 + $0x810] sm:$0xf0]  ;;  %v5294_v59 = vor.u32 %v6221_v46, %v5291_v47  ;;  %v5912_v26 = vld [vmem:[%s9477_s1 + $0xd4] sm:$0xf0] }
  0xb5   :  { %v6173_v54 = vld [vmem:[%s9477_s1 + $0x904] sm:$0xf]  ;;  %v5099_v55 = vld [vmem:[%s9477_s1 + $0x910] sm:$0xf0]  ;;  %v4974_v5 = vor.u32 %v6141_v50, %v4971_v51  ;;  %v5908_v46 = vld [vmem:[%s9477_s1 + $0xb4] sm:$0xf0] }
  0xb6   :  { %2823 = vmatpush.bf16.msrb.mxu0 %v5406_v9  ;;  %v6237_v57 = vld [vmem:[%s9477_s1 + $0xb04] sm:$0xf]  ;;  %v7662_v58 = vadd.f32 %v2555_v37, %v2543_v48  ;;  %v5355_v60 = vld [vmem:[%s9477_s1 + $0xb10] sm:$0xf0]  ;;  %v5980_v9 = vld [vmem:[%s9477_s1 + $0x2f4] sm:$0xf0]  ;;  %v5102_v11 = vor.u32 %v6173_v54, %v5099_v55  ;;  %v4034_v54 = vor.u32 %v5908_v46, %v4033_v45 }
  0xb7   :  { %2762 = vmatmul.bf16.vlgmr.msrb.gmra.mxu3 %v6888_v38  ;;  %2784 = vmatpush.bf16.msrb.mxu1 %v5022_v7  ;;  %v6217_v61 = vld [vmem:[%s9477_s1 + $0xa64] sm:$0xf]  ;;  %v2518_v63 = vpop.f32.mrf.mxu0  ;;  %v5531_v1 = vld [vmem:[%s9477_s1 + $0xc70] sm:$0xf0]  ;;  %v2531_v3 = vpop.f32.mrf.mxu1  ;;  %v5916_v7 = vld [vmem:[%s9477_s1 + $0xf4] sm:$0xf0]  ;;  %v5358_v12 = vor.u32 %v6237_v57, %v5355_v60 }
  0xb8   :  { %2806 = vmatpush.bf16.msra.mxu3 %v5342_v62  ;;  %2797 = vmatpush.bf16.msrb.mxu2 %v5150_v8  ;;  %v5275_v62 = vld [vmem:[%s9477_s1 + $0xa70] sm:$0xf0]  ;;  %v6281_v0 = vld [vmem:[%s9477_s1 + $0xc64] sm:$0xf]  ;;  %v4321_v8 = vld [vmem:[%s9477_s1 + $0x2e8] sm:$0xf]  ;;  %v4066_v18 = vor.u32 %v5916_v7, %v4065_v2 }
  0xb9   :  { %v5278_v14 = vor.u32 %v6217_v61, %v5275_v62  ;;  %v5534_v15 = vor.u32 %v6281_v0, %v5531_v1  ;;  %v6213_v16 = vld [vmem:[%s9477_s1 + $0xa44] sm:$0xf]  ;;  %v5259_v17 = vld [vmem:[%s9477_s1 + $0xa50] sm:$0xf0]  ;;  %v4322_v19 = vor.u32 %v5980_v9, %v4321_v8  ;;  %v4289_v47 = vld [vmem:[%s9477_s1 + $0x2a8] sm:$0xf] }
  0xba   :  { %2824 = vmatpush.bf16.msrb.mxu0 %v5390_v30  ;;  %v6277_v22 = vld [vmem:[%s9477_s1 + $0xc44] sm:$0xf]  ;;  %v5515_v23 = vld [vmem:[%s9477_s1 + $0xc50] sm:$0xf0]  ;;  %v5976_v30 = vld [vmem:[%s9477_s1 + $0x2d4] sm:$0xf0]  ;;  %v5262_v31 = vor.u32 %v6213_v16, %v5259_v17 }
  0xbb   :  { %2785 = vmatpush.bf16.msrb.mxu1 %v5006_v25  ;;  %v4049_v25 = vld [vmem:[%s9477_s1 + $0xc8] sm:$0xf]  ;;  %v5518_v34 = vor.u32 %v6277_v22, %v5515_v23  ;;  %v6209_v35 = vld [vmem:[%s9477_s1 + $0xa24] sm:$0xf]  ;;  %v5243_v36 = vld [vmem:[%s9477_s1 + $0xa30] sm:$0xf0] }
  0xbc   :  { %2807 = vmatpush.bf16.msra.mxu3 %v5326_v13  ;;  %2798 = vmatpush.bf16.msrb.mxu2 %v5134_v27  ;;  %v2557_v13 = vpop.f32.mrf.mxu3  ;;  %v4305_v27 = vld [vmem:[%s9477_s1 + $0x2c8] sm:$0xf]  ;;  %v4050_v37 = vor.u32 %v5912_v26, %v4049_v25  ;;  %v6273_v40 = vld [vmem:[%s9477_s1 + $0xc24] sm:$0xf]  ;;  %v5499_v43 = vld [vmem:[%s9477_s1 + $0xc30] sm:$0xf0] }
  0xbd   :  { %v5972_v48 = vld [vmem:[%s9477_s1 + $0x2b4] sm:$0xf0]  ;;  %v5502_v50 = vor.u32 %v6273_v40, %v5499_v43  ;;  %v6205_v51 = vld [vmem:[%s9477_s1 + $0xa04] sm:$0xf]  ;;  %v5483_v57 = vld [vmem:[%s9477_s1 + $0xc10] sm:$0xf0] }
  0xbe   :  { %2825 = vmatpush.bf16.msrb.mxu0 %v5374_v53  ;;  %v6269_v53 = vld [vmem:[%s9477_s1 + $0xc04] sm:$0xf]  ;;  %v4290_v55 = vor.u32 %v5972_v48, %v4289_v47  ;;  %v5904_v60 = vld [vmem:[%s9477_s1 + $0x94] sm:$0xf0]  ;;  %v4273_v61 = vld [vmem:[%s9477_s1 + $0x288] sm:$0xf] }
  0xbf   :  { %2786 = vmatpush.bf16.msrb.mxu1 %v4990_v49  ;;  %v5246_v49 = vor.u32 %v6209_v35, %v5243_v36  ;;  %v5968_v62 = vld [vmem:[%s9477_s1 + $0x294] sm:$0xf0]  ;;  %v4193_v63 = vld [vmem:[%s9477_s1 + $0x1e8] sm:$0xf]  ;;  %v5486_v7 = vor.u32 %v6269_v53, %v5483_v57 }
  0xc0   :  { %2808 = vmatpush.bf16.msra.mxu3 %v5310_v39  ;;  %2799 = vmatpush.bf16.msrb.mxu2 %v5118_v52  ;;  %v4306_v39 = vor.u32 %v5976_v30, %v4305_v27  ;;  %v5227_v52 = vld [vmem:[%s9477_s1 + $0xa10] sm:$0xf0]  ;;  %v5948_v0 = vld [vmem:[%s9477_s1 + $0x1f4] sm:$0xf0]  ;;  %v4449_v1 = vld [vmem:[%s9477_s1 + $0x3e8] sm:$0xf] }
  0xc1   :  { %v6012_v2 = vld [vmem:[%s9477_s1 + $0x3f4] sm:$0xf0]  ;;  %v4257_v16 = vld [vmem:[%s9477_s1 + $0x268] sm:$0xf] }
  0xc2   :  { %2826 = vmatpush.bf16.msrb.mxu0 %v5358_v12  ;;  %v4001_v12 = vld [vmem:[%s9477_s1 + $0x68] sm:$0xf]  ;;  %v5900_v13 = vld [vmem:[%s9477_s1 + $0x74] sm:$0xf0] }
  0xc3   :  { %2787 = vmatpush.bf16.msrb.mxu1 %v4974_v5  ;;  %v2568_v3 = vpop.f32.mrf.mxu0  ;;  %v5230_v5 = vor.u32 %v6205_v51, %v5227_v52  ;;  %v4177_v17 = vld [vmem:[%s9477_s1 + $0x1c8] sm:$0xf]  ;;  %v6008_v23 = vld [vmem:[%s9477_s1 + $0x3d4] sm:$0xf0]  ;;  %v4002_v26 = vor.u32 %v5900_v13, %v4001_v12 }
  0xc4   :  { %2809 = vmatpush.bf16.msra.mxu3 %v5294_v59  ;;  %2800 = vmatpush.bf16.msrb.mxu2 %v5102_v11  ;;  %v4017_v59 = vld [vmem:[%s9477_s1 + $0x88] sm:$0xf]  ;;  %v2569_v8 = vadd.f32 %v2568_v3, %v7662_v58  ;;  %v4274_v11 = vor.u32 %v5968_v62, %v4273_v61  ;;  %v5964_v58 = vld [vmem:[%s9477_s1 + $0x274] sm:$0xf0] }
  0xc5   :  { %2827 = vmatmul.bf16.vlgmr.msrb.gmra.mxu0 %v7099_v29  ;;  %v2581_v9 = vpop.f32.mrf.mxu1  ;;  %v4018_v10 = vor.u32 %v5904_v60, %v4017_v59  ;;  %v4433_v22 = vld [vmem:[%s9477_s1 + $0x3c8] sm:$0xf]  ;;  %v4258_v27 = vor.u32 %v5964_v58, %v4257_v16  ;;  %v5960_v40 = vld [vmem:[%s9477_s1 + $0x254] sm:$0xf0] }
  0xc6   :  { %2871 = vmatpush.bf16.msra.mxu0 %v4322_v19  ;;  %2788 = vmatmul.bf16.vlgmr.msrb.gmra.mxu1 %v7097_v28  ;;  %v5944_v19 = vld [vmem:[%s9477_s1 + $0x1d4] sm:$0xf0]  ;;  %v3985_v30 = vld [vmem:[%s9477_s1 + $0x48] sm:$0xf] }
  0xc7   :  { %2836 = vmatpush.bf16.msra.mxu1 %v5534_v15  ;;  %2801 = vmatmul.bf16.vlgmr.msrb.gmra.mxu2 %v7110_v33  ;;  %v4450_v15 = vor.u32 %v6012_v2, %v4449_v1  ;;  %v4178_v36 = vor.u32 %v5944_v19, %v4177_v17  ;;  %v4161_v43 = vld [vmem:[%s9477_s1 + $0x1a8] sm:$0xf]  ;;  %v5940_v45 = vld [vmem:[%s9477_s1 + $0x1b4] sm:$0xf0] }
  0xc8   :  { %2810 = vmatpush.bf16.msra.mxu3 %v5278_v14  ;;  %2845 = vmatpush.bf16.msra.mxu2 %v4066_v18  ;;  %v4194_v14 = vor.u32 %v5948_v0, %v4193_v63  ;;  %v2582_v18 = vadd.f32 %v2581_v9, %v2569_v8  ;;  %v4417_v46 = vld [vmem:[%s9477_s1 + $0x3a8] sm:$0xf]  ;;  %v6004_v47 = vld [vmem:[%s9477_s1 + $0x3b4] sm:$0xf0] }
  0xc9   :  { %v2594_v25 = vpop.f32.mrf.mxu2  ;;  %v3969_v53 = vld [vmem:[%s9477_s1 + $0x28] sm:$0xf]  ;;  %v4418_v57 = vor.u32 %v6004_v47, %v4417_v46  ;;  %v5956_v60 = vld [vmem:[%s9477_s1 + $0x234] sm:$0xf0] }
  0xca   :  { %2872 = vmatpush.bf16.msra.mxu0 %v4306_v39  ;;  %v4241_v39 = vld [vmem:[%s9477_s1 + $0x248] sm:$0xf]  ;;  %v5936_v62 = vld [vmem:[%s9477_s1 + $0x194] sm:$0xf0] }
  0xcb   :  { %2837 = vmatpush.bf16.msra.mxu1 %v5518_v34  ;;  %v2595_v34 = vadd.f32 %v2594_v25, %v2582_v18  ;;  %v4242_v52 = vor.u32 %v5960_v40, %v4241_v39  ;;  %v4225_v59 = vld [vmem:[%s9477_s1 + $0x228] sm:$0xf]  ;;  %v6000_v0 = vld [vmem:[%s9477_s1 + $0x394] sm:$0xf0] }
  0xcc   :  { %2811 = vmatpush.bf16.msra.mxu3 %v5262_v31  ;;  %2846 = vmatpush.bf16.msra.mxu2 %v4050_v37  ;;  %v5896_v31 = vld [vmem:[%s9477_s1 + $0x54] sm:$0xf0]  ;;  %v2607_v35 = vpop.f32.mrf.mxu3  ;;  %v4434_v37 = vor.u32 %v6008_v23, %v4433_v22  ;;  %v4145_v61 = vld [vmem:[%s9477_s1 + $0x188] sm:$0xf]  ;;  %v4226_v3 = vor.u32 %v5956_v60, %v4225_v59 }
  0xcd   :  { %v7828_v48 = vadd.f32 %v2607_v35, %v2595_v34  ;;  %v3986_v51 = vor.u32 %v5896_v31, %v3985_v30  ;;  %v4401_v63 = vld [vmem:[%s9477_s1 + $0x388] sm:$0xf]  ;;  %v5952_v12 = vld [vmem:[%s9477_s1 + $0x214] sm:$0xf0] }
  0xce   :  { %2873 = vmatpush.bf16.msra.mxu0 %v4290_v55  ;;  %v4162_v55 = vor.u32 %v5940_v45, %v4161_v43  ;;  %v4209_v8 = vld [vmem:[%s9477_s1 + $0x208] sm:$0xf]  ;;  %v5996_v16 = vld [vmem:[%s9477_s1 + $0x374] sm:$0xf0] }
  0xcf   :  { %2838 = vmatpush.bf16.msra.mxu1 %v5502_v50  ;;  %v2583_v50 = vpop.f32.mrf.mxu1  ;;  %v4129_v13 = vld [vmem:[%s9477_s1 + $0x168] sm:$0xf]  ;;  %v6044_v17 = vld [vmem:[%s9477_s1 + $0x4f4] sm:$0xf0]  ;;  %v4210_v23 = vor.u32 %v5952_v12, %v4209_v8 }
  0xd0   :  { %2812 = vmatpush.bf16.msra.mxu3 %v5246_v49  ;;  %2847 = vmatpush.bf16.msra.mxu2 %v4034_v54  ;;  %v2570_v49 = vpop.f32.mrf.mxu0  ;;  %v5892_v54 = vld [vmem:[%s9477_s1 + $0x34] sm:$0xf0]  ;;  %v4577_v58 = vld [vmem:[%s9477_s1 + $0x4e8] sm:$0xf] }
  0xd1   :  { %v2596_v1 = vpop.f32.mrf.mxu2  ;;  %v3970_v2 = vor.u32 %v5892_v54, %v3969_v53  ;;  %v4833_v18 = vld [vmem:[%s9477_s1 + $0x6e8] sm:$0xf]  ;;  %v6108_v19 = vld [vmem:[%s9477_s1 + $0x6f4] sm:$0xf0]  ;;  %v4578_v31 = vor.u32 %v6044_v17, %v4577_v58 }
  0xd2   :  { %2874 = vmatpush.bf16.msra.mxu0 %v4274_v11  ;;  %v4402_v11 = vor.u32 %v6000_v0, %v4401_v63  ;;  %v5928_v30 = vld [vmem:[%s9477_s1 + $0x154] sm:$0xf0]  ;;  %v4834_v34 = vor.u32 %v6108_v19, %v4833_v18  ;;  %v4369_v35 = vld [vmem:[%s9477_s1 + $0x348] sm:$0xf] }
  0xd3   :  { %2839 = vmatpush.bf16.msra.mxu1 %v5486_v7  ;;  %v5888_v7 = vld [vmem:[%s9477_s1 + $0x14] sm:$0xf0]  ;;  %v4817_v40 = vld [vmem:[%s9477_s1 + $0x6c8] sm:$0xf] }
  0xd4   :  { %2813 = vmatpush.bf16.msra.mxu3 %v5230_v5  ;;  %2848 = vmatpush.bf16.msra.mxu2 %v4018_v10  ;;  %v3953_v5 = vld [vmem:[%s9477_s1 + $0x8] sm:$0xf]  ;;  %v2609_v9 = vpop.f32.mrf.mxu3  ;;  %v4146_v10 = vor.u32 %v5936_v62, %v4145_v61  ;;  %v6040_v39 = vld [vmem:[%s9477_s1 + $0x4d4] sm:$0xf0] }
  0xd5   :  { %v3954_v22 = vor.u32 %v5888_v7, %v3953_v5  ;;  %v6104_v43 = vld [vmem:[%s9477_s1 + $0x6d4] sm:$0xf0]  ;;  %v4097_v47 = vld [vmem:[%s9477_s1 + $0x128] sm:$0xf] }
  0xd6   :  { %2875 = vmatpush.bf16.msra.mxu0 %v4258_v27  ;;  %5544 = vmatmul.msk.bf16.vlgmr.msra.gmra.mxu1 %vm2503_vm0, %v7215_v32  ;;  %v4113_v27 = vld [vmem:[%s9477_s1 + $0x148] sm:$0xf]  ;;  %v5924_v49 = vld [vmem:[%s9477_s1 + $0x134] sm:$0xf0] }
  0xd7   :  { %2884 = vmatpush.bf16.msrb.mxu1 %v4450_v15  ;;  %2814 = vmatmul.bf16.vlgmr.msra.gmra.mxu3 %v7086_v24  ;;  %v4385_v15 = vld [vmem:[%s9477_s1 + $0x368] sm:$0xf]  ;;  %v4114_v45 = vor.u32 %v5928_v30, %v4113_v27  ;;  %v5988_v53 = vld [vmem:[%s9477_s1 + $0x334] sm:$0xf0]  ;;  %v4098_v60 = vor.u32 %v5924_v49, %v4097_v47 }
  0xd8   :  { %2858 = vmatpush.bf16.msrb.mxu3 %v4194_v14  ;;  %2849 = vmatpush.bf16.msra.mxu2 %v4002_v26  ;;  %v5932_v14 = vld [vmem:[%s9477_s1 + $0x174] sm:$0xf0]  ;;  %v4386_v26 = vor.u32 %v5996_v16, %v4385_v15  ;;  %v4545_v54 = vld [vmem:[%s9477_s1 + $0x4a8] sm:$0xf] }
  0xd9   :  { %v4130_v25 = vor.u32 %v5932_v14, %v4129_v13  ;;  %v6100_v59 = vld [vmem:[%s9477_s1 + $0x6b4] sm:$0xf0]  ;;  %v4081_v62 = vld [vmem:[%s9477_s1 + $0x108] sm:$0xf] }
  0xda   :  { %2876 = vmatpush.bf16.msra.mxu0 %v4242_v52  ;;  %v4353_v52 = vld [vmem:[%s9477_s1 + $0x328] sm:$0xf]  ;;  %v5920_v63 = vld [vmem:[%s9477_s1 + $0x114] sm:$0xf0] }
  0xdb   :  { %2885 = vmatpush.bf16.msrb.mxu1 %v4434_v37  ;;  %v4561_v37 = vld [vmem:[%s9477_s1 + $0x4c8] sm:$0xf]  ;;  %v4354_v61 = vor.u32 %v5988_v53, %v4353_v52  ;;  %v6032_v7 = vld [vmem:[%s9477_s1 + $0x494] sm:$0xf0]  ;;  %v4082_v16 = vor.u32 %v5920_v63, %v4081_v62 }
  0xdc   :  { %2859 = vmatpush.bf16.msrb.mxu3 %v4178_v36  ;;  %2850 = vmatpush.bf16.msra.mxu2 %v3986_v51  ;;  %v5992_v36 = vld [vmem:[%s9477_s1 + $0x354] sm:$0xf0]  ;;  %v4562_v50 = vor.u32 %v6040_v39, %v4561_v37  ;;  %v4818_v51 = vor.u32 %v6104_v43, %v4817_v40  ;;  %v4337_v0 = vld [vmem:[%s9477_s1 + $0x308] sm:$0xf] }
  0xdd   :  { %v4370_v46 = vor.u32 %v5992_v36, %v4369_v35  ;;  %v4529_v5 = vld [vmem:[%s9477_s1 + $0x488] sm:$0xf]  ;;  %v6096_v9 = vld [vmem:[%s9477_s1 + $0x694] sm:$0xf0] }
  0xde   :  { %2877 = vmatpush.bf16.msra.mxu0 %v4226_v3  ;;  %v5984_v3 = vld [vmem:[%s9477_s1 + $0x314] sm:$0xf0]  ;;  %v4785_v8 = vld [vmem:[%s9477_s1 + $0x688] sm:$0xf]  ;;  %v4530_v18 = vor.u32 %v6032_v7, %v4529_v5 }
  0xdf   :  { %2886 = vmatpush.bf16.msrb.mxu1 %v4418_v57  ;;  %v4801_v57 = vld [vmem:[%s9477_s1 + $0x6a8] sm:$0xf]  ;;  %v6076_v12 = vld [vmem:[%s9477_s1 + $0x5f4] sm:$0xf0]  ;;  %v4338_v58 = vor.u32 %v5984_v3, %v4337_v0  ;;  %v4786_v19 = vor.u32 %v6096_v9, %v4785_v8 }
  0xe0   :  { %2860 = vmatpush.bf16.msrb.mxu3 %v4162_v55  ;;  %2851 = vmatpush.bf16.msra.mxu2 %v3970_v2  ;;  %v6036_v55 = vld [vmem:[%s9477_s1 + $0x4b4] sm:$0xf0]  ;;  %v4802_v2 = vor.u32 %v6100_v59, %v4801_v57  ;;  %v4961_v13 = vld [vmem:[%s9477_s1 + $0x7e8] sm:$0xf] }
  0xe1   :  { %v4546_v1 = vor.u32 %v6036_v55, %v4545_v54  ;;  %v6140_v14 = vld [vmem:[%s9477_s1 + $0x7f4] sm:$0xf0]  ;;  %v4945_v35 = vld [vmem:[%s9477_s1 + $0x7c8] sm:$0xf] }
  0xe2   :  { %2878 = vmatpush.bf16.msra.mxu0 %v4210_v23  ;;  %v6028_v23 = vld [vmem:[%s9477_s1 + $0x474] sm:$0xf0]  ;;  %v4962_v27 = vor.u32 %v6140_v14, %v4961_v13  ;;  %v4673_v53 = vld [vmem:[%s9477_s1 + $0x5a8] sm:$0xf] }
  0xe3   :  { %2887 = vmatpush.bf16.msrb.mxu1 %v4402_v11  ;;  %v6092_v30 = vld [vmem:[%s9477_s1 + $0x674] sm:$0xf0]  ;;  %v4929_v57 = vld [vmem:[%s9477_s1 + $0x7a8] sm:$0xf] }
  0xe4   :  { %2861 = vmatpush.bf16.msrb.mxu3 %v4146_v10  ;;  %2852 = vmatpush.bf16.msra.mxu2 %v3954_v22  ;;  %v4705_v10 = vld [vmem:[%s9477_s1 + $0x5e8] sm:$0xf]  ;;  %v6136_v36 = vld [vmem:[%s9477_s1 + $0x7d4] sm:$0xf0] }
  0xe5   :  { %2879 = vmatmul.bf16.vlgmr.msra.gmra.mxu0 %v6705_v4  ;;  %v2620_v11 = vpop.f32.mrf.mxu0  ;;  %v4513_v22 = vld [vmem:[%s9477_s1 + $0x468] sm:$0xf]  ;;  %v6024_v47 = vld [vmem:[%s9477_s1 + $0x454] sm:$0xf0] }
  0xe6   :  { %2923 = vmatpush.bf16.msrb.mxu0 %v4834_v34  ;;  %v2621_v15 = vadd.f32 %v2620_v11, %v7828_v48  ;;  %v2633_v17 = vpop.f32.mrf.mxu1  ;;  %v4769_v48 = vld [vmem:[%s9477_s1 + $0x668] sm:$0xf]  ;;  %v6072_v34 = vld [vmem:[%s9477_s1 + $0x5d4] sm:$0xf0]  ;;  %v4514_v39 = vor.u32 %v6028_v23, %v4513_v22 }
  0xe7   :  { %2888 = vmatpush.bf16.msrb.mxu1 %v4386_v26  ;;  %2853 = vmatmul.bf16.vlgmr.msra.gmra.mxu2 %v6737_v20  ;;  %v4706_v26 = vor.u32 %v6076_v12, %v4705_v10  ;;  %v4770_v40 = vor.u32 %v6092_v30, %v4769_v48  ;;  %v6088_v52 = vld [vmem:[%s9477_s1 + $0x654] sm:$0xf0]  ;;  %v4481_v0 = vld [vmem:[%s9477_s1 + $0x428] sm:$0xf] }
  0xe8   :  { %2862 = vmatpush.bf16.msrb.mxu3 %v4130_v25  ;;  %2897 = vmatpush.bf16.msrb.mxu2 %v4578_v31  ;;  %v2634_v25 = vadd.f32 %v2633_v17, %v2621_v15  ;;  %v4689_v31 = vld [vmem:[%s9477_s1 + $0x5c8] sm:$0xf]  ;;  %v6068_v55 = vld [vmem:[%s9477_s1 + $0x5b4] sm:$0xf0] }
  0xe9   :  { %v2646_v37 = vpop.f32.mrf.mxu2  ;;  %v4690_v49 = vor.u32 %v6072_v34, %v4689_v31  ;;  %v6132_v59 = vld [vmem:[%s9477_s1 + $0x7b4] sm:$0xf0]  ;;  %v4737_v5 = vld [vmem:[%s9477_s1 + $0x628] sm:$0xf] }
  0xea   :  { %2924 = vmatpush.bf16.msrb.mxu0 %v4818_v51  ;;  %v2647_v43 = vadd.f32 %v2646_v37, %v2634_v25  ;;  %v4753_v51 = vld [vmem:[%s9477_s1 + $0x648] sm:$0xf]  ;;  %v4930_v3 = vor.u32 %v6132_v59, %v4929_v57  ;;  %v6084_v7 = vld [vmem:[%s9477_s1 + $0x634] sm:$0xf0] }
  0xeb   :  { %2889 = vmatpush.bf16.msrb.mxu1 %v4370_v46  ;;  %v4497_v46 = vld [vmem:[%s9477_s1 + $0x448] sm:$0xf]  ;;  %v4754_v63 = vor.u32 %v6088_v52, %v4753_v51  ;;  %v6064_v9 = vld [vmem:[%s9477_s1 + $0x594] sm:$0xf0]  ;;  %v4738_v14 = vor.u32 %v6084_v7, %v4737_v5 }
  0xec   :  { %2863 = vmatpush.bf16.msrb.mxu3 %v4114_v45  ;;  %2898 = vmatpush.bf16.msrb.mxu2 %v4562_v50  ;;  %v2659_v45 = vpop.f32.mrf.mxu3  ;;  %v4946_v50 = vor.u32 %v6136_v36, %v4945_v35  ;;  %v4498_v62 = vor.u32 %v6024_v47, %v4497_v46  ;;  %v4657_v8 = vld [vmem:[%s9477_s1 + $0x588] sm:$0xf]  ;;  %v6128_v11 = vld [vmem:[%s9477_s1 + $0x794] sm:$0xf0] }
  0xed   :  { %v8018_v54 = vadd.f32 %v2659_v45, %v2647_v43  ;;  %v4913_v10 = vld [vmem:[%s9477_s1 + $0x788] sm:$0xf]  ;;  %v6080_v22 = vld [vmem:[%s9477_s1 + $0x614] sm:$0xf0] }
  0xee   :  { %2925 = vmatpush.bf16.msrb.mxu0 %v4802_v2  ;;  %v4674_v2 = vor.u32 %v6068_v55, %v4673_v53  ;;  %v4721_v17 = vld [vmem:[%s9477_s1 + $0x608] sm:$0xf]  ;;  %v6060_v25 = vld [vmem:[%s9477_s1 + $0x574] sm:$0xf0] }
  0xef   :  { %2890 = vmatpush.bf16.msrb.mxu1 %v4354_v61  ;;  %v2635_v61 = vpop.f32.mrf.mxu1  ;;  %v4641_v23 = vld [vmem:[%s9477_s1 + $0x568] sm:$0xf]  ;;  %v6172_v30 = vld [vmem:[%s9477_s1 + $0x8f4] sm:$0xf0]  ;;  %v4722_v36 = vor.u32 %v6080_v22, %v4721_v17  ;;  %v451_v22 = vperm.slane %v7571_v56, 1 }
  0xf0   :  { %2864 = vmatpush.bf16.msrb.mxu3 %v4098_v60  ;;  %2899 = vmatpush.bf16.msrb.mxu2 %v4546_v1  ;;  %v2622_v60 = vpop.f32.mrf.mxu0  ;;  %v6020_v1 = vld [vmem:[%s9477_s1 + $0x434] sm:$0xf0]  ;;  %v5089_v48 = vld [vmem:[%s9477_s1 + $0x8e8] sm:$0xf]  ;;  %v4642_v37 = vor.u32 %v6060_v25, %v4641_v23 }
  0xf1   :  { %v2648_v12 = vpop.f32.mrf.mxu2  ;;  %v4482_v13 = vor.u32 %v6020_v1, %v4481_v0  ;;  %v5345_v31 = vld [vmem:[%s9477_s1 + $0xae8] sm:$0xf]  ;;  %v6236_v34 = vld [vmem:[%s9477_s1 + $0xaf4] sm:$0xf0]  ;;  %v5090_v45 = vor.u32 %v6172_v30, %v5089_v48 }
  0xf2   :  { %2926 = vmatpush.bf16.msrb.mxu0 %v4786_v19  ;;  %v4914_v19 = vor.u32 %v6128_v11, %v4913_v10  ;;  %v6056_v43 = vld [vmem:[%s9477_s1 + $0x554] sm:$0xf0]  ;;  %v5346_v46 = vor.u32 %v6236_v34, %v5345_v31  ;;  %v4881_v47 = vld [vmem:[%s9477_s1 + $0x748] sm:$0xf] }
  0xf3   :  { %2891 = vmatpush.bf16.msrb.mxu1 %v4338_v58  ;;  %v6016_v58 = vld [vmem:[%s9477_s1 + $0x414] sm:$0xf0]  ;;  %v5329_v52 = vld [vmem:[%s9477_s1 + $0xac8] sm:$0xf] }
  0xf4   :  { %2865 = vmatpush.bf16.msrb.mxu3 %v4082_v16  ;;  %2900 = vmatpush.bf16.msrb.mxu2 %v4530_v18  ;;  %v2661_v15 = vpop.f32.mrf.mxu3  ;;  %v4465_v16 = vld [vmem:[%s9477_s1 + $0x408] sm:$0xf]  ;;  %v4658_v18 = vor.u32 %v6064_v9, %v4657_v8  ;;  %v6168_v51 = vld [vmem:[%s9477_s1 + $0x8d4] sm:$0xf0] }
  0xf5   :  { %v4466_v35 = vor.u32 %v6016_v58, %v4465_v16  ;;  %v6232_v53 = vld [vmem:[%s9477_s1 + $0xad4] sm:$0xf0]  ;;  %v4609_v60 = vld [vmem:[%s9477_s1 + $0x528] sm:$0xf] }
  0xf6   :  { %2892 = vmatmul.bf16.vlgmr.msrb.gmra.mxu1 %v6710_v6  ;;  %2927 = vmatpush.bf16.msrb.mxu0 %v4770_v40  ;;  %v4625_v40 = vld [vmem:[%s9477_s1 + $0x548] sm:$0xf]  ;;  %v6052_v61 = vld [vmem:[%s9477_s1 + $0x534] sm:$0xf0]  ;;  %v5330_v0 = vor.u32 %v6232_v53, %v5329_v52 }
  0xf7   :  { %2936 = vmatpush.bf16.msra.mxu1 %v4962_v27  ;;  %2866 = vmatmul.bf16.vlgmr.msrb.gmra.mxu3 %v6740_v21  ;;  %v6124_v27 = vld [vmem:[%s9477_s1 + $0x774] sm:$0xf0]  ;;  %v4626_v57 = vor.u32 %v6056_v43, %v4625_v40  ;;  %v4865_v1 = vld [vmem:[%s9477_s1 + $0x728] sm:$0xf]  ;;  %v4610_v9 = vor.u32 %v6052_v61, %v4609_v60 }
  0xf8   :  { %2910 = vmatpush.bf16.msra.mxu3 %v4706_v26  ;;  %2901 = vmatpush.bf16.msrb.mxu2 %v4514_v39  ;;  %v4897_v26 = vld [vmem:[%s9477_s1 + $0x768] sm:$0xf]  ;;  %v6164_v5 = vld [vmem:[%s9477_s1 + $0x8b4] sm:$0xf0] }
  0xf9   :  { %v4898_v39 = vor.u32 %v6124_v27, %v4897_v26  ;;  %v6228_v7 = vld [vmem:[%s9477_s1 + $0xab4] sm:$0xf0]  ;;  %v4593_v8 = vld [vmem:[%s9477_s1 + $0x508] sm:$0xf] }
  0xfa   :  { %2928 = vmatpush.bf16.msrb.mxu0 %v4754_v63  ;;  %v6048_v11 = vld [vmem:[%s9477_s1 + $0x514] sm:$0xf0]  ;;  %v4849_v12 = vld [vmem:[%s9477_s1 + $0x708] sm:$0xf] }
  0xfb   :  { %2937 = vmatpush.bf16.msra.mxu1 %v4946_v50  ;;  %v5073_v50 = vld [vmem:[%s9477_s1 + $0x8c8] sm:$0xf]  ;;  %v6160_v58 = vld [vmem:[%s9477_s1 + $0x894] sm:$0xf0]  ;;  %v4594_v48 = vor.u32 %v6048_v11, %v4593_v8 }
  0xfc   :  { %2911 = vmatpush.bf16.msra.mxu3 %v4690_v49  ;;  %2902 = vmatpush.bf16.msrb.mxu2 %v4498_v62  ;;  %v6120_v49 = vld [vmem:[%s9477_s1 + $0x754] sm:$0xf0]  ;;  %v2672_v55 = vpop.f32.mrf.mxu3  ;;  %v5074_v63 = vor.u32 %v6168_v51, %v5073_v50  ;;  %v5041_v16 = vld [vmem:[%s9477_s1 + $0x888] sm:$0xf] }
  0xfd   :  { %v4882_v59 = vor.u32 %v6120_v49, %v4881_v47  ;;  %v8122_v62 = vadd.f32 %v2672_v55, %v8018_v54  ;;  %v5313_v54 = vld [vmem:[%s9477_s1 + $0xaa8] sm:$0xf]  ;;  %v6204_v23 = vld [vmem:[%s9477_s1 + $0x9f4] sm:$0xf0]  ;;  %v5042_v56 = vor.u32 %v6160_v58, %v5041_v16 }
  0xfe   :  { %2929 = vmatpush.bf16.msrb.mxu0 %v4738_v14  ;;  %v5314_v15 = vor.u32 %v6228_v7, %v5313_v54  ;;  %v5297_v17 = vld [vmem:[%s9477_s1 + $0xa88] sm:$0xf]  ;;  %v6268_v26 = vld [vmem:[%s9477_s1 + $0xbf4] sm:$0xf0] }
  0xff   :  { %2938 = vmatpush.bf16.msra.mxu1 %v4930_v3  ;;  %v5057_v3 = vld [vmem:[%s9477_s1 + $0x8a8] sm:$0xf]  ;;  %v6220_v43 = vld [vmem:[%s9477_s1 + $0xa74] sm:$0xf0] }
 0x100   :  { %2912 = vmatpush.bf16.msra.mxu3 %v4674_v2  ;;  %2903 = vmatpush.bf16.msrb.mxu2 %v4482_v13  ;;  %v6116_v2 = vld [vmem:[%s9477_s1 + $0x734] sm:$0xf0]  ;;  %v5058_v14 = vor.u32 %v6164_v5, %v5057_v3  ;;  %v5473_v25 = vld [vmem:[%s9477_s1 + $0xbe8] sm:$0xf] }
 0x101   :  { %v4866_v10 = vor.u32 %v6116_v2, %v4865_v1  ;;  %v6112_v13 = vld [vmem:[%s9477_s1 + $0x714] sm:$0xf0]  ;;  %v5281_v40 = vld [vmem:[%s9477_s1 + $0xa68] sm:$0xf] }
 0x102   :  { %2930 = vmatpush.bf16.msrb.mxu0 %v4722_v36  ;;  %v4850_v30 = vor.u32 %v6112_v13, %v4849_v12  ;;  %v6156_v36 = vld [vmem:[%s9477_s1 + $0x874] sm:$0xf0]  ;;  %v5457_v49 = vld [vmem:[%s9477_s1 + $0xbc8] sm:$0xf]  ;;  %v5282_v52 = vor.u32 %v6220_v43, %v5281_v40 }
 0x103   :  { %2939 = vmatpush.bf16.msra.mxu1 %v4914_v19  ;;  %v5217_v19 = vld [vmem:[%s9477_s1 + $0x9e8] sm:$0xf]  ;;  %v2685_v27 = vpop.f32.mrf.mxu1  ;;  %v6200_v47 = vld [vmem:[%s9477_s1 + $0x9d4] sm:$0xf0] }
 0x104   :  { %2913 = vmatpush.bf16.msra.mxu3 %v4658_v18  ;;  %2904 = vmatpush.bf16.msrb.mxu2 %v4466_v35  ;;  %v6224_v18 = vld [vmem:[%s9477_s1 + $0xa94] sm:$0xf0]  ;;  %v2674_v31 = vpop.f32.mrf.mxu3  ;;  %v5025_v35 = vld [vmem:[%s9477_s1 + $0x868] sm:$0xf] }
 0x105   :  { %2931 = vmatmul.bf16.vlgmr.msrb.gmra.mxu0 %v6888_v38  ;;  %v5298_v34 = vor.u32 %v6224_v18, %v5297_v17  ;;  %v6264_v50 = vld [vmem:[%s9477_s1 + $0xbd4] sm:$0xf0]  ;;  %v5026_v51 = vor.u32 %v6156_v36, %v5025_v35  ;;  %v5009_v53 = vld [vmem:[%s9477_s1 + $0x848] sm:$0xf]  ;;  %v2724_v18 = vpop.f32.mrf.mxu0 }
 0x106   :  { %2975 = vmatpush.bf16.msra.mxu0 %v5346_v46  ;;  %v2686_v46 = vadd.f32 %v2685_v27, %v451_v22  ;;  %v6152_v55 = vld [vmem:[%s9477_s1 + $0x854] sm:$0xf0]  ;;  %v5458_v60 = vor.u32 %v6264_v50, %v5457_v49  ;;  %v5265_v61 = vld [vmem:[%s9477_s1 + $0xa48] sm:$0xf] }
 0x107   :  { %2940 = vmatpush.bf16.msra.mxu1 %v4898_v39  ;;  %2905 = vmatmul.bf16.vlgmr.msrb.gmra.mxu2 %v6896_v41  ;;  %v5474_v39 = vor.u32 %v6268_v26, %v5473_v25  ;;  %v6196_v2 = vld [vmem:[%s9477_s1 + $0x9b4] sm:$0xf0]  ;;  %v5441_v3 = vld [vmem:[%s9477_s1 + $0xba8] sm:$0xf]  ;;  %v5010_v7 = vor.u32 %v6152_v55, %v5009_v53 }
 0x108   :  { %2914 = vmatpush.bf16.msra.mxu3 %v4642_v37  ;;  %2949 = vmatpush.bf16.msra.mxu2 %v5090_v45  ;;  %v5218_v37 = vor.u32 %v6204_v23, %v5217_v19  ;;  %v5201_v45 = vld [vmem:[%s9477_s1 + $0x9c8] sm:$0xf]  ;;  %v6260_v5 = vld [vmem:[%s9477_s1 + $0xbb4] sm:$0xf0] }
 0x109   :  { %v5442_v12 = vor.u32 %v6260_v5, %v5441_v3  ;;  %v5249_v13 = vld [vmem:[%s9477_s1 + $0xa28] sm:$0xf]  ;;  %v6192_v16 = vld [vmem:[%s9477_s1 + $0x994] sm:$0xf0] }
 0x10a   :  { %2976 = vmatpush.bf16.msra.mxu0 %v5330_v0  ;;  %v5185_v0 = vld [vmem:[%s9477_s1 + $0x9a8] sm:$0xf]  ;;  %v6256_v17 = vld [vmem:[%s9477_s1 + $0xb94] sm:$0xf0] }
 0x10b   :  { %2941 = vmatpush.bf16.msra.mxu1 %v4882_v59  ;;  %v5202_v59 = vor.u32 %v6200_v47, %v5201_v45  ;;  %v2687_v54 = vpop.f32.mrf.mxu1  ;;  %v5186_v11 = vor.u32 %v6196_v2, %v5185_v0  ;;  %v5425_v58 = vld [vmem:[%s9477_s1 + $0xb88] sm:$0xf]  ;;  %v6144_v25 = vld [vmem:[%s9477_s1 + $0x814] sm:$0xf0] }
 0x10c   :  { %2915 = vmatpush.bf16.msra.mxu3 %v4626_v57  ;;  %2950 = vmatpush.bf16.msra.mxu2 %v5074_v63  ;;  %v2698_v57 = vpop.f32.mrf.mxu2  ;;  %v6216_v63 = vld [vmem:[%s9477_s1 + $0xa54] sm:$0xf0]  ;;  %v4977_v23 = vld [vmem:[%s9477_s1 + $0x808] sm:$0xf] }
 0x10d   :  { %v2699_v1 = vadd.f32 %v2698_v57, %v2686_v46  ;;  %v5266_v8 = vor.u32 %v6216_v63, %v5265_v61  ;;  %v5233_v26 = vld [vmem:[%s9477_s1 + $0xa08] sm:$0xf]  ;;  %v6208_v31 = vld [vmem:[%s9477_s1 + $0xa14] sm:$0xf0]  ;;  %v4978_v45 = vor.u32 %v6144_v25, %v4977_v23  ;;  %v4179_v63 = vld [vmem:[%s9477_s1 + $0x1d8] sm:$0xf0]  ;;  %v2726_v3 = vpop.f32.mrf.mxu0 }
 0x10e   :  { %2977 = vmatpush.bf16.msra.mxu0 %v5314_v15  ;;  %v5169_v15 = vld [vmem:[%s9477_s1 + $0x988] sm:$0xf]  ;;  %v6252_v36 = vld [vmem:[%s9477_s1 + $0xb74] sm:$0xf0]  ;;  %v5234_v46 = vor.u32 %v6208_v31, %v5233_v26  ;;  %v5914_v31 = vld [vmem:[%s9477_s1 + $0xec] sm:$0xf] }
 0x10f   :  { %2942 = vmatpush.bf16.msra.mxu1 %v4866_v10  ;;  %v6148_v10 = vld [vmem:[%s9477_s1 + $0x834] sm:$0xf0]  ;;  %v5409_v35 = vld [vmem:[%s9477_s1 + $0xb68] sm:$0xf]  ;;  %v4435_v3 = vld [vmem:[%s9477_s1 + $0x3d8] sm:$0xf0] }
 0x110   :  { %2916 = vmatpush.bf16.msra.mxu3 %v4610_v9  ;;  %2951 = vmatpush.bf16.msra.mxu2 %v5058_v14  ;;  %v4993_v9 = vld [vmem:[%s9477_s1 + $0x828] sm:$0xf]  ;;  %v6212_v14 = vld [vmem:[%s9477_s1 + $0xa34] sm:$0xf0]  ;;  %v5410_v49 = vor.u32 %v6252_v36, %v5409_v35  ;;  %v4323_v35 = vld [vmem:[%s9477_s1 + $0x2f8] sm:$0xf0] }
 0x111   :  { %v4994_v19 = vor.u32 %v6148_v10, %v4993_v9  ;;  %v5250_v22 = vor.u32 %v6212_v14, %v5249_v13  ;;  %v5537_v40 = vld [vmem:[%s9477_s1 + $0xc68] sm:$0xf]  ;;  %v6284_v43 = vld [vmem:[%s9477_s1 + $0xc74] sm:$0xf0]  ;;  %v4163_v14 = vld [vmem:[%s9477_s1 + $0x1b8] sm:$0xf0] }
 0x112   :  { %2978 = vmatpush.bf16.msra.mxu0 %v5298_v34  ;;  %v6188_v34 = vld [vmem:[%s9477_s1 + $0x974] sm:$0xf0]  ;;  %v5137_v50 = vld [vmem:[%s9477_s1 + $0x948] sm:$0xf] }
 0x113   :  { %2943 = vmatpush.bf16.msra.mxu1 %v4850_v30  ;;  %v5426_v30 = vor.u32 %v6256_v17, %v5425_v58  ;;  %v5393_v55 = vld [vmem:[%s9477_s1 + $0xb48] sm:$0xf]  ;;  %v6248_v57 = vld [vmem:[%s9477_s1 + $0xb54] sm:$0xf0] }
 0x114   :  { %2917 = vmatpush.bf16.msra.mxu3 %v4594_v48  ;;  %2952 = vmatpush.bf16.msra.mxu2 %v5042_v56  ;;  %v2700_v27 = vpop.f32.mrf.mxu2  ;;  %v5170_v48 = vor.u32 %v6192_v16, %v5169_v15  ;;  %v5153_v56 = vld [vmem:[%s9477_s1 + $0x968] sm:$0xf]  ;;  %v6280_v2 = vld [vmem:[%s9477_s1 + $0xc54] sm:$0xf0] }
 0x115   :  { %v5154_v47 = vor.u32 %v6188_v34, %v5153_v56  ;;  %v5521_v0 = vld [vmem:[%s9477_s1 + $0xc48] sm:$0xf]  ;;  %v6276_v16 = vld [vmem:[%s9477_s1 + $0xc34] sm:$0xf0]  ;;  %v5934_v27 = vld [vmem:[%s9477_s1 + $0x18c] sm:$0xf] }
 0x116   :  { %2944 = vmatmul.bf16.vlgmr.msra.gmra.mxu1 %v6898_v42  ;;  %2979 = vmatpush.bf16.msra.mxu0 %v5282_v52  ;;  %v5377_v10 = vld [vmem:[%s9477_s1 + $0xb28] sm:$0xf]  ;;  %v5522_v13 = vor.u32 %v6280_v2, %v5521_v0  ;;  %v6240_v26 = vld [vmem:[%s9477_s1 + $0xb14] sm:$0xf0]  ;;  %v4067_v56 = vld [vmem:[%s9477_s1 + $0xf8] sm:$0xf0] }
 0x117   :  { %2988 = vmatpush.bf16.msrb.mxu1 %v5474_v39  ;;  %2918 = vmatmul.bf16.vlgmr.msra.gmra.mxu3 %v6900_v44  ;;  %v4195_v39 = vld [vmem:[%s9477_s1 + $0x1f8] sm:$0xf0]  ;;  %v5505_v15 = vld [vmem:[%s9477_s1 + $0xc28] sm:$0xf]  ;;  %v5978_v34 = vld [vmem:[%s9477_s1 + $0x2ec] sm:$0xf] }
 0x118   :  { %2962 = vmatpush.bf16.msrb.mxu3 %v5218_v37  ;;  %2953 = vmatpush.bf16.msra.mxu2 %v5026_v51  ;;  %v5946_v37 = vld [vmem:[%s9477_s1 + $0x1ec] sm:$0xf]  ;;  %v6184_v51 = vld [vmem:[%s9477_s1 + $0x954] sm:$0xf0]  ;;  %v5489_v36 = vld [vmem:[%s9477_s1 + $0xc08] sm:$0xf] }
 0x119   :  { %v4198_v53 = vor.u32 %v5946_v37, %v4195_v39  ;;  %v5138_v54 = vor.u32 %v6184_v51, %v5137_v50  ;;  %v6272_v37 = vld [vmem:[%s9477_s1 + $0xc14] sm:$0xf0]  ;;  %v4070_v51 = vor.u32 %v5914_v31, %v4067_v56  ;;  %v6006_v2 = vld [vmem:[%s9477_s1 + $0x3cc] sm:$0xf]  ;;  %v4275_v31 = vld [vmem:[%s9477_s1 + $0x298] sm:$0xf0] }
 0x11a   :  { %2980 = vmatpush.bf16.msra.mxu0 %v5266_v8  ;;  %v2711_v52 = vpop.f32.mrf.mxu3  ;;  %v6180_v8 = vld [vmem:[%s9477_s1 + $0x934] sm:$0xf0] }
 0x11b   :  { %2989 = vmatpush.bf16.msrb.mxu1 %v5458_v60  ;;  %v5538_v60 = vor.u32 %v6284_v43, %v5537_v40  ;;  %v2712_v61 = vadd.f32 %v2711_v52, %v2699_v1  ;;  %v5394_v1 = vor.u32 %v6248_v57, %v5393_v55  ;;  %v5930_v52 = vld [vmem:[%s9477_s1 + $0x16c] sm:$0xf]  ;;  %v4131_v55 = vld [vmem:[%s9477_s1 + $0x178] sm:$0xf0] }
 0x11c   :  { %2963 = vmatpush.bf16.msrb.mxu3 %v5202_v59  ;;  %2954 = vmatpush.bf16.msra.mxu2 %v5010_v7  ;;  %v5942_v59 = vld [vmem:[%s9477_s1 + $0x1cc] sm:$0xf]  ;;  %v5121_v7 = vld [vmem:[%s9477_s1 + $0x928] sm:$0xf] }
 0x11d   :  { %v2725_v5 = vadd.f32 %v2724_v18, %v2712_v61  ;;  %v4182_v9 = vor.u32 %v5942_v59, %v4179_v63  ;;  %v5122_v58 = vor.u32 %v6180_v8, %v5121_v7  ;;  %v5105_v18 = vld [vmem:[%s9477_s1 + $0x908] sm:$0xf]  ;;  %v5910_v57 = vld [vmem:[%s9477_s1 + $0xcc] sm:$0xf]  ;;  %v4051_v59 = vld [vmem:[%s9477_s1 + $0xd8] sm:$0xf0] }
 0x11e   :  { %2981 = vmatpush.bf16.msra.mxu0 %v5250_v22  ;;  %v5361_v22 = vld [vmem:[%s9477_s1 + $0xb08] sm:$0xf]  ;;  %v5974_v61 = vld [vmem:[%s9477_s1 + $0x2cc] sm:$0xf]  ;;  %v4307_v63 = vld [vmem:[%s9477_s1 + $0x2d8] sm:$0xf0] }
 0x11f   :  { %2990 = vmatpush.bf16.msrb.mxu1 %v5442_v12  ;;  %v5938_v12 = vld [vmem:[%s9477_s1 + $0x1ac] sm:$0xf]  ;;  %v5362_v43 = vor.u32 %v6240_v26, %v5361_v22  ;;  %v4310_v8 = vor.u32 %v5974_v61, %v4307_v63  ;;  %v4099_v26 = vld [vmem:[%s9477_s1 + $0x138] sm:$0xf0] }
 0x120   :  { %2964 = vmatpush.bf16.msrb.mxu3 %v5186_v11  ;;  %2955 = vmatpush.bf16.msra.mxu2 %v4994_v19  ;;  %v6244_v11 = vld [vmem:[%s9477_s1 + $0xb34] sm:$0xf0]  ;;  %v4166_v25 = vor.u32 %v5938_v12, %v4163_v14  ;;  %v4291_v14 = vld [vmem:[%s9477_s1 + $0x2b8] sm:$0xf0] }
 0x121   :  { %v5378_v17 = vor.u32 %v6244_v11, %v5377_v10  ;;  %v6176_v19 = vld [vmem:[%s9477_s1 + $0x914] sm:$0xf0]  ;;  %v5906_v10 = vld [vmem:[%s9477_s1 + $0xac] sm:$0xf]  ;;  %v4035_v11 = vld [vmem:[%s9477_s1 + $0xb8] sm:$0xf0] }
 0x122   :  { %2982 = vmatpush.bf16.msra.mxu0 %v5234_v46  ;;  %v2713_v23 = vpop.f32.mrf.mxu3  ;;  %v5106_v40 = vor.u32 %v6176_v19, %v5105_v18  ;;  %v4451_v46 = vld [vmem:[%s9477_s1 + $0x3f8] sm:$0xf0]  ;;  %v4038_v22 = vor.u32 %v5906_v10, %v4035_v11  ;;  %v5990_v11 = vld [vmem:[%s9477_s1 + $0x34c] sm:$0xf] }
 0x123   :  { %2991 = vmatpush.bf16.msrb.mxu1 %v5426_v30  ;;  %v5506_v30 = vor.u32 %v6276_v16, %v5505_v15  ;;  %v2737_v39 = vpop.f32.mrf.mxu1  ;;  %v4438_v15 = vor.u32 %v6006_v2, %v4435_v3  ;;  %v5922_v23 = vld [vmem:[%s9477_s1 + $0x12c] sm:$0xf]  ;;  %v3987_v3 = vld [vmem:[%s9477_s1 + $0x58] sm:$0xf0] }
 0x124   :  { %2965 = vmatpush.bf16.msrb.mxu3 %v5170_v48  ;;  %2956 = vmatpush.bf16.msra.mxu2 %v4978_v45  ;;  %v4147_v48 = vld [vmem:[%s9477_s1 + $0x198] sm:$0xf0]  ;;  %v6010_v45 = vld [vmem:[%s9477_s1 + $0x3ec] sm:$0xf] }
 0x125   :  { %2983 = vmatmul.bf16.vlgmr.msra.gmra.mxu0 %v7086_v24  ;;  %v4150_v50 = vor.u32 %v5934_v27, %v4147_v48  ;;  %v4454_v0 = vor.u32 %v6010_v45, %v4451_v46  ;;  %v5902_v27 = vld [vmem:[%s9477_s1 + $0x8c] sm:$0xf]  ;;  %v4019_v48 = vld [vmem:[%s9477_s1 + $0x98] sm:$0xf0] }
 0x126   :  { %3027 = vmatpush.bf16.msrb.mxu0 %v4198_v53  ;;  %v4326_v53 = vor.u32 %v5978_v34, %v4323_v35  ;;  %v5998_v34 = vld [vmem:[%s9477_s1 + $0x38c] sm:$0xf]  ;;  %v4403_v35 = vld [vmem:[%s9477_s1 + $0x398] sm:$0xf0] }
 0x127   :  { %2992 = vmatpush.bf16.msrb.mxu1 %v5410_v49  ;;  %2957 = vmatmul.bf16.vlgmr.msra.gmra.mxu2 %v7097_v28  ;;  %v8383_v49 = vpop.f32.mrf.mxu0  ;;  %v5898_v46 = vld [vmem:[%s9477_s1 + $0x6c] sm:$0xf] }
 0x128   :  { %2966 = vmatpush.bf16.msrb.mxu3 %v5154_v47  ;;  %3005 = vmatpush.bf16.msrb.mxu2 %v5538_v60  ;;  %v2738_v47 = vadd.f32 %v2737_v39, %v2725_v5  ;;  %v5490_v60 = vor.u32 %v6272_v37, %v5489_v36  ;;  %v4134_v5 = vor.u32 %v5930_v52, %v4131_v55  ;;  %v5918_v39 = vld [vmem:[%s9477_s1 + $0x10c] sm:$0xf] }
 0x129   :  { %v4102_v36 = vor.u32 %v5922_v23, %v4099_v26  ;;  %v4022_v37 = vor.u32 %v5902_v27, %v4019_v48  ;;  %v6074_v52 = vld [vmem:[%s9477_s1 + $0x5ec] sm:$0xf]  ;;  %v4406_v55 = vor.u32 %v5998_v34, %v4403_v35  ;;  %v4355_v26 = vld [vmem:[%s9477_s1 + $0x338] sm:$0xf0] }
 0x12a   :  { %3028 = vmatpush.bf16.msrb.mxu0 %v4182_v9  ;;  %v2750_v7 = vpop.f32.mrf.mxu2  ;;  %v4115_v9 = vld [vmem:[%s9477_s1 + $0x158] sm:$0xf0]  ;;  %v5894_v2 = vld [vmem:[%s9477_s1 + $0x4c] sm:$0xf] }
 0x12b   :  { %2993 = vmatpush.bf16.msrb.mxu1 %v5394_v1  ;;  %v5926_v1 = vld [vmem:[%s9477_s1 + $0x14c] sm:$0xf]  ;;  %v8421_v12 = vadd.f32 %v2750_v7, %v2738_v47  ;;  %v2739_v16 = vpop.f32.mrf.mxu1  ;;  %v4003_v47 = vld [vmem:[%s9477_s1 + $0x78] sm:$0xf0] }
 0x12c   :  { %2967 = vmatpush.bf16.msrb.mxu3 %v5138_v54  ;;  %3006 = vmatpush.bf16.msrb.mxu2 %v5522_v13  ;;  %v4054_v54 = vor.u32 %v5910_v57, %v4051_v59  ;;  %v5970_v13 = vld [vmem:[%s9477_s1 + $0x2ac] sm:$0xf]  ;;  %v4118_v19 = vor.u32 %v5926_v1, %v4115_v9  ;;  %v4387_v59 = vld [vmem:[%s9477_s1 + $0x378] sm:$0xf0]  ;;  %v4006_v61 = vor.u32 %v5898_v46, %v4003_v47 }
 0x12d   :  { %v5994_v57 = vld [vmem:[%s9477_s1 + $0x36c] sm:$0xf]  ;;  %v4243_v1 = vld [vmem:[%s9477_s1 + $0x258] sm:$0xf0] }
 0x12e   :  { %3029 = vmatpush.bf16.msrb.mxu0 %v4166_v25  ;;  %v4294_v25 = vor.u32 %v5970_v13, %v4291_v14  ;;  %v6070_v7 = vld [vmem:[%s9477_s1 + $0x5cc] sm:$0xf]  ;;  %v4390_v9 = vor.u32 %v5994_v57, %v4387_v59  ;;  %v4371_v13 = vld [vmem:[%s9477_s1 + $0x358] sm:$0xf0]  ;;  %v3990_v14 = vor.u32 %v5894_v2, %v3987_v3 }
 0x12f   :  { %2994 = vmatpush.bf16.msrb.mxu1 %v5378_v17  ;;  %v4419_v17 = vld [vmem:[%s9477_s1 + $0x3b8] sm:$0xf0]  ;;  %v2778_v18 = vpop.f32.mrf.mxu0  ;;  %v4374_v23 = vor.u32 %v5990_v11, %v4371_v13  ;;  %v5886_v48 = vld [vmem:[%s9477_s1 + $0xc] sm:$0xf] }
 0x130   :  { %2968 = vmatpush.bf16.msrb.mxu3 %v5122_v58  ;;  %3007 = vmatpush.bf16.msrb.mxu2 %v5506_v30  ;;  %v6002_v58 = vld [vmem:[%s9477_s1 + $0x3ac] sm:$0xf]  ;;  %v4835_v46 = vld [vmem:[%s9477_s1 + $0x6f8] sm:$0xf0] }
 0x131   :  { %v5966_v30 = vld [vmem:[%s9477_s1 + $0x28c] sm:$0xf]  ;;  %v4422_v56 = vor.u32 %v6002_v58, %v4419_v17  ;;  %v3971_v17 = vld [vmem:[%s9477_s1 + $0x38] sm:$0xf0] }
 0x132   :  { %3030 = vmatpush.bf16.msrb.mxu0 %v4150_v50  ;;  %v4278_v45 = vor.u32 %v5966_v30, %v4275_v31  ;;  %v5962_v50 = vld [vmem:[%s9477_s1 + $0x26c] sm:$0xf]  ;;  %v4643_v3 = vld [vmem:[%s9477_s1 + $0x578] sm:$0xf0] }
 0x133   :  { %2995 = vmatpush.bf16.msrb.mxu1 %v5362_v43  ;;  %v2752_v43 = vpop.f32.mrf.mxu2  ;;  %v5954_v18 = vld [vmem:[%s9477_s1 + $0x22c] sm:$0xf]  ;;  %v4947_v13 = vld [vmem:[%s9477_s1 + $0x7d8] sm:$0xf0] }
 0x134   :  { %2969 = vmatpush.bf16.msrb.mxu3 %v5106_v40  ;;  %3008 = vmatpush.bf16.msrb.mxu2 %v5490_v60  ;;  %v4083_v40 = vld [vmem:[%s9477_s1 + $0x118] sm:$0xf0]  ;;  %v5950_v34 = vld [vmem:[%s9477_s1 + $0x20c] sm:$0xf] }
 0x135   :  { %v4086_v60 = vor.u32 %v5918_v39, %v4083_v40  ;;  %v6042_v39 = vld [vmem:[%s9477_s1 + $0x4ec] sm:$0xf]  ;;  %v4579_v43 = vld [vmem:[%s9477_s1 + $0x4f8] sm:$0xf0] }
 0x136   :  { %2996 = vmatmul.bf16.vlgmr.msrb.gmra.mxu1 %v7099_v29  ;;  %3031 = vmatpush.bf16.msrb.mxu0 %v4134_v5  ;;  %v5958_v5 = vld [vmem:[%s9477_s1 + $0x24c] sm:$0xf] }
 0x137   :  { %3040 = vmatpush.bf16.msra.mxu1 %v4326_v53  ;;  %2970 = vmatmul.bf16.vlgmr.msrb.gmra.mxu3 %v7110_v33  ;;  %v4707_v53 = vld [vmem:[%s9477_s1 + $0x5f8] sm:$0xf0]  ;;  %v4246_v16 = vor.u32 %v5958_v5, %v4243_v1  ;;  %v6138_v59 = vld [vmem:[%s9477_s1 + $0x7ec] sm:$0xf] }
 0x138   :  { %3014 = vmatpush.bf16.msra.mxu3 %v4070_v51  ;;  %3053 = vmatpush.bf16.msra.mxu2 %v4454_v0  ;;  %v4259_v51 = vld [vmem:[%s9477_s1 + $0x278] sm:$0xf0]  ;;  %v4710_v0 = vor.u32 %v6074_v52, %v4707_v53  ;;  %v6058_v2 = vld [vmem:[%s9477_s1 + $0x56c] sm:$0xf] }
 0x139   :  { %5545 = vmatmul.msk.bf16.vlgmr.msrb.gmra.mxu2 %vm2503_vm0, %v7215_v32  ;;  %v4262_v63 = vor.u32 %v5962_v50, %v4259_v51  ;;  %v5982_v51 = vld [vmem:[%s9477_s1 + $0x30c] sm:$0xf]  ;;  %v4339_v52 = vld [vmem:[%s9477_s1 + $0x318] sm:$0xf0] }
 0x13a   :  { %3032 = vmatpush.bf16.msrb.mxu0 %v4118_v19  ;;  %v6066_v19 = vld [vmem:[%s9477_s1 + $0x5ac] sm:$0xf] }
 0x13b   :  { %3041 = vmatpush.bf16.msra.mxu1 %v4310_v8  ;;  %v4691_v8 = vld [vmem:[%s9477_s1 + $0x5d8] sm:$0xf0]  ;;  %v6038_v5 = vld [vmem:[%s9477_s1 + $0x4cc] sm:$0xf] }
 0x13c   :  { %3015 = vmatpush.bf16.msra.mxu3 %v4054_v54  ;;  %3054 = vmatpush.bf16.msra.mxu2 %v4438_v15  ;;  %v2763_v54 = vpop.f32.mrf.mxu3  ;;  %v4694_v58 = vor.u32 %v6070_v7, %v4691_v8  ;;  %v6102_v1 = vld [vmem:[%s9477_s1 + $0x6cc] sm:$0xf]  ;;  %v4819_v7 = vld [vmem:[%s9477_s1 + $0x6d8] sm:$0xf0]  ;;  %v4342_v8 = vor.u32 %v5982_v51, %v4339_v52 }
 0x13d   :  { %v2764_v10 = vadd.f32 %v2763_v54, %v8421_v12  ;;  %v5890_v12 = vld [vmem:[%s9477_s1 + $0x2c] sm:$0xf]  ;;  %v4563_v54 = vld [vmem:[%s9477_s1 + $0x4d8] sm:$0xf0] }
 0x13e   :  { %3033 = vmatpush.bf16.msrb.mxu0 %v4102_v36  ;;  %v3974_v27 = vor.u32 %v5890_v12, %v3971_v17  ;;  %v6062_v36 = vld [vmem:[%s9477_s1 + $0x58c] sm:$0xf]  ;;  %v4627_v12 = vld [vmem:[%s9477_s1 + $0x558] sm:$0xf0] }
 0x13f   :  { %3042 = vmatpush.bf16.msra.mxu1 %v4294_v25  ;;  %v2777_v15 = vadd.f32 %v8383_v49, %v2764_v10  ;;  %v4227_v49 = vld [vmem:[%s9477_s1 + $0x238] sm:$0xf0]  ;;  %v5986_v25 = vld [vmem:[%s9477_s1 + $0x32c] sm:$0xf]  ;;  %v4646_v10 = vor.u32 %v6058_v2, %v4643_v3 }
 0x140   :  { %3016 = vmatpush.bf16.msra.mxu3 %v4038_v22  ;;  %3055 = vmatpush.bf16.msra.mxu2 %v4422_v56  ;;  %v4675_v22 = vld [vmem:[%s9477_s1 + $0x5b8] sm:$0xf0]  ;;  %v4230_v30 = vor.u32 %v5954_v18, %v4227_v49  ;;  %v4358_v40 = vor.u32 %v5986_v25, %v4355_v26  ;;  %v6134_v11 = vld [vmem:[%s9477_s1 + $0x7cc] sm:$0xf] }
 0x141   :  { %v4678_v31 = vor.u32 %v6066_v19, %v4675_v22  ;;  %v3955_v56 = vld [vmem:[%s9477_s1 + $0x18] sm:$0xf0]  ;;  %v6034_v17 = vld [vmem:[%s9477_s1 + $0x4ac] sm:$0xf] }
 0x142   :  { %3034 = vmatpush.bf16.msrb.mxu0 %v4086_v60  ;;  %v3958_v50 = vor.u32 %v5886_v48, %v3955_v56  ;;  %v4963_v60 = vld [vmem:[%s9477_s1 + $0x7f8] sm:$0xf0]  ;;  %v6098_v19 = vld [vmem:[%s9477_s1 + $0x6ac] sm:$0xf] }
 0x143   :  { %3043 = vmatpush.bf16.msra.mxu1 %v4278_v45  ;;  %v6106_v45 = vld [vmem:[%s9477_s1 + $0x6ec] sm:$0xf]  ;;  %v2789_v47 = vpop.f32.mrf.mxu1  ;;  %v4547_v49 = vld [vmem:[%s9477_s1 + $0x4b8] sm:$0xf0] }
 0x144   :  { %3017 = vmatpush.bf16.msra.mxu3 %v4022_v37  ;;  %3056 = vmatpush.bf16.msra.mxu2 %v4406_v55  ;;  %v2765_v35 = vpop.f32.mrf.mxu3  ;;  %v4659_v37 = vld [vmem:[%s9477_s1 + $0x598] sm:$0xf0]  ;;  %v2790_v53 = vadd.f32 %v2789_v47, %v2777_v15  ;;  %v4566_v15 = vor.u32 %v6038_v5, %v4563_v54  ;;  %v6050_v56 = vld [vmem:[%s9477_s1 + $0x52c] sm:$0xf] }
 0x145   :  { %3035 = vmatmul.bf16.vlgmr.msrb.gmra.mxu0 %v6740_v21  ;;  %v4211_v21 = vld [vmem:[%s9477_s1 + $0x218] sm:$0xf0]  ;;  %v4662_v57 = vor.u32 %v6062_v36, %v4659_v37  ;;  %v6094_v35 = vld [vmem:[%s9477_s1 + $0x68c] sm:$0xf] }
 0x146   :  { %3079 = vmatpush.bf16.msra.mxu0 %v4710_v0  ;;  %v4214_v55 = vor.u32 %v5950_v34, %v4211_v21  ;;  %v4838_v0 = vor.u32 %v6106_v45, %v4835_v46  ;;  %v4803_v22 = vld [vmem:[%s9477_s1 + $0x6b8] sm:$0xf0]  ;;  %v6030_v34 = vld [vmem:[%s9477_s1 + $0x48c] sm:$0xf] }
 0x147   :  { %3044 = vmatpush.bf16.msra.mxu1 %v4262_v63  ;;  %v4582_v63 = vor.u32 %v6042_v39, %v4579_v43  ;;  %v4931_v48 = vld [vmem:[%s9477_s1 + $0x7b8] sm:$0xf0]  ;;  %v6122_v2 = vld [vmem:[%s9477_s1 + $0x76c] sm:$0xf] }
 0x148   :  { %3018 = vmatpush.bf16.msra.mxu3 %v4006_v61  ;;  %3057 = vmatpush.bf16.msra.mxu2 %v4390_v9  ;;  %v8586_v61 = vpop.f32.mrf.mxu0  ;;  %v4966_v9 = vor.u32 %v6138_v59, %v4963_v60  ;;  %v4531_v21 = vld [vmem:[%s9477_s1 + $0x498] sm:$0xf0] }
 0x149   :  { %v4787_v36 = vld [vmem:[%s9477_s1 + $0x698] sm:$0xf0]  ;;  %v4534_v45 = vor.u32 %v6030_v34, %v4531_v21  ;;  %v6014_v21 = vld [vmem:[%s9477_s1 + $0x40c] sm:$0xf] }
 0x14a   :  { %3080 = vmatpush.bf16.msra.mxu0 %v4694_v58  ;;  %v6054_v58 = vld [vmem:[%s9477_s1 + $0x54c] sm:$0xf]  ;;  %v4915_v43 = vld [vmem:[%s9477_s1 + $0x798] sm:$0xf0]  ;;  %v4790_v46 = vor.u32 %v6094_v35, %v4787_v36 }
 0x14b   :  { %3045 = vmatpush.bf16.msra.mxu1 %v4246_v16  ;;  %v4822_v16 = vor.u32 %v6102_v1, %v4819_v7  ;;  %v2791_v25 = vpop.f32.mrf.mxu1  ;;  %v4630_v26 = vor.u32 %v6054_v58, %v4627_v12  ;;  %v4595_v47 = vld [vmem:[%s9477_s1 + $0x518] sm:$0xf0]  ;;  %v6022_v1 = vld [vmem:[%s9477_s1 + $0x44c] sm:$0xf] }
 0x14c   :  { %3019 = vmatpush.bf16.msra.mxu3 %v3990_v14  ;;  %3058 = vmatpush.bf16.msra.mxu2 %v4374_v23  ;;  %v2802_v14 = vpop.f32.mrf.mxu2  ;;  %v4950_v23 = vor.u32 %v6134_v11, %v4947_v13  ;;  %v4515_v52 = vld [vmem:[%s9477_s1 + $0x478] sm:$0xf0]  ;;  %v6118_v58 = vld [vmem:[%s9477_s1 + $0x74c] sm:$0xf] }
 0x14d   :  { %v2803_v18 = vadd.f32 %v2802_v14, %v2790_v53  ;;  %v6090_v53 = vld [vmem:[%s9477_s1 + $0x66c] sm:$0xf]  ;;  %v5219_v59 = vld [vmem:[%s9477_s1 + $0x9f8] sm:$0xf0] }
 0x14e   :  { %3081 = vmatpush.bf16.msra.mxu0 %v4678_v31  ;;  %v4550_v31 = vor.u32 %v6034_v17, %v4547_v49  ;;  %v4899_v3 = vld [vmem:[%s9477_s1 + $0x778] sm:$0xf0]  ;;  %v6198_v14 = vld [vmem:[%s9477_s1 + $0x9cc] sm:$0xf] }
 0x14f   :  { %3046 = vmatpush.bf16.msra.mxu1 %v4230_v30  ;;  %v4755_v11 = vld [vmem:[%s9477_s1 + $0x658] sm:$0xf0]  ;;  %v6082_v25 = vld [vmem:[%s9477_s1 + $0x62c] sm:$0xf] }
 0x150   :  { %3020 = vmatpush.bf16.msra.mxu3 %v3974_v27  ;;  %3059 = vmatpush.bf16.msra.mxu2 %v4358_v40  ;;  %v6130_v27 = vld [vmem:[%s9477_s1 + $0x7ac] sm:$0xf]  ;;  %v2830_v30 = vpop.f32.mrf.mxu0  ;;  %v4883_v12 = vld [vmem:[%s9477_s1 + $0x758] sm:$0xf0] }
 0x151   :  { %v4934_v37 = vor.u32 %v6130_v27, %v4931_v48  ;;  %v6126_v40 = vld [vmem:[%s9477_s1 + $0x78c] sm:$0xf]  ;;  %v5187_v48 = vld [vmem:[%s9477_s1 + $0x9b8] sm:$0xf0]  ;;  %v4886_v30 = vor.u32 %v6118_v58, %v4883_v12 }
 0x152   :  { %3082 = vmatpush.bf16.msra.mxu0 %v4662_v57  ;;  %v6202_v57 = vld [vmem:[%s9477_s1 + $0x9ec] sm:$0xf]  ;;  %v4918_v60 = vor.u32 %v6126_v40, %v4915_v43  ;;  %v5171_v40 = vld [vmem:[%s9477_s1 + $0x998] sm:$0xf0] }
 0x153   :  { %3047 = vmatpush.bf16.msra.mxu1 %v4214_v55  ;;  %v4771_v55 = vld [vmem:[%s9477_s1 + $0x678] sm:$0xf0]  ;;  %v5222_v7 = vor.u32 %v6202_v57, %v5219_v59  ;;  %v6194_v27 = vld [vmem:[%s9477_s1 + $0x9ac] sm:$0xf] }
 0x154   :  { %3021 = vmatpush.bf16.msra.mxu3 %v3958_v50  ;;  %3060 = vmatpush.bf16.msra.mxu2 %v4342_v8  ;;  %v6026_v50 = vld [vmem:[%s9477_s1 + $0x46c] sm:$0xf]  ;;  %v2804_v51 = vpop.f32.mrf.mxu2  ;;  %v4774_v54 = vor.u32 %v6090_v53, %v4771_v55  ;;  %v5190_v36 = vor.u32 %v6194_v27, %v5187_v48  ;;  %v5475_v59 = vld [vmem:[%s9477_s1 + $0xbf8] sm:$0xf0] }
 0x155   :  { %v4518_v5 = vor.u32 %v6026_v50, %v4515_v52  ;;  %v6078_v35 = vld [vmem:[%s9477_s1 + $0x60c] sm:$0xf]  ;;  %v5347_v50 = vld [vmem:[%s9477_s1 + $0xaf8] sm:$0xf0] }
 0x156   :  { %3048 = vmatmul.bf16.vlgmr.msra.gmra.mxu1 %v6705_v4  ;;  %3083 = vmatpush.bf16.msra.mxu0 %v4646_v10  ;;  %v4611_v4 = vld [vmem:[%s9477_s1 + $0x538] sm:$0xf0]  ;;  %v6086_v10 = vld [vmem:[%s9477_s1 + $0x64c] sm:$0xf] }
 0x157   :  { %3092 = vmatpush.bf16.msrb.mxu1 %v4838_v0  ;;  %3022 = vmatmul.bf16.vlgmr.msra.gmra.mxu3 %v6737_v20  ;;  %v4806_v20 = vor.u32 %v6098_v19, %v4803_v22  ;;  %v4614_v39 = vor.u32 %v6050_v56, %v4611_v4  ;;  %v2841_v0 = vpop.f32.mrf.mxu1  ;;  %v4758_v49 = vor.u32 %v6086_v10, %v4755_v11  ;;  %v6018_v19 = vld [vmem:[%s9477_s1 + $0x42c] sm:$0xf]  ;;  %v4851_v52 = vld [vmem:[%s9477_s1 + $0x718] sm:$0xf0] }
 0x158   :  { %3066 = vmatpush.bf16.msrb.mxu3 %v4582_v63  ;;  %3105 = vmatpush.bf16.msrb.mxu2 %v4966_v9  ;;  %v4499_v9 = vld [vmem:[%s9477_s1 + $0x458] sm:$0xf0]  ;;  %v6110_v51 = vld [vmem:[%s9477_s1 + $0x70c] sm:$0xf] }
 0x159   :  { %3061 = vmatmul.bf16.vlgmr.msra.gmra.mxu2 %v6710_v6  ;;  %v6046_v6 = vld [vmem:[%s9477_s1 + $0x50c] sm:$0xf]  ;;  %v5459_v11 = vld [vmem:[%s9477_s1 + $0xbd8] sm:$0xf0] }
 0x15a   :  { %3084 = vmatpush.bf16.msra.mxu0 %v4630_v26  ;;  %v4598_v63 = vor.u32 %v6046_v6, %v4595_v47  ;;  %v2815_v8 = vpop.f32.mrf.mxu3  ;;  %v6234_v6 = vld [vmem:[%s9477_s1 + $0xaec] sm:$0xf]  ;;  %v5139_v58 = vld [vmem:[%s9477_s1 + $0x958] sm:$0xf0] }
 0x15b   :  { %3093 = vmatpush.bf16.msrb.mxu1 %v4822_v16  ;;  %v2816_v13 = vadd.f32 %v2815_v8, %v2803_v18  ;;  %v4902_v16 = vor.u32 %v6122_v2, %v4899_v3  ;;  %v4502_v18 = vor.u32 %v6022_v1, %v4499_v9  ;;  %v6266_v57 = vld [vmem:[%s9477_s1 + $0xbec] sm:$0xf]  ;;  %v5350_v2 = vor.u32 %v6234_v6, %v5347_v50  ;;  %v5155_v3 = vld [vmem:[%s9477_s1 + $0x978] sm:$0xf0]  ;;  %v5605_v50 = vld [vmem:[%s9480_s3 + $0x70] sm:$0xf] }
 0x15c   :  { %3067 = vmatpush.bf16.msrb.mxu3 %v4566_v15  ;;  %3106 = vmatpush.bf16.msrb.mxu2 %v4950_v23  ;;  %v5203_v15 = vld [vmem:[%s9477_s1 + $0x9d8] sm:$0xf0]  ;;  %v4854_v1 = vor.u32 %v6110_v51, %v4851_v52  ;;  %v5478_v9 = vor.u32 %v6266_v57, %v5475_v59  ;;  %v6262_v10 = vld [vmem:[%s9477_s1 + $0xbcc] sm:$0xf]  ;;  %v6300_v51 = vld [vmem:[%s9480_s3 + $0x74] sm:$0xf0] }
 0x15d   :  { %v2829_v17 = vadd.f32 %v8586_v61, %v2816_v13  ;;  %v5206_v22 = vor.u32 %v6198_v14, %v5203_v15  ;;  %v4483_v23 = vld [vmem:[%s9477_s1 + $0x438] sm:$0xf0]  ;;  %v6182_v15 = vld [vmem:[%s9477_s1 + $0x94c] sm:$0xf] }
 0x15e   :  { %3085 = vmatpush.bf16.msra.mxu0 %v4614_v39  ;;  %v4739_v61 = vld [vmem:[%s9477_s1 + $0x638] sm:$0xf0]  ;;  %v4486_v4 = vor.u32 %v6018_v19, %v4483_v23  ;;  %v6190_v39 = vld [vmem:[%s9477_s1 + $0x98c] sm:$0xf] }
 0x15f   :  { %3094 = vmatpush.bf16.msrb.mxu1 %v4806_v20  ;;  %v8730_v26 = vadd.f32 %v2841_v0, %v2829_v17  ;;  %v4867_v20 = vld [vmem:[%s9477_s1 + $0x738] sm:$0xf0]  ;;  %v2843_v56 = vpop.f32.mrf.mxu1  ;;  %v4742_v34 = vor.u32 %v6082_v25, %v4739_v61  ;;  %v6186_v0 = vld [vmem:[%s9477_s1 + $0x96c] sm:$0xf] }
 0x160   :  { %3068 = vmatpush.bf16.msrb.mxu3 %v4550_v31  ;;  %3107 = vmatpush.bf16.msrb.mxu2 %v4934_v37  ;;  %v6114_v31 = vld [vmem:[%s9477_s1 + $0x72c] sm:$0xf]  ;;  %v4723_v37 = vld [vmem:[%s9477_s1 + $0x618] sm:$0xf0]  ;;  %v5158_v13 = vor.u32 %v6186_v0, %v5155_v3 }
 0x161   :  { %v4870_v47 = vor.u32 %v6114_v31, %v4867_v20  ;;  %v4726_v55 = vor.u32 %v6078_v35, %v4723_v37  ;;  %v5331_v8 = vld [vmem:[%s9477_s1 + $0xad8] sm:$0xf0]  ;;  %v6162_v12 = vld [vmem:[%s9477_s1 + $0x8ac] sm:$0xf] }
 0x162   :  { %3086 = vmatpush.bf16.msra.mxu0 %v4598_v63  ;;  %v2817_v43 = vpop.f32.mrf.mxu3  ;;  %v5059_v17 = vld [vmem:[%s9477_s1 + $0x8b8] sm:$0xf0]  ;;  %v6258_v23 = vld [vmem:[%s9477_s1 + $0xbac] sm:$0xf] }
 0x163   :  { %3095 = vmatpush.bf16.msrb.mxu1 %v4790_v46  ;;  %v5091_v46 = vld [vmem:[%s9477_s1 + $0x8f8] sm:$0xf0]  ;;  %v5062_v61 = vor.u32 %v6162_v12, %v5059_v17  ;;  %v6178_v27 = vld [vmem:[%s9477_s1 + $0x92c] sm:$0xf] }
 0x164   :  { %3069 = vmatpush.bf16.msrb.mxu3 %v4534_v45  ;;  %3108 = vmatpush.bf16.msrb.mxu2 %v4918_v60  ;;  %v6170_v45 = vld [vmem:[%s9477_s1 + $0x8ec] sm:$0xf]  ;;  %v5174_v60 = vor.u32 %v6190_v39, %v5171_v40  ;;  %v5315_v19 = vld [vmem:[%s9477_s1 + $0xab8] sm:$0xf0] }
 0x165   :  { %3087 = vmatmul.bf16.vlgmr.msra.gmra.mxu0 %v6900_v44  ;;  %v4467_v44 = vld [vmem:[%s9477_s1 + $0x418] sm:$0xf0]  ;;  %v5094_v63 = vor.u32 %v6170_v45, %v5091_v46  ;;  %v6158_v31 = vld [vmem:[%s9477_s1 + $0x88c] sm:$0xf] }
 0x166   :  { %3131 = vmatpush.bf16.msrb.mxu0 %v5222_v7  ;;  %v4470_v53 = vor.u32 %v6014_v21, %v4467_v44  ;;  %v6230_v7 = vld [vmem:[%s9477_s1 + $0xacc] sm:$0xf]  ;;  %v5443_v25 = vld [vmem:[%s9477_s1 + $0xbb8] sm:$0xf0] }
 0x167   :  { %3096 = vmatpush.bf16.msrb.mxu1 %v4774_v54  ;;  %v5075_v54 = vld [vmem:[%s9477_s1 + $0x8d8] sm:$0xf0]  ;;  %v6222_v20 = vld [vmem:[%s9477_s1 + $0xa8c] sm:$0xf] }
 0x168   :  { %3070 = vmatpush.bf16.msrb.mxu3 %v4518_v5  ;;  %3109 = vmatpush.bf16.msrb.mxu2 %v4902_v16  ;;  %v6166_v5 = vld [vmem:[%s9477_s1 + $0x8cc] sm:$0xf]  ;;  %v5334_v16 = vor.u32 %v6230_v7, %v5331_v8  ;;  %v5299_v56 = vld [vmem:[%s9477_s1 + $0xa98] sm:$0xf0] }
 0x169   :  { %v5078_v14 = vor.u32 %v6166_v5, %v5075_v54  ;;  %v6254_v21 = vld [vmem:[%s9477_s1 + $0xb8c] sm:$0xf]  ;;  %v5107_v37 = vld [vmem:[%s9477_s1 + $0x918] sm:$0xf0]  ;;  %v5302_v40 = vor.u32 %v6222_v20, %v5299_v56  ;;  %v5597_v54 = vld [vmem:[%s9480_s3 + $0x60] sm:$0xf] }
 0x16a   :  { %3132 = vmatpush.bf16.msrb.mxu0 %v5206_v22  ;;  %v5462_v22 = vor.u32 %v6262_v10, %v5459_v11  ;;  %v6154_v43 = vld [vmem:[%s9477_s1 + $0x86c] sm:$0xf]  ;;  %v5027_v45 = vld [vmem:[%s9477_s1 + $0x878] sm:$0xf0]  ;;  %v5581_v20 = vld [vmem:[%s9480_s3 + $0x40] sm:$0xf] }
 0x16b   :  { %3097 = vmatpush.bf16.msrb.mxu1 %v4758_v49  ;;  %v6226_v49 = vld [vmem:[%s9477_s1 + $0xaac] sm:$0xf]  ;;  %v5030_v59 = vor.u32 %v6154_v43, %v5027_v45  ;;  %v5267_v5 = vld [vmem:[%s9477_s1 + $0xa58] sm:$0xf0]  ;;  %v6294_v56 = vld [vmem:[%s9480_s3 + $0x44] sm:$0xf0] }
 0x16c   :  { %3071 = vmatpush.bf16.msrb.mxu3 %v4502_v18  ;;  %3110 = vmatpush.bf16.msrb.mxu2 %v4886_v30  ;;  %v8823_v18 = vpop.f32.mrf.mxu2  ;;  %v5318_v48 = vor.u32 %v6226_v49, %v5315_v19  ;;  %v5123_v30 = vld [vmem:[%s9477_s1 + $0x938] sm:$0xf0]  ;;  %v6218_v46 = vld [vmem:[%s9477_s1 + $0xa6c] sm:$0xf]  ;;  %v5589_v19 = vld [vmem:[%s9480_s3 + $0x50] sm:$0xf] }
 0x16d   :  { %v5126_v44 = vor.u32 %v6178_v27, %v5123_v30  ;;  %v6150_v0 = vld [vmem:[%s9477_s1 + $0x84c] sm:$0xf]  ;;  %v5395_v11 = vld [vmem:[%s9477_s1 + $0xb58] sm:$0xf0] }
 0x16e   :  { %3133 = vmatpush.bf16.msrb.mxu0 %v5190_v36  ;;  %v6174_v36 = vld [vmem:[%s9477_s1 + $0x90c] sm:$0xf]  ;;  %v4995_v12 = vld [vmem:[%s9477_s1 + $0x838] sm:$0xf0] }
 0x16f   :  { %3098 = vmatpush.bf16.msrb.mxu1 %v4742_v34  ;;  %v8858_v34 = vpop.f32.mrf.mxu0  ;;  %v5110_v57 = vor.u32 %v6174_v36, %v5107_v37  ;;  %v6214_v3 = vld [vmem:[%s9477_s1 + $0xa4c] sm:$0xf]  ;;  %v5251_v49 = vld [vmem:[%s9477_s1 + $0xa38] sm:$0xf0] }
 0x170   :  { %3072 = vmatpush.bf16.msrb.mxu3 %v4486_v4  ;;  %3111 = vmatpush.bf16.msrb.mxu2 %v4870_v47  ;;  %v5446_v4 = vor.u32 %v6258_v23, %v5443_v25  ;;  %v5283_v47 = vld [vmem:[%s9477_s1 + $0xa78] sm:$0xf0]  ;;  %v6246_v10 = vld [vmem:[%s9477_s1 + $0xb4c] sm:$0xf] }
 0x171   :  { %v6210_v17 = vld [vmem:[%s9477_s1 + $0xa2c] sm:$0xf]  ;;  %v5398_v23 = vor.u32 %v6246_v10, %v5395_v11  ;;  %v5539_v36 = vld [vmem:[%s9477_s1 + $0xc78] sm:$0xf0]  ;;  %v6290_v10 = vld [vmem:[%s9480_s3 + $0x24] sm:$0xf0] }
 0x172   :  { %3134 = vmatpush.bf16.msrb.mxu0 %v5174_v60  ;;  %v5286_v60 = vor.u32 %v6218_v46, %v5283_v47  ;;  %v6242_v25 = vld [vmem:[%s9477_s1 + $0xb2c] sm:$0xf]  ;;  %v5363_v43 = vld [vmem:[%s9477_s1 + $0xb18] sm:$0xf0]  ;;  %v5582_v46 = vor.u32 %v6294_v56, %v5581_v20  ;;  %v6332_v47 = vld [vmem:[%s9480_s3 + $0x174] sm:$0xf0] }
 0x173   :  { %3099 = vmatpush.bf16.msrb.mxu1 %v4726_v55  ;;  %v8872_v39 = vpop.f32.mrf.mxu1  ;;  %v5411_v55 = vld [vmem:[%s9477_s1 + $0xb78] sm:$0xf0]  ;;  %v6142_v27 = vld [vmem:[%s9477_s1 + $0x80c] sm:$0xf]  ;;  %v5653_v11 = vld [vmem:[%s9480_s3 + $0xd0] sm:$0xf] }
 0x174   :  { %3073 = vmatpush.bf16.msrb.mxu3 %v4470_v53  ;;  %3112 = vmatpush.bf16.msrb.mxu2 %v4854_v1  ;;  %v2856_v6 = vpop.f32.mrf.mxu2  ;;  %v6250_v53 = vld [vmem:[%s9477_s1 + $0xb6c] sm:$0xf]  ;;  %v6298_v1 = vld [vmem:[%s9480_s3 + $0x64] sm:$0xf0] }
 0x175   :  { %v5414_v7 = vor.u32 %v6250_v53, %v5411_v55  ;;  %v5733_v6 = vld [vmem:[%s9480_s3 + $0x170] sm:$0xf]  ;;  %v6292_v55 = vld [vmem:[%s9480_s3 + $0x34] sm:$0xf0] }
 0x176   :  { %3100 = vmatmul.bf16.vlgmr.msrb.gmra.mxu1 %v6888_v38  ;;  %3135 = vmatpush.bf16.msrb.mxu0 %v5158_v13  ;;  %v5043_v38 = vld [vmem:[%s9477_s1 + $0x898] sm:$0xf0]  ;;  %v5573_v53 = vld [vmem:[%s9480_s3 + $0x30] sm:$0xf] }
 0x177   :  { %3144 = vmatpush.bf16.msra.mxu1 %v5350_v2  ;;  %3074 = vmatmul.bf16.vlgmr.msrb.gmra.mxu3 %v6896_v41  ;;  %v5142_v41 = vor.u32 %v6182_v15, %v5139_v58  ;;  %v5046_v35 = vor.u32 %v6158_v31, %v5043_v38  ;;  %v5011_v2 = vld [vmem:[%s9477_s1 + $0x858] sm:$0xf0]  ;;  %v5270_v15 = vor.u32 %v6214_v3, %v5267_v5  ;;  %v6146_v58 = vld [vmem:[%s9477_s1 + $0x82c] sm:$0xf]  ;;  %v5725_v5 = vld [vmem:[%s9480_s3 + $0x160] sm:$0xf] }
 0x178   :  { %3118 = vmatpush.bf16.msra.mxu3 %v5094_v63  ;;  %3157 = vmatpush.bf16.msra.mxu2 %v5478_v9  ;;  %v5606_v63 = vor.u32 %v6300_v51, %v5605_v50  ;;  %v2882_v9 = vpop.f32.mrf.mxu0  ;;  %v5014_v13 = vor.u32 %v6150_v0, %v5011_v2  ;;  %v4979_v31 = vld [vmem:[%s9477_s1 + $0x818] sm:$0xf0]  ;;  %v6206_v38 = vld [vmem:[%s9477_s1 + $0xa0c] sm:$0xf]  ;;  %v5734_v2 = vor.u32 %v6332_v47, %v5733_v6  ;;  %v6324_v6 = vld [vmem:[%s9480_s3 + $0x134] sm:$0xf0] }
 0x179   :  { %3113 = vmatmul.bf16.vlgmr.msrb.gmra.mxu2 %v6898_v42  ;;  %v5427_v42 = vld [vmem:[%s9477_s1 + $0xb98] sm:$0xf0]  ;;  %v4982_v37 = vor.u32 %v6142_v27, %v4979_v31  ;;  %v5574_v3 = vor.u32 %v6292_v55, %v5573_v53  ;;  %v5565_v9 = vld [vmem:[%s9480_s3 + $0x20] sm:$0xf]  ;;  %v3183_v47 = vmax.f32 %v8122_v62, 0.0 }
 0x17a   :  { %3136 = vmatpush.bf16.msrb.mxu0 %v5142_v41  ;;  %v5430_v52 = vor.u32 %v6254_v21, %v5427_v42  ;;  %v8916_v8 = vpop.f32.mrf.mxu3  ;;  %v5379_v41 = vld [vmem:[%s9477_s1 + $0xb38] sm:$0xf0]  ;;  %v5629_v53 = vld [vmem:[%s9480_s3 + $0xa0] sm:$0xf]  ;;  %v5599_v62 = vld [vmem:[%s9480_s3 + $0x68] sm:$0xf0] }
 0x17b   :  { %3145 = vmatpush.bf16.msra.mxu1 %v5334_v16  ;;  %v5598_v16 = vor.u32 %v6298_v1, %v5597_v54  ;;  %v5382_v21 = vor.u32 %v6242_v25, %v5379_v41  ;;  %v5523_v0 = vld [vmem:[%s9477_s1 + $0xc58] sm:$0xf0]  ;;  %v6330_v54 = vld [vmem:[%s9480_s3 + $0x164] sm:$0xf0]  ;;  %v5645_v25 = vld [vmem:[%s9480_s3 + $0xc0] sm:$0xf] }
 0x17c   :  { %3119 = vmatpush.bf16.msra.mxu3 %v5078_v14  ;;  %3158 = vmatpush.bf16.msra.mxu2 %v5462_v22  ;;  %v2895_v14 = vpop.f32.mrf.mxu1  ;;  %v6296_v22 = vld [vmem:[%s9480_s3 + $0x54] sm:$0xf0]  ;;  %v6310_v41 = vld [vmem:[%s9480_s3 + $0xc4] sm:$0xf0]  ;;  %v5491_v27 = vld [vmem:[%s9477_s1 + $0xc18] sm:$0xf0] }
 0x17d   :  { %v5590_v30 = vor.u32 %v6296_v22, %v5589_v19  ;;  %v6274_v14 = vld [vmem:[%s9477_s1 + $0xc2c] sm:$0xf]  ;;  %v5646_v20 = vor.u32 %v6310_v41, %v5645_v25  ;;  %v6318_v25 = vld [vmem:[%s9480_s3 + $0x104] sm:$0xf0] }
 0x17e   :  { %3137 = vmatpush.bf16.msrb.mxu0 %v5126_v44  ;;  %v6316_v44 = vld [vmem:[%s9480_s3 + $0xf4] sm:$0xf0] }
 0x17f   :  { %3146 = vmatpush.bf16.msra.mxu1 %v5318_v48  ;;  %v5254_v48 = vor.u32 %v6210_v17, %v5251_v49  ;;  %v6328_v17 = vld [vmem:[%s9480_s3 + $0x154] sm:$0xf0] }
 0x180   :  { %3120 = vmatpush.bf16.msra.mxu3 %v5062_v61  ;;  %3159 = vmatpush.bf16.msra.mxu2 %v5446_v4  ;;  %v4998_v61 = vor.u32 %v6146_v58, %v4995_v12  ;;  %v5669_v4 = vld [vmem:[%s9480_s3 + $0xf0] sm:$0xf]  ;;  %v5726_v58 = vor.u32 %v6330_v54, %v5725_v5 }
 0x181   :  { %v5670_v51 = vor.u32 %v6316_v44, %v5669_v4  ;;  %v5717_v12 = vld [vmem:[%s9480_s3 + $0x150] sm:$0xf]  ;;  %v5549_v4 = vld [vmem:[%s9480_s3] sm:$0xf] }
 0x182   :  { %3138 = vmatpush.bf16.msrb.mxu0 %v5110_v57  ;;  %v2869_v42 = vpop.f32.mrf.mxu3  ;;  %v8991_v50 = vpop.f32.mrf.mxu0  ;;  %v5661_v57 = vld [vmem:[%s9480_s3 + $0xe0] sm:$0xf]  ;;  %v5621_v54 = vld [vmem:[%s9480_s3 + $0x90] sm:$0xf] }
 0x183   :  { %3147 = vmatpush.bf16.msra.mxu1 %v5302_v40  ;;  %v6238_v40 = vld [vmem:[%s9477_s1 + $0xb0c] sm:$0xf]  ;;  %v5637_v42 = vld [vmem:[%s9480_s3 + $0xb0] sm:$0xf] }
 0x184   :  { %3121 = vmatpush.bf16.msra.mxu3 %v5046_v35  ;;  %3160 = vmatpush.bf16.msra.mxu2 %v5430_v52  ;;  %v6282_v35 = vld [vmem:[%s9477_s1 + $0xc6c] sm:$0xf] }
 0x185   :  { %3139 = vmatmul.bf16.vlgmr.msrb.gmra.mxu0 %v7110_v33  ;;  %v5235_v33 = vld [vmem:[%s9477_s1 + $0xa18] sm:$0xf0]  ;;  %v5542_v52 = vor.u32 %v6282_v35, %v5539_v36  ;;  %v6308_v35 = vld [vmem:[%s9480_s3 + $0xb4] sm:$0xf0]  ;;  %v6299_v36 = vld [vmem:[%s9480_s3 + $0x74] sm:$0xf] }
 0x186   :  { %3581 = vmatpush.bf16.msra.mxu0 %v5606_v63  ;;  %v5238_v45 = vor.u32 %v6206_v38, %v5235_v33  ;;  %v6278_v63 = vld [vmem:[%s9477_s1 + $0xc4c] sm:$0xf]  ;;  %v5709_v38 = vld [vmem:[%s9480_s3 + $0x140] sm:$0xf]  ;;  %v6326_v33 = vld [vmem:[%s9480_s3 + $0x144] sm:$0xf0] }
 0x187   :  { %3148 = vmatpush.bf16.msra.mxu1 %v5286_v60  ;;  %v5366_v60 = vor.u32 %v6238_v40, %v5363_v43  ;;  %v5710_v43 = vor.u32 %v6326_v33, %v5709_v38  ;;  %v6291_v33 = vld [vmem:[%s9480_s3 + $0x34] sm:$0xf] }
 0x188   :  { %3122 = vmatpush.bf16.msra.mxu3 %v5030_v59  ;;  %3161 = vmatpush.bf16.msra.mxu2 %v5414_v7  ;;  %v6314_v59 = vld [vmem:[%s9480_s3 + $0xe4] sm:$0xf0]  ;;  %v5526_v7 = vor.u32 %v6278_v63, %v5523_v0 }
 0x189   :  { %v5662_v1 = vor.u32 %v6314_v59, %v5661_v57  ;;  %v6306_v57 = vld [vmem:[%s9480_s3 + $0xa4] sm:$0xf0]  ;;  %v6297_v59 = vld [vmem:[%s9480_s3 + $0x64] sm:$0xf] }
 0x18a   :  { %3582 = vmatpush.bf16.msra.mxu0 %v5598_v16  ;;  %v9036_v16 = vpop.f32.mrf.mxu2  ;;  %v2934_v49 = vpop.f32.mrf.mxu0  ;;  %v6322_v0 = vld [vmem:[%s9480_s3 + $0x124] sm:$0xf0]  ;;  %v5602_v5 = vor.u32 %v6297_v59, %v5599_v62  ;;  %v6287_v62 = vld [vmem:[%s9480_s3 + $0x14] sm:$0xf] }
 0x18b   :  { %3149 = vmatpush.bf16.msra.mxu1 %v5270_v15  ;;  %v5507_v15 = vld [vmem:[%s9477_s1 + $0xc38] sm:$0xf0]  ;;  %v5583_v49 = vld [vmem:[%s9480_s3 + $0x48] sm:$0xf0] }
 0x18c   :  { %3123 = vmatpush.bf16.msra.mxu3 %v5014_v13  ;;  %3162 = vmatpush.bf16.msra.mxu2 %v5398_v23  ;;  %v6312_v13 = vld [vmem:[%s9480_s3 + $0xd4] sm:$0xf0]  ;;  %v5510_v22 = vor.u32 %v6274_v14, %v5507_v15 }
 0x18d   :  { %v5654_v19 = vor.u32 %v6312_v13, %v5653_v11  ;;  %v6288_v23 = vld [vmem:[%s9480_s3 + $0x14] sm:$0xf0]  ;;  %v5591_v11 = vld [vmem:[%s9480_s3 + $0x58] sm:$0xf0] }
 0x18e   :  { %3583 = vmatpush.bf16.msra.mxu0 %v5590_v30  ;;  %v9067_v30 = vld [vmem:[%s9479_s2] sm:$0xf] }
 0x18f   :  { %3150 = vmatpush.bf16.msra.mxu1 %v5254_v48  ;;  %v5718_v48 = vor.u32 %v6328_v17, %v5717_v12  ;;  %v6302_v12 = vld [vmem:[%s9480_s3 + $0x84] sm:$0xf0]  ;;  %v6293_v17 = vld [vmem:[%s9480_s3 + $0x44] sm:$0xf] }
 0x190   :  { %3124 = vmatpush.bf16.msra.mxu3 %v4998_v61  ;;  %3163 = vmatpush.bf16.msra.mxu2 %v5382_v21  ;;  %v6270_v61 = vld [vmem:[%s9477_s1 + $0xc0c] sm:$0xf]  ;;  %v6286_v21 = vld [vmem:[%s9480_s3 + $0x4] sm:$0xf0] }
 0x191   :  { %v5494_v56 = vor.u32 %v6270_v61, %v5491_v27  ;;  %v5586_v61 = vor.u32 %v6293_v17, %v5583_v49  ;;  %v6331_v27 = vld [vmem:[%s9480_s3 + $0x174] sm:$0xf]  ;;  %v6305_v49 = vld [vmem:[%s9480_s3 + $0xa4] sm:$0xf] }
 0x192   :  { %3584 = vmatpush.bf16.msra.mxu0 %v5582_v46  ;;  %v2908_v40 = vpop.f32.mrf.mxu2  ;;  %v5701_v46 = vld [vmem:[%s9480_s3 + $0x130] sm:$0xf] }
 0x193   :  { %3151 = vmatpush.bf16.msra.mxu1 %v5238_v45  ;;  %v9085_v44 = vpop.f32.mrf.mxu1  ;;  %v5550_v45 = vor.u32 %v6286_v21, %v5549_v4  ;;  %v5702_v63 = vor.u32 %v6324_v6, %v5701_v46  ;;  %v6313_v4 = vld [vmem:[%s9480_s3 + $0xe4] sm:$0xf]  ;;  %v5567_v46 = vld [vmem:[%s9480_s3 + $0x28] sm:$0xf0]  ;;  %v6311_v6 = vld [vmem:[%s9480_s3 + $0xd4] sm:$0xf] }
 0x194   :  { %3125 = vmatpush.bf16.msra.mxu3 %v4982_v37  ;;  %3164 = vmatpush.bf16.msra.mxu2 %v5366_v60  ;;  %v5607_v37 = vld [vmem:[%s9480_s3 + $0x78] sm:$0xf0] }
 0x196   :  { %3152 = vmatmul.bf16.vlgmr.msra.gmra.mxu1 %v7086_v24  ;;  %3585 = vmatpush.bf16.msra.mxu0 %v5574_v3  ;;  %v5557_v24 = vld [vmem:[%s9480_s3 + $0x10] sm:$0xf]  ;;  %v5630_v3 = vor.u32 %v6306_v57, %v5629_v53  ;;  %v6327_v53 = vld [vmem:[%s9480_s3 + $0x154] sm:$0xf] }
 0x197   :  { %3594 = vmatpush.bf16.msrb.mxu1 %v5670_v51  ;;  %3126 = vmatmul.bf16.vlgmr.msra.gmra.mxu3 %v7097_v28  ;;  %v5566_v28 = vor.u32 %v6290_v10, %v5565_v9  ;;  %v5558_v31 = vor.u32 %v6288_v23, %v5557_v24  ;;  %v5638_v51 = vor.u32 %v6308_v35, %v5637_v42  ;;  %v6304_v9 = vld [vmem:[%s9480_s3 + $0x94] sm:$0xf0]  ;;  %v6295_v10 = vld [vmem:[%s9480_s3 + $0x54] sm:$0xf]  ;;  %v5677_v23 = vld [vmem:[%s9480_s3 + $0x100] sm:$0xf] }
 0x198   :  { %3174 = vmatpush.bf16.msrb.mxu3 %v5542_v52  ;;  %3607 = vmatpush.bf16.msrb.mxu2 %v5734_v2  ;;  %v5610_v52 = vor.u32 %v6299_v36, %v5607_v37  ;;  %v9124_v2 = vpack.c.bf16 %v3183_v47, %v3183_v47  ;;  %v5622_v14 = vor.u32 %v6304_v9, %v5621_v54  ;;  %v6329_v35 = vld [vmem:[%s9480_s3 + $0x164] sm:$0xf]  ;;  %v5727_v36 = vld [vmem:[%s9480_s3 + $0x168] sm:$0xf0]  ;;  %v5655_v47 = vld [vmem:[%s9480_s3 + $0xd8] sm:$0xf0] }
 0x199   :  { %3165 = vmatmul.bf16.vlgmr.msra.gmra.mxu2 %v7099_v29  ;;  %v452_v29 = vperm.slane %v9067_v30, 2  ;;  %v5594_v15 = vor.u32 %v6295_v10, %v5591_v11  ;;  %v5658_v59 = vor.u32 %v6311_v6, %v5655_v47  ;;  %v6325_v54 = vld [vmem:[%s9480_s3 + $0x144] sm:$0xf]  ;;  %v5551_v11 = vld [vmem:[%s9480_s3 + $0x8] sm:$0xf0] }
 0x19a   :  { %3586 = vmatpush.bf16.msra.mxu0 %v5566_v28  ;;  %v9116_v60 = vpop.f32.mrf.mxu3  ;;  %v6285_v10 = vld [vmem:[%s9480_s3 + $0x4] sm:$0xf] }
 0x19b   :  { %3595 = vmatpush.bf16.msrb.mxu1 %v5662_v1  ;;  %v2855_v55 = vadd.f32 %v8823_v18, %v452_v29  ;;  %v5693_v18 = vld [vmem:[%s9480_s3 + $0x120] sm:$0xf]  ;;  %v2947_v1 = vpop.f32.mrf.mxu1  ;;  %v3184_v29 = vmax.f32 %v8730_v26, 0.0  ;;  %v5663_v26 = vld [vmem:[%s9480_s3 + $0xe8] sm:$0xf0] }
 0x19c   :  { %3175 = vmatpush.bf16.msrb.mxu3 %v5526_v7  ;;  %3608 = vmatpush.bf16.msrb.mxu2 %v5726_v58  ;;  %v5694_v13 = vor.u32 %v6322_v0, %v5693_v18  ;;  %v5613_v58 = vld [vmem:[%s9480_s3 + $0x80] sm:$0xf]  ;;  %v6309_v0 = vld [vmem:[%s9480_s3 + $0xc4] sm:$0xf]  ;;  %v5711_v1 = vld [vmem:[%s9480_s3 + $0x148] sm:$0xf0] }
 0x19d   :  { %v2868_v7 = vadd.f32 %v8916_v8, %v2855_v55  ;;  %v6320_v8 = vld [vmem:[%s9480_s3 + $0x114] sm:$0xf0]  ;;  %v5614_v41 = vor.u32 %v6302_v12, %v5613_v58  ;;  %v9201_v37 = vpack.c.bf16 %v3184_v29, %v3184_v29  ;;  %v5719_v55 = vld [vmem:[%s9480_s3 + $0x158] sm:$0xf0]  ;;  %v6323_v58 = vld [vmem:[%s9480_s3 + $0x134] sm:$0xf] }
 0x19e   :  { %3587 = vmatpush.bf16.msra.mxu0 %v5558_v31 }
 0x19f   :  { %3596 = vmatpush.bf16.msrb.mxu1 %v5654_v19  ;;  %v2881_v28 = vadd.f32 %v8858_v34, %v2868_v7  ;;  %v6315_v19 = vld [vmem:[%s9480_s3 + $0xf4] sm:$0xf]  ;;  %v5671_v34 = vld [vmem:[%s9480_s3 + $0xf8] sm:$0xf0] }
 0x1a0   :  { %3176 = vmatpush.bf16.msrb.mxu3 %v5510_v22  ;;  %3609 = vmatpush.bf16.msrb.mxu2 %v5718_v48  ;;  %v5735_v48 = vld [vmem:[%s9480_s3 + $0x178] sm:$0xf0]  ;;  %v5674_v38 = vor.u32 %v6315_v19, %v5671_v34  ;;  %v5631_v19 = vld [vmem:[%s9480_s3 + $0xa8] sm:$0xf0] }
 0x1a1   :  { %v2894_v31 = vadd.f32 %v8872_v39, %v2881_v28  ;;  %v5678_v39 = vor.u32 %v6318_v25, %v5677_v23  ;;  %v5738_v21 = vor.u32 %v6331_v27, %v5735_v48  ;;  %v5703_v28 = vld [vmem:[%s9480_s3 + $0x138] sm:$0xf0]  ;;  %v6321_v23 = vld [vmem:[%s9480_s3 + $0x124] sm:$0xf] }
 0x1a2   :  { %3588 = vmatpush.bf16.msra.mxu0 %v5550_v45  ;;  %v2921_v22 = vpop.f32.mrf.mxu3  ;;  %v6289_v45 = vld [vmem:[%s9480_s3 + $0x24] sm:$0xf]  ;;  %v5623_v27 = vld [vmem:[%s9480_s3 + $0x98] sm:$0xf0] }
 0x1a3   :  { %3597 = vmatpush.bf16.msrb.mxu1 %v5646_v20  ;;  %v5575_v20 = vld [vmem:[%s9480_s3 + $0x38] sm:$0xf0]  ;;  %v2907_v40 = vadd.f32 %v9036_v16, %v2894_v31  ;;  %v5706_v22 = vor.u32 %v6323_v58, %v5703_v28  ;;  %v453_v28 = vperm.slane %v9067_v30, 3  ;;  %v6334_v30 = vld [vmem:[%s9480_s3 + $0x184] sm:$0xf0] }
 0x1a4   :  { %3177 = vmatpush.bf16.msrb.mxu3 %v5494_v56  ;;  %3610 = vmatpush.bf16.msrb.mxu2 %v5710_v43  ;;  %v9187_v56 = vpop.f32.mrf.mxu0  ;;  %v5578_v42 = vor.u32 %v6291_v33, %v5575_v20  ;;  %v5666_v43 = vor.u32 %v6313_v4, %v5663_v26  ;;  %v6319_v33 = vld [vmem:[%s9480_s3 + $0x114] sm:$0xf]  ;;  %v5687_v20 = vld [vmem:[%s9480_s3 + $0x118] sm:$0xf0] }
 0x1a5   :  { %3589 = vmatmul.bf16.vlgmr.msra.gmra.mxu0 %v9124_v2  ;;  %v2920_v57 = vadd.f32 %v9116_v60, %v2907_v40  ;;  %v5722_v60 = vor.u32 %v6327_v53, %v5719_v55  ;;  %v5797_v53 = vld [vmem:[%s9480_s3 + $0x1f0] sm:$0xf]  ;;  %v6348_v55 = vld [vmem:[%s9480_s3 + $0x1f4] sm:$0xf0] }
 0x1a6   :  { %3633 = vmatpush.bf16.msrb.mxu0 %v5610_v52  ;;  %v5570_v52 = vor.u32 %v6289_v45, %v5567_v46 }
 0x1a7   :  { %3598 = vmatpush.bf16.msrb.mxu1 %v5638_v51  ;;  %5546 = vmatmul.msk.bf16.vlgmr.msrb.gmra.mxu3 %vm2503_vm0, %v7215_v32  ;;  %v5685_v32 = vld [vmem:[%s9480_s3 + $0x110] sm:$0xf]  ;;  %v5730_v51 = vor.u32 %v6329_v35, %v5727_v36  ;;  %v2933_v7 = vadd.f32 %v8991_v50, %v2920_v57  ;;  %v5679_v35 = vld [vmem:[%s9480_s3 + $0x108] sm:$0xf0]  ;;  %v5798_v57 = vor.u32 %v6348_v55, %v5797_v53  ;;  %v6335_v55 = vld [vmem:[%s9480_s3 + $0x194] sm:$0xf] }
 0x1a8   :  { %3611 = vmatpush.bf16.msrb.mxu2 %v5702_v63  ;;  %v5686_v24 = vor.u32 %v6320_v8, %v5685_v32  ;;  %v5559_v63 = vld [vmem:[%s9480_s3 + $0x18] sm:$0xf0] }
 0x1a9   :  { %v5639_v32 = vld [vmem:[%s9480_s3 + $0xb8] sm:$0xf0]  ;;  %v2946_v12 = vadd.f32 %v9085_v44, %v2933_v7  ;;  %v5695_v44 = vld [vmem:[%s9480_s3 + $0x128] sm:$0xf0]  ;;  %3620 = vmatpush.bf16.msra.mxu3 %v5798_v57 }
 0x1aa   :  { %3634 = vmatpush.bf16.msrb.mxu0 %v5602_v5  ;;  %v2958_v16 = vpop.f32.mrf.mxu2  ;;  %v5562_v5 = vor.u32 %v6287_v62, %v5559_v63  ;;  %v5698_v31 = vor.u32 %v6321_v23, %v5695_v44  ;;  %v6346_v63 = vld [vmem:[%s9480_s3 + $0x1e4] sm:$0xf0]  ;;  %v5751_v57 = vld [vmem:[%s9480_s3 + $0x198] sm:$0xf0] }
 0x1ab   :  { %3599 = vmatpush.bf16.msrb.mxu1 %v5630_v3  ;;  %v5647_v3 = vld [vmem:[%s9480_s3 + $0xc8] sm:$0xf0]  ;;  %v2959_v34 = vadd.f32 %v2958_v16, %v2946_v12  ;;  %v5749_v12 = vld [vmem:[%s9480_s3 + $0x190] sm:$0xf] }
 0x1ac   :  { %3612 = vmatpush.bf16.msrb.mxu2 %v5694_v13  ;;  %v2986_v18 = vpop.f32.mrf.mxu0  ;;  %v5650_v9 = vor.u32 %v6309_v0, %v5647_v3  ;;  %v6307_v13 = vld [vmem:[%s9480_s3 + $0xb4] sm:$0xf]  ;;  %v5781_v0 = vld [vmem:[%s9480_s3 + $0x1d0] sm:$0xf]  ;;  %v6344_v3 = vld [vmem:[%s9480_s3 + $0x1d4] sm:$0xf0] }
 0x1ad   :  { %v5642_v17 = vor.u32 %v6307_v13, %v5639_v32  ;;  %v6340_v13 = vld [vmem:[%s9480_s3 + $0x1b4] sm:$0xf0] }
 0x1ae   :  { %3635 = vmatpush.bf16.msrb.mxu0 %v5594_v15  ;;  %v5554_v15 = vor.u32 %v6285_v10, %v5551_v11  ;;  %v5765_v11 = vld [vmem:[%s9480_s3 + $0x1b0] sm:$0xf] }
 0x1af   :  { %3600 = vmatpush.bf16.msrb.mxu1 %v5622_v14  ;;  %v5714_v14 = vor.u32 %v6325_v54, %v5711_v1  ;;  %v5773_v54 = vld [vmem:[%s9480_s3 + $0x1c0] sm:$0xf]  ;;  %v6342_v1 = vld [vmem:[%s9480_s3 + $0x1c4] sm:$0xf0]  ;;  %v5766_v32 = vor.u32 %v6340_v13, %v5765_v11 }
 0x1b0   :  { %3613 = vmatpush.bf16.msrb.mxu2 %v5686_v24  ;;  %v5774_v10 = vor.u32 %v6342_v1, %v5773_v54  ;;  %v3255_v13 = vld [vmem:[%s9481_s4] sm:$0x3] }
 0x1b2   :  { %3636 = vmatpush.bf16.msrb.mxu0 %v5586_v61  ;;  %v2960_v8 = vpop.f32.mrf.mxu2  ;;  %v6303_v61 = vld [vmem:[%s9480_s3 + $0x94] sm:$0xf] }
 0x1b3   :  { %3601 = vmatpush.bf16.msrb.mxu1 %v5614_v41  ;;  %v2997_v50 = vpop.f32.mrf.mxu1  ;;  %v5634_v41 = vor.u32 %v6305_v49, %v5631_v19  ;;  %v5626_v26 = vor.u32 %v6303_v61, %v5623_v27  ;;  %v5757_v8 = vld [vmem:[%s9480_s3 + $0x1a0] sm:$0xf] }
 0x1b4   :  { %3614 = vmatpush.bf16.msrb.mxu2 %v5678_v39 }
 0x1b6   :  { %3602 = vmatmul.bf16.vlgmr.msrb.gmra.mxu1 %v9201_v37  ;;  %3637 = vmatpush.bf16.msrb.mxu0 %v5578_v42  ;;  %v6317_v42 = vld [vmem:[%s9480_s3 + $0x104] sm:$0xf] }
 0x1b7   :  { %3646 = vmatpush.bf16.msra.mxu1 %v5674_v38  ;;  %v5682_v46 = vor.u32 %v6317_v42, %v5679_v35  ;;  %v5775_v42 = vld [vmem:[%s9480_s3 + $0x1c8] sm:$0xf0] }
 0x1b8   :  { %3659 = vmatpush.bf16.msra.mxu2 %v5738_v21  ;;  %v5690_v21 = vor.u32 %v6319_v33, %v5687_v20 }
 0x1ba   :  { %3638 = vmatpush.bf16.msrb.mxu0 %v5570_v52  ;;  %v2971_v24 = vpop.f32.mrf.mxu3 }
 0x1bb   :  { %3647 = vmatpush.bf16.msra.mxu1 %v5666_v43  ;;  %v2972_v25 = vadd.f32 %v2971_v24, %v2959_v34  ;;  %v2999_v38 = vpop.f32.mrf.mxu1 }
 0x1bc   :  { %3660 = vmatpush.bf16.msra.mxu2 %v5730_v51  ;;  %v3010_v29 = vpop.f32.mrf.mxu2 }
 0x1bd   :  { %v2985_v48 = vadd.f32 %v9187_v56, %v2972_v25  ;;  %v5615_v56 = vld [vmem:[%s9480_s3 + $0x88] sm:$0xf0]  ;;  %v6347_v25 = vld [vmem:[%s9480_s3 + $0x1f4] sm:$0xf] }
 0x1be   :  { %3639 = vmatpush.bf16.msrb.mxu0 %v5562_v5  ;;  %v5782_v5 = vor.u32 %v6344_v3, %v5781_v0 }
 0x1bf   :  { %3648 = vmatpush.bf16.msra.mxu1 %v5658_v59  ;;  %v2998_v4 = vadd.f32 %v2997_v50, %v2985_v48  ;;  %v6338_v50 = vld [vmem:[%s9480_s3 + $0x1a4] sm:$0xf0]  ;;  %v6345_v48 = vld [vmem:[%s9480_s3 + $0x1e4] sm:$0xf] }
 0x1c0   :  { %3661 = vmatpush.bf16.msra.mxu2 %v5722_v60 }
 0x1c1   :  { %v3011_v39 = vadd.f32 %v3010_v29, %v2998_v4  ;;  %v5791_v29 = vld [vmem:[%s9480_s3 + $0x1e8] sm:$0xf0] }
 0x1c2   :  { %3640 = vmatpush.bf16.msrb.mxu0 %v5554_v15  ;;  %v2973_v36 = vpop.f32.mrf.mxu3  ;;  %v3036_v47 = vpop.f32.mrf.mxu0  ;;  %v5758_v15 = vor.u32 %v6338_v50, %v5757_v8  ;;  %v5794_v38 = vor.u32 %v6345_v48, %v5791_v29  ;;  %v3257_v50 = vperm.slane %v3255_v13, 0  ;;  %v6354_v48 = vld [vmem:[%s9482_s5 + $0x28] sm:$0xff] }
 0x1c3   :  { %3649 = vmatpush.bf16.msra.mxu1 %v5650_v9  ;;  %v3185_v40 = vmax.f32 %v3011_v39, 0.0 }
 0x1c4   :  { %3662 = vmatpush.bf16.msra.mxu2 %v5714_v14  ;;  %v3012_v6 = vpop.f32.mrf.mxu2 }
 0x1c5   :  { %3641 = vmatmul.bf16.vlgmr.msrb.gmra.mxu0 %v9124_v2  ;;  %v6301_v2 = vld [vmem:[%s9480_s3 + $0x84] sm:$0xf]  ;;  %v3189_v45 = vpack.c.bf16 %v3185_v40, %v3185_v40 }
 0x1c6   :  { %v5618_v43 = vor.u32 %v6301_v2, %v5615_v56  ;;  %v5783_v2 = vld [vmem:[%s9480_s3 + $0x1d8] sm:$0xf0] }
 0x1c7   :  { %3650 = vmatpush.bf16.msra.mxu1 %v5642_v17  ;;  %3615 = vmatmul.bf16.vlgmr.msrb.gmra.mxu2 %v3189_v45  ;;  %v6336_v17 = vld [vmem:[%s9480_s3 + $0x194] sm:$0xf0] }
 0x1c8   :  { %3663 = vmatpush.bf16.msra.mxu2 %v5706_v22  ;;  %v5750_v49 = vor.u32 %v6336_v17, %v5749_v12  ;;  %v5741_v22 = vld [vmem:[%s9480_s3 + $0x180] sm:$0xf] }
 0x1c9   :  { %v5742_v44 = vor.u32 %v6334_v30, %v5741_v22  ;;  %v3258_v22 = vperm.slane %v3255_v13, 1  ;;  %v16_v13 = vstv %s9487_s10 }
 0x1ca   :  { %v3038_v16 = vpop.f32.mrf.mxu0  ;;  %17 = vst [vmem:[#allocation2] sm:$0x1] %v16_v13 }
 0x1cb   :  { %3651 = vmatpush.bf16.msra.mxu1 %v5634_v41  ;;  %v5799_v41 = vld [vmem:[%s9480_s3 + $0x1f8] sm:$0xf0]  ;;  %v5759_v16 = vld [vmem:[%s9480_s3 + $0x1a8] sm:$0xf0] }
 0x1cc   :  { %3664 = vmatpush.bf16.msra.mxu2 %v5698_v31  ;;  %v5802_v61 = vor.u32 %v6347_v25, %v5799_v41  ;;  %v6363_v25 = vld [vmem:[%s9482_s5 + $0x70] sm:$0xff] }
 0x1cf   :  { %3652 = vmatpush.bf16.msra.mxu1 %v5626_v26  ;;  %v6343_v26 = vld [vmem:[%s9480_s3 + $0x1d4] sm:$0xf] }
 0x1d0   :  { %3665 = vmatpush.bf16.msra.mxu2 %v5690_v21  ;;  %v5786_v56 = vor.u32 %v6343_v26, %v5783_v2  ;;  %v6341_v21 = vld [vmem:[%s9480_s3 + $0x1c4] sm:$0xf]  ;;  %v6351_v26 = vld [vmem:[%s9482_s5 + $0x10] sm:$0xff] }
 0x1d1   :  { %v5778_v35 = vor.u32 %v6341_v21, %v5775_v42  ;;  %v6350_v21 = vld [vmem:[%s9482_s5 + $0x8] sm:$0xff] }
 0x1d2   :  { %v6362_v42 = vld [vmem:[%s9482_s5 + $0x68] sm:$0xff] }
 0x1d3   :  { %3653 = vmatpush.bf16.msra.mxu1 %v5618_v43  ;;  %v3049_v51 = vpop.f32.mrf.mxu1  ;;  %v6339_v43 = vld [vmem:[%s9480_s3 + $0x1b4] sm:$0xf] }
 0x1d4   :  { %3666 = vmatpush.bf16.msra.mxu2 %v5682_v46 }
 0x1d6   :  { %3654 = vmatmul.bf16.vlgmr.msra.gmra.mxu1 %v9201_v37  ;;  %v5789_v37 = vld [vmem:[%s9480_s3 + $0x1e0] sm:$0xf] }
 0x1d7   :  { %3667 = vmatmul.bf16.vlgmr.msra.gmra.mxu2 %v3189_v45  ;;  %v5790_v18 = vor.u32 %v6346_v63, %v5789_v37  ;;  %v5767_v45 = vld [vmem:[%s9480_s3 + $0x1b8] sm:$0xf0]  ;;  %v6333_v37 = vld [vmem:[%s9480_s3 + $0x184] sm:$0xf]  ;;  %v5743_v63 = vld [vmem:[%s9480_s3 + $0x188] sm:$0xf0] }
 0x1d8   :  { %v5770_v46 = vor.u32 %v6339_v43, %v5767_v45  ;;  %v5746_v0 = vor.u32 %v6333_v37, %v5743_v63  ;;  %v6359_v43 = vld [vmem:[%s9482_s5 + $0x50] sm:$0xff]  ;;  %v6358_v45 = vld [vmem:[%s9482_s5 + $0x48] sm:$0xff]  ;;  %v6368_v37 = vld [vmem:[%s9485_s7 + $0x18] sm:$0xff] }
 0x1d9   :  { %3621 = vmatpush.bf16.msra.mxu3 %v5790_v18  ;;  %3892 = vmatpush.bf16.msrb.mxu2 %v6368_v37  ;;  %v6367_v63 = vld [vmem:[%s9485_s7 + $0x10] sm:$0xff] }
 0x1da   :  { %v3023_v52 = vpop.f32.mrf.mxu3 }
 0x1db   :  { %v3051_v59 = vpop.f32.mrf.mxu1  ;;  %v3024_v34 = vadd.f32 %v3023_v52, %v453_v28 }
 0x1dc   :  { %v3062_v62 = vpop.f32.mrf.mxu2  ;;  %v5754_v59 = vor.u32 %v6335_v55, %v5751_v57 }
 0x1dd   :  { %3622 = vmatpush.bf16.msra.mxu3 %v5782_v5  ;;  %v3037_v27 = vadd.f32 %v3036_v47, %v3024_v34  ;;  %v6337_v47 = vld [vmem:[%s9480_s3 + $0x1a4] sm:$0xf]  ;;  %3893 = vmatpush.bf16.msrb.mxu2 %v6367_v63 }
 0x1df   :  { %v3050_v33 = vadd.f32 %v3049_v51, %v3037_v27  ;;  %v5762_v51 = vor.u32 %v6337_v47, %v5759_v16 }
 0x1e1   :  { %3623 = vmatpush.bf16.msra.mxu3 %v5774_v10  ;;  %v3063_v39 = vadd.f32 %v3062_v62, %v3050_v33 }
 0x1e2   :  { %v3025_v60 = vpop.f32.mrf.mxu3  ;;  %v3088_v7 = vpop.f32.mrf.mxu0 }
 0x1e4   :  { %v3064_v9 = vpop.f32.mrf.mxu2 }
 0x1e5   :  { %3624 = vmatpush.bf16.msra.mxu3 %v5766_v32 }
 0x1e9   :  { %3625 = vmatpush.bf16.msra.mxu3 %v5758_v15 }
 0x1ea   :  { %v3090_v14 = vpop.f32.mrf.mxu0 }
 0x1ed   :  { %3626 = vmatpush.bf16.msra.mxu3 %v5750_v49 }
 0x1f1   :  { %3627 = vmatpush.bf16.msra.mxu3 %v5742_v44  ;;  %v6355_v44 = vld [vmem:[%s9482_s5 + $0x30] sm:$0xff] }
 0x1f3   :  { %v3101_v58 = vpop.f32.mrf.mxu1 }
 0x1f5   :  { %3672 = vmatpush.bf16.msrb.mxu3 %v5802_v61 }
 0x1f9   :  { %3673 = vmatpush.bf16.msrb.mxu3 %v5794_v38  ;;  %v6353_v38 = vld [vmem:[%s9482_s5 + $0x20] sm:$0xff] }
 0x1fa   :  { %v3075_v19 = vpop.f32.mrf.mxu3 }
 0x1fb   :  { %v3103_v23 = vpop.f32.mrf.mxu1  ;;  %v3076_v36 = vadd.f32 %v3075_v19, %v3063_v39 }
 0x1fc   :  { %v3114_v24 = vpop.f32.mrf.mxu2  ;;  %v6364_v23 = vld [vmem:[%s9482_s5 + $0x78] sm:$0xff] }
 0x1fd   :  { %3674 = vmatpush.bf16.msrb.mxu3 %v5786_v56  ;;  %v3089_v6 = vadd.f32 %v3088_v7, %v3076_v36  ;;  %3834 = vmatpush.bf16.msrb.mxu1 %v6364_v23  ;;  %v6361_v36 = vld [vmem:[%s9482_s5 + $0x60] sm:$0xff] }
 0x1ff   :  { %v3102_v53 = vadd.f32 %v3101_v58, %v3089_v6 }
 0x201   :  { %3675 = vmatpush.bf16.msrb.mxu3 %v5778_v35  ;;  %v3115_v18 = vadd.f32 %v3114_v24, %v3102_v53  ;;  %v6356_v24 = vld [vmem:[%s9482_s5 + $0x38] sm:$0xff]  ;;  %3835 = vmatpush.bf16.msrb.mxu1 %v6363_v25  ;;  %v6349_v35 = vld [vmem:[%s9482_s5] sm:$0xff] }
 0x202   :  { %v3077_v31 = vpop.f32.mrf.mxu3  ;;  %v3140_v20 = vpop.f32.mrf.mxu0  ;;  %3821 = vmatpush.bf16.msra.mxu0 %v6356_v24 }
 0x204   :  { %v3116_v4 = vpop.f32.mrf.mxu2 }
 0x205   :  { %3676 = vmatpush.bf16.msrb.mxu3 %v5770_v46  ;;  %3836 = vmatpush.bf16.msrb.mxu1 %v6362_v42  ;;  %v6357_v46 = vld [vmem:[%s9482_s5 + $0x40] sm:$0xff] }
 0x206   :  { %3822 = vmatpush.bf16.msra.mxu0 %v6355_v44 }
 0x209   :  { %3677 = vmatpush.bf16.msrb.mxu3 %v5762_v51  ;;  %3837 = vmatpush.bf16.msrb.mxu1 %v6361_v36 }
 0x20a   :  { %v3142_v40 = vpop.f32.mrf.mxu0  ;;  %3823 = vmatpush.bf16.msra.mxu0 %v6354_v48 }
 0x20b   :  { %v6360_v40 = vld [vmem:[%s9482_s5 + $0x58] sm:$0xff] }
 0x20d   :  { %3678 = vmatpush.bf16.msrb.mxu3 %v5754_v59  ;;  %3838 = vmatpush.bf16.msrb.mxu1 %v6360_v40 }
 0x20e   :  { %3824 = vmatpush.bf16.msra.mxu0 %v6353_v38 }
 0x211   :  { %3679 = vmatpush.bf16.msrb.mxu3 %v5746_v0  ;;  %3839 = vmatpush.bf16.msrb.mxu1 %v6359_v43  ;;  %v6365_v0 = vld [vmem:[%s9485_s7] sm:$0xff] }
 0x213   :  { %v3153_v52 = vpop.f32.mrf.mxu1 }
 0x215   :  { %3840 = vmatpush.bf16.msrb.mxu1 %v6358_v45 }
 0x219   :  { %3841 = vmatpush.bf16.msrb.mxu1 %v6357_v46 }
 0x21a   :  { %v3127_v62 = vpop.f32.mrf.mxu3 }
 0x21b   :  { %v3128_v3 = vadd.f32 %v3127_v62, %v3115_v18  ;;  %v3155_v60 = vpop.f32.mrf.mxu1  ;;  %v6366_v18 = vld [vmem:[%s9485_s7 + $0x8] sm:$0xff] }
 0x21c   :  { %v3166_v5 = vpop.f32.mrf.mxu2  ;;  %3894 = vmatpush.bf16.msrb.mxu2 %v6366_v18 }
 0x21d   :  { %v3141_v54 = vadd.f32 %v3140_v20, %v3128_v3  ;;  %v6352_v20 = vld [vmem:[%s9482_s5 + $0x18] sm:$0xff] }
 0x21e   :  { %3825 = vmatpush.bf16.msra.mxu0 %v6352_v20 }
 0x21f   :  { %v3154_v7 = vadd.f32 %v3153_v52, %v3141_v54 }
 0x220   :  { %3895 = vmatpush.bf16.msrb.mxu2 %v6365_v0 }
 0x221   :  { %v3167_v11 = vadd.f32 %v3166_v5, %v3154_v7  ;;  %v6369_v5 = vld [vmem:[%s9483_s6] ss:$0 sm:$0xff] }
 0x222   :  { %v3129_v1 = vpop.f32.mrf.mxu3  ;;  %v3590_v9 = vpop.f32.mrf.mxu0  ;;  %3826 = vmatpush.bf16.msra.mxu0 %v6351_v26 }
 0x223   :  { %v3591_v28 = vadd.f32 %v3590_v9, %v3257_v50 }
 0x224   :  { %v3168_v10 = vpop.f32.mrf.mxu2 }
 0x226   :  { %3827 = vmatpush.bf16.msra.mxu0 %v6350_v21 }
 0x22a   :  { %v3179_v32 = vpop.f32.mrf.mxu3  ;;  %v3592_v15 = vpop.f32.mrf.mxu0  ;;  %3828 = vmatpush.bf16.msra.mxu0 %v6349_v35 }
 0x22b   :  { %v3180_v8 = vadd.f32 %v3179_v32, %v3167_v11  ;;  %v6370_v32 = vld [vmem:[%s9484_s8] ss:$0 sm:$0xff] }
 0x22d   :  { %v3186_v14 = vmax.f32 %v3180_v8, 0.0 }
 0x22f   :  { %v3190_v58 = vpack.c.bf16 %v3186_v14, %v3186_v14 }
 0x231   :  { %3628 = vmatmul.bf16.vlgmr.msra.gmra.mxu3 %v3190_v58 }
 0x232   :  { %v3181_v17 = vpop.f32.mrf.mxu3 }
 0x233   :  { %v3603_v12 = vpop.f32.mrf.mxu1 }
 0x234   :  { %v3604_v49 = vadd.f32 %v3603_v12, %v3591_v28 }
 0x23b   :  { %v3605_v19 = vpop.f32.mrf.mxu1 }
 0x23c   :  { %v6372_v19 = vld [vmem:[#allocation2] ss:$0 sm:$0xff] }
 0x241   :  { %3680 = vmatmul.bf16.vlgmr.msrb.gmra.mxu3 %v3190_v58  ;;  %v6371_v58 = vld [vmem:[%s9486_s9] ss:$0 sm:$0xff] }
 0x242   :  { %v3642_v34 = vpop.f32.mrf.mxu0 }
 0x243   :  { %v3643_v41 = vadd.f32 %v3642_v34, %v3258_v22 }
 0x24a   :  { %v3644_v30 = vpop.f32.mrf.mxu0  ;;  %v3616_v29 = vpop.f32.mrf.mxu2 }
 0x24b   :  { %v3617_v31 = vadd.f32 %v3616_v29, %v3604_v49 }
 0x252   :  { %v3618_v4 = vpop.f32.mrf.mxu2 }
 0x253   :  { %v3655_v61 = vpop.f32.mrf.mxu1 }
 0x254   :  { %v3656_v27 = vadd.f32 %v3655_v61, %v3643_v41 }
 0x25a   :  { %v3668_v2 = vpop.f32.mrf.mxu2 }
 0x25b   :  { %v3657_v33 = vpop.f32.mrf.mxu1  ;;  %v3669_v56 = vadd.f32 %v3668_v2, %v3656_v27 }
 0x262   :  { %v3670_v39 = vpop.f32.mrf.mxu2 }
 0x2b4   :  { %v3629_v6 = vpop.f32.mrf.mxu3 }
 0x2b5   :  { %v3630_v47 = vadd.f32 %v3629_v6, %v3617_v31 }
 0x2b7   :  { %v3685_v16 = vmax.f32 %v3630_v47, 0.0 }
 0x2b9   :  { %v3687_v51 = vpack.c.bf16 %v3685_v16, %v3685_v16 }
 0x2bb   :  { %3829 = vmatmul.bf16.vlgmr.msra.gmra.mxu0 %v3687_v51 }
 0x2bc   :  { %v3631_v52 = vpop.f32.mrf.mxu3 }
 0x2c4   :  { %v3681_v53 = vpop.f32.mrf.mxu3 }
 0x2c5   :  { %v3682_v55 = vadd.f32 %v3681_v53, %v3669_v56 }
 0x2c7   :  { %v3686_v57 = vmax.f32 %v3682_v55, 0.0 }
 0x2c9   :  { %v3688_v59 = vpack.c.bf16 %v3686_v57, %v3686_v57 }
 0x2cb   :  { %3842 = vmatmul.bf16.vlgmr.msrb.gmra.mxu1 %v3688_v59 }
 0x2cc   :  { %v3683_v62 = vpop.f32.mrf.mxu3 }
 0x338   :  { %v3830_v3 = vpop.f32.mrf.mxu0 }
 0x339   :  { %v3831_v54 = vadd.f32 %v6369_v5, %v3830_v3 }
 0x340   :  { %v3832_v60 = vpop.f32.mrf.mxu0 }
 0x348   :  { %v3843_v1 = vpop.f32.mrf.mxu1 }
 0x349   :  { %v3844_v7 = vadd.f32 %v3843_v1, %v3831_v54 }
 0x34b   :  { %v3847_v9 = vmax.f32 %v3844_v7, 0.0 }
 0x34d   :  { %v3848_v10 = vpack.c.bf16 %v3847_v9, %v3847_v9 }
 0x34f   :  { %5883 = vmatmul.msk.bf16.vlgmr.msrb.gmra.mxu2 %vm2503_vm0, %v3848_v10 }
 0x350   :  { %v3845_v11 = vpop.f32.mrf.mxu1 }
 0x3d2   :  { %v3897_v8 = vpop.f32.mrf.mxu2 }
 0x3d3   :  { %v3898_v50 = vadd.f32 %v6370_v32, %v3897_v8 }
 0x3d5   :  { %v3901_v14 = vmax.f32 %v3898_v50, 0.0 }
 0x3d7   :  { %v3902_v15 = vpack.c.bf16 %v3901_v14, %v3901_v14 }
 0x3d9   :  { %v3903_v28 = vunpack.c.l.bf16 %v3902_v15 }
 0x3da   :  { %v3899_v12 = vpop.f32.mrf.mxu2 }
 0x3db   :  { %v3908_v17 = vmul.f32 %v6371_v58, %v3903_v28 }
 0x3dd   :  { %v3910_v49 = vsel %vm3909_vm1, %v3908_v17, 0.0 }
 0x3de   :  { %3911 = vadd.xlane.f32.xlu0 %v3910_v49 }
 0x451   :  { %v3912_v34 = vpop.xlane.xlu0 %3911 }
 0x452   :  { %v3917_v22 = vadd.f32 %v6372_v19, %v3912_v34 }
 0x454   :  { %v5884_v30 = vmul.f32 -1.442695, %v3917_v22 }
 0x456   :  { %6373 = vpow2.f32 %v5884_v30 }
 0x45c   :  { %v6374_v24 = vpop.eup %6373 }
 0x45d   :  { %v3921_v23 = vadd.f32 1.0, %v6374_v24 }
 0x45f   :  { %6375 = vrcp.f32 %v3921_v23  ;;  %v3933_v61 = vand.u32 2147483648, %v3921_v23  ;;  %v3931_v48 = vand.u32 2147483647, %v3921_v23  ;;  %vm3927_vm3 = vweird.f32 %v3921_v23 }
 0x461   :  { %v3934_v31 = vor.u32 1.1754944e-38, %v3933_v61  ;;  %vm3932_vm6 = vcmp.eq.f32.partialorder %v3931_v48, 8.507059e+37 }
 0x465   :  { %v6376_v44 = vpop.eup %6375 }
 0x466   :  { %v3923_v25 = vmul.f32 %v6376_v44, %v3921_v23  ;;  %vm3928_vm2 = vweird.f32 %v6376_v44 }
 0x467   :  { %vm3929_vm4 = vmor %vm3927_vm3, %vm3928_vm2 }
 0x468   :  { %v3924_v41 = vsub.f32 1.0, %v3923_v25 }
 0x46a   :  { %v3925_v27 = vmul.f32 %v6376_v44, %v3924_v41 }
 0x46c   :  { %v3926_v29 = vadd.f32 %v6376_v44, %v3925_v27 }
 0x46e   :  { %v3930_v38 = vsel %vm3929_vm4, %v6376_v44, %v3926_v29 }
 0x46f   :  { %v3935_v33 = vsel %vm3932_vm6, %v3934_v31, %v3930_v38 }
 0x470   :  { %3938 = vst.msk [vmem:[%s9488_s11] sm:$0xff] %vm3937_vm5, %v3935_v33 }

</bundles_post_ra>
